<compile_context>
chip_gen: v6e
topology: v6e:2x2x1
jax: 0.10.0
libtpu: 0.0.40
codegen_flags: <defaults>
</compile_context>

<pallas_src>
import jax
import jax.numpy as jnp
from jax.experimental import pallas as pl
from jax.experimental.pallas import tpu as pltpu


# ----------------------------------------------------------------------------
# Pallas kernels
# ----------------------------------------------------------------------------
def _matmul_kernel(x_ref, w_ref, o_ref):
    # (tm, Cin) @ (Cin, Ncol) -> (tm, Ncol); bf16 MXU inputs, f32 accumulation.
    o_ref[...] = jnp.dot(x_ref[...].astype(jnp.bfloat16), w_ref[...],
                         preferred_element_type=jnp.float32)


def _bn_relu_matmul_kernel(x_ref, scale_ref, shift_ref, w_ref, o_ref):
    # Fused BatchNorm apply (per-channel scale/shift) + ReLU prologue, then
    # the transposed-conv matmul on the MXU.
    x = jnp.maximum(x_ref[...] * scale_ref[...] + shift_ref[...], 0.0)
    o_ref[...] = jnp.dot(x.astype(jnp.bfloat16), w_ref[...],
                         preferred_element_type=jnp.float32)


def _colsum_kernel(x_ref, s_ref, ss_ref):
    # lane-dense (R, 128) -> per-lane sum and sum-of-squares (f32).
    x = x_ref[...]
    s_ref[...] = jnp.sum(x, axis=0, keepdims=True)
    ss_ref[...] = jnp.sum(x * x, axis=0, keepdims=True)


def _tanh_kernel(x_ref, o_ref):
    o_ref[...] = jnp.tanh(x_ref[...])


# ----------------------------------------------------------------------------
# Pallas wrappers
# ----------------------------------------------------------------------------
def _matmul_call(x2d, wm_bf16, scale=None, shift=None, *, tm_max=4096):
    """x2d (M, Cin) [f32] @ wm_bf16 (Cin, Ncol) [bf16] -> (M, Ncol) [f32].
    If scale/shift are given, applies relu(x*scale+shift) per-channel first."""
    M, Cin = x2d.shape
    Ncol = wm_bf16.shape[1]
    if M <= tm_max:
        tm = M
    else:
        assert M % tm_max == 0, (M, tm_max)
        tm = tm_max

    x_spec = pl.BlockSpec((tm, Cin), lambda i: (i, 0))
    w_spec = pl.BlockSpec((Cin, Ncol), lambda i: (0, 0))
    o_spec = pl.BlockSpec((tm, Ncol), lambda i: (i, 0))

    if scale is None:
        kernel = _matmul_kernel
        in_specs = [x_spec, w_spec]
        args = (x2d, wm_bf16)
    else:
        ss_spec = pl.BlockSpec((1, Cin), lambda i: (0, 0))
        kernel = _bn_relu_matmul_kernel
        in_specs = [x_spec, ss_spec, ss_spec, w_spec]
        args = (x2d, scale, shift, wm_bf16)

    return pl.pallas_call(
        kernel,
        out_shape=jax.ShapeDtypeStruct((M, Ncol), jnp.float32),
        grid=(M // tm,),
        in_specs=in_specs,
        out_specs=o_spec,
        compiler_params=pltpu.CompilerParams(
            dimension_semantics=("parallel",)),
    )(*args)


def bn_scale_shift(o_nhwc, eps=1e-5):
    """Training-mode BatchNorm2d(gamma=1, beta=0) folded into per-channel
    scale/shift.  Reduction runs as a Pallas lane-dense column-sum kernel."""
    N, H, W, C = o_nhwc.shape
    total = N * H * W * C
    assert total % 128 == 0 and 128 % C == 0, (total, C)
    flat = o_nhwc.reshape(total // 128, 128)            # lane index % C == channel
    col_s, col_ss = pl.pallas_call(
        _colsum_kernel,
        out_shape=(jax.ShapeDtypeStruct((1, 128), jnp.float32),
                   jax.ShapeDtypeStruct((1, 128), jnp.float32)),
        in_specs=[pl.BlockSpec(memory_space=pltpu.MemorySpace.VMEM)],
        out_specs=(pl.BlockSpec(memory_space=pltpu.MemorySpace.VMEM),
                   pl.BlockSpec(memory_space=pltpu.MemorySpace.VMEM)),
    )(flat)
    # tiny glue on 128-element vectors: fold lanes back onto C channels
    cnt = float(N * H * W)
    ch_sum = col_s.reshape(128 // C, C).sum(axis=0)
    ch_sumsq = col_ss.reshape(128 // C, C).sum(axis=0)
    mean = ch_sum / cnt
    var = jnp.maximum(ch_sumsq / cnt - mean * mean, 0.0)   # biased (training) var
    scale = jax.lax.rsqrt(var + eps)
    shift = -mean * scale
    return scale.reshape(1, C), shift.reshape(1, C)


def pallas_tanh(x_nhwc):
    """Elementwise tanh on a lane-dense (total/128, 128) view, row-tiled."""
    shape = x_nhwc.shape
    total = x_nhwc.size
    assert total % 128 == 0
    R = total // 128
    flat = x_nhwc.reshape(R, 128)
    tr = R
    for cand in (1024, 512, 384, 256, 128, 64, 32, 16, 8):
        if R > cand and R % cand == 0:
            tr = cand
            break
    out = pl.pallas_call(
        _tanh_kernel,
        out_shape=jax.ShapeDtypeStruct((R, 128), jnp.float32),
        grid=(R // tr,),
        in_specs=[pl.BlockSpec((tr, 128), lambda i: (i, 0))],
        out_specs=pl.BlockSpec((tr, 128), lambda i: (i, 0)),
        compiler_params=pltpu.CompilerParams(
            dimension_semantics=("parallel",)),
    )(flat)
    return out.reshape(shape)


# ----------------------------------------------------------------------------
# ConvTranspose2d = input-side matmul (Pallas) + dense col2im overlap-add (glue)
# ----------------------------------------------------------------------------
def _weight_to_matrix(w_t):
    """PyTorch ConvTranspose2d weight (Cin, Cout, K, K) -> (Cin, K*K*Cout) bf16,
    columns ordered (ky, kx, cout), zero-padded up to a multiple of 128 lanes."""
    Cin, Cout, K, _ = w_t.shape
    ncol = K * K * Cout
    wm = jnp.transpose(w_t, (0, 2, 3, 1)).reshape(Cin, ncol)
    ncol_pad = ((ncol + 127) // 128) * 128
    if ncol_pad != ncol:
        wm = jnp.pad(wm, ((0, 0), (0, ncol_pad - ncol)))
    return wm.astype(jnp.bfloat16), ncol


def _col2im(y, N, H, W, K, C, stride, padding):
    """Overlap-add of per-input-pixel (K,K,C) patches -> (N, Ho, Wo, C).
    Pure dense pad/add/stack/reshape glue: no scatter, no zero-dilated slab."""
    s = stride
    assert K % s == 0
    T = K // s
    y6 = y.reshape(N, H, W, K, K, C)

    # rows: fold (H, ky) -> Hf = (H-1)*s + K   (per-residue shifted sums)
    Mr = H + T - 1
    rows = []
    for r in range(s):
        acc = None
        for t in range(T):
            piece = y6[:, :, :, r + t * s, :, :]                 # (N, H, W, K, C)
            piece = jnp.pad(piece,
                            ((0, 0), (t, Mr - H - t), (0, 0), (0, 0), (0, 0)))
            acc = piece if acc is None else acc + piece
        rows.append(acc)
    z = jnp.stack(rows, axis=2).reshape(N, Mr * s, W, K, C)      # (N, Hf, W, K, C)
    Hf = Mr * s

    # cols: fold (W, kx) -> Wf = (W-1)*s + K
    Mc = W + T - 1
    cols = []
    for r in range(s):
        acc = None
        for t in range(T):
            piece = z[:, :, :, r + t * s, :]                     # (N, Hf, W, C)
            piece = jnp.pad(piece, ((0, 0), (0, 0), (t, Mc - W - t), (0, 0)))
            acc = piece if acc is None else acc + piece
        cols.append(acc)
    full = jnp.stack(cols, axis=3).reshape(N, Hf, Mc * s, C)     # (N, Hf, Wf, C)
    Wf = Mc * s

    return full[:, padding:Hf - padding, padding:Wf - padding, :]


def conv_transpose_layer(x_nhwc, w_t, *, stride, padding, scale=None, shift=None):
    """ConvTranspose2d(bias=False); if scale/shift are given, the preceding
    BatchNorm-apply + ReLU is fused into the matmul kernel's prologue."""
    N, H, W, Cin = x_nhwc.shape
    _, Cout, K, _ = w_t.shape
    wm, ncol = _weight_to_matrix(w_t)
    y = _matmul_call(x_nhwc.reshape(N * H * W, Cin), wm, scale, shift)
    if y.shape[1] != ncol:
        y = y[:, :ncol]                    # drop lane padding (last layer only)
    return _col2im(y, N, H, W, K, Cout, stride, padding)


# ----------------------------------------------------------------------------
# Generator forward
# ----------------------------------------------------------------------------
def init_generator_params(key, latent_dim, width, n_channels):
    dims = [
        (latent_dim, width * 8),   # conv1: stride 1, pad 0
        (width * 8, width * 4),    # conv2
        (width * 4, width * 2),    # conv3
        (width * 2, width),        # conv4
        (width, width),            # conv5
        (width, n_channels),       # conv6
    ]
    keys = jax.random.split(key, len(dims))
    return [0.05 * jax.random.normal(k, (cin, cout, 4, 4), jnp.float32)
            for k, (cin, cout) in zip(keys, dims)]


@jax.jit
def generator_forward(x_nchw, params):
    w1, w2, w3, w4, w5, w6 = params
    x = jnp.transpose(x_nchw, (0, 2, 3, 1))                  # NCHW -> NHWC (once)

    o = conv_transpose_layer(x, w1, stride=1, padding=0)     # conv1 (no BN before)
    for w in (w2, w3, w4, w5, w6):                           # conv2 .. conv6
        scale, shift = bn_scale_shift(o)                     # batch-norm stats
        o = conv_transpose_layer(o, w, stride=2, padding=1,  # bn+relu fused into
                                 scale=scale, shift=shift)   # the conv's matmul
    o = pallas_tanh(o)                                       # tanh
    return jnp.transpose(o, (0, 3, 1, 2))                    # NHWC -> NCHW (once)


# ----------------------------------------------------------------------------
if __name__ == "__main__":
    latent_dim, width, n_channels, batch = 16, 8, 3, 2

    key = jax.random.PRNGKey(0)
    k_par, k_in = jax.random.split(key)
    params = init_generator_params(k_par, latent_dim, width, n_channels)
    x = jax.random.normal(k_in, (batch, latent_dim, 1, 1), jnp.float32)

    out = generator_forward(x, params)
    jax.block_until_ready(out)

    assert out.shape == (batch, n_channels, 128, 128), out.shape
    assert bool(jnp.all(jnp.isfinite(out)))
    print("KERNEL_OK")
</pallas_src>

<mosaic_0001>
module attributes {stable_mosaic.version = 11 : i64} {
  func.func @_matmul_kernel(%arg0: i32, %arg1: memref<2x16xf32, #tpu.memory_space<vmem>>, %arg2: memref<16x1024xbf16, #tpu.memory_space<vmem>>, %arg3: memref<2x1024xf32, #tpu.memory_space<vmem>>) attributes {dimension_semantics = [#tpu.dimension_semantics<parallel>], iteration_bounds = array<i64: 1>, scalar_prefetch = 0 : i64, scratch_operands = 0 : i64, tpu.core_type = #tpu.core_type<tc>, window_params = [{transform_indices = @transform_0, window_bounds = array<i64: 2, 16>}, {pipeline_mode = #tpu.pipeline_mode<synchronous>, transform_indices = @transform_1, window_bounds = array<i64: 16, 1024>}, {transform_indices = @transform_2, window_bounds = array<i64: 2, 1024>}]} {
    %c0 = arith.constant 0 : index
    %c0_0 = arith.constant 0 : index
    %0 = vector.load %arg1[%c0, %c0_0] : memref<2x16xf32, #tpu.memory_space<vmem>>, vector<2x16xf32>
    %1 = arith.truncf %0 : vector<2x16xf32> to vector<2x16xbf16>
    %c0_1 = arith.constant 0 : index
    %c0_2 = arith.constant 0 : index
    %2 = vector.load %arg2[%c0_1, %c0_2] : memref<16x1024xbf16, #tpu.memory_space<vmem>>, vector<16x1024xbf16>
    %cst = arith.constant dense<0.000000e+00> : vector<2x1024xf32>
    %3 = tpu.matmul %1, %2, %cst {dimension_numbers = #tpu.dot_dimension_numbers<[1], [0], [0], [1], [0, 0, 1, 1], [], []>} : vector<2x16xbf16>, vector<16x1024xbf16>, vector<2x1024xf32> -> vector<2x1024xf32>
    %c0_3 = arith.constant 0 : index
    %c0_4 = arith.constant 0 : index
    %4 = vector.load %arg3[%c0_3, %c0_4] : memref<2x1024xf32, #tpu.memory_space<vmem>>, vector<2x1024xf32>
    tpu.vector_store %arg3[%c0_3, %c0_4], %3 {strides = array<i32>} : memref<2x1024xf32, #tpu.memory_space<vmem>>, vector<2x1024xf32>,
    return
  }
  func.func @transform_0(%arg0: i32) -> (i32, i32) {
    %c0_i32 = arith.constant 0 : i32
    %c0_i32_0 = arith.constant 0 : i32
    return %arg0, %c0_i32 : i32, i32
  }
  func.func @transform_1(%arg0: i32) -> (i32, i32) {
    %c0_i32 = arith.constant 0 : i32
    %c0_i32_0 = arith.constant 0 : i32
    %c0_i32_1 = arith.constant 0 : i32
    return %c0_i32, %c0_i32_0 : i32, i32
  }
  func.func @transform_2(%arg0: i32) -> (i32, i32) {
    %c0_i32 = arith.constant 0 : i32
    %c0_i32_0 = arith.constant 0 : i32
    return %arg0, %c0_i32 : i32, i32
  }
}

module attributes {stable_mosaic.version = 11 : i64} {
  func.func @_colsum_kernel(%arg0: memref<16x128xf32, #tpu.memory_space<vmem>>, %arg1: memref<1x128xf32, #tpu.memory_space<vmem>>, %arg2: memref<1x128xf32, #tpu.memory_space<vmem>>) attributes {dimension_semantics = [], scalar_prefetch = 0 : i64, scratch_operands = 0 : i64, tpu.core_type = #tpu.core_type<tc>} {
    %c0 = arith.constant 0 : index
    %c0_0 = arith.constant 0 : index
    %0 = vector.load %arg0[%c0, %c0_0] : memref<16x128xf32, #tpu.memory_space<vmem>>, vector<16x128xf32>
    %cst = arith.constant dense<0.000000e+00> : vector<128xf32>
    %1 = vector.multi_reduction <add>, %0, %cst [0] : vector<16x128xf32> to vector<128xf32>
    %2 = vector.shape_cast %1 : vector<128xf32> to vector<1x128xf32>
    %c0_1 = arith.constant 0 : index
    %c0_2 = arith.constant 0 : index
    %3 = vector.load %arg1[%c0_1, %c0_2] : memref<1x128xf32, #tpu.memory_space<vmem>>, vector<1x128xf32>
    tpu.vector_store %arg1[%c0_1, %c0_2], %2 {strides = array<i32>} : memref<1x128xf32, #tpu.memory_space<vmem>>, vector<1x128xf32>,
    %4 = arith.mulf %0, %0 : vector<16x128xf32>
    %cst_3 = arith.constant dense<0.000000e+00> : vector<128xf32>
    %5 = vector.multi_reduction <add>, %4, %cst_3 [0] : vector<16x128xf32> to vector<128xf32>
    %6 = vector.shape_cast %5 : vector<128xf32> to vector<1x128xf32>
    %c0_4 = arith.constant 0 : index
    %c0_5 = arith.constant 0 : index
    %7 = vector.load %arg2[%c0_4, %c0_5] : memref<1x128xf32, #tpu.memory_space<vmem>>, vector<1x128xf32>
    tpu.vector_store %arg2[%c0_4, %c0_5], %6 {strides = array<i32>} : memref<1x128xf32, #tpu.memory_space<vmem>>, vector<1x128xf32>,
    return
  }
}

module attributes {stable_mosaic.version = 11 : i64} {
  func.func @_bn_relu_matmul_kernel(%arg0: i32, %arg1: memref<32x64xf32, #tpu.memory_space<vmem>>, %arg2: memref<1x64xf32, #tpu.memory_space<vmem>>, %arg3: memref<1x64xf32, #tpu.memory_space<vmem>>, %arg4: memref<64x512xbf16, #tpu.memory_space<vmem>>, %arg5: memref<32x512xf32, #tpu.memory_space<vmem>>) attributes {dimension_semantics = [#tpu.dimension_semantics<parallel>], iteration_bounds = array<i64: 1>, scalar_prefetch = 0 : i64, scratch_operands = 0 : i64, tpu.core_type = #tpu.core_type<tc>, window_params = [{transform_indices = @transform_0, window_bounds = array<i64: 32, 64>}, {pipeline_mode = #tpu.pipeline_mode<synchronous>, transform_indices = @transform_1, window_bounds = array<i64: 1, 64>}, {pipeline_mode = #tpu.pipeline_mode<synchronous>, transform_indices = @transform_2, window_bounds = array<i64: 1, 64>}, {pipeline_mode = #tpu.pipeline_mode<synchronous>, transform_indices = @transform_3, window_bounds = array<i64: 64, 512>}, {transform_indices = @transform_4, window_bounds = array<i64: 32, 512>}]} {
    %c0 = arith.constant 0 : index
    %c0_0 = arith.constant 0 : index
    %0 = vector.load %arg1[%c0, %c0_0] : memref<32x64xf32, #tpu.memory_space<vmem>>, vector<32x64xf32>
    %c0_1 = arith.constant 0 : index
    %c0_2 = arith.constant 0 : index
    %1 = vector.load %arg2[%c0_1, %c0_2] : memref<1x64xf32, #tpu.memory_space<vmem>>, vector<1x64xf32>
    %2 = vector.broadcast %1 : vector<1x64xf32> to vector<32x64xf32>
    %3 = arith.mulf %0, %2 : vector<32x64xf32>
    %c0_3 = arith.constant 0 : index
    %c0_4 = arith.constant 0 : index
    %4 = vector.load %arg3[%c0_3, %c0_4] : memref<1x64xf32, #tpu.memory_space<vmem>>, vector<1x64xf32>
    %5 = vector.broadcast %4 : vector<1x64xf32> to vector<32x64xf32>
    %6 = arith.addf %3, %5 : vector<32x64xf32>
    %cst = arith.constant 0.000000e+00 : f32
    %7 = vector.broadcast %cst : f32 to vector<32x64xf32>
    %8 = arith.maximumf %6, %7 : vector<32x64xf32>
    %9 = arith.truncf %8 : vector<32x64xf32> to vector<32x64xbf16>
    %c0_5 = arith.constant 0 : index
    %c0_6 = arith.constant 0 : index
    %10 = vector.load %arg4[%c0_5, %c0_6] : memref<64x512xbf16, #tpu.memory_space<vmem>>, vector<64x512xbf16>
    %cst_7 = arith.constant dense<0.000000e+00> : vector<32x512xf32>
    %11 = tpu.matmul %9, %10, %cst_7 {dimension_numbers = #tpu.dot_dimension_numbers<[1], [0], [0], [1], [0, 0, 1, 1], [], []>} : vector<32x64xbf16>, vector<64x512xbf16>, vector<32x512xf32> -> vector<32x512xf32>
    %c0_8 = arith.constant 0 : index
    %c0_9 = arith.constant 0 : index
    %12 = vector.load %arg5[%c0_8, %c0_9] : memref<32x512xf32, #tpu.memory_space<vmem>>, vector<32x512xf32>
    tpu.vector_store %arg5[%c0_8, %c0_9], %11 {strides = array<i32>} : memref<32x512xf32, #tpu.memory_space<vmem>>, vector<32x512xf32>,
    return
  }
  func.func @transform_0(%arg0: i32) -> (i32, i32) {
    %c0_i32 = arith.constant 0 : i32
    %c0_i32_0 = arith.constant 0 : i32
    return %arg0, %c0_i32 : i32, i32
  }
  func.func @transform_1(%arg0: i32) -> (i32, i32) {
    %c0_i32 = arith.constant 0 : i32
    %c0_i32_0 = arith.constant 0 : i32
    %c0_i32_1 = arith.constant 0 : i32
    return %c0_i32, %c0_i32_0 : i32, i32
  }
  func.func @transform_2(%arg0: i32) -> (i32, i32) {
    %c0_i32 = arith.constant 0 : i32
    %c0_i32_0 = arith.constant 0 : i32
    %c0_i32_1 = arith.constant 0 : i32
    return %c0_i32, %c0_i32_0 : i32, i32
  }
  func.func @transform_3(%arg0: i32) -> (i32, i32) {
    %c0_i32 = arith.constant 0 : i32
    %c0_i32_0 = arith.constant 0 : i32
    %c0_i32_1 = arith.constant 0 : i32
    return %c0_i32, %c0_i32_0 : i32, i32
  }
  func.func @transform_4(%arg0: i32) -> (i32, i32) {
    %c0_i32 = arith.constant 0 : i32
    %c0_i32_0 = arith.constant 0 : i32
    return %arg0, %c0_i32 : i32, i32
  }
}

module attributes {stable_mosaic.version = 11 : i64} {
  func.func @_colsum_kernel(%arg0: memref<32x128xf32, #tpu.memory_space<vmem>>, %arg1: memref<1x128xf32, #tpu.memory_space<vmem>>, %arg2: memref<1x128xf32, #tpu.memory_space<vmem>>) attributes {dimension_semantics = [], scalar_prefetch = 0 : i64, scratch_operands = 0 : i64, tpu.core_type = #tpu.core_type<tc>} {
    %c0 = arith.constant 0 : index
    %c0_0 = arith.constant 0 : index
    %0 = vector.load %arg0[%c0, %c0_0] : memref<32x128xf32, #tpu.memory_space<vmem>>, vector<32x128xf32>
    %cst = arith.constant dense<0.000000e+00> : vector<128xf32>
    %1 = vector.multi_reduction <add>, %0, %cst [0] : vector<32x128xf32> to vector<128xf32>
    %2 = vector.shape_cast %1 : vector<128xf32> to vector<1x128xf32>
    %c0_1 = arith.constant 0 : index
    %c0_2 = arith.constant 0 : index
    %3 = vector.load %arg1[%c0_1, %c0_2] : memref<1x128xf32, #tpu.memory_space<vmem>>, vector<1x128xf32>
    tpu.vector_store %arg1[%c0_1, %c0_2], %2 {strides = array<i32>} : memref<1x128xf32, #tpu.memory_space<vmem>>, vector<1x128xf32>,
    %4 = arith.mulf %0, %0 : vector<32x128xf32>
    %cst_3 = arith.constant dense<0.000000e+00> : vector<128xf32>
    %5 = vector.multi_reduction <add>, %4, %cst_3 [0] : vector<32x128xf32> to vector<128xf32>
    %6 = vector.shape_cast %5 : vector<128xf32> to vector<1x128xf32>
    %c0_4 = arith.constant 0 : index
    %c0_5 = arith.constant 0 : index
    %7 = vector.load %arg2[%c0_4, %c0_5] : memref<1x128xf32, #tpu.memory_space<vmem>>, vector<1x128xf32>
    tpu.vector_store %arg2[%c0_4, %c0_5], %6 {strides = array<i32>} : memref<1x128xf32, #tpu.memory_space<vmem>>, vector<1x128xf32>,
    return
  }
}

module attributes {stable_mosaic.version = 11 : i64} {
  func.func @_bn_relu_matmul_kernel(%arg0: i32, %arg1: memref<128x32xf32, #tpu.memory_space<vmem>>, %arg2: memref<1x32xf32, #tpu.memory_space<vmem>>, %arg3: memref<1x32xf32, #tpu.memory_space<vmem>>, %arg4: memref<32x256xbf16, #tpu.memory_space<vmem>>, %arg5: memref<128x256xf32, #tpu.memory_space<vmem>>) attributes {dimension_semantics = [#tpu.dimension_semantics<parallel>], iteration_bounds = array<i64: 1>, scalar_prefetch = 0 : i64, scratch_operands = 0 : i64, tpu.core_type = #tpu.core_type<tc>, window_params = [{transform_indices = @transform_0, window_bounds = array<i64: 128, 32>}, {pipeline_mode = #tpu.pipeline_mode<synchronous>, transform_indices = @transform_1, window_bounds = array<i64: 1, 32>}, {pipeline_mode = #tpu.pipeline_mode<synchronous>, transform_indices = @transform_2, window_bounds = array<i64: 1, 32>}, {pipeline_mode = #tpu.pipeline_mode<synchronous>, transform_indices = @transform_3, window_bounds = array<i64: 32, 256>}, {transform_indices = @transform_4, window_bounds = array<i64: 128, 256>}]} {
    %c0 = arith.constant 0 : index
    %c0_0 = arith.constant 0 : index
    %0 = vector.load %arg1[%c0, %c0_0] : memref<128x32xf32, #tpu.memory_space<vmem>>, vector<128x32xf32>
    %c0_1 = arith.constant 0 : index
    %c0_2 = arith.constant 0 : index
    %1 = vector.load %arg2[%c0_1, %c0_2] : memref<1x32xf32, #tpu.memory_space<vmem>>, vector<1x32xf32>
    %2 = vector.broadcast %1 : vector<1x32xf32> to vector<128x32xf32>
    %3 = arith.mulf %0, %2 : vector<128x32xf32>
    %c0_3 = arith.constant 0 : index
    %c0_4 = arith.constant 0 : index
    %4 = vector.load %arg3[%c0_3, %c0_4] : memref<1x32xf32, #tpu.memory_space<vmem>>, vector<1x32xf32>
    %5 = vector.broadcast %4 : vector<1x32xf32> to vector<128x32xf32>
    %6 = arith.addf %3, %5 : vector<128x32xf32>
    %cst = arith.constant 0.000000e+00 : f32
    %7 = vector.broadcast %cst : f32 to vector<128x32xf32>
    %8 = arith.maximumf %6, %7 : vector<128x32xf32>
    %9 = arith.truncf %8 : vector<128x32xf32> to vector<128x32xbf16>
    %c0_5 = arith.constant 0 : index
    %c0_6 = arith.constant 0 : index
    %10 = vector.load %arg4[%c0_5, %c0_6] : memref<32x256xbf16, #tpu.memory_space<vmem>>, vector<32x256xbf16>
    %cst_7 = arith.constant dense<0.000000e+00> : vector<128x256xf32>
    %11 = tpu.matmul %9, %10, %cst_7 {dimension_numbers = #tpu.dot_dimension_numbers<[1], [0], [0], [1], [0, 0, 1, 1], [], []>} : vector<128x32xbf16>, vector<32x256xbf16>, vector<128x256xf32> -> vector<128x256xf32>
    %c0_8 = arith.constant 0 : index
    %c0_9 = arith.constant 0 : index
    %12 = vector.load %arg5[%c0_8, %c0_9] : memref<128x256xf32, #tpu.memory_space<vmem>>, vector<128x256xf32>
    tpu.vector_store %arg5[%c0_8, %c0_9], %11 {strides = array<i32>} : memref<128x256xf32, #tpu.memory_space<vmem>>, vector<128x256xf32>,
    return
  }
  func.func @transform_0(%arg0: i32) -> (i32, i32) {
    %c0_i32 = arith.constant 0 : i32
    %c0_i32_0 = arith.constant 0 : i32
    return %arg0, %c0_i32 : i32, i32
  }
  func.func @transform_1(%arg0: i32) -> (i32, i32) {
    %c0_i32 = arith.constant 0 : i32
    %c0_i32_0 = arith.constant 0 : i32
    %c0_i32_1 = arith.constant 0 : i32
    return %c0_i32, %c0_i32_0 : i32, i32
  }
  func.func @transform_2(%arg0: i32) -> (i32, i32) {
    %c0_i32 = arith.constant 0 : i32
    %c0_i32_0 = arith.constant 0 : i32
    %c0_i32_1 = arith.constant 0 : i32
    return %c0_i32, %c0_i32_0 : i32, i32
  }
  func.func @transform_3(%arg0: i32) -> (i32, i32) {
    %c0_i32 = arith.constant 0 : i32
    %c0_i32_0 = arith.constant 0 : i32
    %c0_i32_1 = arith.constant 0 : i32
    return %c0_i32, %c0_i32_0 : i32, i32
  }
  func.func @transform_4(%arg0: i32) -> (i32, i32) {
    %c0_i32 = arith.constant 0 : i32
    %c0_i32_0 = arith.constant 0 : i32
    return %arg0, %c0_i32 : i32, i32
  }
}

module attributes {stable_mosaic.version = 11 : i64} {
  func.func @_colsum_kernel(%arg0: memref<64x128xf32, #tpu.memory_space<vmem>>, %arg1: memref<1x128xf32, #tpu.memory_space<vmem>>, %arg2: memref<1x128xf32, #tpu.memory_space<vmem>>) attributes {dimension_semantics = [], scalar_prefetch = 0 : i64, scratch_operands = 0 : i64, tpu.core_type = #tpu.core_type<tc>} {
    %c0 = arith.constant 0 : index
    %c0_0 = arith.constant 0 : index
    %0 = vector.load %arg0[%c0, %c0_0] : memref<64x128xf32, #tpu.memory_space<vmem>>, vector<64x128xf32>
    %cst = arith.constant dense<0.000000e+00> : vector<128xf32>
    %1 = vector.multi_reduction <add>, %0, %cst [0] : vector<64x128xf32> to vector<128xf32>
    %2 = vector.shape_cast %1 : vector<128xf32> to vector<1x128xf32>
    %c0_1 = arith.constant 0 : index
    %c0_2 = arith.constant 0 : index
    %3 = vector.load %arg1[%c0_1, %c0_2] : memref<1x128xf32, #tpu.memory_space<vmem>>, vector<1x128xf32>
    tpu.vector_store %arg1[%c0_1, %c0_2], %2 {strides = array<i32>} : memref<1x128xf32, #tpu.memory_space<vmem>>, vector<1x128xf32>,
    %4 = arith.mulf %0, %0 : vector<64x128xf32>
    %cst_3 = arith.constant dense<0.000000e+00> : vector<128xf32>
    %5 = vector.multi_reduction <add>, %4, %cst_3 [0] : vector<64x128xf32> to vector<128xf32>
    %6 = vector.shape_cast %5 : vector<128xf32> to vector<1x128xf32>
    %c0_4 = arith.constant 0 : index
    %c0_5 = arith.constant 0 : index
    %7 = vector.load %arg2[%c0_4, %c0_5] : memref<1x128xf32, #tpu.memory_space<vmem>>, vector<1x128xf32>
    tpu.vector_store %arg2[%c0_4, %c0_5], %6 {strides = array<i32>} : memref<1x128xf32, #tpu.memory_space<vmem>>, vector<1x128xf32>,
    return
  }
}

module attributes {stable_mosaic.version = 11 : i64} {
  func.func @_bn_relu_matmul_kernel(%arg0: i32, %arg1: memref<512x16xf32, #tpu.memory_space<vmem>>, %arg2: memref<1x16xf32, #tpu.memory_space<vmem>>, %arg3: memref<1x16xf32, #tpu.memory_space<vmem>>, %arg4: memref<16x128xbf16, #tpu.memory_space<vmem>>, %arg5: memref<512x128xf32, #tpu.memory_space<vmem>>) attributes {dimension_semantics = [#tpu.dimension_semantics<parallel>], iteration_bounds = array<i64: 1>, scalar_prefetch = 0 : i64, scratch_operands = 0 : i64, tpu.core_type = #tpu.core_type<tc>, window_params = [{transform_indices = @transform_0, window_bounds = array<i64: 512, 16>}, {pipeline_mode = #tpu.pipeline_mode<synchronous>, transform_indices = @transform_1, window_bounds = array<i64: 1, 16>}, {pipeline_mode = #tpu.pipeline_mode<synchronous>, transform_indices = @transform_2, window_bounds = array<i64: 1, 16>}, {pipeline_mode = #tpu.pipeline_mode<synchronous>, transform_indices = @transform_3, window_bounds = array<i64: 16, 128>}, {transform_indices = @transform_4, window_bounds = array<i64: 512, 128>}]} {
    %c0 = arith.constant 0 : index
    %c0_0 = arith.constant 0 : index
    %0 = vector.load %arg1[%c0, %c0_0] : memref<512x16xf32, #tpu.memory_space<vmem>>, vector<512x16xf32>
    %c0_1 = arith.constant 0 : index
    %c0_2 = arith.constant 0 : index
    %1 = vector.load %arg2[%c0_1, %c0_2] : memref<1x16xf32, #tpu.memory_space<vmem>>, vector<1x16xf32>
    %2 = vector.broadcast %1 : vector<1x16xf32> to vector<512x16xf32>
    %3 = arith.mulf %0, %2 : vector<512x16xf32>
    %c0_3 = arith.constant 0 : index
    %c0_4 = arith.constant 0 : index
    %4 = vector.load %arg3[%c0_3, %c0_4] : memref<1x16xf32, #tpu.memory_space<vmem>>, vector<1x16xf32>
    %5 = vector.broadcast %4 : vector<1x16xf32> to vector<512x16xf32>
    %6 = arith.addf %3, %5 : vector<512x16xf32>
    %cst = arith.constant 0.000000e+00 : f32
    %7 = vector.broadcast %cst : f32 to vector<512x16xf32>
    %8 = arith.maximumf %6, %7 : vector<512x16xf32>
    %9 = arith.truncf %8 : vector<512x16xf32> to vector<512x16xbf16>
    %c0_5 = arith.constant 0 : index
    %c0_6 = arith.constant 0 : index
    %10 = vector.load %arg4[%c0_5, %c0_6] : memref<16x128xbf16, #tpu.memory_space<vmem>>, vector<16x128xbf16>
    %cst_7 = arith.constant dense<0.000000e+00> : vector<512x128xf32>
    %11 = tpu.matmul %9, %10, %cst_7 {dimension_numbers = #tpu.dot_dimension_numbers<[1], [0], [0], [1], [0, 0, 1, 1], [], []>} : vector<512x16xbf16>, vector<16x128xbf16>, vector<512x128xf32> -> vector<512x128xf32>
    %c0_8 = arith.constant 0 : index
    %c0_9 = arith.constant 0 : index
    %12 = vector.load %arg5[%c0_8, %c0_9] : memref<512x128xf32, #tpu.memory_space<vmem>>, vector<512x128xf32>
    tpu.vector_store %arg5[%c0_8, %c0_9], %11 {strides = array<i32>} : memref<512x128xf32, #tpu.memory_space<vmem>>, vector<512x128xf32>,
    return
  }
  func.func @transform_0(%arg0: i32) -> (i32, i32) {
    %c0_i32 = arith.constant 0 : i32
    %c0_i32_0 = arith.constant 0 : i32
    return %arg0, %c0_i32 : i32, i32
  }
  func.func @transform_1(%arg0: i32) -> (i32, i32) {
    %c0_i32 = arith.constant 0 : i32
    %c0_i32_0 = arith.constant 0 : i32
    %c0_i32_1 = arith.constant 0 : i32
    return %c0_i32, %c0_i32_0 : i32, i32
  }
  func.func @transform_2(%arg0: i32) -> (i32, i32) {
    %c0_i32 = arith.constant 0 : i32
    %c0_i32_0 = arith.constant 0 : i32
    %c0_i32_1 = arith.constant 0 : i32
    return %c0_i32, %c0_i32_0 : i32, i32
  }
  func.func @transform_3(%arg0: i32) -> (i32, i32) {
    %c0_i32 = arith.constant 0 : i32
    %c0_i32_0 = arith.constant 0 : i32
    %c0_i32_1 = arith.constant 0 : i32
    return %c0_i32, %c0_i32_0 : i32, i32
  }
  func.func @transform_4(%arg0: i32) -> (i32, i32) {
    %c0_i32 = arith.constant 0 : i32
    %c0_i32_0 = arith.constant 0 : i32
    return %arg0, %c0_i32 : i32, i32
  }
}

module attributes {stable_mosaic.version = 11 : i64} {
  func.func @_colsum_kernel(%arg0: memref<128x128xf32, #tpu.memory_space<vmem>>, %arg1: memref<1x128xf32, #tpu.memory_space<vmem>>, %arg2: memref<1x128xf32, #tpu.memory_space<vmem>>) attributes {dimension_semantics = [], scalar_prefetch = 0 : i64, scratch_operands = 0 : i64, tpu.core_type = #tpu.core_type<tc>} {
    %c0 = arith.constant 0 : index
    %c0_0 = arith.constant 0 : index
    %0 = vector.load %arg0[%c0, %c0_0] : memref<128x128xf32, #tpu.memory_space<vmem>>, vector<128x128xf32>
    %cst = arith.constant dense<0.000000e+00> : vector<128xf32>
    %1 = vector.multi_reduction <add>, %0, %cst [0] : vector<128x128xf32> to vector<128xf32>
    %2 = vector.shape_cast %1 : vector<128xf32> to vector<1x128xf32>
    %c0_1 = arith.constant 0 : index
    %c0_2 = arith.constant 0 : index
    %3 = vector.load %arg1[%c0_1, %c0_2] : memref<1x128xf32, #tpu.memory_space<vmem>>, vector<1x128xf32>
    tpu.vector_store %arg1[%c0_1, %c0_2], %2 {strides = array<i32>} : memref<1x128xf32, #tpu.memory_space<vmem>>, vector<1x128xf32>,
    %4 = arith.mulf %0, %0 : vector<128x128xf32>
    %cst_3 = arith.constant dense<0.000000e+00> : vector<128xf32>
    %5 = vector.multi_reduction <add>, %4, %cst_3 [0] : vector<128x128xf32> to vector<128xf32>
    %6 = vector.shape_cast %5 : vector<128xf32> to vector<1x128xf32>
    %c0_4 = arith.constant 0 : index
    %c0_5 = arith.constant 0 : index
    %7 = vector.load %arg2[%c0_4, %c0_5] : memref<1x128xf32, #tpu.memory_space<vmem>>, vector<1x128xf32>
    tpu.vector_store %arg2[%c0_4, %c0_5], %6 {strides = array<i32>} : memref<1x128xf32, #tpu.memory_space<vmem>>, vector<1x128xf32>,
    return
  }
}

module attributes {stable_mosaic.version = 11 : i64} {
  func.func @_bn_relu_matmul_kernel(%arg0: i32, %arg1: memref<2048x8xf32, #tpu.memory_space<vmem>>, %arg2: memref<1x8xf32, #tpu.memory_space<vmem>>, %arg3: memref<1x8xf32, #tpu.memory_space<vmem>>, %arg4: memref<8x128xbf16, #tpu.memory_space<vmem>>, %arg5: memref<2048x128xf32, #tpu.memory_space<vmem>>) attributes {dimension_semantics = [#tpu.dimension_semantics<parallel>], iteration_bounds = array<i64: 1>, scalar_prefetch = 0 : i64, scratch_operands = 0 : i64, tpu.core_type = #tpu.core_type<tc>, window_params = [{transform_indices = @transform_0, window_bounds = array<i64: 2048, 8>}, {pipeline_mode = #tpu.pipeline_mode<synchronous>, transform_indices = @transform_1, window_bounds = array<i64: 1, 8>}, {pipeline_mode = #tpu.pipeline_mode<synchronous>, transform_indices = @transform_2, window_bounds = array<i64: 1, 8>}, {pipeline_mode = #tpu.pipeline_mode<synchronous>, transform_indices = @transform_3, window_bounds = array<i64: 8, 128>}, {transform_indices = @transform_4, window_bounds = array<i64: 2048, 128>}]} {
    %c0 = arith.constant 0 : index
    %c0_0 = arith.constant 0 : index
    %0 = vector.load %arg1[%c0, %c0_0] : memref<2048x8xf32, #tpu.memory_space<vmem>>, vector<2048x8xf32>
    %c0_1 = arith.constant 0 : index
    %c0_2 = arith.constant 0 : index
    %1 = vector.load %arg2[%c0_1, %c0_2] : memref<1x8xf32, #tpu.memory_space<vmem>>, vector<1x8xf32>
    %2 = vector.broadcast %1 : vector<1x8xf32> to vector<2048x8xf32>
    %3 = arith.mulf %0, %2 : vector<2048x8xf32>
    %c0_3 = arith.constant 0 : index
    %c0_4 = arith.constant 0 : index
    %4 = vector.load %arg3[%c0_3, %c0_4] : memref<1x8xf32, #tpu.memory_space<vmem>>, vector<1x8xf32>
    %5 = vector.broadcast %4 : vector<1x8xf32> to vector<2048x8xf32>
    %6 = arith.addf %3, %5 : vector<2048x8xf32>
    %cst = arith.constant 0.000000e+00 : f32
    %7 = vector.broadcast %cst : f32 to vector<2048x8xf32>
    %8 = arith.maximumf %6, %7 : vector<2048x8xf32>
    %9 = arith.truncf %8 : vector<2048x8xf32> to vector<2048x8xbf16>
    %c0_5 = arith.constant 0 : index
    %c0_6 = arith.constant 0 : index
    %10 = vector.load %arg4[%c0_5, %c0_6] : memref<8x128xbf16, #tpu.memory_space<vmem>>, vector<8x128xbf16>
    %cst_7 = arith.constant dense<0.000000e+00> : vector<2048x128xf32>
    %11 = tpu.matmul %9, %10, %cst_7 {dimension_numbers = #tpu.dot_dimension_numbers<[1], [0], [0], [1], [0, 0, 1, 1], [], []>} : vector<2048x8xbf16>, vector<8x128xbf16>, vector<2048x128xf32> -> vector<2048x128xf32>
    %c0_8 = arith.constant 0 : index
    %c0_9 = arith.constant 0 : index
    %12 = vector.load %arg5[%c0_8, %c0_9] : memref<2048x128xf32, #tpu.memory_space<vmem>>, vector<2048x128xf32>
    tpu.vector_store %arg5[%c0_8, %c0_9], %11 {strides = array<i32>} : memref<2048x128xf32, #tpu.memory_space<vmem>>, vector<2048x128xf32>,
    return
  }
  func.func @transform_0(%arg0: i32) -> (i32, i32) {
    %c0_i32 = arith.constant 0 : i32
    %c0_i32_0 = arith.constant 0 : i32
    return %arg0, %c0_i32 : i32, i32
  }
  func.func @transform_1(%arg0: i32) -> (i32, i32) {
    %c0_i32 = arith.constant 0 : i32
    %c0_i32_0 = arith.constant 0 : i32
    %c0_i32_1 = arith.constant 0 : i32
    return %c0_i32, %c0_i32_0 : i32, i32
  }
  func.func @transform_2(%arg0: i32) -> (i32, i32) {
    %c0_i32 = arith.constant 0 : i32
    %c0_i32_0 = arith.constant 0 : i32
    %c0_i32_1 = arith.constant 0 : i32
    return %c0_i32, %c0_i32_0 : i32, i32
  }
  func.func @transform_3(%arg0: i32) -> (i32, i32) {
    %c0_i32 = arith.constant 0 : i32
    %c0_i32_0 = arith.constant 0 : i32
    %c0_i32_1 = arith.constant 0 : i32
    return %c0_i32, %c0_i32_0 : i32, i32
  }
  func.func @transform_4(%arg0: i32) -> (i32, i32) {
    %c0_i32 = arith.constant 0 : i32
    %c0_i32_0 = arith.constant 0 : i32
    return %arg0, %c0_i32 : i32, i32
  }
}

module attributes {stable_mosaic.version = 11 : i64} {
  func.func @_colsum_kernel(%arg0: memref<512x128xf32, #tpu.memory_space<vmem>>, %arg1: memref<1x128xf32, #tpu.memory_space<vmem>>, %arg2: memref<1x128xf32, #tpu.memory_space<vmem>>) attributes {dimension_semantics = [], scalar_prefetch = 0 : i64, scratch_operands = 0 : i64, tpu.core_type = #tpu.core_type<tc>} {
    %c0 = arith.constant 0 : index
    %c0_0 = arith.constant 0 : index
    %0 = vector.load %arg0[%c0, %c0_0] : memref<512x128xf32, #tpu.memory_space<vmem>>, vector<512x128xf32>
    %cst = arith.constant dense<0.000000e+00> : vector<128xf32>
    %1 = vector.multi_reduction <add>, %0, %cst [0] : vector<512x128xf32> to vector<128xf32>
    %2 = vector.shape_cast %1 : vector<128xf32> to vector<1x128xf32>
    %c0_1 = arith.constant 0 : index
    %c0_2 = arith.constant 0 : index
    %3 = vector.load %arg1[%c0_1, %c0_2] : memref<1x128xf32, #tpu.memory_space<vmem>>, vector<1x128xf32>
    tpu.vector_store %arg1[%c0_1, %c0_2], %2 {strides = array<i32>} : memref<1x128xf32, #tpu.memory_space<vmem>>, vector<1x128xf32>,
    %4 = arith.mulf %0, %0 : vector<512x128xf32>
    %cst_3 = arith.constant dense<0.000000e+00> : vector<128xf32>
    %5 = vector.multi_reduction <add>, %4, %cst_3 [0] : vector<512x128xf32> to vector<128xf32>
    %6 = vector.shape_cast %5 : vector<128xf32> to vector<1x128xf32>
    %c0_4 = arith.constant 0 : index
    %c0_5 = arith.constant 0 : index
    %7 = vector.load %arg2[%c0_4, %c0_5] : memref<1x128xf32, #tpu.memory_space<vmem>>, vector<1x128xf32>
    tpu.vector_store %arg2[%c0_4, %c0_5], %6 {strides = array<i32>} : memref<1x128xf32, #tpu.memory_space<vmem>>, vector<1x128xf32>,
    return
  }
}

module attributes {stable_mosaic.version = 11 : i64} {
  func.func @_bn_relu_matmul_kernel(%arg0: i32, %arg1: memref<4096x8xf32, #tpu.memory_space<vmem>>, %arg2: memref<1x8xf32, #tpu.memory_space<vmem>>, %arg3: memref<1x8xf32, #tpu.memory_space<vmem>>, %arg4: memref<8x128xbf16, #tpu.memory_space<vmem>>, %arg5: memref<4096x128xf32, #tpu.memory_space<vmem>>) attributes {dimension_semantics = [#tpu.dimension_semantics<parallel>], iteration_bounds = array<i64: 2>, scalar_prefetch = 0 : i64, scratch_operands = 0 : i64, tpu.core_type = #tpu.core_type<tc>, window_params = [{transform_indices = @transform_0, window_bounds = array<i64: 4096, 8>}, {pipeline_mode = #tpu.pipeline_mode<synchronous>, transform_indices = @transform_1, window_bounds = array<i64: 1, 8>}, {pipeline_mode = #tpu.pipeline_mode<synchronous>, transform_indices = @transform_2, window_bounds = array<i64: 1, 8>}, {pipeline_mode = #tpu.pipeline_mode<synchronous>, transform_indices = @transform_3, window_bounds = array<i64: 8, 128>}, {transform_indices = @transform_4, window_bounds = array<i64: 4096, 128>}]} {
    %c0 = arith.constant 0 : index
    %c0_0 = arith.constant 0 : index
    %0 = vector.load %arg1[%c0, %c0_0] : memref<4096x8xf32, #tpu.memory_space<vmem>>, vector<4096x8xf32>
    %c0_1 = arith.constant 0 : index
    %c0_2 = arith.constant 0 : index
    %1 = vector.load %arg2[%c0_1, %c0_2] : memref<1x8xf32, #tpu.memory_space<vmem>>, vector<1x8xf32>
    %2 = vector.broadcast %1 : vector<1x8xf32> to vector<4096x8xf32>
    %3 = arith.mulf %0, %2 : vector<4096x8xf32>
    %c0_3 = arith.constant 0 : index
    %c0_4 = arith.constant 0 : index
    %4 = vector.load %arg3[%c0_3, %c0_4] : memref<1x8xf32, #tpu.memory_space<vmem>>, vector<1x8xf32>
    %5 = vector.broadcast %4 : vector<1x8xf32> to vector<4096x8xf32>
    %6 = arith.addf %3, %5 : vector<4096x8xf32>
    %cst = arith.constant 0.000000e+00 : f32
    %7 = vector.broadcast %cst : f32 to vector<4096x8xf32>
    %8 = arith.maximumf %6, %7 : vector<4096x8xf32>
    %9 = arith.truncf %8 : vector<4096x8xf32> to vector<4096x8xbf16>
    %c0_5 = arith.constant 0 : index
    %c0_6 = arith.constant 0 : index
    %10 = vector.load %arg4[%c0_5, %c0_6] : memref<8x128xbf16, #tpu.memory_space<vmem>>, vector<8x128xbf16>
    %cst_7 = arith.constant dense<0.000000e+00> : vector<4096x128xf32>
    %11 = tpu.matmul %9, %10, %cst_7 {dimension_numbers = #tpu.dot_dimension_numbers<[1], [0], [0], [1], [0, 0, 1, 1], [], []>} : vector<4096x8xbf16>, vector<8x128xbf16>, vector<4096x128xf32> -> vector<4096x128xf32>
    %c0_8 = arith.constant 0 : index
    %c0_9 = arith.constant 0 : index
    %12 = vector.load %arg5[%c0_8, %c0_9] : memref<4096x128xf32, #tpu.memory_space<vmem>>, vector<4096x128xf32>
    tpu.vector_store %arg5[%c0_8, %c0_9], %11 {strides = array<i32>} : memref<4096x128xf32, #tpu.memory_space<vmem>>, vector<4096x128xf32>,
    return
  }
  func.func @transform_0(%arg0: i32) -> (i32, i32) {
    %c0_i32 = arith.constant 0 : i32
    %c0_i32_0 = arith.constant 0 : i32
    return %arg0, %c0_i32 : i32, i32
  }
  func.func @transform_1(%arg0: i32) -> (i32, i32) {
    %c0_i32 = arith.constant 0 : i32
    %c0_i32_0 = arith.constant 0 : i32
    %c0_i32_1 = arith.constant 0 : i32
    return %c0_i32, %c0_i32_0 : i32, i32
  }
  func.func @transform_2(%arg0: i32) -> (i32, i32) {
    %c0_i32 = arith.constant 0 : i32
    %c0_i32_0 = arith.constant 0 : i32
    %c0_i32_1 = arith.constant 0 : i32
    return %c0_i32, %c0_i32_0 : i32, i32
  }
  func.func @transform_3(%arg0: i32) -> (i32, i32) {
    %c0_i32 = arith.constant 0 : i32
    %c0_i32_0 = arith.constant 0 : i32
    %c0_i32_1 = arith.constant 0 : i32
    return %c0_i32, %c0_i32_0 : i32, i32
  }
  func.func @transform_4(%arg0: i32) -> (i32, i32) {
    %c0_i32 = arith.constant 0 : i32
    %c0_i32_0 = arith.constant 0 : i32
    return %arg0, %c0_i32 : i32, i32
  }
}

module attributes {stable_mosaic.version = 11 : i64} {
  func.func @_tanh_kernel(%arg0: i32, %arg1: memref<384x128xf32, #tpu.memory_space<vmem>>, %arg2: memref<384x128xf32, #tpu.memory_space<vmem>>) attributes {dimension_semantics = [#tpu.dimension_semantics<parallel>], iteration_bounds = array<i64: 2>, scalar_prefetch = 0 : i64, scratch_operands = 0 : i64, tpu.core_type = #tpu.core_type<tc>, window_params = [{transform_indices = @transform_0, window_bounds = array<i64: 384, 128>}, {transform_indices = @transform_1, window_bounds = array<i64: 384, 128>}]} {
    %c0 = arith.constant 0 : index
    %c0_0 = arith.constant 0 : index
    %0 = vector.load %arg1[%c0, %c0_0] : memref<384x128xf32, #tpu.memory_space<vmem>>, vector<384x128xf32>
    %1 = math.tanh %0 : vector<384x128xf32>
    %c0_1 = arith.constant 0 : index
    %c0_2 = arith.constant 0 : index
    %2 = vector.load %arg2[%c0_1, %c0_2] : memref<384x128xf32, #tpu.memory_space<vmem>>, vector<384x128xf32>
    tpu.vector_store %arg2[%c0_1, %c0_2], %1 {strides = array<i32>} : memref<384x128xf32, #tpu.memory_space<vmem>>, vector<384x128xf32>,
    return
  }
  func.func @transform_0(%arg0: i32) -> (i32, i32) {
    %c0_i32 = arith.constant 0 : i32
    %c0_i32_0 = arith.constant 0 : i32
    return %arg0, %c0_i32 : i32, i32
  }
  func.func @transform_1(%arg0: i32) -> (i32, i32) {
    %c0_i32 = arith.constant 0 : i32
    %c0_i32_0 = arith.constant 0 : i32
    return %arg0, %c0_i32 : i32, i32
  }
}

</mosaic_0001>

<bundles_post_ra>
// kernel: generator_forward.13
= control target key start
LH: loop header
LB: loop body
LE: loop exit
PB: predicated region body
PF: predicated region fallthrough
CT: control target
= control target key end

     0   :  { %s65_s0 = inlined_call_operand.vmem [shape: f32[16,128], index: 0, kind: input, shape index: {}]   ;;  %s66_s1 = inlined_call_operand.vmem [shape: f32[1,128], index: 1, kind: output, shape index: {0}]   ;;  %s67_s2 = inlined_call_operand.vmem [shape: f32[1,128], index: 2, kind: output, shape index: {1}]  }
   0x1   :  { %v10_v0 = vld [vmem:[%s65_s0] sm:$0xff]  ;;  %v11_v1 = vld [vmem:[%s65_s0 + $0x8] sm:$0xff] }
   0x2   :  { %v12_v2 = vadd.f32 %v11_v1, %v10_v0  ;;  %v20_v3 = vmul.f32 %v10_v0, %v10_v0  ;;  %v21_v4 = vmul.f32 %v11_v1, %v11_v1 }
   0x4   :  { %v13_v5 = vrot.slane %v12_v2, 4  ;;  %v22_v6 = vadd.f32 %v21_v4, %v20_v3 }
   0x6   :  { %v14_v7 = vadd.f32 %v13_v5, %v12_v2  ;;  %v23_v8 = vrot.slane %v22_v6, 4 }
   0x8   :  { %v15_v9 = vrot.slane %v14_v7, 2  ;;  %v24_v10 = vadd.f32 %v23_v8, %v22_v6 }
   0xa   :  { %v16_v11 = vadd.f32 %v15_v9, %v14_v7  ;;  %v25_v12 = vrot.slane %v24_v10, 2 }
   0xc   :  { %v17_v13 = vrot.slane %v16_v11, 1  ;;  %v26_v14 = vadd.f32 %v25_v12, %v24_v10 }
   0xe   :  { %v18_v15 = vadd.f32 %v17_v13, %v16_v11  ;;  %v27_v16 = vrot.slane %v26_v14, 1 }
  0x10   :  { %19 = vst [vmem:[%s66_s1] sm:$0x1] %v18_v15  ;;  %v28_v17 = vadd.f32 %v27_v16, %v26_v14 }
  0x12   :  { %29 = vst [vmem:[%s67_s2] sm:$0x1] %v28_v17 }

// kernel: generator_forward.12
= control target key start
LH: loop header
LB: loop body
LE: loop exit
PB: predicated region body
PF: predicated region fallthrough
CT: control target
= control target key end

     0   :  { %7 = vsyncpa [#allocation3], 0  ;;  %s330_s9 = smov [#allocation2]   ;;  %s381_s0 = inlined_call_operand.hbm [shape: f32[2,16], index: 0, kind: input, shape index: {}]   ;;  %s382_s1 = inlined_call_operand.vmem [shape: bf16[16,1024], index: 1, kind: input, shape index: {}]   ;;  %s383_s2 = inlined_call_operand.vmem [shape: f32[2,1024], index: 2, kind: output, shape index: {}]  }
   0x1   :  { %s14_s10 = sshll.u32 %s330_s9, 4  ;;  %s15_s10 = int_to_ptr.vmem [resolvable:$true] %s14_s10 }
   0x2   :  { %s316_s11 = scalar_lea.vmem %s15_s10, 32  ;;  %p321_p1 = scmp.lt.s32.totalorder %s15_s10, %s15_s10 }
   0x3   :  { %p317_p0 = scmp.ne.s32.totalorder %s15_s10, %s316_s11  ;;  %p322_p2 = scmp.lt.s32.totalorder %s316_s11, %s316_s11 }
   0x5   :  { %p323_p3 = por %p322_p2, %p321_p1 }
   0x7   :  { %p324_p4 = pnand %p323_p3, %p317_p0 }
   0x9   :  { %327 = shalt.err (!%p324_p4)
}
   0xa   :  { %17 = dma.hbm_to_vmem [thread:$0]  %s381_s0, 32, %s15_s10, [#allocation3]  }
   0xb   :  { %328 = dma.done.wait [#allocation3], 32  }
   0xc   :  { %329 = vsyncadd [#allocation3], 4294967264  ;;  %v331_v0 = vmov 0   ;;  %v26_v1 = vld [vmem:[%s382_s1] sm:$0xff]  ;;  %v27_v3 = vld [vmem:[%s382_s1 + $0x8] sm:$0xff]  ;;  %vm74_vm0 = vcmask 130048   ;;  %v255_v21 = vlaneseq }
   0xd   :  { %110 = vmatprep.mubr.bf16.mxu0 %v331_v0  ;;  %151 = vmatprep.mubr.bf16.mxu1 %v331_v0  ;;  %v30_v2 = vld [vmem:[%s382_s1 + $0x20] sm:$0xff]  ;;  %v31_v5 = vld [vmem:[%s382_s1 + $0x28] sm:$0xff]  ;;  %v28_v8 = vld [vmem:[%s382_s1 + $0x10] sm:$0xff]  ;;  %v332_v19 = vmov 1983009808  }
   0xe   :  { %v294_v4 = vcombine.high %v26_v1, %v30_v2  ;;  %v293_v6 = vcombine.low %v26_v1, %v30_v2  ;;  %v24_v7 = vld [vmem:[#allocation2] sm:$0x3]  ;;  %v296_v9 = vcombine.high %v27_v3, %v31_v5  ;;  %v295_v10 = vcombine.low %v27_v3, %v31_v5  ;;  %v32_v11 = vld [vmem:[%s382_s1 + $0x30] sm:$0xff]  ;;  %v29_v12 = vld [vmem:[%s382_s1 + $0x18] sm:$0xff] }
   0xf   :  { %v33_v13 = vld [vmem:[%s382_s1 + $0x38] sm:$0xff]  ;;  %v25_v14 = vpack.c.bf16 %v24_v7, %v24_v7  ;;  %v298_v15 = vcombine.high %v28_v8, %v32_v11  ;;  %v297_v17 = vcombine.low %v28_v8, %v32_v11  ;;  %v253_v20 = vunpack.c.l.s4 %v332_v19 }
  0x10   :  { %92 = vmatprep.subr.bf16.mxu0 %v294_v4  ;;  %v300_v16 = vcombine.high %v29_v12, %v33_v13  ;;  %133 = vmatprep.subr.bf16.mxu1 %v296_v9  ;;  %v299_v18 = vcombine.low %v29_v12, %v33_v13  ;;  %v256_v23 = vshrl.u32 %v255_v21, 7 }
  0x11   :  { %93 = vmatpush1.bf16.msra.mxu0 %v293_v6  ;;  %134 = vmatpush1.bf16.msra.mxu1 %v295_v10  ;;  %v254_v22 = vunpack.c.0.s8 %v253_v20 }
  0x12   :  { %174 = vmatprep.subr.bf16.mxu0 %v298_v15  ;;  %215 = vmatprep.subr.bf16.mxu1 %v300_v16 }
  0x13   :  { %v257_v26 = vsub.s32 %v254_v22, %v256_v23 }
  0x14   :  { %301 = vmatmul.mubr.msk.bf16.vlgmr.msra.gmra.mxu0 %vm74_vm0, %v25_v14  ;;  %302 = vmatmul.mubr.msk.bf16.vlgmr.msra.gmra.mxu1 %vm74_vm0, %v25_v14 }
  0x15   :  { %175 = vmatpush1.bf16.msra.mxu0 %v297_v17  ;;  %216 = vmatpush1.bf16.msra.mxu1 %v299_v18 }
  0x16   :  { %192 = vmatprep.mubr.bf16.mxu0 %v331_v0  ;;  %233 = vmatprep.mubr.bf16.mxu1 %v331_v0 }
  0x1c   :  { %303 = vmatmul.mubr.msk.bf16.vlgmr.msra.gmra.mxu0 %vm74_vm0, %v25_v14  ;;  %304 = vmatmul.mubr.msk.bf16.vlgmr.msra.gmra.mxu1 %vm74_vm0, %v25_v14 }
  0xd4   :  { %v112_v24 = vpop.f32.mrf.mxu0  ;;  %v153_v25 = vpop.f32.mrf.mxu1 }
  0xd6   :  { %v114_v27 = vpop.f32.mrf.mxu0  ;;  %v155_v29 = vpop.f32.mrf.mxu1 }
  0xd7   :  { %v250_v28 = vcombine.low %v112_v24, %v114_v27  ;;  %v251_v30 = vcombine.low %v153_v25, %v155_v29 }
  0xd8   :  { %v116_v31 = vpop.f32.mrf.mxu0  ;;  %v157_v33 = vpop.f32.mrf.mxu1 }
  0xd9   :  { %v258_v32 = vrot.slane %v250_v28, %v257_v26  ;;  %v265_v34 = vrot.slane %v251_v30, %v257_v26 }
  0xda   :  { %v117_v35 = vpop.f32.mrf.mxu0  ;;  %v158_v36 = vpop.f32.mrf.mxu1 }
  0xdb   :  { %v266_v37 = vcombine.low %v258_v32, %v265_v34 }
  0xdc   :  { %v194_v38 = vpop.f32.mrf.mxu0  ;;  %v235_v39 = vpop.f32.mrf.mxu1 }
  0xdd   :  { %286 = vst [vmem:[%s383_s2] sm:$0xff] %v266_v37 }
  0xde   :  { %v196_v40 = vpop.f32.mrf.mxu0  ;;  %v237_v42 = vpop.f32.mrf.mxu1 }
  0xdf   :  { %v267_v41 = vcombine.low %v194_v38, %v196_v40  ;;  %v268_v43 = vcombine.low %v235_v39, %v237_v42 }
  0xe0   :  { %v198_v44 = vpop.f32.mrf.mxu0  ;;  %v239_v46 = vpop.f32.mrf.mxu1 }
  0xe1   :  { %v275_v45 = vrot.slane %v267_v41, %v257_v26  ;;  %v282_v47 = vrot.slane %v268_v43, %v257_v26 }
  0xe2   :  { %v199_v48 = vpop.f32.mrf.mxu0  ;;  %v240_v49 = vpop.f32.mrf.mxu1 }
  0xe3   :  { %v283_v50 = vcombine.low %v275_v45, %v282_v47 }
  0xe5   :  { %287 = vst [vmem:[%s383_s2 + $0x8] sm:$0xff] %v283_v50 }
  0xe6   :  { %292 = vsyncpa [#allocation3], 1 }

// kernel: generator_forward.14
= control target key start
LH: loop header
LB: loop body
LE: loop exit
PB: predicated region body
PF: predicated region fallthrough
CT: control target
= control target key end

     0   :  { %v326_v1 = vmov 0   ;;  %vm146_vm0 = vcmask 523264   ;;  %s466_s3 = inlined_call_operand.vmem [shape: bf16[64,512], index: 3, kind: input, shape index: {}]   ;;  %s467_s0 = inlined_call_operand.vmem [shape: f32[32,64], index: 0, kind: input, shape index: {}]   ;;  %s468_s1 = inlined_call_operand.vmem [shape: f32[1,64], index: 1, kind: input, shape index: {}]   ;;  %s469_s2 = inlined_call_operand.vmem [shape: f32[1,64], index: 2, kind: input, shape index: {}]   ;;  %s470_s4 = inlined_call_operand.vmem [shape: f32[32,512], index: 4, kind: output, shape index: {}]  }
   0x1   :  { %v302_v0 = vld [vmem:[%s466_s3 + $0x64] ss:$16 sps:$4 sm:$0xff]   ;;  %185 = vmatprep.mubr.bf16.mxu0 %v326_v1  ;;  %238 = vmatprep.mubr.bf16.mxu1 %v326_v1  ;;  %v304_v2 = vld [vmem:[%s466_s3 + $0x6c] ss:$16 sps:$4 sm:$0xff]   ;;  %v306_v3 = vld [vmem:[%s466_s3 + $0x60] ss:$16 sps:$4 sm:$0xff]  }
   0x2   :  { %161 = vmatprep.subr.bf16.mxu0 %v302_v0  ;;  %v307_v4 = vld [vmem:[%s466_s3 + $0x68] ss:$16 sps:$4 sm:$0xff]   ;;  %214 = vmatprep.subr.bf16.mxu1 %v304_v2  ;;  %v308_v5 = vld [vmem:[%s466_s3 + $0x44] ss:$16 sps:$4 sm:$0xff]   ;;  %v310_v6 = vld [vmem:[%s466_s3 + $0x4c] ss:$16 sps:$4 sm:$0xff]  }
   0x3   :  { %162 = vmatpush1.bf16.msra.mxu0 %v306_v3  ;;  %215 = vmatpush1.bf16.msra.mxu1 %v307_v4  ;;  %v312_v7 = vld [vmem:[%s466_s3 + $0x40] ss:$16 sps:$4 sm:$0xff]   ;;  %v313_v8 = vld [vmem:[%s466_s3 + $0x48] ss:$16 sps:$4 sm:$0xff]   ;;  %v314_v9 = vld [vmem:[%s466_s3 + $0x24] ss:$16 sps:$4 sm:$0xff]  }
   0x4   :  { %163 = vmatprep.subr.bf16.mxu0 %v308_v5  ;;  %216 = vmatprep.subr.bf16.mxu1 %v310_v6  ;;  %v316_v10 = vld [vmem:[%s466_s3 + $0x2c] ss:$16 sps:$4 sm:$0xff]   ;;  %v318_v11 = vld [vmem:[%s466_s3 + $0x20] ss:$16 sps:$4 sm:$0xff]   ;;  %v319_v12 = vld [vmem:[%s466_s3 + $0x28] ss:$16 sps:$4 sm:$0xff]  }
   0x5   :  { %v320_v13 = vld [vmem:[%s466_s3 + $0x4] ss:$16 sps:$4 sm:$0xff]   ;;  %v322_v14 = vld [vmem:[%s466_s3 + $0xc] ss:$16 sps:$4 sm:$0xff]   ;;  %v324_v15 = vld [vmem:[%s466_s3] ss:$16 sps:$4 sm:$0xff]  }
   0x6   :  { %v18_v16 = vld [vmem:[%s467_s0] sm:$0xff]  ;;  %v19_v17 = vld [vmem:[%s467_s0 + $0x8] sm:$0xff]  ;;  %v20_v23 = vld [vmem:[%s467_s0 + $0x10] sm:$0xff] }
   0x7   :  { %164 = vmatpush1.bf16.msra.mxu0 %v312_v7  ;;  %217 = vmatpush1.bf16.msra.mxu1 %v313_v8  ;;  %v279_v18 = vld [vmem:[%s468_s1] ss:$0 sm:$0xff]  ;;  %v325_v20 = vld [vmem:[%s466_s3 + $0x8] ss:$16 sps:$4 sm:$0xff]  }
   0x8   :  { %165 = vmatprep.subr.bf16.mxu0 %v314_v9  ;;  %218 = vmatprep.subr.bf16.mxu1 %v316_v10  ;;  %v280_v19 = vld [vmem:[%s469_s2] ss:$0 sm:$0xff]  ;;  %v29_v21 = vmul.f32 %v279_v18, %v18_v16  ;;  %v30_v22 = vmul.f32 %v279_v18, %v19_v17  ;;  %v21_v24 = vld [vmem:[%s467_s0 + $0x18] sm:$0xff]  ;;  %v31_v25 = vmul.f32 %v279_v18, %v20_v23 }
   0x9   :  { %v32_v26 = vmul.f32 %v279_v18, %v21_v24 }
   0xa   :  { %v40_v27 = vadd.f32 %v280_v19, %v29_v21  ;;  %v41_v28 = vadd.f32 %v280_v19, %v30_v22  ;;  %v42_v31 = vadd.f32 %v280_v19, %v31_v25 }
   0xb   :  { %166 = vmatpush1.bf16.msra.mxu0 %v318_v11  ;;  %219 = vmatpush1.bf16.msra.mxu1 %v319_v12  ;;  %v43_v32 = vadd.f32 %v280_v19, %v32_v26 }
   0xc   :  { %167 = vmatprep.subr.bf16.mxu0 %v320_v13  ;;  %220 = vmatprep.subr.bf16.mxu1 %v322_v14  ;;  %v44_v29 = vmax.f32 %v40_v27, 0.0  ;;  %v45_v30 = vmax.f32 %v41_v28, 0.0  ;;  %v46_v34 = vmax.f32 %v42_v31, 0.0 }
   0xd   :  { %v47_v35 = vmax.f32 %v43_v32, 0.0 }
   0xe   :  { %v48_v33 = vpack.c.bf16 %v45_v30, %v44_v29 }
   0xf   :  { %168 = vmatpush1.bf16.msra.mxu0 %v324_v15  ;;  %221 = vmatpush1.bf16.msra.mxu1 %v325_v20  ;;  %v49_v36 = vpack.c.bf16 %v47_v35, %v46_v34 }
  0x12   :  { %297 = vmatmul.mubr.msk.bf16.vlgmr.msra.gmra.mxu0 %vm146_vm0, %v48_v33  ;;  %299 = vmatmul.mubr.msk.bf16.vlgmr.msra.gmra.mxu1 %vm146_vm0, %v48_v33 }
  0x13   :  { %195 = vmatprep.mubr.bf16.mxu0 %v326_v1  ;;  %248 = vmatprep.mubr.bf16.mxu1 %v326_v1 }
  0x1a   :  { %298 = vmatmul.mubr.msk.bf16.gmra.mxu0 %vm146_vm0, %v49_v36  ;;  %300 = vmatmul.mubr.msk.bf16.gmra.mxu1 %vm146_vm0, %v49_v36 }
  0xd2   :  { %v187_v37 = vpop.f32.mrf.mxu0  ;;  %v240_v38 = vpop.f32.mrf.mxu1 }
  0xd3   :  { %259 = vst [vmem:[%s470_s4] sm:$0xff] %v187_v37  ;;  %261 = vst [vmem:[%s470_s4 + $0x10] sm:$0xff] %v240_v38 }
  0xd4   :  { %v189_v39 = vpop.f32.mrf.mxu0  ;;  %v242_v40 = vpop.f32.mrf.mxu1 }
  0xd5   :  { %260 = vst [vmem:[%s470_s4 + $0x8] sm:$0xff] %v189_v39  ;;  %262 = vst [vmem:[%s470_s4 + $0x18] sm:$0xff] %v242_v40 }
  0xd6   :  { %v191_v41 = vpop.f32.mrf.mxu0  ;;  %v244_v42 = vpop.f32.mrf.mxu1 }
  0xd7   :  { %263 = vst [vmem:[%s470_s4 + $0x20] sm:$0xff] %v191_v41  ;;  %265 = vst [vmem:[%s470_s4 + $0x30] sm:$0xff] %v244_v42 }
  0xd8   :  { %v193_v43 = vpop.f32.mrf.mxu0  ;;  %v246_v44 = vpop.f32.mrf.mxu1 }
  0xd9   :  { %264 = vst [vmem:[%s470_s4 + $0x28] sm:$0xff] %v193_v43  ;;  %266 = vst [vmem:[%s470_s4 + $0x38] sm:$0xff] %v246_v44 }
  0xda   :  { %v197_v45 = vpop.f32.mrf.mxu0  ;;  %v250_v46 = vpop.f32.mrf.mxu1 }
  0xdb   :  { %267 = vst [vmem:[%s470_s4 + $0x40] sm:$0xff] %v197_v45  ;;  %269 = vst [vmem:[%s470_s4 + $0x50] sm:$0xff] %v250_v46 }
  0xdc   :  { %v199_v47 = vpop.f32.mrf.mxu0  ;;  %v252_v48 = vpop.f32.mrf.mxu1 }
  0xdd   :  { %268 = vst [vmem:[%s470_s4 + $0x48] sm:$0xff] %v199_v47  ;;  %270 = vst [vmem:[%s470_s4 + $0x58] sm:$0xff] %v252_v48 }
  0xde   :  { %v201_v49 = vpop.f32.mrf.mxu0  ;;  %v254_v50 = vpop.f32.mrf.mxu1 }
  0xdf   :  { %271 = vst [vmem:[%s470_s4 + $0x60] sm:$0xff] %v201_v49  ;;  %273 = vst [vmem:[%s470_s4 + $0x70] sm:$0xff] %v254_v50 }
  0xe0   :  { %v203_v51 = vpop.f32.mrf.mxu0  ;;  %v256_v52 = vpop.f32.mrf.mxu1 }
  0xe1   :  { %272 = vst [vmem:[%s470_s4 + $0x68] sm:$0xff] %v203_v51  ;;  %274 = vst [vmem:[%s470_s4 + $0x78] sm:$0xff] %v256_v52 }

// kernel: generator_forward.15
= control target key start
LH: loop header
LB: loop body
LE: loop exit
PB: predicated region body
PF: predicated region fallthrough
CT: control target
= control target key end

     0   :  { %s79_s0 = inlined_call_operand.vmem [shape: f32[32,128], index: 0, kind: input, shape index: {}]   ;;  %s80_s1 = inlined_call_operand.vmem [shape: f32[1,128], index: 1, kind: output, shape index: {0}]   ;;  %s81_s2 = inlined_call_operand.vmem [shape: f32[1,128], index: 2, kind: output, shape index: {1}]  }
   0x1   :  { %v10_v0 = vld [vmem:[%s79_s0] sm:$0xff]  ;;  %v11_v1 = vld [vmem:[%s79_s0 + $0x8] sm:$0xff]  ;;  %v12_v2 = vld [vmem:[%s79_s0 + $0x10] sm:$0xff] }
   0x2   :  { %v13_v3 = vld [vmem:[%s79_s0 + $0x18] sm:$0xff]  ;;  %v14_v4 = vadd.f32 %v11_v1, %v10_v0  ;;  %v24_v5 = vmul.f32 %v10_v0, %v10_v0  ;;  %v25_v6 = vmul.f32 %v11_v1, %v11_v1  ;;  %v26_v7 = vmul.f32 %v12_v2, %v12_v2 }
   0x3   :  { %v27_v9 = vmul.f32 %v13_v3, %v13_v3 }
   0x4   :  { %v15_v8 = vadd.f32 %v14_v4, %v12_v2  ;;  %v28_v10 = vadd.f32 %v25_v6, %v24_v5 }
   0x6   :  { %v16_v11 = vadd.f32 %v15_v8, %v13_v3  ;;  %v29_v12 = vadd.f32 %v28_v10, %v26_v7 }
   0x8   :  { %v17_v13 = vrot.slane %v16_v11, 4  ;;  %v30_v14 = vadd.f32 %v29_v12, %v27_v9 }
   0xa   :  { %v18_v15 = vadd.f32 %v17_v13, %v16_v11  ;;  %v31_v16 = vrot.slane %v30_v14, 4 }
   0xc   :  { %v19_v17 = vrot.slane %v18_v15, 2  ;;  %v32_v18 = vadd.f32 %v31_v16, %v30_v14 }
   0xe   :  { %v20_v19 = vadd.f32 %v19_v17, %v18_v15  ;;  %v33_v20 = vrot.slane %v32_v18, 2 }
  0x10   :  { %v21_v21 = vrot.slane %v20_v19, 1  ;;  %v34_v22 = vadd.f32 %v33_v20, %v32_v18 }
  0x12   :  { %v22_v23 = vadd.f32 %v21_v21, %v20_v19  ;;  %v35_v24 = vrot.slane %v34_v22, 1 }
  0x14   :  { %23 = vst [vmem:[%s80_s1] sm:$0x1] %v22_v23  ;;  %v36_v25 = vadd.f32 %v35_v24, %v34_v22 }
  0x16   :  { %37 = vst [vmem:[%s81_s2] sm:$0x1] %v36_v25 }

// kernel: generator_forward.16
= control target key start
LH: loop header
LB: loop body
LE: loop exit
PB: predicated region body
PF: predicated region fallthrough
CT: control target
= control target key end

     0   :  { %v327_v1 = vmov 0   ;;  %vm128_vm0 = vcmask 261120   ;;  %s567_s3 = inlined_call_operand.vmem [shape: bf16[32,256], index: 3, kind: input, shape index: {}]   ;;  %s568_s0 = inlined_call_operand.vmem [shape: f32[128,32], index: 0, kind: input, shape index: {}]   ;;  %s569_s1 = inlined_call_operand.vmem [shape: f32[1,32], index: 1, kind: input, shape index: {}]   ;;  %s570_s2 = inlined_call_operand.vmem [shape: f32[1,32], index: 2, kind: input, shape index: {}]   ;;  %s571_s4 = inlined_call_operand.vmem [shape: f32[128,256], index: 4, kind: output, shape index: {}]  }
   0x1   :  { %v321_v0 = vld [vmem:[%s567_s3 + $0x14] ss:$8 sps:$4 sm:$0xff]   ;;  %185 = vmatprep.mubr.bf16.mxu0 %v327_v1  ;;  %225 = vmatprep.mubr.bf16.mxu1 %v327_v1  ;;  %v323_v2 = vld [vmem:[%s567_s3 + $0x10] ss:$8 sps:$4 sm:$0xff]   ;;  %v324_v3 = vld [vmem:[%s567_s3 + $0x4] ss:$8 sps:$4 sm:$0xff]  }
   0x2   :  { %165 = vmatprep.subr.bf16.mxu0 %v321_v0  ;;  %316 = vmatprep.subr.bf16.mxu1 %v321_v0  ;;  %v326_v4 = vld [vmem:[%s567_s3] ss:$8 sps:$4 sm:$0xff]   ;;  %v20_v13 = vld [vmem:[%s568_s0 + $0x10] sm:$0xff]  ;;  %v21_v16 = vld [vmem:[%s568_s0 + $0x18] sm:$0xff] }
   0x3   :  { %v18_v5 = vld [vmem:[%s568_s0] sm:$0xff]  ;;  %166 = vmatpush1.bf16.msra.mxu0 %v323_v2  ;;  %318 = vmatpush1.bf16.msra.mxu1 %v323_v2  ;;  %v19_v6 = vld [vmem:[%s568_s0 + $0x8] sm:$0xff]  ;;  %v28_v18 = vld [vmem:[%s568_s0 + $0x50] sm:$0xff] }
   0x4   :  { %v376_v7 = vld [vmem:[%s569_s1] ss:$0 sm:$0xff]  ;;  %167 = vmatprep.subr.bf16.mxu0 %v324_v3  ;;  %317 = vmatprep.subr.bf16.mxu1 %v324_v3  ;;  %v27_v12 = vld [vmem:[%s568_s0 + $0x48] sm:$0xff]  ;;  %v29_v19 = vld [vmem:[%s568_s0 + $0x58] sm:$0xff] }
   0x5   :  { %v381_v8 = vld [vmem:[%s570_s2] ss:$0 sm:$0xff]  ;;  %v41_v9 = vmul.f32 %v376_v7, %v18_v5  ;;  %v42_v10 = vmul.f32 %v376_v7, %v19_v6  ;;  %v50_v15 = vmul.f32 %v376_v7, %v27_v12  ;;  %v43_v17 = vmul.f32 %v376_v7, %v20_v13  ;;  %v23_v35 = vld [vmem:[%s568_s0 + $0x28] sm:$0xff]  ;;  %v24_v55 = vld [vmem:[%s568_s0 + $0x30] sm:$0xff] }
   0x6   :  { %v26_v11 = vld [vmem:[%s568_s0 + $0x40] sm:$0xff]  ;;  %v44_v22 = vmul.f32 %v376_v7, %v21_v16  ;;  %v51_v23 = vmul.f32 %v376_v7, %v28_v18  ;;  %v52_v30 = vmul.f32 %v376_v7, %v29_v19  ;;  %v31_v39 = vld [vmem:[%s568_s0 + $0x68] sm:$0xff]  ;;  %v46_v44 = vmul.f32 %v376_v7, %v23_v35  ;;  %v25_v56 = vld [vmem:[%s568_s0 + $0x38] sm:$0xff] }
   0x7   :  { %v49_v14 = vmul.f32 %v376_v7, %v26_v11  ;;  %v64_v20 = vadd.f32 %v381_v8, %v41_v9  ;;  %v65_v21 = vadd.f32 %v381_v8, %v42_v10  ;;  %168 = vmatpush1.bf16.msra.mxu0 %v326_v4  ;;  %319 = vmatpush1.bf16.msra.mxu1 %v326_v4  ;;  %v22_v34 = vld [vmem:[%s568_s0 + $0x20] sm:$0xff]  ;;  %v32_v57 = vld [vmem:[%s568_s0 + $0x70] sm:$0xff]  ;;  %v33_v58 = vld [vmem:[%s568_s0 + $0x78] sm:$0xff] }
   0x8   :  { %v73_v25 = vadd.f32 %v381_v8, %v50_v15  ;;  %v66_v26 = vadd.f32 %v381_v8, %v43_v17  ;;  %v67_v29 = vadd.f32 %v381_v8, %v44_v22  ;;  %v74_v33 = vadd.f32 %v381_v8, %v51_v23  ;;  %v30_v38 = vld [vmem:[%s568_s0 + $0x60] sm:$0xff] }
   0x9   :  { %v72_v24 = vadd.f32 %v381_v8, %v49_v14  ;;  %v80_v27 = vmax.f32 %v64_v20, 0.0  ;;  %v81_v28 = vmax.f32 %v65_v21, 0.0  ;;  %v75_v37 = vadd.f32 %v381_v8, %v52_v30 }
   0xa   :  { %v89_v32 = vmax.f32 %v73_v25, 0.0  ;;  %v82_v41 = vmax.f32 %v66_v26, 0.0  ;;  %v83_v42 = vmax.f32 %v67_v29, 0.0  ;;  %v45_v43 = vmul.f32 %v376_v7, %v22_v34 }
   0xb   :  { %v88_v31 = vmax.f32 %v72_v24, 0.0  ;;  %v96_v36 = vpack.c.bf16 %v81_v28, %v80_v27  ;;  %v90_v45 = vmax.f32 %v74_v33, 0.0  ;;  %v91_v46 = vmax.f32 %v75_v37, 0.0 }
   0xc   :  { %v53_v47 = vmul.f32 %v376_v7, %v30_v38  ;;  %v54_v48 = vmul.f32 %v376_v7, %v31_v39  ;;  %v97_v49 = vpack.c.bf16 %v83_v42, %v82_v41  ;;  %v68_v50 = vadd.f32 %v381_v8, %v45_v43 }
   0xd   :  { %v100_v40 = vpack.c.bf16 %v89_v32, %v88_v31  ;;  %308 = vmatmul.mubr.msk.bf16.vlgmr.msra.gmra.mxu0 %vm128_vm0, %v96_v36  ;;  %v69_v51 = vadd.f32 %v381_v8, %v46_v44  ;;  %v101_v52 = vpack.c.bf16 %v91_v46, %v90_v45  ;;  %v47_v61 = vmul.f32 %v376_v7, %v24_v55 }
   0xe   :  { %195 = vmatprep.mubr.bf16.mxu0 %v327_v1  ;;  %v76_v53 = vadd.f32 %v381_v8, %v53_v47  ;;  %v77_v54 = vadd.f32 %v381_v8, %v54_v48  ;;  %v84_v59 = vmax.f32 %v68_v50, 0.0  ;;  %v48_v62 = vmul.f32 %v376_v7, %v25_v56 }
   0xf   :  { %312 = vmatmul.mubr.msk.bf16.vlgmr.msra.gmra.mxu1 %vm128_vm0, %v100_v40  ;;  %v85_v60 = vmax.f32 %v69_v51, 0.0  ;;  %v55_v2 = vmul.f32 %v376_v7, %v32_v57  ;;  %v56_v3 = vmul.f32 %v376_v7, %v33_v58  ;;  %v70_v5 = vadd.f32 %v381_v8, %v47_v61 }
  0x10   :  { %235 = vmatprep.mubr.bf16.mxu1 %v327_v1  ;;  %v92_v63 = vmax.f32 %v76_v53, 0.0  ;;  %v93_v0 = vmax.f32 %v77_v54, 0.0  ;;  %v71_v6 = vadd.f32 %v381_v8, %v48_v62 }
  0x11   :  { %v98_v4 = vpack.c.bf16 %v85_v60, %v84_v59  ;;  %v78_v10 = vadd.f32 %v381_v8, %v55_v2  ;;  %v79_v11 = vadd.f32 %v381_v8, %v56_v3  ;;  %v86_v12 = vmax.f32 %v70_v5, 0.0 }
  0x12   :  { %v102_v9 = vpack.c.bf16 %v93_v0, %v92_v63  ;;  %v87_v13 = vmax.f32 %v71_v6, 0.0 }
  0x13   :  { %v94_v7 = vmax.f32 %v78_v10, 0.0  ;;  %v95_v14 = vmax.f32 %v79_v11, 0.0 }
  0x14   :  { %v99_v15 = vpack.c.bf16 %v87_v13, %v86_v12 }
  0x15   :  { %309 = vmatmul.mubr.msk.bf16.gmra.mxu0 %vm128_vm0, %v97_v49  ;;  %v103_v16 = vpack.c.bf16 %v95_v14, %v94_v7 }
  0x16   :  { %205 = vmatprep.mubr.bf16.mxu0 %v327_v1 }
  0x17   :  { %313 = vmatmul.mubr.msk.bf16.gmra.mxu1 %vm128_vm0, %v101_v52 }
  0x18   :  { %245 = vmatprep.mubr.bf16.mxu1 %v327_v1 }
  0x1d   :  { %310 = vmatmul.mubr.msk.bf16.gmra.mxu0 %vm128_vm0, %v98_v4 }
  0x1e   :  { %215 = vmatprep.mubr.bf16.mxu0 %v327_v1 }
  0x1f   :  { %314 = vmatmul.mubr.msk.bf16.gmra.mxu1 %vm128_vm0, %v102_v9 }
  0x20   :  { %255 = vmatprep.mubr.bf16.mxu1 %v327_v1 }
  0x25   :  { %311 = vmatmul.mubr.msk.bf16.gmra.mxu0 %vm128_vm0, %v99_v15 }
  0x27   :  { %315 = vmatmul.mubr.msk.bf16.gmra.mxu1 %vm128_vm0, %v103_v16 }
  0xcd   :  { %v187_v17 = vpop.f32.mrf.mxu0 }
  0xce   :  { %266 = vst [vmem:[%s571_s4] sm:$0xff] %v187_v17 }
  0xcf   :  { %v227_v8 = vpop.f32.mrf.mxu1  ;;  %v189_v18 = vpop.f32.mrf.mxu0 }
  0xd0   :  { %282 = vst [vmem:[%s571_s4 + $0x80] sm:$0xff] %v227_v8  ;;  %267 = vst [vmem:[%s571_s4 + $0x8] sm:$0xff] %v189_v18 }
  0xd1   :  { %v229_v1 = vpop.f32.mrf.mxu1  ;;  %v191_v19 = vpop.f32.mrf.mxu0 }
  0xd2   :  { %283 = vst [vmem:[%s571_s4 + $0x88] sm:$0xff] %v229_v1  ;;  %268 = vst [vmem:[%s571_s4 + $0x10] sm:$0xff] %v191_v19 }
  0xd3   :  { %v231_v20 = vpop.f32.mrf.mxu1  ;;  %v193_v21 = vpop.f32.mrf.mxu0 }
  0xd4   :  { %284 = vst [vmem:[%s571_s4 + $0x90] sm:$0xff] %v231_v20  ;;  %269 = vst [vmem:[%s571_s4 + $0x18] sm:$0xff] %v193_v21 }
  0xd5   :  { %v233_v22 = vpop.f32.mrf.mxu1  ;;  %v197_v23 = vpop.f32.mrf.mxu0 }
  0xd6   :  { %285 = vst [vmem:[%s571_s4 + $0x98] sm:$0xff] %v233_v22  ;;  %270 = vst [vmem:[%s571_s4 + $0x20] sm:$0xff] %v197_v23 }
  0xd7   :  { %v237_v24 = vpop.f32.mrf.mxu1  ;;  %v199_v25 = vpop.f32.mrf.mxu0 }
  0xd8   :  { %286 = vst [vmem:[%s571_s4 + $0xa0] sm:$0xff] %v237_v24  ;;  %271 = vst [vmem:[%s571_s4 + $0x28] sm:$0xff] %v199_v25 }
  0xd9   :  { %v239_v26 = vpop.f32.mrf.mxu1  ;;  %v201_v27 = vpop.f32.mrf.mxu0 }
  0xda   :  { %287 = vst [vmem:[%s571_s4 + $0xa8] sm:$0xff] %v239_v26  ;;  %272 = vst [vmem:[%s571_s4 + $0x30] sm:$0xff] %v201_v27 }
  0xdb   :  { %v241_v28 = vpop.f32.mrf.mxu1  ;;  %v203_v29 = vpop.f32.mrf.mxu0 }
  0xdc   :  { %288 = vst [vmem:[%s571_s4 + $0xb0] sm:$0xff] %v241_v28  ;;  %273 = vst [vmem:[%s571_s4 + $0x38] sm:$0xff] %v203_v29 }
  0xdd   :  { %v243_v30 = vpop.f32.mrf.mxu1  ;;  %v207_v31 = vpop.f32.mrf.mxu0 }
  0xde   :  { %289 = vst [vmem:[%s571_s4 + $0xb8] sm:$0xff] %v243_v30  ;;  %274 = vst [vmem:[%s571_s4 + $0x40] sm:$0xff] %v207_v31 }
  0xdf   :  { %v247_v32 = vpop.f32.mrf.mxu1  ;;  %v209_v33 = vpop.f32.mrf.mxu0 }
  0xe0   :  { %290 = vst [vmem:[%s571_s4 + $0xc0] sm:$0xff] %v247_v32  ;;  %275 = vst [vmem:[%s571_s4 + $0x48] sm:$0xff] %v209_v33 }
  0xe1   :  { %v249_v34 = vpop.f32.mrf.mxu1  ;;  %v211_v35 = vpop.f32.mrf.mxu0 }
  0xe2   :  { %291 = vst [vmem:[%s571_s4 + $0xc8] sm:$0xff] %v249_v34  ;;  %276 = vst [vmem:[%s571_s4 + $0x50] sm:$0xff] %v211_v35 }
  0xe3   :  { %v251_v36 = vpop.f32.mrf.mxu1  ;;  %v213_v37 = vpop.f32.mrf.mxu0 }
  0xe4   :  { %292 = vst [vmem:[%s571_s4 + $0xd0] sm:$0xff] %v251_v36  ;;  %277 = vst [vmem:[%s571_s4 + $0x58] sm:$0xff] %v213_v37 }
  0xe5   :  { %v253_v38 = vpop.f32.mrf.mxu1  ;;  %v217_v39 = vpop.f32.mrf.mxu0 }
  0xe6   :  { %293 = vst [vmem:[%s571_s4 + $0xd8] sm:$0xff] %v253_v38  ;;  %278 = vst [vmem:[%s571_s4 + $0x60] sm:$0xff] %v217_v39 }
  0xe7   :  { %v257_v40 = vpop.f32.mrf.mxu1  ;;  %v219_v41 = vpop.f32.mrf.mxu0 }
  0xe8   :  { %294 = vst [vmem:[%s571_s4 + $0xe0] sm:$0xff] %v257_v40  ;;  %279 = vst [vmem:[%s571_s4 + $0x68] sm:$0xff] %v219_v41 }
  0xe9   :  { %v259_v42 = vpop.f32.mrf.mxu1  ;;  %v221_v43 = vpop.f32.mrf.mxu0 }
  0xea   :  { %295 = vst [vmem:[%s571_s4 + $0xe8] sm:$0xff] %v259_v42  ;;  %280 = vst [vmem:[%s571_s4 + $0x70] sm:$0xff] %v221_v43 }
  0xeb   :  { %v261_v44 = vpop.f32.mrf.mxu1  ;;  %v223_v45 = vpop.f32.mrf.mxu0 }
  0xec   :  { %296 = vst [vmem:[%s571_s4 + $0xf0] sm:$0xff] %v261_v44  ;;  %281 = vst [vmem:[%s571_s4 + $0x78] sm:$0xff] %v223_v45 }
  0xed   :  { %v263_v46 = vpop.f32.mrf.mxu1 }
  0xee   :  { %297 = vst [vmem:[%s571_s4 + $0xf8] sm:$0xff] %v263_v46 }

// kernel: generator_forward.17
= control target key start
LH: loop header
LB: loop body
LE: loop exit
PB: predicated region body
PF: predicated region fallthrough
CT: control target
= control target key end

     0   :  { %s107_s0 = inlined_call_operand.vmem [shape: f32[64,128], index: 0, kind: input, shape index: {}]   ;;  %s108_s1 = inlined_call_operand.vmem [shape: f32[1,128], index: 1, kind: output, shape index: {0}]   ;;  %s109_s2 = inlined_call_operand.vmem [shape: f32[1,128], index: 2, kind: output, shape index: {1}]  }
   0x1   :  { %v10_v0 = vld [vmem:[%s107_s0] sm:$0xff]  ;;  %v11_v1 = vld [vmem:[%s107_s0 + $0x8] sm:$0xff]  ;;  %v12_v2 = vld [vmem:[%s107_s0 + $0x10] sm:$0xff] }
   0x2   :  { %v13_v3 = vld [vmem:[%s107_s0 + $0x18] sm:$0xff]  ;;  %v18_v4 = vadd.f32 %v11_v1, %v10_v0  ;;  %v32_v5 = vmul.f32 %v10_v0, %v10_v0  ;;  %v33_v6 = vmul.f32 %v11_v1, %v11_v1  ;;  %v34_v7 = vmul.f32 %v12_v2, %v12_v2  ;;  %v14_v8 = vld [vmem:[%s107_s0 + $0x20] sm:$0xff]  ;;  %v15_v12 = vld [vmem:[%s107_s0 + $0x28] sm:$0xff] }
   0x3   :  { %v35_v10 = vmul.f32 %v13_v3, %v13_v3  ;;  %v36_v14 = vmul.f32 %v14_v8, %v14_v8  ;;  %v16_v16 = vld [vmem:[%s107_s0 + $0x30] sm:$0xff]  ;;  %v37_v18 = vmul.f32 %v15_v12, %v15_v12  ;;  %v17_v20 = vld [vmem:[%s107_s0 + $0x38] sm:$0xff] }
   0x4   :  { %v19_v9 = vadd.f32 %v18_v4, %v12_v2  ;;  %v40_v11 = vadd.f32 %v33_v6, %v32_v5  ;;  %v38_v22 = vmul.f32 %v16_v16, %v16_v16  ;;  %v39_v25 = vmul.f32 %v17_v20, %v17_v20 }
   0x6   :  { %v20_v13 = vadd.f32 %v19_v9, %v13_v3  ;;  %v41_v15 = vadd.f32 %v40_v11, %v34_v7 }
   0x8   :  { %v21_v17 = vadd.f32 %v20_v13, %v14_v8  ;;  %v42_v19 = vadd.f32 %v41_v15, %v35_v10 }
   0xa   :  { %v22_v21 = vadd.f32 %v21_v17, %v15_v12  ;;  %v43_v23 = vadd.f32 %v42_v19, %v36_v14 }
   0xc   :  { %v23_v24 = vadd.f32 %v22_v21, %v16_v16  ;;  %v44_v26 = vadd.f32 %v43_v23, %v37_v18 }
   0xe   :  { %v24_v27 = vadd.f32 %v23_v24, %v17_v20  ;;  %v45_v28 = vadd.f32 %v44_v26, %v38_v22 }
  0x10   :  { %v25_v29 = vrot.slane %v24_v27, 4  ;;  %v46_v30 = vadd.f32 %v45_v28, %v39_v25 }
  0x12   :  { %v26_v31 = vadd.f32 %v25_v29, %v24_v27  ;;  %v47_v32 = vrot.slane %v46_v30, 4 }
  0x14   :  { %v27_v33 = vrot.slane %v26_v31, 2  ;;  %v48_v34 = vadd.f32 %v47_v32, %v46_v30 }
  0x16   :  { %v28_v35 = vadd.f32 %v27_v33, %v26_v31  ;;  %v49_v36 = vrot.slane %v48_v34, 2 }
  0x18   :  { %v29_v37 = vrot.slane %v28_v35, 1  ;;  %v50_v38 = vadd.f32 %v49_v36, %v48_v34 }
  0x1a   :  { %v30_v39 = vadd.f32 %v29_v37, %v28_v35  ;;  %v51_v40 = vrot.slane %v50_v38, 1 }
  0x1c   :  { %31 = vst [vmem:[%s108_s1] sm:$0x1] %v30_v39  ;;  %v52_v41 = vadd.f32 %v51_v40, %v50_v38 }
  0x1e   :  { %53 = vst [vmem:[%s109_s2] sm:$0x1] %v52_v41 }

// kernel: generator_forward.18
= control target key start
LH: loop header
LB: loop body
LE: loop exit
PB: predicated region body
PF: predicated region fallthrough
CT: control target
= control target key end

     0   :  { %vm328_vm0 = vcmask 130048   ;;  %s1501_s3 = inlined_call_operand.vmem [shape: bf16[16,128], index: 3, kind: input, shape index: {}]   ;;  %s1502_s0 = inlined_call_operand.vmem [shape: f32[512,16], index: 0, kind: input, shape index: {}]   ;;  %s1503_s1 = inlined_call_operand.vmem [shape: f32[1,16], index: 1, kind: input, shape index: {}]   ;;  %s1504_s2 = inlined_call_operand.vmem [shape: f32[1,16], index: 2, kind: input, shape index: {}]   ;;  %s1505_s4 = inlined_call_operand.vmem [shape: f32[512,128], index: 4, kind: output, shape index: {}]  }
   0x1   :  { %v918_v0 = vld [vmem:[%s1501_s3] sm:$0xff]   ;;  %v19_v2 = vld [vmem:[%s1502_s0 + $0x8] sm:$0xff]  ;;  %v20_v11 = vld [vmem:[%s1502_s0 + $0x10] sm:$0xff] }
   0x2   :  { %v18_v1 = vld [vmem:[%s1502_s0] sm:$0xff]  ;;  %850 = vmatprep.subr.bf16.mxu0 %v918_v0  ;;  %916 = vmatprep.subr.bf16.mxu1 %v918_v0  ;;  %v51_v8 = vld [vmem:[%s1502_s0 + $0x108] sm:$0xff]  ;;  %v21_v12 = vld [vmem:[%s1502_s0 + $0x18] sm:$0xff] }
   0x3   :  { %v956_v3 = vld [vmem:[%s1503_s1] ss:$0 sm:$0xff]  ;;  %851 = vmatpush3.bf16.msra.mxu0 %v918_v0  ;;  %917 = vmatpush3.bf16.msra.mxu1 %v918_v0  ;;  %v52_v13 = vld [vmem:[%s1502_s0 + $0x110] sm:$0xff]  ;;  %v53_v18 = vld [vmem:[%s1502_s0 + $0x118] sm:$0xff] }
   0x4   :  { %v89_v4 = vmul.f32 %v956_v3, %v18_v1  ;;  %v90_v5 = vmul.f32 %v956_v3, %v19_v2  ;;  %v963_v6 = vld [vmem:[%s1504_s2] ss:$0 sm:$0xff]  ;;  %v122_v10 = vmul.f32 %v956_v3, %v51_v8  ;;  %v91_v16 = vmul.f32 %v956_v3, %v20_v11  ;;  %v23_v28 = vld [vmem:[%s1502_s0 + $0x28] sm:$0xff]  ;;  %v24_v39 = vld [vmem:[%s1502_s0 + $0x30] sm:$0xff] }
   0x5   :  { %v50_v7 = vld [vmem:[%s1502_s0 + $0x100] sm:$0xff]  ;;  %v92_v17 = vmul.f32 %v956_v3, %v21_v12  ;;  %v123_v21 = vmul.f32 %v956_v3, %v52_v13  ;;  %v124_v22 = vmul.f32 %v956_v3, %v53_v18  ;;  %v55_v34 = vld [vmem:[%s1502_s0 + $0x128] sm:$0xff]  ;;  %v25_v40 = vld [vmem:[%s1502_s0 + $0x38] sm:$0xff]  ;;  %v94_v44 = vmul.f32 %v956_v3, %v23_v28 }
   0x6   :  { %v121_v9 = vmul.f32 %v956_v3, %v50_v7  ;;  %v160_v14 = vadd.f32 %v963_v6, %v89_v4  ;;  %v161_v15 = vadd.f32 %v963_v6, %v90_v5  ;;  %v193_v20 = vadd.f32 %v963_v6, %v122_v10  ;;  %v22_v23 = vld [vmem:[%s1502_s0 + $0x20] sm:$0xff]  ;;  %v56_v45 = vld [vmem:[%s1502_s0 + $0x130] sm:$0xff]  ;;  %v57_v50 = vld [vmem:[%s1502_s0 + $0x138] sm:$0xff] }
   0x7   :  { %v162_v26 = vadd.f32 %v963_v6, %v91_v16  ;;  %v163_v27 = vadd.f32 %v963_v6, %v92_v17  ;;  %v194_v31 = vadd.f32 %v963_v6, %v123_v21  ;;  %v195_v32 = vadd.f32 %v963_v6, %v124_v22  ;;  %v54_v33 = vld [vmem:[%s1502_s0 + $0x120] sm:$0xff]  ;;  %v27_v0 = vld [vmem:[%s1502_s0 + $0x48] sm:$0xff]  ;;  %v28_v13 = vld [vmem:[%s1502_s0 + $0x50] sm:$0xff] }
   0x8   :  { %v192_v19 = vadd.f32 %v963_v6, %v121_v9  ;;  %v224_v24 = vmax.f32 %v160_v14, 0.0  ;;  %v225_v25 = vmax.f32 %v161_v15, 0.0  ;;  %v257_v30 = vmax.f32 %v193_v20, 0.0  ;;  %v26_v55 = vld [vmem:[%s1502_s0 + $0x40] sm:$0xff]  ;;  %v59_v8 = vld [vmem:[%s1502_s0 + $0x148] sm:$0xff]  ;;  %v29_v14 = vld [vmem:[%s1502_s0 + $0x58] sm:$0xff] }
   0x9   :  { %v226_v36 = vmax.f32 %v162_v26, 0.0  ;;  %v227_v37 = vmax.f32 %v163_v27, 0.0  ;;  %v93_v38 = vmul.f32 %v956_v3, %v22_v23  ;;  %v258_v42 = vmax.f32 %v194_v31, 0.0  ;;  %v58_v7 = vld [vmem:[%s1502_s0 + $0x140] sm:$0xff] }
   0xa   :  { %v256_v29 = vmax.f32 %v192_v19, 0.0  ;;  %v288_v35 = vpack.c.bf16 %v225_v25, %v224_v24  ;;  %v259_v43 = vmax.f32 %v195_v32, 0.0  ;;  %v125_v48 = vmul.f32 %v956_v3, %v54_v33  ;;  %v60_v19 = vld [vmem:[%s1502_s0 + $0x150] sm:$0xff]  ;;  %v61_v24 = vld [vmem:[%s1502_s0 + $0x158] sm:$0xff] }
   0xb   :  { %v289_v46 = vpack.c.bf16 %v227_v37, %v226_v36  ;;  %v164_v47 = vadd.f32 %v963_v6, %v93_v38  ;;  %v126_v49 = vmul.f32 %v956_v3, %v55_v34  ;;  %v165_v52 = vadd.f32 %v963_v6, %v94_v44  ;;  %v31_v38 = vld [vmem:[%s1502_s0 + $0x68] sm:$0xff] }
   0xc   :  { %v304_v41 = vpack.c.bf16 %v257_v30, %v256_v29  ;;  %852 = vmatprep.mubr.msk.bf16.mxu0 %vm328_vm0, %v288_v35  ;;  %v305_v51 = vpack.c.bf16 %v259_v43, %v258_v42  ;;  %v95_v53 = vmul.f32 %v956_v3, %v24_v39  ;;  %v96_v54 = vmul.f32 %v956_v3, %v25_v40  ;;  %v30_v29 = vld [vmem:[%s1502_s0 + $0x60] sm:$0xff]  ;;  %v63_v44 = vld [vmem:[%s1502_s0 + $0x168] sm:$0xff] }
   0xd   :  { %853 = vmatmul.mubr.msk.bf16.vlgmr.msra.gmra.mxu0 %vm328_vm0, %v289_v46  ;;  %v228_v56 = vmax.f32 %v164_v47, 0.0  ;;  %v196_v57 = vadd.f32 %v963_v6, %v125_v48  ;;  %v197_v58 = vadd.f32 %v963_v6, %v126_v49  ;;  %v127_v59 = vmul.f32 %v956_v3, %v56_v45  ;;  %v62_v43 = vld [vmem:[%s1502_s0 + $0x160] sm:$0xff]  ;;  %v32_v49 = vld [vmem:[%s1502_s0 + $0x70] sm:$0xff] }
   0xe   :  { %884 = vmatprep.mubr.msk.bf16.mxu1 %vm328_vm0, %v304_v41  ;;  %v229_v60 = vmax.f32 %v165_v52, 0.0  ;;  %v166_v61 = vadd.f32 %v963_v6, %v95_v53  ;;  %v167_v62 = vadd.f32 %v963_v6, %v96_v54  ;;  %v128_v63 = vmul.f32 %v956_v3, %v57_v50  ;;  %v33_v50 = vld [vmem:[%s1502_s0 + $0x78] sm:$0xff] }
   0xf   :  { %885 = vmatmul.mubr.msk.bf16.vlgmr.msra.gmra.mxu1 %vm328_vm0, %v305_v51  ;;  %v260_v1 = vmax.f32 %v196_v57, 0.0  ;;  %v261_v2 = vmax.f32 %v197_v58, 0.0  ;;  %v198_v4 = vadd.f32 %v963_v6, %v127_v59  ;;  %v97_v5 = vmul.f32 %v956_v3, %v26_v55  ;;  %v64_v55 = vld [vmem:[%s1502_s0 + $0x170] sm:$0xff] }
  0x10   :  { %v290_v9 = vpack.c.bf16 %v229_v60, %v228_v56  ;;  %v230_v10 = vmax.f32 %v166_v61, 0.0  ;;  %v231_v11 = vmax.f32 %v167_v62, 0.0  ;;  %v199_v12 = vadd.f32 %v963_v6, %v128_v63  ;;  %v65_v60 = vld [vmem:[%s1502_s0 + $0x178] sm:$0xff] }
  0x11   :  { %v306_v15 = vpack.c.bf16 %v261_v2, %v260_v1  ;;  %v262_v16 = vmax.f32 %v198_v4, 0.0  ;;  %v98_v17 = vmul.f32 %v956_v3, %v27_v0  ;;  %v168_v18 = vadd.f32 %v963_v6, %v97_v5  ;;  %v34_v1 = vld [vmem:[%s1502_s0 + $0x80] sm:$0xff] }
  0x12   :  { %856 = vmatprep.mubr.msk.bf16.mxu0 %vm328_vm0, %v290_v9  ;;  %v291_v20 = vpack.c.bf16 %v231_v11, %v230_v10  ;;  %v263_v21 = vmax.f32 %v199_v12, 0.0  ;;  %v129_v22 = vmul.f32 %v956_v3, %v58_v7  ;;  %v130_v23 = vmul.f32 %v956_v3, %v59_v8  ;;  %v35_v12 = vld [vmem:[%s1502_s0 + $0x88] sm:$0xff] }
  0x13   :  { %888 = vmatprep.mubr.msk.bf16.mxu1 %vm328_vm0, %v306_v15  ;;  %v169_v25 = vadd.f32 %v963_v6, %v98_v17  ;;  %v232_v26 = vmax.f32 %v168_v18, 0.0  ;;  %v99_v27 = vmul.f32 %v956_v3, %v28_v13  ;;  %v100_v28 = vmul.f32 %v956_v3, %v29_v14  ;;  %v66_v17 = vld [vmem:[%s1502_s0 + $0x180] sm:$0xff]  ;;  %v67_v18 = vld [vmem:[%s1502_s0 + $0x188] sm:$0xff] }
  0x14   :  { %v307_v30 = vpack.c.bf16 %v263_v21, %v262_v16  ;;  %v200_v31 = vadd.f32 %v963_v6, %v129_v22  ;;  %v201_v32 = vadd.f32 %v963_v6, %v130_v23  ;;  %v131_v33 = vmul.f32 %v956_v3, %v60_v19  ;;  %v36_v23 = vld [vmem:[%s1502_s0 + $0x90] sm:$0xff] }
  0x15   :  { %857 = vmatmul.mubr.msk.bf16.gmra.mxu0 %vm328_vm0, %v291_v20  ;;  %v233_v34 = vmax.f32 %v169_v25, 0.0  ;;  %v170_v35 = vadd.f32 %v963_v6, %v99_v27  ;;  %v171_v36 = vadd.f32 %v963_v6, %v100_v28  ;;  %v132_v37 = vmul.f32 %v956_v3, %v61_v24  ;;  %v37_v24 = vld [vmem:[%s1502_s0 + $0x98] sm:$0xff] }
  0x16   :  { %v264_v39 = vmax.f32 %v200_v31, 0.0  ;;  %v265_v40 = vmax.f32 %v201_v32, 0.0  ;;  %v202_v41 = vadd.f32 %v963_v6, %v131_v33  ;;  %v101_v42 = vmul.f32 %v956_v3, %v30_v29  ;;  %v68_v29 = vld [vmem:[%s1502_s0 + $0x190] sm:$0xff] }
  0x17   :  { %889 = vmatmul.mubr.msk.bf16.gmra.mxu1 %vm328_vm0, %v307_v30  ;;  %v292_v45 = vpack.c.bf16 %v233_v34, %v232_v26  ;;  %v234_v46 = vmax.f32 %v170_v35, 0.0  ;;  %v235_v47 = vmax.f32 %v171_v36, 0.0  ;;  %v203_v48 = vadd.f32 %v963_v6, %v132_v37  ;;  %v69_v34 = vld [vmem:[%s1502_s0 + $0x198] sm:$0xff] }
  0x18   :  { %v308_v51 = vpack.c.bf16 %v265_v40, %v264_v39  ;;  %v266_v52 = vmax.f32 %v202_v41, 0.0  ;;  %v102_v53 = vmul.f32 %v956_v3, %v31_v38  ;;  %v172_v54 = vadd.f32 %v963_v6, %v101_v42  ;;  %v38_v39 = vld [vmem:[%s1502_s0 + $0xa0] sm:$0xff] }
  0x19   :  { %860 = vmatprep.mubr.msk.bf16.mxu0 %vm328_vm0, %v292_v45  ;;  %v293_v56 = vpack.c.bf16 %v235_v47, %v234_v46  ;;  %v267_v57 = vmax.f32 %v203_v48, 0.0  ;;  %v133_v58 = vmul.f32 %v956_v3, %v62_v43  ;;  %v134_v59 = vmul.f32 %v956_v3, %v63_v44  ;;  %v39_v48 = vld [vmem:[%s1502_s0 + $0xa8] sm:$0xff] }
  0x1a   :  { %892 = vmatprep.mubr.msk.bf16.mxu1 %vm328_vm0, %v308_v51  ;;  %v173_v61 = vadd.f32 %v963_v6, %v102_v53  ;;  %v236_v62 = vmax.f32 %v172_v54, 0.0  ;;  %v103_v63 = vmul.f32 %v956_v3, %v32_v49  ;;  %v104_v0 = vmul.f32 %v956_v3, %v33_v50  ;;  %v70_v53 = vld [vmem:[%s1502_s0 + $0x1a0] sm:$0xff]  ;;  %v71_v54 = vld [vmem:[%s1502_s0 + $0x1a8] sm:$0xff] }
  0x1b   :  { %v309_v2 = vpack.c.bf16 %v267_v57, %v266_v52  ;;  %v204_v4 = vadd.f32 %v963_v6, %v133_v58  ;;  %v205_v5 = vadd.f32 %v963_v6, %v134_v59  ;;  %v135_v7 = vmul.f32 %v956_v3, %v64_v55  ;;  %v40_v59 = vld [vmem:[%s1502_s0 + $0xb0] sm:$0xff] }
  0x1c   :  { %v237_v8 = vmax.f32 %v173_v61, 0.0  ;;  %v174_v9 = vadd.f32 %v963_v6, %v103_v63  ;;  %v175_v10 = vadd.f32 %v963_v6, %v104_v0  ;;  %v136_v11 = vmul.f32 %v956_v3, %v65_v60  ;;  %v41_v60 = vld [vmem:[%s1502_s0 + $0xb8] sm:$0xff] }
  0x1d   :  { %861 = vmatmul.mubr.msk.bf16.gmra.mxu0 %vm328_vm0, %v293_v56  ;;  %v268_v13 = vmax.f32 %v204_v4, 0.0  ;;  %v269_v14 = vmax.f32 %v205_v5, 0.0  ;;  %v206_v15 = vadd.f32 %v963_v6, %v135_v7  ;;  %v105_v16 = vmul.f32 %v956_v3, %v34_v1  ;;  %v72_v1 = vld [vmem:[%s1502_s0 + $0x1b0] sm:$0xff] }
  0x1e   :  { %v294_v19 = vpack.c.bf16 %v237_v8, %v236_v62  ;;  %v238_v20 = vmax.f32 %v174_v9, 0.0  ;;  %v239_v21 = vmax.f32 %v175_v10, 0.0  ;;  %v207_v22 = vadd.f32 %v963_v6, %v136_v11  ;;  %v73_v8 = vld [vmem:[%s1502_s0 + $0x1b8] sm:$0xff] }
  0x1f   :  { %893 = vmatmul.mubr.msk.bf16.gmra.mxu1 %vm328_vm0, %v309_v2  ;;  %v310_v25 = vpack.c.bf16 %v269_v14, %v268_v13  ;;  %v270_v26 = vmax.f32 %v206_v15, 0.0  ;;  %v106_v27 = vmul.f32 %v956_v3, %v35_v12  ;;  %v176_v28 = vadd.f32 %v963_v6, %v105_v16  ;;  %v42_v13 = vld [vmem:[%s1502_s0 + $0xc0] sm:$0xff] }
  0x20   :  { %864 = vmatprep.mubr.msk.bf16.mxu0 %vm328_vm0, %v294_v19  ;;  %v295_v30 = vpack.c.bf16 %v239_v21, %v238_v20  ;;  %v271_v31 = vmax.f32 %v207_v22, 0.0  ;;  %v137_v32 = vmul.f32 %v956_v3, %v66_v17  ;;  %v138_v33 = vmul.f32 %v956_v3, %v67_v18  ;;  %v43_v22 = vld [vmem:[%s1502_s0 + $0xc8] sm:$0xff] }
  0x21   :  { %896 = vmatprep.mubr.msk.bf16.mxu1 %vm328_vm0, %v310_v25  ;;  %v177_v35 = vadd.f32 %v963_v6, %v106_v27  ;;  %v240_v36 = vmax.f32 %v176_v28, 0.0  ;;  %v107_v37 = vmul.f32 %v956_v3, %v36_v23  ;;  %v108_v38 = vmul.f32 %v956_v3, %v37_v24  ;;  %v74_v27 = vld [vmem:[%s1502_s0 + $0x1c0] sm:$0xff]  ;;  %v75_v28 = vld [vmem:[%s1502_s0 + $0x1c8] sm:$0xff] }
  0x22   :  { %v311_v40 = vpack.c.bf16 %v271_v31, %v270_v26  ;;  %v208_v41 = vadd.f32 %v963_v6, %v137_v32  ;;  %v209_v42 = vadd.f32 %v963_v6, %v138_v33  ;;  %v139_v43 = vmul.f32 %v956_v3, %v68_v29  ;;  %v44_v33 = vld [vmem:[%s1502_s0 + $0xd0] sm:$0xff] }
  0x23   :  { %v241_v44 = vmax.f32 %v177_v35, 0.0  ;;  %v178_v45 = vadd.f32 %v963_v6, %v107_v37  ;;  %v179_v46 = vadd.f32 %v963_v6, %v108_v38  ;;  %v140_v47 = vmul.f32 %v956_v3, %v69_v34  ;;  %v45_v34 = vld [vmem:[%s1502_s0 + $0xd8] sm:$0xff] }
  0x24   :  { %v272_v49 = vmax.f32 %v208_v41, 0.0  ;;  %v273_v50 = vmax.f32 %v209_v42, 0.0  ;;  %v210_v51 = vadd.f32 %v963_v6, %v139_v43  ;;  %v109_v52 = vmul.f32 %v956_v3, %v38_v39  ;;  %v76_v39 = vld [vmem:[%s1502_s0 + $0x1d0] sm:$0xff] }
  0x25   :  { %865 = vmatmul.mubr.msk.bf16.gmra.mxu0 %vm328_vm0, %v295_v30  ;;  %v296_v55 = vpack.c.bf16 %v241_v44, %v240_v36  ;;  %v242_v56 = vmax.f32 %v178_v45, 0.0  ;;  %v243_v57 = vmax.f32 %v179_v46, 0.0  ;;  %v211_v58 = vadd.f32 %v963_v6, %v140_v47  ;;  %v77_v44 = vld [vmem:[%s1502_s0 + $0x1d8] sm:$0xff] }
  0x26   :  { %v312_v61 = vpack.c.bf16 %v273_v50, %v272_v49  ;;  %v274_v62 = vmax.f32 %v210_v51, 0.0  ;;  %v110_v63 = vmul.f32 %v956_v3, %v39_v48  ;;  %v180_v0 = vadd.f32 %v963_v6, %v109_v52  ;;  %v46_v49 = vld [vmem:[%s1502_s0 + $0xe0] sm:$0xff] }
  0x27   :  { %897 = vmatmul.mubr.msk.bf16.gmra.mxu1 %vm328_vm0, %v311_v40  ;;  %868 = vmatprep.mubr.msk.bf16.mxu0 %vm328_vm0, %v296_v55  ;;  %v297_v2 = vpack.c.bf16 %v243_v57, %v242_v56  ;;  %v275_v4 = vmax.f32 %v211_v58, 0.0  ;;  %v141_v5 = vmul.f32 %v956_v3, %v70_v53  ;;  %v142_v7 = vmul.f32 %v956_v3, %v71_v54  ;;  %v47_v58 = vld [vmem:[%s1502_s0 + $0xe8] sm:$0xff] }
  0x28   :  { %900 = vmatprep.mubr.msk.bf16.mxu1 %vm328_vm0, %v312_v61  ;;  %v181_v9 = vadd.f32 %v963_v6, %v110_v63  ;;  %v244_v10 = vmax.f32 %v180_v0, 0.0  ;;  %v111_v11 = vmul.f32 %v956_v3, %v40_v59  ;;  %v112_v12 = vmul.f32 %v956_v3, %v41_v60  ;;  %v78_v63 = vld [vmem:[%s1502_s0 + $0x1e0] sm:$0xff]  ;;  %v79_v0 = vld [vmem:[%s1502_s0 + $0x1e8] sm:$0xff] }
  0x29   :  { %v313_v14 = vpack.c.bf16 %v275_v4, %v274_v62  ;;  %v212_v15 = vadd.f32 %v963_v6, %v141_v5  ;;  %v213_v16 = vadd.f32 %v963_v6, %v142_v7  ;;  %v143_v17 = vmul.f32 %v956_v3, %v72_v1  ;;  %v48_v5 = vld [vmem:[%s1502_s0 + $0xf0] sm:$0xff]  ;;  %v49_v7 = vld [vmem:[%s1502_s0 + $0xf8] sm:$0xff] }
  0x2a   :  { %v245_v18 = vmax.f32 %v181_v9, 0.0  ;;  %v182_v19 = vadd.f32 %v963_v6, %v111_v11  ;;  %v183_v20 = vadd.f32 %v963_v6, %v112_v12  ;;  %v144_v21 = vmul.f32 %v956_v3, %v73_v8  ;;  %v80_v12 = vld [vmem:[%s1502_s0 + $0x1f0] sm:$0xff] }
  0x2b   :  { %v276_v23 = vmax.f32 %v212_v15, 0.0  ;;  %v277_v24 = vmax.f32 %v213_v16, 0.0  ;;  %v214_v25 = vadd.f32 %v963_v6, %v143_v17  ;;  %v113_v26 = vmul.f32 %v956_v3, %v42_v13  ;;  %v81_v17 = vld [vmem:[%s1502_s0 + $0x1f8] sm:$0xff] }
  0x2c   :  { %v298_v29 = vpack.c.bf16 %v245_v18, %v244_v10  ;;  %v246_v30 = vmax.f32 %v182_v19, 0.0  ;;  %v247_v31 = vmax.f32 %v183_v20, 0.0  ;;  %v215_v32 = vadd.f32 %v963_v6, %v144_v21 }
  0x2d   :  { %869 = vmatmul.mubr.msk.bf16.gmra.mxu0 %vm328_vm0, %v297_v2  ;;  %v314_v35 = vpack.c.bf16 %v277_v24, %v276_v23  ;;  %v278_v36 = vmax.f32 %v214_v25, 0.0  ;;  %v114_v37 = vmul.f32 %v956_v3, %v43_v22  ;;  %v184_v38 = vadd.f32 %v963_v6, %v113_v26 }
  0x2e   :  { %872 = vmatprep.mubr.msk.bf16.mxu0 %vm328_vm0, %v298_v29  ;;  %v299_v40 = vpack.c.bf16 %v247_v31, %v246_v30  ;;  %v279_v41 = vmax.f32 %v215_v32, 0.0  ;;  %v145_v42 = vmul.f32 %v956_v3, %v74_v27  ;;  %v146_v43 = vmul.f32 %v956_v3, %v75_v28 }
  0x2f   :  { %901 = vmatmul.mubr.msk.bf16.gmra.mxu1 %vm328_vm0, %v313_v14  ;;  %v185_v45 = vadd.f32 %v963_v6, %v114_v37  ;;  %v248_v46 = vmax.f32 %v184_v38, 0.0  ;;  %v115_v47 = vmul.f32 %v956_v3, %v44_v33  ;;  %v116_v48 = vmul.f32 %v956_v3, %v45_v34 }
  0x30   :  { %904 = vmatprep.mubr.msk.bf16.mxu1 %vm328_vm0, %v314_v35  ;;  %v315_v50 = vpack.c.bf16 %v279_v41, %v278_v36  ;;  %v216_v51 = vadd.f32 %v963_v6, %v145_v42  ;;  %v217_v52 = vadd.f32 %v963_v6, %v146_v43  ;;  %v147_v53 = vmul.f32 %v956_v3, %v76_v39 }
  0x31   :  { %v249_v54 = vmax.f32 %v185_v45, 0.0  ;;  %v186_v55 = vadd.f32 %v963_v6, %v115_v47  ;;  %v187_v56 = vadd.f32 %v963_v6, %v116_v48  ;;  %v148_v57 = vmul.f32 %v956_v3, %v77_v44 }
  0x32   :  { %v280_v59 = vmax.f32 %v216_v51, 0.0  ;;  %v281_v60 = vmax.f32 %v217_v52, 0.0  ;;  %v218_v61 = vadd.f32 %v963_v6, %v147_v53  ;;  %v117_v62 = vmul.f32 %v956_v3, %v46_v49 }
  0x33   :  { %v300_v1 = vpack.c.bf16 %v249_v54, %v248_v46  ;;  %v250_v2 = vmax.f32 %v186_v55, 0.0  ;;  %v219_v4 = vadd.f32 %v963_v6, %v148_v57  ;;  %v251_v9 = vmax.f32 %v187_v56, 0.0 }
  0x34   :  { %v316_v8 = vpack.c.bf16 %v281_v60, %v280_v59  ;;  %v118_v10 = vmul.f32 %v956_v3, %v47_v58  ;;  %v188_v11 = vadd.f32 %v963_v6, %v117_v62  ;;  %v282_v13 = vmax.f32 %v218_v61, 0.0 }
  0x35   :  { %873 = vmatmul.mubr.msk.bf16.gmra.mxu0 %vm328_vm0, %v299_v40  ;;  %v283_v14 = vmax.f32 %v219_v4, 0.0  ;;  %v149_v15 = vmul.f32 %v956_v3, %v78_v63  ;;  %v150_v16 = vmul.f32 %v956_v3, %v79_v0  ;;  %v119_v20 = vmul.f32 %v956_v3, %v48_v5 }
  0x36   :  { %876 = vmatprep.mubr.msk.bf16.mxu0 %vm328_vm0, %v300_v1  ;;  %v189_v18 = vadd.f32 %v963_v6, %v118_v10  ;;  %v252_v19 = vmax.f32 %v188_v11, 0.0  ;;  %v120_v21 = vmul.f32 %v956_v3, %v49_v7  ;;  %v151_v24 = vmul.f32 %v956_v3, %v80_v12 }
  0x37   :  { %905 = vmatmul.mubr.msk.bf16.gmra.mxu1 %vm328_vm0, %v315_v50  ;;  %v220_v22 = vadd.f32 %v963_v6, %v149_v15  ;;  %v221_v23 = vadd.f32 %v963_v6, %v150_v16  ;;  %v301_v25 = vpack.c.bf16 %v251_v9, %v250_v2  ;;  %v152_v27 = vmul.f32 %v956_v3, %v81_v17 }
  0x38   :  { %908 = vmatprep.mubr.msk.bf16.mxu1 %vm328_vm0, %v316_v8  ;;  %v253_v26 = vmax.f32 %v189_v18, 0.0  ;;  %v190_v30 = vadd.f32 %v963_v6, %v119_v20  ;;  %v191_v31 = vadd.f32 %v963_v6, %v120_v21  ;;  %v317_v32 = vpack.c.bf16 %v283_v14, %v282_v13 }
  0x39   :  { %v284_v28 = vmax.f32 %v220_v22, 0.0  ;;  %v285_v29 = vmax.f32 %v221_v23, 0.0  ;;  %v222_v34 = vadd.f32 %v963_v6, %v151_v24  ;;  %v223_v35 = vadd.f32 %v963_v6, %v152_v27 }
  0x3a   :  { %v302_v33 = vpack.c.bf16 %v253_v26, %v252_v19  ;;  %v254_v37 = vmax.f32 %v190_v30, 0.0  ;;  %v255_v38 = vmax.f32 %v191_v31, 0.0 }
  0x3b   :  { %v318_v36 = vpack.c.bf16 %v285_v29, %v284_v28  ;;  %v286_v3 = vmax.f32 %v222_v34, 0.0  ;;  %v287_v39 = vmax.f32 %v223_v35, 0.0 }
  0x3c   :  { %v303_v40 = vpack.c.bf16 %v255_v38, %v254_v37 }
  0x3d   :  { %877 = vmatmul.mubr.msk.bf16.gmra.mxu0 %vm328_vm0, %v301_v25  ;;  %v319_v41 = vpack.c.bf16 %v287_v39, %v286_v3 }
  0x3e   :  { %880 = vmatprep.mubr.msk.bf16.mxu0 %vm328_vm0, %v302_v33 }
  0x3f   :  { %909 = vmatmul.mubr.msk.bf16.gmra.mxu1 %vm328_vm0, %v317_v32 }
  0x40   :  { %912 = vmatprep.mubr.msk.bf16.mxu1 %vm328_vm0, %v318_v36 }
  0x45   :  { %881 = vmatmul.mubr.msk.bf16.gmra.mxu0 %vm328_vm0, %v303_v40 }
  0x47   :  { %913 = vmatmul.mubr.msk.bf16.gmra.mxu1 %vm328_vm0, %v319_v41 }
  0xcd   :  { %v854_v6 = vpop.f32.mrf.mxu0 }
  0xce   :  { %716 = vst [vmem:[%s1505_s4 + $0x10] sm:$0xff] %v854_v6 }
  0xcf   :  { %v886_v42 = vpop.f32.mrf.mxu1  ;;  %v459_v43 = vpop.f32.mrf.mxu0 }
  0xd0   :  { %748 = vst [vmem:[%s1505_s4 + $0x110] sm:$0xff] %v886_v42  ;;  %714 = vst [vmem:[%s1505_s4] sm:$0xff] %v459_v43 }
  0xd1   :  { %v587_v44 = vpop.f32.mrf.mxu1  ;;  %v855_v45 = vpop.f32.mrf.mxu0 }
  0xd2   :  { %746 = vst [vmem:[%s1505_s4 + $0x100] sm:$0xff] %v587_v44  ;;  %717 = vst [vmem:[%s1505_s4 + $0x18] sm:$0xff] %v855_v45 }
  0xd3   :  { %v887_v46 = vpop.f32.mrf.mxu1  ;;  %v462_v47 = vpop.f32.mrf.mxu0 }
  0xd4   :  { %749 = vst [vmem:[%s1505_s4 + $0x118] sm:$0xff] %v887_v46  ;;  %715 = vst [vmem:[%s1505_s4 + $0x8] sm:$0xff] %v462_v47 }
  0xd5   :  { %v590_v48 = vpop.f32.mrf.mxu1  ;;  %v858_v49 = vpop.f32.mrf.mxu0 }
  0xd6   :  { %747 = vst [vmem:[%s1505_s4 + $0x108] sm:$0xff] %v590_v48  ;;  %720 = vst [vmem:[%s1505_s4 + $0x30] sm:$0xff] %v858_v49 }
  0xd7   :  { %v890_v50 = vpop.f32.mrf.mxu1  ;;  %v475_v51 = vpop.f32.mrf.mxu0 }
  0xd8   :  { %752 = vst [vmem:[%s1505_s4 + $0x130] sm:$0xff] %v890_v50  ;;  %718 = vst [vmem:[%s1505_s4 + $0x20] sm:$0xff] %v475_v51 }
  0xd9   :  { %v603_v52 = vpop.f32.mrf.mxu1  ;;  %v859_v53 = vpop.f32.mrf.mxu0 }
  0xda   :  { %750 = vst [vmem:[%s1505_s4 + $0x120] sm:$0xff] %v603_v52  ;;  %721 = vst [vmem:[%s1505_s4 + $0x38] sm:$0xff] %v859_v53 }
  0xdb   :  { %v891_v54 = vpop.f32.mrf.mxu1  ;;  %v478_v55 = vpop.f32.mrf.mxu0 }
  0xdc   :  { %753 = vst [vmem:[%s1505_s4 + $0x138] sm:$0xff] %v891_v54  ;;  %719 = vst [vmem:[%s1505_s4 + $0x28] sm:$0xff] %v478_v55 }
  0xdd   :  { %v606_v56 = vpop.f32.mrf.mxu1  ;;  %v862_v57 = vpop.f32.mrf.mxu0 }
  0xde   :  { %751 = vst [vmem:[%s1505_s4 + $0x128] sm:$0xff] %v606_v56  ;;  %724 = vst [vmem:[%s1505_s4 + $0x50] sm:$0xff] %v862_v57 }
  0xdf   :  { %v894_v58 = vpop.f32.mrf.mxu1  ;;  %v491_v59 = vpop.f32.mrf.mxu0 }
  0xe0   :  { %756 = vst [vmem:[%s1505_s4 + $0x150] sm:$0xff] %v894_v58  ;;  %722 = vst [vmem:[%s1505_s4 + $0x40] sm:$0xff] %v491_v59 }
  0xe1   :  { %v619_v60 = vpop.f32.mrf.mxu1  ;;  %v863_v61 = vpop.f32.mrf.mxu0 }
  0xe2   :  { %754 = vst [vmem:[%s1505_s4 + $0x140] sm:$0xff] %v619_v60  ;;  %725 = vst [vmem:[%s1505_s4 + $0x58] sm:$0xff] %v863_v61 }
  0xe3   :  { %v895_v62 = vpop.f32.mrf.mxu1  ;;  %v494_v63 = vpop.f32.mrf.mxu0 }
  0xe4   :  { %757 = vst [vmem:[%s1505_s4 + $0x158] sm:$0xff] %v895_v62  ;;  %723 = vst [vmem:[%s1505_s4 + $0x48] sm:$0xff] %v494_v63 }
  0xe5   :  { %v622_v0 = vpop.f32.mrf.mxu1  ;;  %v866_v1 = vpop.f32.mrf.mxu0 }
  0xe6   :  { %755 = vst [vmem:[%s1505_s4 + $0x148] sm:$0xff] %v622_v0  ;;  %728 = vst [vmem:[%s1505_s4 + $0x70] sm:$0xff] %v866_v1 }
  0xe7   :  { %v898_v2 = vpop.f32.mrf.mxu1  ;;  %v507_v4 = vpop.f32.mrf.mxu0 }
  0xe8   :  { %760 = vst [vmem:[%s1505_s4 + $0x170] sm:$0xff] %v898_v2  ;;  %726 = vst [vmem:[%s1505_s4 + $0x60] sm:$0xff] %v507_v4 }
  0xe9   :  { %v635_v5 = vpop.f32.mrf.mxu1  ;;  %v867_v7 = vpop.f32.mrf.mxu0 }
  0xea   :  { %758 = vst [vmem:[%s1505_s4 + $0x160] sm:$0xff] %v635_v5  ;;  %729 = vst [vmem:[%s1505_s4 + $0x78] sm:$0xff] %v867_v7 }
  0xeb   :  { %v899_v8 = vpop.f32.mrf.mxu1  ;;  %v510_v9 = vpop.f32.mrf.mxu0 }
  0xec   :  { %761 = vst [vmem:[%s1505_s4 + $0x178] sm:$0xff] %v899_v8  ;;  %727 = vst [vmem:[%s1505_s4 + $0x68] sm:$0xff] %v510_v9 }
  0xed   :  { %v638_v10 = vpop.f32.mrf.mxu1  ;;  %v870_v11 = vpop.f32.mrf.mxu0 }
  0xee   :  { %759 = vst [vmem:[%s1505_s4 + $0x168] sm:$0xff] %v638_v10  ;;  %732 = vst [vmem:[%s1505_s4 + $0x90] sm:$0xff] %v870_v11 }
  0xef   :  { %v902_v12 = vpop.f32.mrf.mxu1  ;;  %v523_v13 = vpop.f32.mrf.mxu0 }
  0xf0   :  { %764 = vst [vmem:[%s1505_s4 + $0x190] sm:$0xff] %v902_v12  ;;  %730 = vst [vmem:[%s1505_s4 + $0x80] sm:$0xff] %v523_v13 }
  0xf1   :  { %v651_v14 = vpop.f32.mrf.mxu1  ;;  %v871_v15 = vpop.f32.mrf.mxu0 }
  0xf2   :  { %762 = vst [vmem:[%s1505_s4 + $0x180] sm:$0xff] %v651_v14  ;;  %733 = vst [vmem:[%s1505_s4 + $0x98] sm:$0xff] %v871_v15 }
  0xf3   :  { %v903_v16 = vpop.f32.mrf.mxu1  ;;  %v526_v17 = vpop.f32.mrf.mxu0 }
  0xf4   :  { %765 = vst [vmem:[%s1505_s4 + $0x198] sm:$0xff] %v903_v16  ;;  %731 = vst [vmem:[%s1505_s4 + $0x88] sm:$0xff] %v526_v17 }
  0xf5   :  { %v654_v18 = vpop.f32.mrf.mxu1  ;;  %v874_v19 = vpop.f32.mrf.mxu0 }
  0xf6   :  { %763 = vst [vmem:[%s1505_s4 + $0x188] sm:$0xff] %v654_v18  ;;  %736 = vst [vmem:[%s1505_s4 + $0xb0] sm:$0xff] %v874_v19 }
  0xf7   :  { %v906_v20 = vpop.f32.mrf.mxu1  ;;  %v539_v21 = vpop.f32.mrf.mxu0 }
  0xf8   :  { %768 = vst [vmem:[%s1505_s4 + $0x1b0] sm:$0xff] %v906_v20  ;;  %734 = vst [vmem:[%s1505_s4 + $0xa0] sm:$0xff] %v539_v21 }
  0xf9   :  { %v667_v22 = vpop.f32.mrf.mxu1  ;;  %v875_v23 = vpop.f32.mrf.mxu0 }
  0xfa   :  { %766 = vst [vmem:[%s1505_s4 + $0x1a0] sm:$0xff] %v667_v22  ;;  %737 = vst [vmem:[%s1505_s4 + $0xb8] sm:$0xff] %v875_v23 }
  0xfb   :  { %v907_v24 = vpop.f32.mrf.mxu1  ;;  %v542_v25 = vpop.f32.mrf.mxu0 }
  0xfc   :  { %769 = vst [vmem:[%s1505_s4 + $0x1b8] sm:$0xff] %v907_v24  ;;  %735 = vst [vmem:[%s1505_s4 + $0xa8] sm:$0xff] %v542_v25 }
  0xfd   :  { %v670_v26 = vpop.f32.mrf.mxu1  ;;  %v878_v27 = vpop.f32.mrf.mxu0 }
  0xfe   :  { %767 = vst [vmem:[%s1505_s4 + $0x1a8] sm:$0xff] %v670_v26  ;;  %740 = vst [vmem:[%s1505_s4 + $0xd0] sm:$0xff] %v878_v27 }
  0xff   :  { %v910_v28 = vpop.f32.mrf.mxu1  ;;  %v555_v29 = vpop.f32.mrf.mxu0 }
 0x100   :  { %772 = vst [vmem:[%s1505_s4 + $0x1d0] sm:$0xff] %v910_v28  ;;  %738 = vst [vmem:[%s1505_s4 + $0xc0] sm:$0xff] %v555_v29 }
 0x101   :  { %v683_v30 = vpop.f32.mrf.mxu1  ;;  %v879_v31 = vpop.f32.mrf.mxu0 }
 0x102   :  { %770 = vst [vmem:[%s1505_s4 + $0x1c0] sm:$0xff] %v683_v30  ;;  %741 = vst [vmem:[%s1505_s4 + $0xd8] sm:$0xff] %v879_v31 }
 0x103   :  { %v911_v32 = vpop.f32.mrf.mxu1  ;;  %v558_v33 = vpop.f32.mrf.mxu0 }
 0x104   :  { %773 = vst [vmem:[%s1505_s4 + $0x1d8] sm:$0xff] %v911_v32  ;;  %739 = vst [vmem:[%s1505_s4 + $0xc8] sm:$0xff] %v558_v33 }
 0x105   :  { %v686_v34 = vpop.f32.mrf.mxu1  ;;  %v882_v35 = vpop.f32.mrf.mxu0 }
 0x106   :  { %771 = vst [vmem:[%s1505_s4 + $0x1c8] sm:$0xff] %v686_v34  ;;  %744 = vst [vmem:[%s1505_s4 + $0xf0] sm:$0xff] %v882_v35 }
 0x107   :  { %v914_v36 = vpop.f32.mrf.mxu1  ;;  %v571_v37 = vpop.f32.mrf.mxu0 }
 0x108   :  { %776 = vst [vmem:[%s1505_s4 + $0x1f0] sm:$0xff] %v914_v36  ;;  %742 = vst [vmem:[%s1505_s4 + $0xe0] sm:$0xff] %v571_v37 }
 0x109   :  { %v699_v38 = vpop.f32.mrf.mxu1  ;;  %v883_v3 = vpop.f32.mrf.mxu0 }
 0x10a   :  { %774 = vst [vmem:[%s1505_s4 + $0x1e0] sm:$0xff] %v699_v38  ;;  %745 = vst [vmem:[%s1505_s4 + $0xf8] sm:$0xff] %v883_v3 }
 0x10b   :  { %v915_v39 = vpop.f32.mrf.mxu1  ;;  %v574_v40 = vpop.f32.mrf.mxu0 }
 0x10c   :  { %777 = vst [vmem:[%s1505_s4 + $0x1f8] sm:$0xff] %v915_v39  ;;  %743 = vst [vmem:[%s1505_s4 + $0xe8] sm:$0xff] %v574_v40 }
 0x10d   :  { %v702_v41 = vpop.f32.mrf.mxu1 }
 0x10e   :  { %775 = vst [vmem:[%s1505_s4 + $0x1e8] sm:$0xff] %v702_v41 }

// kernel: generator_forward.19
= control target key start
LH: loop header
LB: loop body
LE: loop exit
PB: predicated region body
PF: predicated region fallthrough
CT: control target
= control target key end

     0   :  { %s163_s0 = inlined_call_operand.vmem [shape: f32[128,128], index: 0, kind: input, shape index: {}]   ;;  %s164_s1 = inlined_call_operand.vmem [shape: f32[1,128], index: 1, kind: output, shape index: {0}]   ;;  %s165_s2 = inlined_call_operand.vmem [shape: f32[1,128], index: 2, kind: output, shape index: {1}]  }
   0x1   :  { %v10_v0 = vld [vmem:[%s163_s0] sm:$0xff]  ;;  %v11_v1 = vld [vmem:[%s163_s0 + $0x8] sm:$0xff]  ;;  %v12_v2 = vld [vmem:[%s163_s0 + $0x10] sm:$0xff] }
   0x2   :  { %v13_v3 = vld [vmem:[%s163_s0 + $0x18] sm:$0xff]  ;;  %v26_v4 = vadd.f32 %v11_v1, %v10_v0  ;;  %v48_v5 = vmul.f32 %v10_v0, %v10_v0  ;;  %v49_v6 = vmul.f32 %v11_v1, %v11_v1  ;;  %v50_v7 = vmul.f32 %v12_v2, %v12_v2  ;;  %v14_v8 = vld [vmem:[%s163_s0 + $0x20] sm:$0xff]  ;;  %v15_v12 = vld [vmem:[%s163_s0 + $0x28] sm:$0xff] }
   0x3   :  { %v51_v10 = vmul.f32 %v13_v3, %v13_v3  ;;  %v52_v14 = vmul.f32 %v14_v8, %v14_v8  ;;  %v16_v16 = vld [vmem:[%s163_s0 + $0x30] sm:$0xff]  ;;  %v53_v18 = vmul.f32 %v15_v12, %v15_v12  ;;  %v17_v20 = vld [vmem:[%s163_s0 + $0x38] sm:$0xff]  ;;  %v18_v24 = vld [vmem:[%s163_s0 + $0x40] sm:$0xff] }
   0x4   :  { %v27_v9 = vadd.f32 %v26_v4, %v12_v2  ;;  %v64_v11 = vadd.f32 %v49_v6, %v48_v5  ;;  %v54_v22 = vmul.f32 %v16_v16, %v16_v16  ;;  %v55_v26 = vmul.f32 %v17_v20, %v17_v20  ;;  %v19_v28 = vld [vmem:[%s163_s0 + $0x48] sm:$0xff]  ;;  %v20_v32 = vld [vmem:[%s163_s0 + $0x50] sm:$0xff]  ;;  %v21_v36 = vld [vmem:[%s163_s0 + $0x58] sm:$0xff] }
   0x5   :  { %v56_v30 = vmul.f32 %v18_v24, %v18_v24  ;;  %v57_v34 = vmul.f32 %v19_v28, %v19_v28  ;;  %v58_v38 = vmul.f32 %v20_v32, %v20_v32  ;;  %v22_v40 = vld [vmem:[%s163_s0 + $0x60] sm:$0xff]  ;;  %v59_v42 = vmul.f32 %v21_v36, %v21_v36  ;;  %v23_v44 = vld [vmem:[%s163_s0 + $0x68] sm:$0xff]  ;;  %v24_v48 = vld [vmem:[%s163_s0 + $0x70] sm:$0xff] }
   0x6   :  { %v28_v13 = vadd.f32 %v27_v9, %v13_v3  ;;  %v65_v15 = vadd.f32 %v64_v11, %v50_v7  ;;  %v60_v46 = vmul.f32 %v22_v40, %v22_v40  ;;  %v61_v50 = vmul.f32 %v23_v44, %v23_v44  ;;  %v25_v52 = vld [vmem:[%s163_s0 + $0x78] sm:$0xff] }
   0x7   :  { %v62_v54 = vmul.f32 %v24_v48, %v24_v48  ;;  %v63_v57 = vmul.f32 %v25_v52, %v25_v52 }
   0x8   :  { %v29_v17 = vadd.f32 %v28_v13, %v14_v8  ;;  %v66_v19 = vadd.f32 %v65_v15, %v51_v10 }
   0xa   :  { %v30_v21 = vadd.f32 %v29_v17, %v15_v12  ;;  %v67_v23 = vadd.f32 %v66_v19, %v52_v14 }
   0xc   :  { %v31_v25 = vadd.f32 %v30_v21, %v16_v16  ;;  %v68_v27 = vadd.f32 %v67_v23, %v53_v18 }
   0xe   :  { %v32_v29 = vadd.f32 %v31_v25, %v17_v20  ;;  %v69_v31 = vadd.f32 %v68_v27, %v54_v22 }
  0x10   :  { %v33_v33 = vadd.f32 %v32_v29, %v18_v24  ;;  %v70_v35 = vadd.f32 %v69_v31, %v55_v26 }
  0x12   :  { %v34_v37 = vadd.f32 %v33_v33, %v19_v28  ;;  %v71_v39 = vadd.f32 %v70_v35, %v56_v30 }
  0x14   :  { %v35_v41 = vadd.f32 %v34_v37, %v20_v32  ;;  %v72_v43 = vadd.f32 %v71_v39, %v57_v34 }
  0x16   :  { %v36_v45 = vadd.f32 %v35_v41, %v21_v36  ;;  %v73_v47 = vadd.f32 %v72_v43, %v58_v38 }
  0x18   :  { %v37_v49 = vadd.f32 %v36_v45, %v22_v40  ;;  %v74_v51 = vadd.f32 %v73_v47, %v59_v42 }
  0x1a   :  { %v38_v53 = vadd.f32 %v37_v49, %v23_v44  ;;  %v75_v55 = vadd.f32 %v74_v51, %v60_v46 }
  0x1c   :  { %v39_v56 = vadd.f32 %v38_v53, %v24_v48  ;;  %v76_v58 = vadd.f32 %v75_v55, %v61_v50 }
  0x1e   :  { %v40_v59 = vadd.f32 %v39_v56, %v25_v52  ;;  %v77_v60 = vadd.f32 %v76_v58, %v62_v54 }
  0x20   :  { %v41_v61 = vrot.slane %v40_v59, 4  ;;  %v78_v62 = vadd.f32 %v77_v60, %v63_v57 }
  0x22   :  { %v42_v63 = vadd.f32 %v41_v61, %v40_v59  ;;  %v79_v0 = vrot.slane %v78_v62, 4 }
  0x24   :  { %v43_v1 = vrot.slane %v42_v63, 2  ;;  %v80_v2 = vadd.f32 %v79_v0, %v78_v62 }
  0x26   :  { %v44_v3 = vadd.f32 %v43_v1, %v42_v63  ;;  %v81_v4 = vrot.slane %v80_v2, 2 }
  0x28   :  { %v45_v5 = vrot.slane %v44_v3, 1  ;;  %v82_v6 = vadd.f32 %v81_v4, %v80_v2 }
  0x2a   :  { %v46_v7 = vadd.f32 %v45_v5, %v44_v3  ;;  %v83_v8 = vrot.slane %v82_v6, 1 }
  0x2c   :  { %47 = vst [vmem:[%s164_s1] sm:$0x1] %v46_v7  ;;  %v84_v9 = vadd.f32 %v83_v8, %v82_v6 }
  0x2e   :  { %85 = vst [vmem:[%s165_s2] sm:$0x1] %v84_v9 }

// kernel: generator_forward.20
= control target key start
LH: loop header
LB: loop body
LE: loop exit
PB: predicated region body
PF: predicated region fallthrough
CT: control target
= control target key end

     0   :  { %vm1570_vm0 = vcmask 1043456   ;;  %vm1185_vm1 = vcmask 64512   ;;  %s5650_s3 = inlined_call_operand.vmem [shape: bf16[8,128], index: 3, kind: input, shape index: {}]   ;;  %s5651_s0 = inlined_call_operand.vmem [shape: f32[2048,8], index: 0, kind: input, shape index: {}]   ;;  %s5652_s1 = inlined_call_operand.vmem [shape: f32[1,8], index: 1, kind: input, shape index: {}]   ;;  %s5653_s2 = inlined_call_operand.vmem [shape: f32[1,8], index: 2, kind: input, shape index: {}]   ;;  %s5654_s4 = inlined_call_operand.vmem [shape: f32[2048,128], index: 4, kind: output, shape index: {}]  }
   0x1   :  { %v1184_v0 = vld [vmem:[%s5650_s3] sm:$0xf]  ;;  %v19_v2 = vld [vmem:[%s5651_s0 + $0x8] sm:$0xff]  ;;  %v20_v11 = vld [vmem:[%s5651_s0 + $0x10] sm:$0xff] }
   0x2   :  { %v18_v1 = vld [vmem:[%s5651_s0] sm:$0xff]  ;;  %3410 = vmatprep.subr.msk.bf16.mxu0 %vm1570_vm0, %v1184_v0  ;;  %3411 = vmatprep.subr.msk.bf16.mxu1 %vm1570_vm0, %v1184_v0  ;;  %v1572_v3 = vsel %vm1570_vm0, %v1184_v0, 0  ;;  %v147_v9 = vld [vmem:[%s5651_s0 + $0x408] sm:$0xff]  ;;  %v21_v12 = vld [vmem:[%s5651_s0 + $0x18] sm:$0xff] }
   0x3   :  { %v3453_v4 = vld [vmem:[%s5652_s1] ss:$0 sm:$0xff]  ;;  %3151 = vmatpush3.bf16.msra.mxu0 %v1572_v3  ;;  %3409 = vmatpush3.bf16.msra.mxu1 %v1572_v3  ;;  %v148_v16 = vld [vmem:[%s5651_s0 + $0x410] sm:$0xff]  ;;  %v149_v17 = vld [vmem:[%s5651_s0 + $0x418] sm:$0xff] }
   0x4   :  { %v3458_v5 = vld [vmem:[%s5653_s2] ss:$0 sm:$0xff]  ;;  %v281_v7 = vmul.f32 %v3453_v4, %v18_v1  ;;  %v282_v8 = vmul.f32 %v3453_v4, %v19_v2  ;;  %v410_v13 = vmul.f32 %v3453_v4, %v147_v9  ;;  %v283_v14 = vmul.f32 %v3453_v4, %v20_v11  ;;  %v23_v27 = vld [vmem:[%s5651_s0 + $0x28] sm:$0xff]  ;;  %v24_v38 = vld [vmem:[%s5651_s0 + $0x30] sm:$0xff] }
   0x5   :  { %v146_v6 = vld [vmem:[%s5651_s0 + $0x400] sm:$0xff]  ;;  %v284_v15 = vmul.f32 %v3453_v4, %v21_v12  ;;  %v411_v21 = vmul.f32 %v3453_v4, %v148_v16  ;;  %v412_v25 = vmul.f32 %v3453_v4, %v149_v17  ;;  %v151_v37 = vld [vmem:[%s5651_s0 + $0x428] sm:$0xff]  ;;  %v286_v42 = vmul.f32 %v3453_v4, %v23_v27  ;;  %v25_v43 = vld [vmem:[%s5651_s0 + $0x38] sm:$0xff] }
   0x6   :  { %v409_v10 = vmul.f32 %v3453_v4, %v146_v6  ;;  %v544_v18 = vadd.f32 %v3458_v5, %v281_v7  ;;  %v545_v19 = vadd.f32 %v3458_v5, %v282_v8  ;;  %v673_v22 = vadd.f32 %v3458_v5, %v410_v13  ;;  %v22_v26 = vld [vmem:[%s5651_s0 + $0x20] sm:$0xff]  ;;  %v152_v52 = vld [vmem:[%s5651_s0 + $0x430] sm:$0xff]  ;;  %v153_v53 = vld [vmem:[%s5651_s0 + $0x438] sm:$0xff] }
   0x7   :  { %v546_v23 = vadd.f32 %v3458_v5, %v283_v14  ;;  %v547_v24 = vadd.f32 %v3458_v5, %v284_v15  ;;  %v674_v31 = vadd.f32 %v3458_v5, %v411_v21  ;;  %v150_v32 = vld [vmem:[%s5651_s0 + $0x420] sm:$0xff]  ;;  %v675_v36 = vadd.f32 %v3458_v5, %v412_v25  ;;  %v27_v62 = vld [vmem:[%s5651_s0 + $0x48] sm:$0xff]  ;;  %v28_v15 = vld [vmem:[%s5651_s0 + $0x50] sm:$0xff] }
   0x8   :  { %v672_v20 = vadd.f32 %v3458_v5, %v409_v10  ;;  %v800_v28 = vmax.f32 %v544_v18, 0.0  ;;  %v801_v29 = vmax.f32 %v545_v19, 0.0  ;;  %v929_v33 = vmax.f32 %v673_v22, 0.0  ;;  %v26_v57 = vld [vmem:[%s5651_s0 + $0x40] sm:$0xff]  ;;  %v155_v6 = vld [vmem:[%s5651_s0 + $0x448] sm:$0xff]  ;;  %v156_v21 = vld [vmem:[%s5651_s0 + $0x450] sm:$0xff] }
   0x9   :  { %v802_v34 = vmax.f32 %v546_v23, 0.0  ;;  %v803_v35 = vmax.f32 %v547_v24, 0.0  ;;  %v930_v40 = vmax.f32 %v674_v31, 0.0  ;;  %v285_v41 = vmul.f32 %v3453_v4, %v22_v26  ;;  %v154_v3 = vld [vmem:[%s5651_s0 + $0x440] sm:$0xff]  ;;  %v157_v26 = vld [vmem:[%s5651_s0 + $0x458] sm:$0xff] }
   0xa   :  { %v928_v30 = vmax.f32 %v672_v20, 0.0  ;;  %v1056_v39 = vpack.c.bf16 %v801_v29, %v800_v28  ;;  %v931_v46 = vmax.f32 %v675_v36, 0.0  ;;  %v413_v47 = vmul.f32 %v3453_v4, %v150_v32  ;;  %v29_v20 = vld [vmem:[%s5651_s0 + $0x58] sm:$0xff]  ;;  %v30_v31 = vld [vmem:[%s5651_s0 + $0x60] sm:$0xff]  ;;  %v31_v36 = vld [vmem:[%s5651_s0 + $0x68] sm:$0xff] }
   0xb   :  { %v1057_v45 = vpack.c.bf16 %v803_v35, %v802_v34  ;;  %v548_v48 = vadd.f32 %v3458_v5, %v285_v41  ;;  %v549_v49 = vadd.f32 %v3458_v5, %v286_v42  ;;  %v414_v50 = vmul.f32 %v3453_v4, %v151_v37  ;;  %v158_v41 = vld [vmem:[%s5651_s0 + $0x460] sm:$0xff] }
   0xc   :  { %v1120_v44 = vpack.c.bf16 %v929_v33, %v928_v30  ;;  %3152 = vmatprep.mubr.msk.bf16.mxu0 %vm1185_vm1, %v1056_v39  ;;  %v287_v51 = vmul.f32 %v3453_v4, %v24_v38  ;;  %v1121_v54 = vpack.c.bf16 %v931_v46, %v930_v40  ;;  %v676_v55 = vadd.f32 %v3458_v5, %v413_v47  ;;  %v159_v46 = vld [vmem:[%s5651_s0 + $0x468] sm:$0xff]  ;;  %v32_v47 = vld [vmem:[%s5651_s0 + $0x70] sm:$0xff] }
   0xd   :  { %3153 = vmatmul.mubr.msk.bf16.vlgmr.msra.gmra.mxu0 %vm1185_vm1, %v1057_v45  ;;  %v288_v56 = vmul.f32 %v3453_v4, %v25_v43  ;;  %v804_v58 = vmax.f32 %v548_v48, 0.0  ;;  %v805_v59 = vmax.f32 %v549_v49, 0.0  ;;  %v677_v60 = vadd.f32 %v3458_v5, %v414_v50 }
   0xe   :  { %3280 = vmatprep.mubr.msk.bf16.mxu1 %vm1185_vm1, %v1120_v44  ;;  %v550_v61 = vadd.f32 %v3458_v5, %v287_v51  ;;  %v932_v63 = vmax.f32 %v676_v55, 0.0  ;;  %v415_v1 = vmul.f32 %v3453_v4, %v152_v52  ;;  %v416_v2 = vmul.f32 %v3453_v4, %v153_v53  ;;  %v33_v52 = vld [vmem:[%s5651_s0 + $0x78] sm:$0xff] }
   0xf   :  { %3281 = vmatmul.mubr.msk.bf16.vlgmr.msra.gmra.mxu1 %vm1185_vm1, %v1121_v54  ;;  %v551_v0 = vadd.f32 %v3458_v5, %v288_v56  ;;  %v1058_v7 = vpack.c.bf16 %v805_v59, %v804_v58  ;;  %v933_v8 = vmax.f32 %v677_v60, 0.0  ;;  %v289_v10 = vmul.f32 %v3453_v4, %v26_v57 }
  0x10   :  { %v806_v9 = vmax.f32 %v550_v61, 0.0  ;;  %v678_v12 = vadd.f32 %v3458_v5, %v415_v1  ;;  %v679_v13 = vadd.f32 %v3458_v5, %v416_v2  ;;  %v290_v14 = vmul.f32 %v3453_v4, %v27_v62  ;;  %v160_v61 = vld [vmem:[%s5651_s0 + $0x470] sm:$0xff]  ;;  %v161_v62 = vld [vmem:[%s5651_s0 + $0x478] sm:$0xff] }
  0x11   :  { %v807_v11 = vmax.f32 %v551_v0, 0.0  ;;  %3156 = vmatprep.mubr.msk.bf16.mxu0 %vm1185_vm1, %v1058_v7  ;;  %v1122_v16 = vpack.c.bf16 %v933_v8, %v932_v63  ;;  %v552_v17 = vadd.f32 %v3458_v5, %v289_v10  ;;  %v417_v18 = vmul.f32 %v3453_v4, %v154_v3  ;;  %v34_v3 = vld [vmem:[%s5651_s0 + $0x80] sm:$0xff]  ;;  %v35_v10 = vld [vmem:[%s5651_s0 + $0x88] sm:$0xff] }
  0x12   :  { %v418_v19 = vmul.f32 %v3453_v4, %v155_v6  ;;  %v934_v23 = vmax.f32 %v678_v12, 0.0  ;;  %v935_v24 = vmax.f32 %v679_v13, 0.0  ;;  %v553_v25 = vadd.f32 %v3458_v5, %v290_v14 }
  0x13   :  { %v1059_v22 = vpack.c.bf16 %v807_v11, %v806_v9  ;;  %3284 = vmatprep.mubr.msk.bf16.mxu1 %vm1185_vm1, %v1122_v16  ;;  %v808_v27 = vmax.f32 %v552_v17, 0.0  ;;  %v680_v28 = vadd.f32 %v3458_v5, %v417_v18  ;;  %v291_v30 = vmul.f32 %v3453_v4, %v28_v15  ;;  %v162_v15 = vld [vmem:[%s5651_s0 + $0x480] sm:$0xff]  ;;  %v163_v16 = vld [vmem:[%s5651_s0 + $0x488] sm:$0xff] }
  0x14   :  { %v681_v29 = vadd.f32 %v3458_v5, %v418_v19  ;;  %v1123_v32 = vpack.c.bf16 %v935_v24, %v934_v23  ;;  %v809_v33 = vmax.f32 %v553_v25, 0.0  ;;  %v292_v34 = vmul.f32 %v3453_v4, %v29_v20  ;;  %v36_v25 = vld [vmem:[%s5651_s0 + $0x90] sm:$0xff] }
  0x15   :  { %3157 = vmatmul.mubr.msk.bf16.gmra.mxu0 %vm1185_vm1, %v1059_v22  ;;  %v419_v35 = vmul.f32 %v3453_v4, %v156_v21  ;;  %v936_v37 = vmax.f32 %v680_v28, 0.0  ;;  %v554_v39 = vadd.f32 %v3458_v5, %v291_v30  ;;  %v420_v40 = vmul.f32 %v3453_v4, %v157_v26  ;;  %v37_v30 = vld [vmem:[%s5651_s0 + $0x98] sm:$0xff] }
  0x16   :  { %v937_v38 = vmax.f32 %v681_v29, 0.0  ;;  %v1060_v42 = vpack.c.bf16 %v809_v33, %v808_v27  ;;  %v555_v43 = vadd.f32 %v3458_v5, %v292_v34  ;;  %v293_v45 = vmul.f32 %v3453_v4, %v30_v31  ;;  %v164_v31 = vld [vmem:[%s5651_s0 + $0x490] sm:$0xff] }
  0x17   :  { %3285 = vmatmul.mubr.msk.bf16.gmra.mxu1 %vm1185_vm1, %v1123_v32  ;;  %v682_v44 = vadd.f32 %v3458_v5, %v419_v35  ;;  %v810_v49 = vmax.f32 %v554_v39, 0.0  ;;  %v683_v50 = vadd.f32 %v3458_v5, %v420_v40  ;;  %v294_v51 = vmul.f32 %v3453_v4, %v31_v36  ;;  %v165_v36 = vld [vmem:[%s5651_s0 + $0x498] sm:$0xff] }
  0x18   :  { %v1124_v48 = vpack.c.bf16 %v937_v38, %v936_v37  ;;  %3160 = vmatprep.mubr.msk.bf16.mxu0 %vm1185_vm1, %v1060_v42  ;;  %v811_v53 = vmax.f32 %v555_v43, 0.0  ;;  %v556_v55 = vadd.f32 %v3458_v5, %v293_v45  ;;  %v421_v56 = vmul.f32 %v3453_v4, %v158_v41  ;;  %v38_v41 = vld [vmem:[%s5651_s0 + $0xa0] sm:$0xff] }
  0x19   :  { %v938_v54 = vmax.f32 %v682_v44, 0.0  ;;  %v939_v57 = vmax.f32 %v683_v50, 0.0  ;;  %v557_v58 = vadd.f32 %v3458_v5, %v294_v51  ;;  %v422_v59 = vmul.f32 %v3453_v4, %v159_v46  ;;  %v39_v46 = vld [vmem:[%s5651_s0 + $0xa8] sm:$0xff]  ;;  %v166_v51 = vld [vmem:[%s5651_s0 + $0x4a0] sm:$0xff] }
  0x1a   :  { %3288 = vmatprep.mubr.msk.bf16.mxu1 %vm1185_vm1, %v1124_v48  ;;  %v295_v60 = vmul.f32 %v3453_v4, %v32_v47  ;;  %v1061_v63 = vpack.c.bf16 %v811_v53, %v810_v49  ;;  %v812_v0 = vmax.f32 %v556_v55, 0.0  ;;  %v684_v1 = vadd.f32 %v3458_v5, %v421_v56  ;;  %v167_v56 = vld [vmem:[%s5651_s0 + $0x4a8] sm:$0xff] }
  0x1b   :  { %v296_v2 = vmul.f32 %v3453_v4, %v33_v52  ;;  %v1125_v6 = vpack.c.bf16 %v939_v57, %v938_v54  ;;  %v813_v7 = vmax.f32 %v557_v58, 0.0  ;;  %v685_v8 = vadd.f32 %v3458_v5, %v422_v59  ;;  %v40_v57 = vld [vmem:[%s5651_s0 + $0xb0] sm:$0xff] }
  0x1c   :  { %v558_v9 = vadd.f32 %v3458_v5, %v295_v60  ;;  %v940_v11 = vmax.f32 %v684_v1, 0.0  ;;  %v423_v13 = vmul.f32 %v3453_v4, %v160_v61  ;;  %v424_v14 = vmul.f32 %v3453_v4, %v161_v62  ;;  %v41_v62 = vld [vmem:[%s5651_s0 + $0xb8] sm:$0xff] }
  0x1d   :  { %3161 = vmatmul.mubr.msk.bf16.gmra.mxu0 %vm1185_vm1, %v1061_v63  ;;  %v559_v12 = vadd.f32 %v3458_v5, %v296_v2  ;;  %v1062_v17 = vpack.c.bf16 %v813_v7, %v812_v0  ;;  %v941_v18 = vmax.f32 %v685_v8, 0.0  ;;  %v297_v20 = vmul.f32 %v3453_v4, %v34_v3 }
  0x1e   :  { %v814_v19 = vmax.f32 %v558_v9, 0.0  ;;  %v686_v22 = vadd.f32 %v3458_v5, %v423_v13  ;;  %v687_v23 = vadd.f32 %v3458_v5, %v424_v14  ;;  %v298_v24 = vmul.f32 %v3453_v4, %v35_v10  ;;  %v168_v9 = vld [vmem:[%s5651_s0 + $0x4b0] sm:$0xff]  ;;  %v169_v10 = vld [vmem:[%s5651_s0 + $0x4b8] sm:$0xff] }
  0x1f   :  { %3289 = vmatmul.mubr.msk.bf16.gmra.mxu1 %vm1185_vm1, %v1125_v6  ;;  %v815_v21 = vmax.f32 %v559_v12, 0.0  ;;  %3164 = vmatprep.mubr.msk.bf16.mxu0 %vm1185_vm1, %v1062_v17  ;;  %v1126_v26 = vpack.c.bf16 %v941_v18, %v940_v11  ;;  %v560_v27 = vadd.f32 %v3458_v5, %v297_v20  ;;  %v425_v28 = vmul.f32 %v3453_v4, %v162_v15  ;;  %v42_v15 = vld [vmem:[%s5651_s0 + $0xc0] sm:$0xff]  ;;  %v43_v20 = vld [vmem:[%s5651_s0 + $0xc8] sm:$0xff] }
  0x20   :  { %v426_v29 = vmul.f32 %v3453_v4, %v163_v16  ;;  %v942_v33 = vmax.f32 %v686_v22, 0.0  ;;  %v943_v34 = vmax.f32 %v687_v23, 0.0  ;;  %v561_v35 = vadd.f32 %v3458_v5, %v298_v24 }
  0x21   :  { %v1063_v32 = vpack.c.bf16 %v815_v21, %v814_v19  ;;  %3292 = vmatprep.mubr.msk.bf16.mxu1 %vm1185_vm1, %v1126_v26  ;;  %v816_v37 = vmax.f32 %v560_v27, 0.0  ;;  %v688_v38 = vadd.f32 %v3458_v5, %v425_v28  ;;  %v299_v40 = vmul.f32 %v3453_v4, %v36_v25  ;;  %v170_v25 = vld [vmem:[%s5651_s0 + $0x4c0] sm:$0xff]  ;;  %v171_v26 = vld [vmem:[%s5651_s0 + $0x4c8] sm:$0xff] }
  0x22   :  { %v689_v39 = vadd.f32 %v3458_v5, %v426_v29  ;;  %v1127_v42 = vpack.c.bf16 %v943_v34, %v942_v33  ;;  %v817_v43 = vmax.f32 %v561_v35, 0.0  ;;  %v300_v44 = vmul.f32 %v3453_v4, %v37_v30  ;;  %v44_v35 = vld [vmem:[%s5651_s0 + $0xd0] sm:$0xff] }
  0x23   :  { %v427_v45 = vmul.f32 %v3453_v4, %v164_v31  ;;  %v944_v47 = vmax.f32 %v688_v38, 0.0  ;;  %v562_v49 = vadd.f32 %v3458_v5, %v299_v40  ;;  %v428_v50 = vmul.f32 %v3453_v4, %v165_v36  ;;  %v45_v40 = vld [vmem:[%s5651_s0 + $0xd8] sm:$0xff] }
  0x24   :  { %v945_v48 = vmax.f32 %v689_v39, 0.0  ;;  %v1064_v52 = vpack.c.bf16 %v817_v43, %v816_v37  ;;  %v563_v53 = vadd.f32 %v3458_v5, %v300_v44  ;;  %v301_v55 = vmul.f32 %v3453_v4, %v38_v41  ;;  %v172_v41 = vld [vmem:[%s5651_s0 + $0x4d0] sm:$0xff] }
  0x25   :  { %3165 = vmatmul.mubr.msk.bf16.gmra.mxu0 %vm1185_vm1, %v1063_v32  ;;  %v690_v54 = vadd.f32 %v3458_v5, %v427_v45  ;;  %v818_v59 = vmax.f32 %v562_v49, 0.0  ;;  %v691_v60 = vadd.f32 %v3458_v5, %v428_v50  ;;  %v302_v61 = vmul.f32 %v3453_v4, %v39_v46  ;;  %v173_v46 = vld [vmem:[%s5651_s0 + $0x4d8] sm:$0xff] }
  0x26   :  { %v1128_v58 = vpack.c.bf16 %v945_v48, %v944_v47  ;;  %3168 = vmatprep.mubr.msk.bf16.mxu0 %vm1185_vm1, %v1064_v52  ;;  %v819_v63 = vmax.f32 %v563_v53, 0.0  ;;  %v564_v1 = vadd.f32 %v3458_v5, %v301_v55  ;;  %v429_v2 = vmul.f32 %v3453_v4, %v166_v51  ;;  %v46_v51 = vld [vmem:[%s5651_s0 + $0xe0] sm:$0xff] }
  0x27   :  { %3293 = vmatmul.mubr.msk.bf16.gmra.mxu1 %vm1185_vm1, %v1127_v42  ;;  %v946_v0 = vmax.f32 %v690_v54, 0.0  ;;  %v947_v3 = vmax.f32 %v691_v60, 0.0  ;;  %v565_v6 = vadd.f32 %v3458_v5, %v302_v61  ;;  %v430_v7 = vmul.f32 %v3453_v4, %v167_v56  ;;  %v47_v56 = vld [vmem:[%s5651_s0 + $0xe8] sm:$0xff]  ;;  %v174_v61 = vld [vmem:[%s5651_s0 + $0x4e0] sm:$0xff] }
  0x28   :  { %3296 = vmatprep.mubr.msk.bf16.mxu1 %vm1185_vm1, %v1128_v58  ;;  %v303_v8 = vmul.f32 %v3453_v4, %v40_v57  ;;  %v1065_v11 = vpack.c.bf16 %v819_v63, %v818_v59  ;;  %v820_v12 = vmax.f32 %v564_v1, 0.0  ;;  %v692_v13 = vadd.f32 %v3458_v5, %v429_v2  ;;  %v175_v2 = vld [vmem:[%s5651_s0 + $0x4e8] sm:$0xff] }
  0x29   :  { %v304_v14 = vmul.f32 %v3453_v4, %v41_v62  ;;  %v1129_v16 = vpack.c.bf16 %v947_v3, %v946_v0  ;;  %v821_v17 = vmax.f32 %v565_v6, 0.0  ;;  %v693_v18 = vadd.f32 %v3458_v5, %v430_v7  ;;  %v48_v3 = vld [vmem:[%s5651_s0 + $0xf0] sm:$0xff] }
  0x2a   :  { %v566_v19 = vadd.f32 %v3458_v5, %v303_v8  ;;  %v948_v21 = vmax.f32 %v692_v13, 0.0  ;;  %v431_v23 = vmul.f32 %v3453_v4, %v168_v9  ;;  %v432_v24 = vmul.f32 %v3453_v4, %v169_v10  ;;  %v49_v10 = vld [vmem:[%s5651_s0 + $0xf8] sm:$0xff] }
  0x2b   :  { %v567_v22 = vadd.f32 %v3458_v5, %v304_v14  ;;  %v1066_v27 = vpack.c.bf16 %v821_v17, %v820_v12  ;;  %v949_v28 = vmax.f32 %v693_v18, 0.0  ;;  %v305_v30 = vmul.f32 %v3453_v4, %v42_v15 }
  0x2c   :  { %v822_v29 = vmax.f32 %v566_v19, 0.0  ;;  %v694_v32 = vadd.f32 %v3458_v5, %v431_v23  ;;  %v695_v33 = vadd.f32 %v3458_v5, %v432_v24  ;;  %v306_v34 = vmul.f32 %v3453_v4, %v43_v20  ;;  %v176_v19 = vld [vmem:[%s5651_s0 + $0x4f0] sm:$0xff]  ;;  %v177_v20 = vld [vmem:[%s5651_s0 + $0x4f8] sm:$0xff]  ;;  %v50_v24 = vld [vmem:[%s5651_s0 + $0x100] sm:$0xff] }
  0x2d   :  { %3169 = vmatmul.mubr.msk.bf16.gmra.mxu0 %vm1185_vm1, %v1065_v11  ;;  %v823_v31 = vmax.f32 %v567_v22, 0.0  ;;  %v1130_v36 = vpack.c.bf16 %v949_v28, %v948_v21  ;;  %v568_v37 = vadd.f32 %v3458_v5, %v305_v30  ;;  %v433_v38 = vmul.f32 %v3453_v4, %v170_v25 }
  0x2e   :  { %3172 = vmatprep.mubr.msk.bf16.mxu0 %vm1185_vm1, %v1066_v27  ;;  %v434_v39 = vmul.f32 %v3453_v4, %v171_v26  ;;  %v950_v43 = vmax.f32 %v694_v32, 0.0  ;;  %v951_v44 = vmax.f32 %v695_v33, 0.0  ;;  %v569_v45 = vadd.f32 %v3458_v5, %v306_v34  ;;  %v178_v34 = vld [vmem:[%s5651_s0 + $0x500] sm:$0xff] }
  0x2f   :  { %3297 = vmatmul.mubr.msk.bf16.gmra.mxu1 %vm1185_vm1, %v1129_v16  ;;  %v1067_v42 = vpack.c.bf16 %v823_v31, %v822_v29  ;;  %v824_v47 = vmax.f32 %v568_v37, 0.0  ;;  %v696_v48 = vadd.f32 %v3458_v5, %v433_v38  ;;  %v307_v50 = vmul.f32 %v3453_v4, %v44_v35  ;;  %v51_v29 = vld [vmem:[%s5651_s0 + $0x108] sm:$0xff] }
  0x30   :  { %3300 = vmatprep.mubr.msk.bf16.mxu1 %vm1185_vm1, %v1130_v36  ;;  %v697_v49 = vadd.f32 %v3458_v5, %v434_v39  ;;  %v1131_v52 = vpack.c.bf16 %v951_v44, %v950_v43  ;;  %v825_v53 = vmax.f32 %v569_v45, 0.0  ;;  %v308_v54 = vmul.f32 %v3453_v4, %v45_v40  ;;  %v179_v35 = vld [vmem:[%s5651_s0 + $0x508] sm:$0xff]  ;;  %v52_v44 = vld [vmem:[%s5651_s0 + $0x110] sm:$0xff] }
  0x31   :  { %v435_v55 = vmul.f32 %v3453_v4, %v172_v41  ;;  %v952_v57 = vmax.f32 %v696_v48, 0.0  ;;  %v570_v59 = vadd.f32 %v3458_v5, %v307_v50  ;;  %v436_v60 = vmul.f32 %v3453_v4, %v173_v46  ;;  %v180_v50 = vld [vmem:[%s5651_s0 + $0x510] sm:$0xff] }
  0x32   :  { %v953_v58 = vmax.f32 %v697_v49, 0.0  ;;  %v1068_v62 = vpack.c.bf16 %v825_v53, %v824_v47  ;;  %v571_v63 = vadd.f32 %v3458_v5, %v308_v54  ;;  %v309_v1 = vmul.f32 %v3453_v4, %v46_v51  ;;  %v53_v49 = vld [vmem:[%s5651_s0 + $0x118] sm:$0xff] }
  0x33   :  { %v698_v0 = vadd.f32 %v3458_v5, %v435_v55  ;;  %v826_v7 = vmax.f32 %v570_v59, 0.0  ;;  %v699_v8 = vadd.f32 %v3458_v5, %v436_v60  ;;  %v310_v9 = vmul.f32 %v3453_v4, %v47_v56  ;;  %v181_v55 = vld [vmem:[%s5651_s0 + $0x518] sm:$0xff]  ;;  %v54_v60 = vld [vmem:[%s5651_s0 + $0x120] sm:$0xff] }
  0x34   :  { %v1132_v6 = vpack.c.bf16 %v953_v58, %v952_v57  ;;  %v827_v11 = vmax.f32 %v571_v63, 0.0  ;;  %v572_v13 = vadd.f32 %v3458_v5, %v309_v1  ;;  %v437_v14 = vmul.f32 %v3453_v4, %v174_v61 }
  0x35   :  { %3173 = vmatmul.mubr.msk.bf16.gmra.mxu0 %vm1185_vm1, %v1067_v42  ;;  %v954_v12 = vmax.f32 %v698_v0, 0.0  ;;  %v955_v15 = vmax.f32 %v699_v8, 0.0  ;;  %v573_v16 = vadd.f32 %v3458_v5, %v310_v9  ;;  %v438_v17 = vmul.f32 %v3453_v4, %v175_v2  ;;  %v55_v0 = vld [vmem:[%s5651_s0 + $0x128] sm:$0xff] }
  0x36   :  { %3176 = vmatprep.mubr.msk.bf16.mxu0 %vm1185_vm1, %v1068_v62  ;;  %v311_v18 = vmul.f32 %v3453_v4, %v48_v3  ;;  %v828_v21 = vmax.f32 %v572_v13, 0.0  ;;  %v700_v22 = vadd.f32 %v3458_v5, %v437_v14  ;;  %v312_v23 = vmul.f32 %v3453_v4, %v49_v10  ;;  %v56_v13 = vld [vmem:[%s5651_s0 + $0x130] sm:$0xff] }
  0x37   :  { %3301 = vmatmul.mubr.msk.bf16.gmra.mxu1 %vm1185_vm1, %v1131_v52  ;;  %v1069_v25 = vpack.c.bf16 %v827_v11, %v826_v7  ;;  %v829_v26 = vmax.f32 %v573_v16, 0.0  ;;  %v701_v27 = vadd.f32 %v3458_v5, %v438_v17  ;;  %v439_v32 = vmul.f32 %v3453_v4, %v176_v19  ;;  %v182_v7 = vld [vmem:[%s5651_s0 + $0x520] sm:$0xff] }
  0x38   :  { %3304 = vmatprep.mubr.msk.bf16.mxu1 %vm1185_vm1, %v1132_v6  ;;  %v574_v28 = vadd.f32 %v3458_v5, %v311_v18  ;;  %v956_v30 = vmax.f32 %v700_v22, 0.0  ;;  %v575_v31 = vadd.f32 %v3458_v5, %v312_v23  ;;  %v440_v33 = vmul.f32 %v3453_v4, %v177_v20  ;;  %v57_v18 = vld [vmem:[%s5651_s0 + $0x138] sm:$0xff] }
  0x39   :  { %v1133_v36 = vpack.c.bf16 %v955_v15, %v954_v12  ;;  %v1070_v37 = vpack.c.bf16 %v829_v26, %v828_v21  ;;  %v957_v38 = vmax.f32 %v701_v27, 0.0  ;;  %v313_v39 = vmul.f32 %v3453_v4, %v50_v24  ;;  %v183_v12 = vld [vmem:[%s5651_s0 + $0x528] sm:$0xff]  ;;  %v184_v27 = vld [vmem:[%s5651_s0 + $0x530] sm:$0xff] }
  0x3a   :  { %v830_v40 = vmax.f32 %v574_v28, 0.0  ;;  %v702_v41 = vadd.f32 %v3458_v5, %v439_v32  ;;  %v703_v42 = vadd.f32 %v3458_v5, %v440_v33  ;;  %v314_v43 = vmul.f32 %v3453_v4, %v51_v29  ;;  %v185_v28 = vld [vmem:[%s5651_s0 + $0x538] sm:$0xff]  ;;  %v58_v33 = vld [vmem:[%s5651_s0 + $0x140] sm:$0xff] }
  0x3b   :  { %v1134_v45 = vpack.c.bf16 %v957_v38, %v956_v30  ;;  %v576_v46 = vadd.f32 %v3458_v5, %v313_v39  ;;  %v441_v47 = vmul.f32 %v3453_v4, %v178_v34  ;;  %v442_v48 = vmul.f32 %v3453_v4, %v179_v35 }
  0x3c   :  { %v831_v51 = vmax.f32 %v575_v31, 0.0  ;;  %v958_v52 = vmax.f32 %v702_v41, 0.0  ;;  %v959_v53 = vmax.f32 %v703_v42, 0.0  ;;  %v577_v54 = vadd.f32 %v3458_v5, %v314_v43  ;;  %v186_v41 = vld [vmem:[%s5651_s0 + $0x540] sm:$0xff]  ;;  %v187_v42 = vld [vmem:[%s5651_s0 + $0x548] sm:$0xff] }
  0x3d   :  { %3177 = vmatmul.mubr.msk.bf16.gmra.mxu0 %vm1185_vm1, %v1069_v25  ;;  %v832_v56 = vmax.f32 %v576_v46, 0.0  ;;  %v704_v57 = vadd.f32 %v3458_v5, %v441_v47  ;;  %v705_v58 = vadd.f32 %v3458_v5, %v442_v48  ;;  %v315_v59 = vmul.f32 %v3453_v4, %v52_v44 }
  0x3e   :  { %3180 = vmatprep.mubr.msk.bf16.mxu0 %vm1185_vm1, %v1070_v37  ;;  %v833_v61 = vmax.f32 %v577_v54, 0.0  ;;  %v316_v62 = vmul.f32 %v3453_v4, %v53_v49  ;;  %v443_v63 = vmul.f32 %v3453_v4, %v180_v50  ;;  %v444_v6 = vmul.f32 %v3453_v4, %v181_v55  ;;  %v59_v37 = vld [vmem:[%s5651_s0 + $0x148] sm:$0xff]  ;;  %v60_v54 = vld [vmem:[%s5651_s0 + $0x150] sm:$0xff]  ;;  %v61_v55 = vld [vmem:[%s5651_s0 + $0x158] sm:$0xff] }
  0x3f   :  { %3305 = vmatmul.mubr.msk.bf16.gmra.mxu1 %vm1185_vm1, %v1133_v36  ;;  %v960_v1 = vmax.f32 %v704_v57, 0.0  ;;  %v961_v2 = vmax.f32 %v705_v58, 0.0  ;;  %v578_v3 = vadd.f32 %v3458_v5, %v315_v59  ;;  %v1071_v8 = vpack.c.bf16 %v831_v51, %v830_v40 }
  0x40   :  { %3308 = vmatprep.mubr.msk.bf16.mxu1 %vm1185_vm1, %v1134_v45  ;;  %v579_v9 = vadd.f32 %v3458_v5, %v316_v62  ;;  %v706_v10 = vadd.f32 %v3458_v5, %v443_v63  ;;  %v317_v11 = vmul.f32 %v3453_v4, %v54_v60  ;;  %v1135_v14 = vpack.c.bf16 %v959_v53, %v958_v52  ;;  %v188_v60 = vld [vmem:[%s5651_s0 + $0x550] sm:$0xff] }
  0x41   :  { %v1072_v15 = vpack.c.bf16 %v833_v61, %v832_v56  ;;  %v707_v16 = vadd.f32 %v3458_v5, %v444_v6  ;;  %v318_v17 = vmul.f32 %v3453_v4, %v55_v0  ;;  %v1136_v19 = vpack.c.bf16 %v961_v2, %v960_v1  ;;  %v189_v1 = vld [vmem:[%s5651_s0 + $0x558] sm:$0xff]  ;;  %v62_v2 = vld [vmem:[%s5651_s0 + $0x160] sm:$0xff] }
  0x42   :  { %v834_v20 = vmax.f32 %v578_v3, 0.0  ;;  %v580_v21 = vadd.f32 %v3458_v5, %v317_v11  ;;  %v445_v22 = vmul.f32 %v3453_v4, %v182_v7  ;;  %v835_v23 = vmax.f32 %v579_v9, 0.0  ;;  %v63_v9 = vld [vmem:[%s5651_s0 + $0x168] sm:$0xff]  ;;  %v190_v11 = vld [vmem:[%s5651_s0 + $0x560] sm:$0xff] }
  0x43   :  { %v581_v24 = vadd.f32 %v3458_v5, %v318_v17  ;;  %v446_v25 = vmul.f32 %v3453_v4, %v183_v12  ;;  %v319_v26 = vmul.f32 %v3453_v4, %v56_v13  ;;  %v962_v29 = vmax.f32 %v706_v10, 0.0 }
  0x44   :  { %v963_v30 = vmax.f32 %v707_v16, 0.0  ;;  %v708_v31 = vadd.f32 %v3458_v5, %v445_v22  ;;  %v320_v32 = vmul.f32 %v3453_v4, %v57_v18  ;;  %v836_v34 = vmax.f32 %v580_v21, 0.0  ;;  %v191_v16 = vld [vmem:[%s5651_s0 + $0x568] sm:$0xff] }
  0x45   :  { %3181 = vmatmul.mubr.msk.bf16.gmra.mxu0 %vm1185_vm1, %v1071_v8  ;;  %v837_v35 = vmax.f32 %v581_v24, 0.0  ;;  %v709_v36 = vadd.f32 %v3458_v5, %v446_v25  ;;  %v582_v38 = vadd.f32 %v3458_v5, %v319_v26  ;;  %v447_v39 = vmul.f32 %v3453_v4, %v184_v27 }
  0x46   :  { %3184 = vmatprep.mubr.msk.bf16.mxu0 %vm1185_vm1, %v1072_v15  ;;  %v448_v40 = vmul.f32 %v3453_v4, %v185_v28  ;;  %v964_v43 = vmax.f32 %v708_v31, 0.0  ;;  %v583_v45 = vadd.f32 %v3458_v5, %v320_v32  ;;  %v321_v46 = vmul.f32 %v3453_v4, %v58_v33  ;;  %v66_v33 = vld [vmem:[%s5651_s0 + $0x180] sm:$0xff] }
  0x47   :  { %3309 = vmatmul.mubr.msk.bf16.gmra.mxu1 %vm1185_vm1, %v1135_v14  ;;  %v965_v44 = vmax.f32 %v709_v36, 0.0  ;;  %v1073_v47 = vpack.c.bf16 %v835_v23, %v834_v20  ;;  %v1137_v48 = vpack.c.bf16 %v963_v30, %v962_v29  ;;  %v322_v49 = vmul.f32 %v3453_v4, %v59_v37  ;;  %v64_v29 = vld [vmem:[%s5651_s0 + $0x170] sm:$0xff]  ;;  %v65_v30 = vld [vmem:[%s5651_s0 + $0x178] sm:$0xff] }
  0x48   :  { %3312 = vmatprep.mubr.msk.bf16.mxu1 %vm1185_vm1, %v1136_v19  ;;  %v1074_v50 = vpack.c.bf16 %v837_v35, %v836_v34  ;;  %v584_v51 = vadd.f32 %v3458_v5, %v321_v46  ;;  %v449_v52 = vmul.f32 %v3453_v4, %v186_v41  ;;  %v450_v53 = vmul.f32 %v3453_v4, %v187_v42  ;;  %v192_v37 = vld [vmem:[%s5651_s0 + $0x570] sm:$0xff] }
  0x49   :  { %v838_v56 = vmax.f32 %v582_v38, 0.0  ;;  %v710_v57 = vadd.f32 %v3458_v5, %v447_v39  ;;  %v711_v58 = vadd.f32 %v3458_v5, %v448_v40  ;;  %v585_v59 = vadd.f32 %v3458_v5, %v322_v49  ;;  %v193_v38 = vld [vmem:[%s5651_s0 + $0x578] sm:$0xff]  ;;  %v67_v39 = vld [vmem:[%s5651_s0 + $0x188] sm:$0xff] }
  0x4a   :  { %v1138_v61 = vpack.c.bf16 %v965_v44, %v964_v43  ;;  %v839_v62 = vmax.f32 %v583_v45, 0.0  ;;  %v712_v63 = vadd.f32 %v3458_v5, %v449_v52  ;;  %v713_v0 = vadd.f32 %v3458_v5, %v450_v53  ;;  %v194_v44 = vld [vmem:[%s5651_s0 + $0x580] sm:$0xff]  ;;  %v195_v45 = vld [vmem:[%s5651_s0 + $0x588] sm:$0xff] }
  0x4b   :  { %v840_v3 = vmax.f32 %v584_v51, 0.0  ;;  %v841_v6 = vmax.f32 %v585_v59, 0.0  ;;  %v323_v7 = vmul.f32 %v3453_v4, %v60_v54  ;;  %v324_v8 = vmul.f32 %v3453_v4, %v61_v55 }
  0x4c   :  { %v451_v10 = vmul.f32 %v3453_v4, %v188_v60  ;;  %v966_v12 = vmax.f32 %v710_v57, 0.0  ;;  %v967_v13 = vmax.f32 %v711_v58, 0.0  ;;  %v452_v14 = vmul.f32 %v3453_v4, %v189_v1  ;;  %v69_v1 = vld [vmem:[%s5651_s0 + $0x198] sm:$0xff] }
  0x4d   :  { %3185 = vmatmul.mubr.msk.bf16.gmra.mxu0 %vm1185_vm1, %v1073_v47  ;;  %v325_v15 = vmul.f32 %v3453_v4, %v62_v2  ;;  %v1075_v17 = vpack.c.bf16 %v839_v62, %v838_v56  ;;  %v968_v18 = vmax.f32 %v712_v63, 0.0  ;;  %v969_v19 = vmax.f32 %v713_v0, 0.0  ;;  %v68_v0 = vld [vmem:[%s5651_s0 + $0x190] sm:$0xff] }
  0x4e   :  { %3188 = vmatprep.mubr.msk.bf16.mxu0 %vm1185_vm1, %v1074_v50  ;;  %v326_v20 = vmul.f32 %v3453_v4, %v63_v9  ;;  %v1076_v21 = vpack.c.bf16 %v841_v6, %v840_v3  ;;  %v586_v22 = vadd.f32 %v3458_v5, %v323_v7  ;;  %v587_v23 = vadd.f32 %v3458_v5, %v324_v8  ;;  %v70_v7 = vld [vmem:[%s5651_s0 + $0x1a0] sm:$0xff]  ;;  %v71_v8 = vld [vmem:[%s5651_s0 + $0x1a8] sm:$0xff] }
  0x4f   :  { %3313 = vmatmul.mubr.msk.bf16.gmra.mxu1 %vm1185_vm1, %v1137_v48  ;;  %v453_v24 = vmul.f32 %v3453_v4, %v190_v11  ;;  %v714_v25 = vadd.f32 %v3458_v5, %v451_v10  ;;  %v588_v26 = vadd.f32 %v3458_v5, %v325_v15  ;;  %v454_v28 = vmul.f32 %v3453_v4, %v191_v16 }
  0x50   :  { %3316 = vmatprep.mubr.msk.bf16.mxu1 %vm1185_vm1, %v1138_v61  ;;  %v589_v27 = vadd.f32 %v3458_v5, %v326_v20  ;;  %v1139_v31 = vpack.c.bf16 %v967_v13, %v966_v12  ;;  %v715_v32 = vadd.f32 %v3458_v5, %v452_v14  ;;  %v1140_v34 = vpack.c.bf16 %v969_v19, %v968_v18  ;;  %v196_v12 = vld [vmem:[%s5651_s0 + $0x590] sm:$0xff]  ;;  %v197_v13 = vld [vmem:[%s5651_s0 + $0x598] sm:$0xff]  ;;  %v198_v18 = vld [vmem:[%s5651_s0 + $0x5a0] sm:$0xff] }
  0x51   :  { %v716_v35 = vadd.f32 %v3458_v5, %v453_v24  ;;  %v717_v36 = vadd.f32 %v3458_v5, %v454_v28  ;;  %v842_v40 = vmax.f32 %v586_v22, 0.0  ;;  %v843_v41 = vmax.f32 %v587_v23, 0.0  ;;  %v199_v19 = vld [vmem:[%s5651_s0 + $0x5a8] sm:$0xff] }
  0x52   :  { %v327_v42 = vmul.f32 %v3453_v4, %v64_v29  ;;  %v328_v43 = vmul.f32 %v3453_v4, %v65_v30  ;;  %v970_v46 = vmax.f32 %v714_v25, 0.0  ;;  %v844_v47 = vmax.f32 %v588_v26, 0.0 }
  0x53   :  { %v845_v48 = vmax.f32 %v589_v27, 0.0  ;;  %v329_v49 = vmul.f32 %v3453_v4, %v66_v33  ;;  %v971_v50 = vmax.f32 %v715_v32, 0.0  ;;  %v455_v51 = vmul.f32 %v3453_v4, %v192_v37 }
  0x54   :  { %v456_v52 = vmul.f32 %v3453_v4, %v193_v38  ;;  %v330_v53 = vmul.f32 %v3453_v4, %v67_v39  ;;  %v972_v54 = vmax.f32 %v716_v35, 0.0  ;;  %v973_v55 = vmax.f32 %v717_v36, 0.0  ;;  %v72_v39 = vld [vmem:[%s5651_s0 + $0x1b0] sm:$0xff] }
  0x55   :  { %3189 = vmatmul.mubr.msk.bf16.gmra.mxu0 %vm1185_vm1, %v1075_v17  ;;  %v457_v56 = vmul.f32 %v3453_v4, %v194_v44  ;;  %v458_v57 = vmul.f32 %v3453_v4, %v195_v45  ;;  %v1077_v58 = vpack.c.bf16 %v843_v41, %v842_v40  ;;  %v590_v59 = vadd.f32 %v3458_v5, %v327_v42  ;;  %v74_v42 = vld [vmem:[%s5651_s0 + $0x1c0] sm:$0xff] }
  0x56   :  { %3192 = vmatprep.mubr.msk.bf16.mxu0 %vm1185_vm1, %v1076_v21  ;;  %v591_v60 = vadd.f32 %v3458_v5, %v328_v43  ;;  %v1078_v61 = vpack.c.bf16 %v845_v48, %v844_v47  ;;  %v592_v62 = vadd.f32 %v3458_v5, %v329_v49  ;;  %v593_v63 = vadd.f32 %v3458_v5, %v330_v53  ;;  %v75_v43 = vld [vmem:[%s5651_s0 + $0x1c8] sm:$0xff]  ;;  %v200_v47 = vld [vmem:[%s5651_s0 + $0x5b0] sm:$0xff]  ;;  %v201_v48 = vld [vmem:[%s5651_s0 + $0x5b8] sm:$0xff] }
  0x57   :  { %3317 = vmatmul.mubr.msk.bf16.gmra.mxu1 %vm1185_vm1, %v1139_v31  ;;  %v1141_v2 = vpack.c.bf16 %v971_v50, %v970_v46  ;;  %v718_v3 = vadd.f32 %v3458_v5, %v455_v51  ;;  %v719_v6 = vadd.f32 %v3458_v5, %v456_v52  ;;  %v1142_v9 = vpack.c.bf16 %v973_v55, %v972_v54  ;;  %v4067_v51 = vld [vmem:[%s5652_s1] ss:$0 sm:$0xff]  ;;  %v203_v55 = vld [vmem:[%s5651_s0 + $0x5c8] sm:$0xff] }
  0x58   :  { %3320 = vmatprep.mubr.msk.bf16.mxu1 %vm1185_vm1, %v1140_v34  ;;  %v720_v10 = vadd.f32 %v3458_v5, %v457_v56  ;;  %v721_v11 = vadd.f32 %v3458_v5, %v458_v57  ;;  %v846_v14 = vmax.f32 %v590_v59, 0.0  ;;  %v847_v15 = vmax.f32 %v591_v60, 0.0  ;;  %v4036_v34 = vld [vmem:[%s5653_s2] ss:$0 sm:$0xff] }
  0x59   :  { %v331_v16 = vmul.f32 %v3453_v4, %v68_v0  ;;  %v332_v17 = vmul.f32 %v3453_v4, %v69_v1  ;;  %v848_v20 = vmax.f32 %v592_v62, 0.0  ;;  %v849_v21 = vmax.f32 %v593_v63, 0.0  ;;  %v202_v54 = vld [vmem:[%s5651_s0 + $0x5c0] sm:$0xff] }
  0x5a   :  { %v333_v22 = vmul.f32 %v3453_v4, %v70_v7  ;;  %v334_v23 = vmul.f32 %v3453_v4, %v71_v8  ;;  %v974_v24 = vmax.f32 %v718_v3, 0.0  ;;  %v975_v25 = vmax.f32 %v719_v6, 0.0 }
  0x5b   :  { %v459_v26 = vmul.f32 %v3453_v4, %v196_v12  ;;  %v460_v27 = vmul.f32 %v3453_v4, %v197_v13  ;;  %v976_v28 = vmax.f32 %v720_v10, 0.0  ;;  %v977_v29 = vmax.f32 %v721_v11, 0.0  ;;  %v76_v12 = vld [vmem:[%s5651_s0 + $0x1d0] sm:$0xff]  ;;  %v77_v13 = vld [vmem:[%s5651_s0 + $0x1d8] sm:$0xff] }
  0x5c   :  { %v461_v30 = vmul.f32 %v3453_v4, %v198_v18  ;;  %v462_v31 = vmul.f32 %v3453_v4, %v199_v19  ;;  %v1079_v32 = vpack.c.bf16 %v847_v15, %v846_v14  ;;  %v594_v33 = vadd.f32 %v3458_v5, %v331_v16  ;;  %v73_v4 = vld [vmem:[%s5651_s0 + $0x1b8] sm:$0xff]  ;;  %v79_v18 = vld [vmem:[%s5651_s0 + $0x1e8] sm:$0xff] }
  0x5d   :  { %3193 = vmatmul.mubr.msk.bf16.gmra.mxu0 %vm1185_vm1, %v1077_v58  ;;  %v595_v35 = vadd.f32 %v4036_v34, %v332_v17  ;;  %v1080_v36 = vpack.c.bf16 %v849_v21, %v848_v20  ;;  %v596_v37 = vadd.f32 %v4036_v34, %v333_v22  ;;  %v597_v38 = vadd.f32 %v4036_v34, %v334_v23  ;;  %v78_v17 = vld [vmem:[%s5651_s0 + $0x1e0] sm:$0xff]  ;;  %v204_v22 = vld [vmem:[%s5651_s0 + $0x5d0] sm:$0xff]  ;;  %v205_v23 = vld [vmem:[%s5651_s0 + $0x5d8] sm:$0xff] }
  0x5e   :  { %3196 = vmatprep.mubr.msk.bf16.mxu0 %vm1185_vm1, %v1078_v61  ;;  %v1143_v5 = vpack.c.bf16 %v975_v25, %v974_v24  ;;  %v722_v40 = vadd.f32 %v4036_v34, %v459_v26  ;;  %v723_v41 = vadd.f32 %v4036_v34, %v460_v27  ;;  %v1144_v44 = vpack.c.bf16 %v977_v29, %v976_v28  ;;  %v206_v28 = vld [vmem:[%s5651_s0 + $0x5e0] sm:$0xff]  ;;  %v207_v29 = vld [vmem:[%s5651_s0 + $0x5e8] sm:$0xff] }
  0x5f   :  { %3321 = vmatmul.mubr.msk.bf16.gmra.mxu1 %vm1185_vm1, %v1141_v2  ;;  %v724_v45 = vadd.f32 %v4036_v34, %v461_v30  ;;  %v725_v46 = vadd.f32 %v4036_v34, %v462_v31  ;;  %v850_v49 = vmax.f32 %v594_v33, 0.0  ;;  %v851_v50 = vmax.f32 %v595_v35, 0.0 }
  0x60   :  { %3324 = vmatprep.mubr.msk.bf16.mxu1 %vm1185_vm1, %v1142_v9  ;;  %v335_v52 = vmul.f32 %v4067_v51, %v72_v39  ;;  %v336_v53 = vmul.f32 %v4067_v51, %v73_v4  ;;  %v852_v56 = vmax.f32 %v596_v37, 0.0  ;;  %v853_v57 = vmax.f32 %v597_v38, 0.0 }
  0x61   :  { %v337_v58 = vmul.f32 %v4067_v51, %v74_v42  ;;  %v338_v59 = vmul.f32 %v4067_v51, %v75_v43  ;;  %v978_v60 = vmax.f32 %v722_v40, 0.0  ;;  %v979_v61 = vmax.f32 %v723_v41, 0.0 }
  0x62   :  { %v463_v62 = vmul.f32 %v4067_v51, %v200_v47  ;;  %v464_v63 = vmul.f32 %v4067_v51, %v201_v48  ;;  %v980_v0 = vmax.f32 %v724_v45, 0.0  ;;  %v981_v1 = vmax.f32 %v725_v46, 0.0  ;;  %v80_v47 = vld [vmem:[%s5651_s0 + $0x1f0] sm:$0xff]  ;;  %v81_v48 = vld [vmem:[%s5651_s0 + $0x1f8] sm:$0xff] }
  0x63   :  { %v465_v2 = vmul.f32 %v4067_v51, %v202_v54  ;;  %v466_v3 = vmul.f32 %v4067_v51, %v203_v55  ;;  %v1081_v6 = vpack.c.bf16 %v851_v50, %v850_v49  ;;  %v598_v7 = vadd.f32 %v4036_v34, %v335_v52  ;;  %v83_v54 = vld [vmem:[%s5651_s0 + $0x208] sm:$0xff] }
  0x64   :  { %v599_v8 = vadd.f32 %v4036_v34, %v336_v53  ;;  %v1082_v9 = vpack.c.bf16 %v853_v57, %v852_v56  ;;  %v600_v10 = vadd.f32 %v4036_v34, %v337_v58  ;;  %v601_v11 = vadd.f32 %v4036_v34, %v338_v59  ;;  %v82_v53 = vld [vmem:[%s5651_s0 + $0x200] sm:$0xff]  ;;  %v208_v58 = vld [vmem:[%s5651_s0 + $0x5f0] sm:$0xff]  ;;  %v209_v59 = vld [vmem:[%s5651_s0 + $0x5f8] sm:$0xff] }
  0x65   :  { %3197 = vmatmul.mubr.msk.bf16.gmra.mxu0 %vm1185_vm1, %v1079_v32  ;;  %v1145_v14 = vpack.c.bf16 %v979_v61, %v978_v60  ;;  %v726_v15 = vadd.f32 %v4036_v34, %v463_v62  ;;  %v727_v16 = vadd.f32 %v4036_v34, %v464_v63  ;;  %v1146_v19 = vpack.c.bf16 %v981_v1, %v980_v0  ;;  %v210_v0 = vld [vmem:[%s5651_s0 + $0x600] sm:$0xff]  ;;  %v211_v1 = vld [vmem:[%s5651_s0 + $0x608] sm:$0xff] }
  0x66   :  { %3200 = vmatprep.mubr.msk.bf16.mxu0 %vm1185_vm1, %v1080_v36  ;;  %v728_v20 = vadd.f32 %v4036_v34, %v465_v2  ;;  %v729_v21 = vadd.f32 %v4036_v34, %v466_v3  ;;  %v854_v24 = vmax.f32 %v598_v7, 0.0  ;;  %v855_v25 = vmax.f32 %v599_v8, 0.0 }
  0x67   :  { %3325 = vmatmul.mubr.msk.bf16.gmra.mxu1 %vm1185_vm1, %v1143_v5  ;;  %v339_v26 = vmul.f32 %v4067_v51, %v76_v12  ;;  %v340_v27 = vmul.f32 %v4067_v51, %v77_v13  ;;  %v856_v30 = vmax.f32 %v600_v10, 0.0  ;;  %v857_v31 = vmax.f32 %v601_v11, 0.0 }
  0x68   :  { %3328 = vmatprep.mubr.msk.bf16.mxu1 %vm1185_vm1, %v1144_v44  ;;  %v341_v32 = vmul.f32 %v4067_v51, %v78_v17  ;;  %v342_v33 = vmul.f32 %v4067_v51, %v79_v18  ;;  %v982_v35 = vmax.f32 %v726_v15, 0.0  ;;  %v983_v36 = vmax.f32 %v727_v16, 0.0 }
  0x69   :  { %v467_v37 = vmul.f32 %v4067_v51, %v204_v22  ;;  %v468_v38 = vmul.f32 %v4067_v51, %v205_v23  ;;  %v984_v39 = vmax.f32 %v728_v20, 0.0  ;;  %v985_v4 = vmax.f32 %v729_v21, 0.0  ;;  %v84_v22 = vld [vmem:[%s5651_s0 + $0x210] sm:$0xff]  ;;  %v85_v23 = vld [vmem:[%s5651_s0 + $0x218] sm:$0xff] }
  0x6a   :  { %v469_v5 = vmul.f32 %v4067_v51, %v206_v28  ;;  %v470_v40 = vmul.f32 %v4067_v51, %v207_v29  ;;  %v1083_v41 = vpack.c.bf16 %v855_v25, %v854_v24  ;;  %v602_v42 = vadd.f32 %v4036_v34, %v339_v26  ;;  %v87_v28 = vld [vmem:[%s5651_s0 + $0x228] sm:$0xff] }
  0x6b   :  { %v603_v43 = vadd.f32 %v4036_v34, %v340_v27  ;;  %v1084_v44 = vpack.c.bf16 %v857_v31, %v856_v30  ;;  %v604_v45 = vadd.f32 %v4036_v34, %v341_v32  ;;  %v605_v46 = vadd.f32 %v4036_v34, %v342_v33  ;;  %v86_v27 = vld [vmem:[%s5651_s0 + $0x220] sm:$0xff]  ;;  %v212_v32 = vld [vmem:[%s5651_s0 + $0x610] sm:$0xff]  ;;  %v213_v33 = vld [vmem:[%s5651_s0 + $0x618] sm:$0xff] }
  0x6c   :  { %v1147_v49 = vpack.c.bf16 %v983_v36, %v982_v35  ;;  %v730_v50 = vadd.f32 %v4036_v34, %v467_v37  ;;  %v731_v52 = vadd.f32 %v4036_v34, %v468_v38  ;;  %v1148_v55 = vpack.c.bf16 %v985_v4, %v984_v39  ;;  %v214_v39 = vld [vmem:[%s5651_s0 + $0x620] sm:$0xff]  ;;  %v215_v4 = vld [vmem:[%s5651_s0 + $0x628] sm:$0xff] }
  0x6d   :  { %3201 = vmatmul.mubr.msk.bf16.gmra.mxu0 %vm1185_vm1, %v1081_v6  ;;  %v732_v56 = vadd.f32 %v4036_v34, %v469_v5  ;;  %v733_v57 = vadd.f32 %v4036_v34, %v470_v40  ;;  %v858_v60 = vmax.f32 %v602_v42, 0.0  ;;  %v859_v61 = vmax.f32 %v603_v43, 0.0 }
  0x6e   :  { %3204 = vmatprep.mubr.msk.bf16.mxu0 %vm1185_vm1, %v1082_v9  ;;  %v343_v62 = vmul.f32 %v4067_v51, %v80_v47  ;;  %v344_v63 = vmul.f32 %v4067_v51, %v81_v48  ;;  %v860_v2 = vmax.f32 %v604_v45, 0.0  ;;  %v861_v3 = vmax.f32 %v605_v46, 0.0 }
  0x6f   :  { %3329 = vmatmul.mubr.msk.bf16.gmra.mxu1 %vm1185_vm1, %v1145_v14  ;;  %v345_v6 = vmul.f32 %v4067_v51, %v82_v53  ;;  %v346_v7 = vmul.f32 %v4067_v51, %v83_v54  ;;  %v986_v8 = vmax.f32 %v730_v50, 0.0  ;;  %v987_v9 = vmax.f32 %v731_v52, 0.0 }
  0x70   :  { %3332 = vmatprep.mubr.msk.bf16.mxu1 %vm1185_vm1, %v1146_v19  ;;  %v471_v10 = vmul.f32 %v4067_v51, %v208_v58  ;;  %v472_v11 = vmul.f32 %v4067_v51, %v209_v59  ;;  %v988_v12 = vmax.f32 %v732_v56, 0.0  ;;  %v989_v13 = vmax.f32 %v733_v57, 0.0  ;;  %v88_v58 = vld [vmem:[%s5651_s0 + $0x230] sm:$0xff]  ;;  %v89_v59 = vld [vmem:[%s5651_s0 + $0x238] sm:$0xff] }
  0x71   :  { %v473_v14 = vmul.f32 %v4067_v51, %v210_v0  ;;  %v474_v15 = vmul.f32 %v4067_v51, %v211_v1  ;;  %v1085_v16 = vpack.c.bf16 %v859_v61, %v858_v60  ;;  %v606_v17 = vadd.f32 %v4036_v34, %v343_v62  ;;  %v91_v0 = vld [vmem:[%s5651_s0 + $0x248] sm:$0xff] }
  0x72   :  { %v607_v18 = vadd.f32 %v4036_v34, %v344_v63  ;;  %v1086_v19 = vpack.c.bf16 %v861_v3, %v860_v2  ;;  %v608_v20 = vadd.f32 %v4036_v34, %v345_v6  ;;  %v609_v21 = vadd.f32 %v4036_v34, %v346_v7  ;;  %v90_v63 = vld [vmem:[%s5651_s0 + $0x240] sm:$0xff]  ;;  %v216_v6 = vld [vmem:[%s5651_s0 + $0x630] sm:$0xff]  ;;  %v217_v7 = vld [vmem:[%s5651_s0 + $0x638] sm:$0xff] }
  0x73   :  { %v1149_v24 = vpack.c.bf16 %v987_v9, %v986_v8  ;;  %v734_v25 = vadd.f32 %v4036_v34, %v471_v10  ;;  %v735_v26 = vadd.f32 %v4036_v34, %v472_v11  ;;  %v1150_v29 = vpack.c.bf16 %v989_v13, %v988_v12  ;;  %v218_v12 = vld [vmem:[%s5651_s0 + $0x640] sm:$0xff]  ;;  %v219_v13 = vld [vmem:[%s5651_s0 + $0x648] sm:$0xff] }
  0x74   :  { %v736_v30 = vadd.f32 %v4036_v34, %v473_v14  ;;  %v737_v31 = vadd.f32 %v4036_v34, %v474_v15  ;;  %v862_v35 = vmax.f32 %v606_v17, 0.0  ;;  %v863_v36 = vmax.f32 %v607_v18, 0.0 }
  0x75   :  { %3205 = vmatmul.mubr.msk.bf16.gmra.mxu0 %vm1185_vm1, %v1083_v41  ;;  %v347_v37 = vmul.f32 %v4067_v51, %v84_v22  ;;  %v348_v38 = vmul.f32 %v4067_v51, %v85_v23  ;;  %v864_v5 = vmax.f32 %v608_v20, 0.0  ;;  %v865_v40 = vmax.f32 %v609_v21, 0.0 }
  0x76   :  { %3208 = vmatprep.mubr.msk.bf16.mxu0 %vm1185_vm1, %v1084_v44  ;;  %v349_v41 = vmul.f32 %v4067_v51, %v86_v27  ;;  %v350_v42 = vmul.f32 %v4067_v51, %v87_v28  ;;  %v990_v43 = vmax.f32 %v734_v25, 0.0  ;;  %v991_v44 = vmax.f32 %v735_v26, 0.0 }
  0x77   :  { %3333 = vmatmul.mubr.msk.bf16.gmra.mxu1 %vm1185_vm1, %v1147_v49  ;;  %v475_v45 = vmul.f32 %v4067_v51, %v212_v32  ;;  %v476_v46 = vmul.f32 %v4067_v51, %v213_v33  ;;  %v992_v47 = vmax.f32 %v736_v30, 0.0  ;;  %v993_v48 = vmax.f32 %v737_v31, 0.0  ;;  %v92_v32 = vld [vmem:[%s5651_s0 + $0x250] sm:$0xff]  ;;  %v93_v33 = vld [vmem:[%s5651_s0 + $0x258] sm:$0xff] }
  0x78   :  { %3336 = vmatprep.mubr.msk.bf16.mxu1 %vm1185_vm1, %v1148_v55  ;;  %v477_v49 = vmul.f32 %v4067_v51, %v214_v39  ;;  %v478_v50 = vmul.f32 %v4067_v51, %v215_v4  ;;  %v1087_v52 = vpack.c.bf16 %v863_v36, %v862_v35  ;;  %v610_v53 = vadd.f32 %v4036_v34, %v347_v37  ;;  %v95_v39 = vld [vmem:[%s5651_s0 + $0x268] sm:$0xff] }
  0x79   :  { %v611_v54 = vadd.f32 %v4036_v34, %v348_v38  ;;  %v1088_v55 = vpack.c.bf16 %v865_v40, %v864_v5  ;;  %v612_v56 = vadd.f32 %v4036_v34, %v349_v41  ;;  %v613_v57 = vadd.f32 %v4036_v34, %v350_v42  ;;  %v94_v38 = vld [vmem:[%s5651_s0 + $0x260] sm:$0xff]  ;;  %v220_v41 = vld [vmem:[%s5651_s0 + $0x650] sm:$0xff]  ;;  %v221_v42 = vld [vmem:[%s5651_s0 + $0x658] sm:$0xff] }
  0x7a   :  { %v1151_v60 = vpack.c.bf16 %v991_v44, %v990_v43  ;;  %v738_v61 = vadd.f32 %v4036_v34, %v475_v45  ;;  %v739_v62 = vadd.f32 %v4036_v34, %v476_v46  ;;  %v1152_v1 = vpack.c.bf16 %v993_v48, %v992_v47  ;;  %v222_v47 = vld [vmem:[%s5651_s0 + $0x660] sm:$0xff]  ;;  %v223_v48 = vld [vmem:[%s5651_s0 + $0x668] sm:$0xff] }
  0x7b   :  { %v740_v2 = vadd.f32 %v4036_v34, %v477_v49  ;;  %v741_v3 = vadd.f32 %v4036_v34, %v478_v50  ;;  %v866_v8 = vmax.f32 %v610_v53, 0.0  ;;  %v867_v9 = vmax.f32 %v611_v54, 0.0 }
  0x7c   :  { %v351_v10 = vmul.f32 %v4067_v51, %v88_v58  ;;  %v352_v11 = vmul.f32 %v4067_v51, %v89_v59  ;;  %v868_v14 = vmax.f32 %v612_v56, 0.0  ;;  %v869_v15 = vmax.f32 %v613_v57, 0.0 }
  0x7d   :  { %3209 = vmatmul.mubr.msk.bf16.gmra.mxu0 %vm1185_vm1, %v1085_v16  ;;  %v353_v16 = vmul.f32 %v4067_v51, %v90_v63  ;;  %v354_v17 = vmul.f32 %v4067_v51, %v91_v0  ;;  %v994_v18 = vmax.f32 %v738_v61, 0.0  ;;  %v479_v20 = vmul.f32 %v4067_v51, %v216_v6  ;;  %v96_v6 = vld [vmem:[%s5651_s0 + $0x270] sm:$0xff] }
  0x7e   :  { %3212 = vmatprep.mubr.msk.bf16.mxu0 %vm1185_vm1, %v1086_v19  ;;  %v995_v19 = vmax.f32 %v739_v62, 0.0  ;;  %v480_v21 = vmul.f32 %v4067_v51, %v217_v7  ;;  %v996_v22 = vmax.f32 %v740_v2, 0.0  ;;  %v997_v23 = vmax.f32 %v741_v3, 0.0  ;;  %v97_v7 = vld [vmem:[%s5651_s0 + $0x278] sm:$0xff] }
  0x7f   :  { %3337 = vmatmul.mubr.msk.bf16.gmra.mxu1 %vm1185_vm1, %v1149_v24  ;;  %v481_v24 = vmul.f32 %v4067_v51, %v218_v12  ;;  %v482_v25 = vmul.f32 %v4067_v51, %v219_v13  ;;  %v1089_v26 = vpack.c.bf16 %v867_v9, %v866_v8  ;;  %v614_v27 = vadd.f32 %v4036_v34, %v351_v10  ;;  %v99_v12 = vld [vmem:[%s5651_s0 + $0x288] sm:$0xff] }
  0x80   :  { %3340 = vmatprep.mubr.msk.bf16.mxu1 %vm1185_vm1, %v1150_v29  ;;  %v615_v28 = vadd.f32 %v4036_v34, %v352_v11  ;;  %v1090_v29 = vpack.c.bf16 %v869_v15, %v868_v14  ;;  %v616_v30 = vadd.f32 %v4036_v34, %v353_v16  ;;  %v617_v31 = vadd.f32 %v4036_v34, %v354_v17  ;;  %v98_v11 = vld [vmem:[%s5651_s0 + $0x280] sm:$0xff]  ;;  %v224_v16 = vld [vmem:[%s5651_s0 + $0x670] sm:$0xff]  ;;  %v225_v17 = vld [vmem:[%s5651_s0 + $0x678] sm:$0xff] }
  0x81   :  { %v1153_v35 = vpack.c.bf16 %v995_v19, %v994_v18  ;;  %v742_v36 = vadd.f32 %v4036_v34, %v479_v20  ;;  %v743_v37 = vadd.f32 %v4036_v34, %v480_v21  ;;  %v1154_v4 = vpack.c.bf16 %v997_v23, %v996_v22  ;;  %v226_v22 = vld [vmem:[%s5651_s0 + $0x680] sm:$0xff]  ;;  %v227_v23 = vld [vmem:[%s5651_s0 + $0x688] sm:$0xff] }
  0x82   :  { %v744_v5 = vadd.f32 %v4036_v34, %v481_v24  ;;  %v745_v40 = vadd.f32 %v4036_v34, %v482_v25  ;;  %v870_v43 = vmax.f32 %v614_v27, 0.0  ;;  %v871_v44 = vmax.f32 %v615_v28, 0.0 }
  0x83   :  { %v355_v45 = vmul.f32 %v4067_v51, %v92_v32  ;;  %v356_v46 = vmul.f32 %v4067_v51, %v93_v33  ;;  %v872_v49 = vmax.f32 %v616_v30, 0.0  ;;  %v873_v50 = vmax.f32 %v617_v31, 0.0 }
  0x84   :  { %v358_v53 = vmul.f32 %v4067_v51, %v95_v39  ;;  %v998_v54 = vmax.f32 %v742_v36, 0.0  ;;  %v483_v56 = vmul.f32 %v4067_v51, %v220_v41  ;;  %v484_v57 = vmul.f32 %v4067_v51, %v221_v42  ;;  %v100_v41 = vld [vmem:[%s5651_s0 + $0x290] sm:$0xff]  ;;  %v101_v42 = vld [vmem:[%s5651_s0 + $0x298] sm:$0xff] }
  0x85   :  { %3213 = vmatmul.mubr.msk.bf16.gmra.mxu0 %vm1185_vm1, %v1087_v52  ;;  %v357_v52 = vmul.f32 %v4067_v51, %v94_v38  ;;  %v1000_v58 = vmax.f32 %v744_v5, 0.0  ;;  %v1001_v59 = vmax.f32 %v745_v40, 0.0  ;;  %v486_v61 = vmul.f32 %v4067_v51, %v223_v48 }
  0x86   :  { %3216 = vmatprep.mubr.msk.bf16.mxu0 %vm1185_vm1, %v1088_v55  ;;  %v999_v55 = vmax.f32 %v743_v37, 0.0  ;;  %v1091_v62 = vpack.c.bf16 %v871_v44, %v870_v43  ;;  %v618_v63 = vadd.f32 %v4036_v34, %v355_v45  ;;  %v619_v0 = vadd.f32 %v4036_v34, %v356_v46  ;;  %v102_v46 = vld [vmem:[%s5651_s0 + $0x2a0] sm:$0xff] }
  0x87   :  { %3341 = vmatmul.mubr.msk.bf16.gmra.mxu1 %vm1185_vm1, %v1151_v60  ;;  %v485_v60 = vmul.f32 %v4067_v51, %v222_v47  ;;  %v620_v2 = vadd.f32 %v4036_v34, %v357_v52  ;;  %v621_v3 = vadd.f32 %v4036_v34, %v358_v53  ;;  %v746_v9 = vadd.f32 %v4036_v34, %v483_v56  ;;  %v103_v47 = vld [vmem:[%s5651_s0 + $0x2a8] sm:$0xff]  ;;  %v228_v52 = vld [vmem:[%s5651_s0 + $0x690] sm:$0xff]  ;;  %v229_v53 = vld [vmem:[%s5651_s0 + $0x698] sm:$0xff] }
  0x88   :  { %3344 = vmatprep.mubr.msk.bf16.mxu1 %vm1185_vm1, %v1152_v1  ;;  %v1092_v1 = vpack.c.bf16 %v873_v50, %v872_v49  ;;  %v1155_v8 = vpack.c.bf16 %v999_v55, %v998_v54  ;;  %v747_v10 = vadd.f32 %v4036_v34, %v484_v57  ;;  %v1156_v13 = vpack.c.bf16 %v1001_v59, %v1000_v58  ;;  %v230_v58 = vld [vmem:[%s5651_s0 + $0x6a0] sm:$0xff]  ;;  %v231_v59 = vld [vmem:[%s5651_s0 + $0x6a8] sm:$0xff] }
  0x89   :  { %v748_v14 = vadd.f32 %v4036_v34, %v485_v60  ;;  %v749_v15 = vadd.f32 %v4036_v34, %v486_v61  ;;  %v874_v18 = vmax.f32 %v618_v63, 0.0  ;;  %v875_v19 = vmax.f32 %v619_v0, 0.0 }
  0x8a   :  { %v359_v20 = vmul.f32 %v4067_v51, %v96_v6  ;;  %v360_v21 = vmul.f32 %v4067_v51, %v97_v7  ;;  %v876_v24 = vmax.f32 %v620_v2, 0.0  ;;  %v877_v25 = vmax.f32 %v621_v3, 0.0 }
  0x8b   :  { %v362_v27 = vmul.f32 %v4067_v51, %v99_v12  ;;  %v1002_v28 = vmax.f32 %v746_v9, 0.0  ;;  %v487_v30 = vmul.f32 %v4067_v51, %v224_v16  ;;  %v488_v31 = vmul.f32 %v4067_v51, %v225_v17  ;;  %v104_v16 = vld [vmem:[%s5651_s0 + $0x2b0] sm:$0xff]  ;;  %v105_v17 = vld [vmem:[%s5651_s0 + $0x2b8] sm:$0xff] }
  0x8c   :  { %v1004_v32 = vmax.f32 %v748_v14, 0.0  ;;  %v1005_v33 = vmax.f32 %v749_v15, 0.0  ;;  %v490_v36 = vmul.f32 %v4067_v51, %v227_v23  ;;  %v1093_v37 = vpack.c.bf16 %v875_v19, %v874_v18 }
  0x8d   :  { %3217 = vmatmul.mubr.msk.bf16.gmra.mxu0 %vm1185_vm1, %v1089_v26  ;;  %v361_v26 = vmul.f32 %v4067_v51, %v98_v11  ;;  %v622_v38 = vadd.f32 %v4036_v34, %v359_v20  ;;  %v623_v39 = vadd.f32 %v4036_v34, %v360_v21  ;;  %v625_v40 = vadd.f32 %v4036_v34, %v362_v27  ;;  %v106_v21 = vld [vmem:[%s5651_s0 + $0x2c0] sm:$0xff]  ;;  %v233_v27 = vld [vmem:[%s5651_s0 + $0x6b8] sm:$0xff] }
  0x8e   :  { %3220 = vmatprep.mubr.msk.bf16.mxu0 %vm1185_vm1, %v1090_v29  ;;  %v1003_v29 = vmax.f32 %v747_v10, 0.0  ;;  %v750_v44 = vadd.f32 %v4036_v34, %v487_v30  ;;  %v751_v45 = vadd.f32 %v4036_v34, %v488_v31  ;;  %v1158_v48 = vpack.c.bf16 %v1005_v33, %v1004_v32  ;;  %v234_v32 = vld [vmem:[%s5651_s0 + $0x6c0] sm:$0xff]  ;;  %v235_v33 = vld [vmem:[%s5651_s0 + $0x6c8] sm:$0xff] }
  0x8f   :  { %3345 = vmatmul.mubr.msk.bf16.gmra.mxu1 %vm1185_vm1, %v1153_v35  ;;  %v489_v35 = vmul.f32 %v4067_v51, %v226_v22  ;;  %v624_v5 = vadd.f32 %v4036_v34, %v361_v26  ;;  %v753_v50 = vadd.f32 %v4036_v34, %v490_v36  ;;  %v878_v54 = vmax.f32 %v622_v38, 0.0  ;;  %v107_v22 = vld [vmem:[%s5651_s0 + $0x2c8] sm:$0xff]  ;;  %v232_v26 = vld [vmem:[%s5651_s0 + $0x6b0] sm:$0xff] }
  0x90   :  { %3348 = vmatprep.mubr.msk.bf16.mxu1 %vm1185_vm1, %v1154_v4  ;;  %v1094_v4 = vpack.c.bf16 %v877_v25, %v876_v24  ;;  %v1157_v43 = vpack.c.bf16 %v1003_v29, %v1002_v28  ;;  %v879_v55 = vmax.f32 %v623_v39, 0.0  ;;  %v363_v56 = vmul.f32 %v4067_v51, %v100_v41 }
  0x91   :  { %v752_v49 = vadd.f32 %v4036_v34, %v489_v35  ;;  %v364_v57 = vmul.f32 %v4067_v51, %v101_v42  ;;  %v880_v60 = vmax.f32 %v624_v5, 0.0  ;;  %v881_v61 = vmax.f32 %v625_v40, 0.0 }
  0x92   :  { %v366_v63 = vmul.f32 %v4067_v51, %v103_v47  ;;  %v1006_v0 = vmax.f32 %v750_v44, 0.0  ;;  %v491_v2 = vmul.f32 %v4067_v51, %v228_v52  ;;  %v492_v3 = vmul.f32 %v4067_v51, %v229_v53  ;;  %v108_v52 = vld [vmem:[%s5651_s0 + $0x2d0] sm:$0xff]  ;;  %v109_v53 = vld [vmem:[%s5651_s0 + $0x2d8] sm:$0xff] }
  0x93   :  { %v1008_v6 = vmax.f32 %v752_v49, 0.0  ;;  %v1009_v7 = vmax.f32 %v753_v50, 0.0  ;;  %v494_v9 = vmul.f32 %v4067_v51, %v231_v59  ;;  %v1095_v10 = vpack.c.bf16 %v879_v55, %v878_v54 }
  0x94   :  { %v626_v11 = vadd.f32 %v4036_v34, %v363_v56  ;;  %v627_v12 = vadd.f32 %v4036_v34, %v364_v57  ;;  %v629_v15 = vadd.f32 %v4036_v34, %v366_v63  ;;  %v754_v19 = vadd.f32 %v4036_v34, %v491_v2  ;;  %v110_v57 = vld [vmem:[%s5651_s0 + $0x2e0] sm:$0xff]  ;;  %v237_v63 = vld [vmem:[%s5651_s0 + $0x6d8] sm:$0xff] }
  0x95   :  { %3221 = vmatmul.mubr.msk.bf16.gmra.mxu0 %vm1185_vm1, %v1091_v62  ;;  %v365_v62 = vmul.f32 %v4067_v51, %v102_v46  ;;  %v755_v20 = vadd.f32 %v4036_v34, %v492_v3  ;;  %v1160_v23 = vpack.c.bf16 %v1009_v7, %v1008_v6  ;;  %v757_v25 = vadd.f32 %v4036_v34, %v494_v9  ;;  %v238_v6 = vld [vmem:[%s5651_s0 + $0x6e0] sm:$0xff]  ;;  %v239_v7 = vld [vmem:[%s5651_s0 + $0x6e8] sm:$0xff] }
  0x96   :  { %3224 = vmatprep.mubr.msk.bf16.mxu0 %vm1185_vm1, %v1092_v1  ;;  %v1007_v1 = vmax.f32 %v751_v45, 0.0  ;;  %v882_v28 = vmax.f32 %v626_v11, 0.0  ;;  %v883_v29 = vmax.f32 %v627_v12, 0.0  ;;  %v367_v30 = vmul.f32 %v4067_v51, %v104_v16 }
  0x97   :  { %3349 = vmatmul.mubr.msk.bf16.gmra.mxu1 %vm1185_vm1, %v1155_v8  ;;  %v493_v8 = vmul.f32 %v4067_v51, %v230_v58  ;;  %v628_v14 = vadd.f32 %v4036_v34, %v365_v62  ;;  %v368_v31 = vmul.f32 %v4067_v51, %v105_v17  ;;  %v885_v36 = vmax.f32 %v629_v15, 0.0  ;;  %v111_v58 = vld [vmem:[%s5651_s0 + $0x2e8] sm:$0xff]  ;;  %v236_v62 = vld [vmem:[%s5651_s0 + $0x6d0] sm:$0xff] }
  0x98   :  { %3352 = vmatprep.mubr.msk.bf16.mxu1 %vm1185_vm1, %v1156_v13  ;;  %v1096_v13 = vpack.c.bf16 %v881_v61, %v880_v60  ;;  %v1159_v18 = vpack.c.bf16 %v1007_v1, %v1006_v0  ;;  %v370_v38 = vmul.f32 %v4067_v51, %v107_v22  ;;  %v1010_v39 = vmax.f32 %v754_v19, 0.0 }
  0x99   :  { %v756_v24 = vadd.f32 %v4036_v34, %v493_v8  ;;  %v884_v35 = vmax.f32 %v628_v14, 0.0  ;;  %v495_v5 = vmul.f32 %v4067_v51, %v232_v26  ;;  %v496_v40 = vmul.f32 %v4067_v51, %v233_v27  ;;  %v112_v26 = vld [vmem:[%s5651_s0 + $0x2f0] sm:$0xff]  ;;  %v113_v27 = vld [vmem:[%s5651_s0 + $0x2f8] sm:$0xff] }
  0x9a   :  { %v1013_v42 = vmax.f32 %v757_v25, 0.0  ;;  %v498_v44 = vmul.f32 %v4067_v51, %v235_v33  ;;  %v1097_v45 = vpack.c.bf16 %v883_v29, %v882_v28  ;;  %v630_v46 = vadd.f32 %v4036_v34, %v367_v30 }
  0x9b   :  { %v1012_v41 = vmax.f32 %v756_v24, 0.0  ;;  %v631_v47 = vadd.f32 %v4036_v34, %v368_v31  ;;  %v633_v50 = vadd.f32 %v4036_v34, %v370_v38  ;;  %v758_v55 = vadd.f32 %v4036_v34, %v495_v5  ;;  %v114_v31 = vld [vmem:[%s5651_s0 + $0x300] sm:$0xff]  ;;  %v241_v38 = vld [vmem:[%s5651_s0 + $0x6f8] sm:$0xff] }
  0x9c   :  { %v759_v56 = vadd.f32 %v4036_v34, %v496_v40  ;;  %v761_v61 = vadd.f32 %v4036_v34, %v498_v44  ;;  %v886_v0 = vmax.f32 %v630_v46, 0.0  ;;  %v371_v2 = vmul.f32 %v4067_v51, %v108_v52 }
  0x9d   :  { %3225 = vmatmul.mubr.msk.bf16.gmra.mxu0 %vm1185_vm1, %v1093_v37  ;;  %v369_v37 = vmul.f32 %v4067_v51, %v106_v21  ;;  %v1162_v59 = vpack.c.bf16 %v1013_v42, %v1012_v41  ;;  %v887_v1 = vmax.f32 %v631_v47, 0.0  ;;  %v372_v3 = vmul.f32 %v4067_v51, %v109_v53  ;;  %v242_v41 = vld [vmem:[%s5651_s0 + $0x700] sm:$0xff]  ;;  %v243_v42 = vld [vmem:[%s5651_s0 + $0x708] sm:$0xff] }
  0x9e   :  { %3228 = vmatprep.mubr.msk.bf16.mxu0 %vm1185_vm1, %v1094_v4  ;;  %v1011_v4 = vmax.f32 %v755_v20, 0.0  ;;  %v889_v9 = vmax.f32 %v633_v50, 0.0  ;;  %v374_v11 = vmul.f32 %v4067_v51, %v111_v58  ;;  %v1014_v12 = vmax.f32 %v758_v55, 0.0 }
  0x9f   :  { %3353 = vmatmul.mubr.msk.bf16.gmra.mxu1 %vm1185_vm1, %v1157_v43  ;;  %v497_v43 = vmul.f32 %v4067_v51, %v234_v32  ;;  %v632_v49 = vadd.f32 %v4036_v34, %v369_v37  ;;  %v499_v14 = vmul.f32 %v4067_v51, %v236_v62  ;;  %v500_v15 = vmul.f32 %v4067_v51, %v237_v63  ;;  %v115_v32 = vld [vmem:[%s5651_s0 + $0x308] sm:$0xff]  ;;  %v240_v37 = vld [vmem:[%s5651_s0 + $0x6f0] sm:$0xff]  ;;  %v117_v63 = vld [vmem:[%s5651_s0 + $0x318] sm:$0xff] }
  0xa0   :  { %3356 = vmatprep.mubr.msk.bf16.mxu1 %vm1185_vm1, %v1158_v48  ;;  %v1098_v48 = vpack.c.bf16 %v885_v36, %v884_v35  ;;  %v1161_v54 = vpack.c.bf16 %v1011_v4, %v1010_v39  ;;  %v1017_v17 = vmax.f32 %v761_v61, 0.0  ;;  %v502_v19 = vmul.f32 %v4067_v51, %v239_v7  ;;  %v116_v62 = vld [vmem:[%s5651_s0 + $0x310] sm:$0xff] }
  0xa1   :  { %v760_v60 = vadd.f32 %v4036_v34, %v497_v43  ;;  %v888_v8 = vmax.f32 %v632_v49, 0.0  ;;  %v1099_v20 = vpack.c.bf16 %v887_v1, %v886_v0  ;;  %v634_v21 = vadd.f32 %v4036_v34, %v371_v2 }
  0xa2   :  { %v635_v22 = vadd.f32 %v4036_v34, %v372_v3  ;;  %v637_v25 = vadd.f32 %v4036_v34, %v374_v11  ;;  %v762_v29 = vadd.f32 %v4036_v34, %v499_v14  ;;  %v763_v30 = vadd.f32 %v4036_v34, %v500_v15  ;;  %v118_v3 = vld [vmem:[%s5651_s0 + $0x320] sm:$0xff]  ;;  %v245_v11 = vld [vmem:[%s5651_s0 + $0x718] sm:$0xff] }
  0xa3   :  { %v1016_v16 = vmax.f32 %v760_v60, 0.0  ;;  %v765_v36 = vadd.f32 %v4036_v34, %v502_v19  ;;  %v890_v39 = vmax.f32 %v634_v21, 0.0  ;;  %v375_v5 = vmul.f32 %v4067_v51, %v112_v26 }
  0xa4   :  { %v891_v4 = vmax.f32 %v635_v22, 0.0  ;;  %v376_v40 = vmul.f32 %v4067_v51, %v113_v27  ;;  %v893_v44 = vmax.f32 %v637_v25, 0.0  ;;  %v378_v46 = vmul.f32 %v4067_v51, %v115_v32 }
  0xa5   :  { %3229 = vmatmul.mubr.msk.bf16.gmra.mxu0 %vm1185_vm1, %v1095_v10  ;;  %v373_v10 = vmul.f32 %v4067_v51, %v110_v57  ;;  %v1164_v33 = vpack.c.bf16 %v1017_v17, %v1016_v16  ;;  %v1018_v47 = vmax.f32 %v762_v29, 0.0  ;;  %v503_v49 = vmul.f32 %v4067_v51, %v240_v37  ;;  %v246_v16 = vld [vmem:[%s5651_s0 + $0x720] sm:$0xff]  ;;  %v247_v17 = vld [vmem:[%s5651_s0 + $0x728] sm:$0xff]  ;;  %v120_v37 = vld [vmem:[%s5651_s0 + $0x330] sm:$0xff] }
  0xa6   :  { %3232 = vmatprep.mubr.msk.bf16.mxu0 %vm1185_vm1, %v1096_v13  ;;  %v1015_v13 = vmax.f32 %v759_v56, 0.0  ;;  %v504_v50 = vmul.f32 %v4067_v51, %v241_v38  ;;  %v1021_v53 = vmax.f32 %v765_v36, 0.0  ;;  %v506_v55 = vmul.f32 %v4067_v51, %v243_v42  ;;  %v121_v38 = vld [vmem:[%s5651_s0 + $0x338] sm:$0xff] }
  0xa7   :  { %3357 = vmatmul.mubr.msk.bf16.gmra.mxu1 %vm1185_vm1, %v1159_v18  ;;  %v501_v18 = vmul.f32 %v4067_v51, %v238_v6  ;;  %v636_v24 = vadd.f32 %v4036_v34, %v373_v10  ;;  %v1101_v56 = vpack.c.bf16 %v891_v4, %v890_v39  ;;  %v638_v57 = vadd.f32 %v4036_v34, %v375_v5  ;;  %v119_v6 = vld [vmem:[%s5651_s0 + $0x328] sm:$0xff]  ;;  %v244_v10 = vld [vmem:[%s5651_s0 + $0x710] sm:$0xff] }
  0xa8   :  { %3360 = vmatprep.mubr.msk.bf16.mxu1 %vm1185_vm1, %v1160_v23  ;;  %v1100_v23 = vpack.c.bf16 %v889_v9, %v888_v8  ;;  %v1163_v28 = vpack.c.bf16 %v1015_v13, %v1014_v12  ;;  %v639_v58 = vadd.f32 %v4036_v34, %v376_v40  ;;  %v641_v61 = vadd.f32 %v4036_v34, %v378_v46  ;;  %v122_v40 = vld [vmem:[%s5651_s0 + $0x340] sm:$0xff]  ;;  %v249_v46 = vld [vmem:[%s5651_s0 + $0x738] sm:$0xff] }
  0xa9   :  { %v764_v35 = vadd.f32 %v4036_v34, %v501_v18  ;;  %v892_v43 = vmax.f32 %v636_v24, 0.0  ;;  %v766_v1 = vadd.f32 %v4036_v34, %v503_v49  ;;  %v767_v2 = vadd.f32 %v4036_v34, %v504_v50 }
  0xaa   :  { %v769_v9 = vadd.f32 %v4036_v34, %v506_v55  ;;  %v894_v12 = vmax.f32 %v638_v57, 0.0  ;;  %v895_v13 = vmax.f32 %v639_v58, 0.0  ;;  %v379_v14 = vmul.f32 %v4067_v51, %v116_v62 }
  0xab   :  { %v1020_v52 = vmax.f32 %v764_v35, 0.0  ;;  %v380_v15 = vmul.f32 %v4067_v51, %v117_v63  ;;  %v897_v19 = vmax.f32 %v641_v61, 0.0  ;;  %v382_v21 = vmul.f32 %v4067_v51, %v119_v6 }
  0xac   :  { %v1022_v22 = vmax.f32 %v766_v1, 0.0  ;;  %v507_v24 = vmul.f32 %v4067_v51, %v244_v10  ;;  %v508_v25 = vmul.f32 %v4067_v51, %v245_v11  ;;  %v1025_v27 = vmax.f32 %v769_v9, 0.0  ;;  %v124_v10 = vld [vmem:[%s5651_s0 + $0x350] sm:$0xff] }
  0xad   :  { %3233 = vmatmul.mubr.msk.bf16.gmra.mxu0 %vm1185_vm1, %v1097_v45  ;;  %v377_v45 = vmul.f32 %v4067_v51, %v114_v31  ;;  %v1166_v7 = vpack.c.bf16 %v1021_v53, %v1020_v52  ;;  %v510_v29 = vmul.f32 %v4067_v51, %v247_v17  ;;  %v642_v31 = vadd.f32 %v4036_v34, %v379_v14  ;;  %v251_v52 = vld [vmem:[%s5651_s0 + $0x748] sm:$0xff]  ;;  %v126_v14 = vld [vmem:[%s5651_s0 + $0x360] sm:$0xff] }
  0xae   :  { %3236 = vmatprep.mubr.msk.bf16.mxu0 %vm1185_vm1, %v1098_v48  ;;  %v1019_v48 = vmax.f32 %v763_v30, 0.0  ;;  %v1103_v30 = vpack.c.bf16 %v895_v13, %v894_v12  ;;  %v643_v32 = vadd.f32 %v4036_v34, %v380_v15  ;;  %v645_v36 = vadd.f32 %v4036_v34, %v382_v21  ;;  %v127_v15 = vld [vmem:[%s5651_s0 + $0x368] sm:$0xff] }
  0xaf   :  { %3361 = vmatmul.mubr.msk.bf16.gmra.mxu1 %vm1185_vm1, %v1161_v54  ;;  %v505_v54 = vmul.f32 %v4067_v51, %v242_v41  ;;  %v640_v60 = vadd.f32 %v4036_v34, %v377_v45  ;;  %v770_v4 = vadd.f32 %v4036_v34, %v507_v24  ;;  %v771_v5 = vadd.f32 %v4036_v34, %v508_v25  ;;  %v123_v41 = vld [vmem:[%s5651_s0 + $0x348] sm:$0xff]  ;;  %v248_v45 = vld [vmem:[%s5651_s0 + $0x730] sm:$0xff]  ;;  %v4649_v24 = vld [vmem:[%s5652_s1] ss:$0 sm:$0xff] }
  0xb0   :  { %3364 = vmatprep.mubr.msk.bf16.mxu1 %vm1185_vm1, %v1162_v59  ;;  %v1102_v59 = vpack.c.bf16 %v893_v44, %v892_v43  ;;  %v1165_v0 = vpack.c.bf16 %v1019_v48, %v1018_v47  ;;  %v773_v44 = vadd.f32 %v4036_v34, %v510_v29  ;;  %v898_v47 = vmax.f32 %v642_v31, 0.0 }
  0xb1   :  { %v768_v8 = vadd.f32 %v4036_v34, %v505_v54  ;;  %v896_v18 = vmax.f32 %v640_v60, 0.0  ;;  %v899_v48 = vmax.f32 %v643_v32, 0.0  ;;  %v383_v49 = vmul.f32 %v4067_v51, %v120_v37 }
  0xb2   :  { %v384_v50 = vmul.f32 %v4067_v51, %v121_v38  ;;  %v901_v54 = vmax.f32 %v645_v36, 0.0  ;;  %v385_v55 = vmul.f32 %v4067_v51, %v122_v40  ;;  %v1026_v57 = vmax.f32 %v770_v4, 0.0 }
  0xb3   :  { %v1024_v26 = vmax.f32 %v768_v8, 0.0  ;;  %v1027_v58 = vmax.f32 %v771_v5, 0.0  ;;  %v512_v60 = vmul.f32 %v4067_v51, %v249_v46  ;;  %v1029_v62 = vmax.f32 %v773_v44, 0.0 }
  0xb4   :  { %v1105_v1 = vpack.c.bf16 %v899_v48, %v898_v47  ;;  %v387_v25 = vmul.f32 %v4649_v24, %v124_v10  ;;  %v389_v31 = vmul.f32 %v4649_v24, %v126_v14  ;;  %v390_v32 = vmul.f32 %v4649_v24, %v127_v15  ;;  %v259_v10 = vld [vmem:[%s5651_s0 + $0x788] sm:$0xff] }
  0xb5   :  { %3237 = vmatmul.mubr.msk.bf16.gmra.mxu0 %vm1185_vm1, %v1099_v20  ;;  %v381_v20 = vmul.f32 %v4067_v51, %v118_v3  ;;  %v1168_v42 = vpack.c.bf16 %v1025_v27, %v1024_v26  ;;  %v1169_v11 = vpack.c.bf16 %v1027_v58, %v1026_v57  ;;  %v254_v27 = vld [vmem:[%s5651_s0 + $0x760] sm:$0xff]  ;;  %v131_v58 = vld [vmem:[%s5651_s0 + $0x388] sm:$0xff] }
  0xb6   :  { %3240 = vmatprep.mubr.msk.bf16.mxu0 %vm1185_vm1, %v1100_v23  ;;  %v1023_v23 = vmax.f32 %v767_v2, 0.0  ;;  %v4617_v2 = vld [vmem:[%s5653_s2] ss:$0 sm:$0xff]  ;;  %v517_v40 = vmul.f32 %v4649_v24, %v254_v27 }
  0xb7   :  { %3365 = vmatmul.mubr.msk.bf16.gmra.mxu1 %vm1185_vm1, %v1163_v28  ;;  %v509_v28 = vmul.f32 %v4067_v51, %v246_v16  ;;  %v644_v35 = vadd.f32 %v4036_v34, %v381_v20  ;;  %v646_v3 = vadd.f32 %v4617_v2, %v383_v49  ;;  %v647_v6 = vadd.f32 %v4617_v2, %v384_v50  ;;  %v253_v20 = vld [vmem:[%s5651_s0 + $0x758] sm:$0xff]  ;;  %v128_v50 = vld [vmem:[%s5651_s0 + $0x370] sm:$0xff]  ;;  %v130_v57 = vld [vmem:[%s5651_s0 + $0x380] sm:$0xff] }
  0xb8   :  { %3368 = vmatprep.mubr.msk.bf16.mxu1 %vm1185_vm1, %v1164_v33  ;;  %v1104_v33 = vpack.c.bf16 %v897_v19, %v896_v18  ;;  %v1167_v39 = vpack.c.bf16 %v1023_v23, %v1022_v22  ;;  %v648_v8 = vadd.f32 %v4617_v2, %v385_v55  ;;  %v775_v13 = vadd.f32 %v4617_v2, %v512_v60  ;;  %v252_v19 = vld [vmem:[%s5651_s0 + $0x750] sm:$0xff] }
  0xb9   :  { %v772_v43 = vadd.f32 %v4036_v34, %v509_v28  ;;  %v250_v34 = vld [vmem:[%s5651_s0 + $0x740] sm:$0xff]  ;;  %v900_v53 = vmax.f32 %v644_v35, 0.0  ;;  %v902_v22 = vmax.f32 %v646_v3, 0.0  ;;  %v903_v23 = vmax.f32 %v647_v6, 0.0  ;;  %v255_v28 = vld [vmem:[%s5651_s0 + $0x768] sm:$0xff] }
  0xba   :  { %v513_v63 = vmul.f32 %v4067_v51, %v250_v34  ;;  %v904_v29 = vmax.f32 %v648_v8, 0.0  ;;  %v1031_v37 = vmax.f32 %v775_v13, 0.0  ;;  %v515_v38 = vmul.f32 %v4649_v24, %v252_v19  ;;  %v129_v34 = vld [vmem:[%s5651_s0 + $0x378] sm:$0xff] }
  0xbb   :  { %v1028_v61 = vmax.f32 %v772_v43, 0.0  ;;  %v1107_v44 = vpack.c.bf16 %v903_v23, %v902_v22  ;;  %v652_v48 = vadd.f32 %v4617_v2, %v389_v31  ;;  %v653_v49 = vadd.f32 %v4617_v2, %v390_v32 }
  0xbc   :  { %v776_v17 = vadd.f32 %v4617_v2, %v513_v63  ;;  %v778_v55 = vadd.f32 %v4617_v2, %v515_v38  ;;  %v780_v60 = vadd.f32 %v4617_v2, %v517_v40  ;;  %v257_v63 = vld [vmem:[%s5651_s0 + $0x778] sm:$0xff]  ;;  %v392_v8 = vmul.f32 %v4649_v24, %v129_v34  ;;  %v135_v40 = vld [vmem:[%s5651_s0 + $0x3a8] sm:$0xff] }
  0xbd   :  { %3241 = vmatmul.mubr.msk.bf16.gmra.mxu0 %vm1185_vm1, %v1101_v56  ;;  %v386_v56 = vmul.f32 %v4067_v51, %v123_v41  ;;  %v1170_v16 = vpack.c.bf16 %v1029_v62, %v1028_v61  ;;  %v518_v41 = vmul.f32 %v4649_v24, %v255_v28  ;;  %v256_v62 = vld [vmem:[%s5651_s0 + $0x770] sm:$0xff]  ;;  %v394_v13 = vmul.f32 %v4649_v24, %v131_v58 }
  0xbe   :  { %3244 = vmatprep.mubr.msk.bf16.mxu0 %vm1185_vm1, %v1102_v59  ;;  %v511_v59 = vmul.f32 %v4067_v51, %v248_v45  ;;  %v1032_v4 = vmax.f32 %v776_v17, 0.0  ;;  %v650_v45 = vadd.f32 %v4617_v2, %v387_v25  ;;  %v520_v19 = vmul.f32 %v4649_v24, %v257_v63 }
  0xbf   :  { %3369 = vmatmul.mubr.msk.bf16.gmra.mxu1 %vm1185_vm1, %v1165_v0  ;;  %v514_v0 = vmul.f32 %v4067_v51, %v251_v52  ;;  %v649_v9 = vadd.f32 %v4617_v2, %v386_v56  ;;  %v125_v51 = vld [vmem:[%s5651_s0 + $0x358] sm:$0xff]  ;;  %v781_v61 = vadd.f32 %v4617_v2, %v518_v41  ;;  %v522_v23 = vmul.f32 %v4649_v24, %v259_v10 }
  0xc0   :  { %3372 = vmatprep.mubr.msk.bf16.mxu1 %vm1185_vm1, %v1166_v7  ;;  %v1106_v7 = vpack.c.bf16 %v901_v54, %v900_v53  ;;  %v774_v12 = vadd.f32 %v4617_v2, %v511_v59  ;;  %v388_v26 = vmul.f32 %v4649_v24, %v125_v51  ;;  %v906_v3 = vmax.f32 %v650_v45, 0.0  ;;  %v261_v45 = vld [vmem:[%s5651_s0 + $0x798] sm:$0xff] }
  0xc1   :  { %v777_v18 = vadd.f32 %v4617_v2, %v514_v0  ;;  %v908_v51 = vmax.f32 %v652_v48, 0.0  ;;  %v657_v32 = vadd.f32 %v4617_v2, %v394_v13  ;;  %v524_v63 = vmul.f32 %v4649_v24, %v261_v45 }
  0xc2   :  { %v1030_v36 = vmax.f32 %v774_v12, 0.0  ;;  %v651_v46 = vadd.f32 %v4617_v2, %v388_v26  ;;  %v393_v12 = vmul.f32 %v4649_v24, %v130_v57  ;;  %v398_v57 = vmul.f32 %v4649_v24, %v135_v40 }
  0xc3   :  { %v1033_v5 = vmax.f32 %v777_v18, 0.0  ;;  %v519_v18 = vmul.f32 %v4649_v24, %v256_v62 }
  0xc4   :  { %v1171_v54 = vpack.c.bf16 %v1031_v37, %v1030_v36  ;;  %v907_v6 = vmax.f32 %v651_v46, 0.0  ;;  %v656_v31 = vadd.f32 %v4617_v2, %v393_v12  ;;  %v661_v13 = vadd.f32 %v4617_v2, %v398_v57 }
  0xc5   :  { %3245 = vmatmul.mubr.msk.bf16.gmra.mxu0 %vm1185_vm1, %v1103_v30  ;;  %v905_v30 = vmax.f32 %v649_v9, 0.0  ;;  %v1172_v59 = vpack.c.bf16 %v1033_v5, %v1032_v4  ;;  %v258_v9 = vld [vmem:[%s5651_s0 + $0x780] sm:$0xff]  ;;  %v783_v4 = vadd.f32 %v4617_v2, %v520_v19 }
  0xc6   :  { %3248 = vmatprep.mubr.msk.bf16.mxu0 %vm1185_vm1, %v1104_v33  ;;  %v521_v22 = vmul.f32 %v4649_v24, %v258_v9  ;;  %v1109_v27 = vpack.c.bf16 %v907_v6, %v906_v3  ;;  %v134_v5 = vld [vmem:[%s5651_s0 + $0x3a0] sm:$0xff] }
  0xc7   :  { %3373 = vmatmul.mubr.msk.bf16.gmra.mxu1 %vm1185_vm1, %v1167_v39  ;;  %v516_v39 = vmul.f32 %v4649_v24, %v253_v20  ;;  %v1108_v47 = vpack.c.bf16 %v905_v30, %v904_v29  ;;  %v1036_v20 = vmax.f32 %v780_v60, 0.0  ;;  %v655_v29 = vadd.f32 %v4617_v2, %v392_v8 }
  0xc8   :  { %3376 = vmatprep.mubr.msk.bf16.mxu1 %vm1185_vm1, %v1168_v42 }
  0xc9   :  { %v779_v56 = vadd.f32 %v4617_v2, %v516_v39  ;;  %v782_v39 = vadd.f32 %v4617_v2, %v519_v18 }
  0xcb   :  { %v1035_v17 = vmax.f32 %v779_v56, 0.0  ;;  %v397_v56 = vmul.f32 %v4649_v24, %v134_v5  ;;  %v1038_v60 = vmax.f32 %v782_v39, 0.0  ;;  %v917_v39 = vmax.f32 %v661_v13, 0.0 }
  0xcd   :  { %v3154_v21 = vpop.f32.mrf.mxu0  ;;  %3249 = vmatmul.mubr.msk.bf16.gmra.mxu0 %vm1185_vm1, %v1105_v1  ;;  %v660_v12 = vadd.f32 %v4617_v2, %v397_v56 }
  0xce   :  { %2633 = vst [vmem:[%s5654_s4 + $0x10] sm:$0xff] %v3154_v21  ;;  %3252 = vmatprep.mubr.msk.bf16.mxu0 %vm1185_vm1, %v1106_v7  ;;  %v391_v7 = vmul.f32 %v4649_v24, %v128_v50  ;;  %v1037_v21 = vmax.f32 %v781_v61, 0.0  ;;  %v1039_v61 = vmax.f32 %v783_v4, 0.0 }
  0xcf   :  { %v3282_v33 = vpop.f32.mrf.mxu1  ;;  %3377 = vmatmul.mubr.msk.bf16.gmra.mxu1 %vm1185_vm1, %v1169_v11  ;;  %v1608_v35 = vpop.f32.mrf.mxu0  ;;  %v909_v11 = vmax.f32 %v653_v49, 0.0  ;;  %v911_v49 = vmax.f32 %v655_v29, 0.0 }
  0xd0   :  { %2761 = vst [vmem:[%s5654_s4 + $0x410] sm:$0xff] %v3282_v33  ;;  %2631 = vst [vmem:[%s5654_s4] sm:$0xff] %v1608_v35  ;;  %3380 = vmatprep.mubr.msk.bf16.mxu1 %vm1185_vm1, %v1170_v16  ;;  %v1034_v16 = vmax.f32 %v778_v55, 0.0  ;;  %v654_v28 = vadd.f32 %v4617_v2, %v391_v7  ;;  %v132_v33 = vld [vmem:[%s5651_s0 + $0x390] sm:$0xff]  ;;  %v133_v35 = vld [vmem:[%s5651_s0 + $0x398] sm:$0xff]  ;;  %v1174_v41 = vpack.c.bf16 %v1037_v21, %v1036_v20  ;;  %v913_v55 = vmax.f32 %v657_v32, 0.0 }
  0xd1   :  { %v2120_v42 = vpop.f32.mrf.mxu1  ;;  %v3155_v43 = vpop.f32.mrf.mxu0  ;;  %v1110_v30 = vpack.c.bf16 %v909_v11, %v908_v51  ;;  %v395_v50 = vmul.f32 %v4649_v24, %v132_v33  ;;  %v396_v34 = vmul.f32 %v4649_v24, %v133_v35  ;;  %v1175_v18 = vpack.c.bf16 %v1039_v61, %v1038_v60  ;;  %v138_v21 = vld [vmem:[%s5651_s0 + $0x3c0] sm:$0xff] }
  0xd2   :  { %2759 = vst [vmem:[%s5654_s4 + $0x400] sm:$0xff] %v2120_v42  ;;  %2634 = vst [vmem:[%s5654_s4 + $0x18] sm:$0xff] %v3155_v43  ;;  %v1173_v38 = vpack.c.bf16 %v1035_v17, %v1034_v16  ;;  %v784_v42 = vadd.f32 %v4617_v2, %v521_v22  ;;  %v785_v43 = vadd.f32 %v4617_v2, %v522_v23  ;;  %v910_v48 = vmax.f32 %v654_v28, 0.0  ;;  %v139_v22 = vld [vmem:[%s5651_s0 + $0x3c8] sm:$0xff]  ;;  %v265_v28 = vld [vmem:[%s5651_s0 + $0x7b8] sm:$0xff] }
  0xd3   :  { %v3283_v52 = vpop.f32.mrf.mxu1  ;;  %v1611_v53 = vpop.f32.mrf.mxu0  ;;  %v658_v10 = vadd.f32 %v4617_v2, %v395_v50  ;;  %v659_v51 = vadd.f32 %v4617_v2, %v396_v34  ;;  %v787_v20 = vadd.f32 %v4617_v2, %v524_v63  ;;  %v401_v4 = vmul.f32 %v4649_v24, %v138_v21 }
  0xd4   :  { %2762 = vst [vmem:[%s5654_s4 + $0x418] sm:$0xff] %v3283_v52  ;;  %2632 = vst [vmem:[%s5654_s4 + $0x8] sm:$0xff] %v1611_v53  ;;  %v262_v52 = vld [vmem:[%s5651_s0 + $0x7a0] sm:$0xff]  ;;  %v263_v53 = vld [vmem:[%s5651_s0 + $0x7a8] sm:$0xff]  ;;  %v1111_v9 = vpack.c.bf16 %v911_v49, %v910_v48  ;;  %v402_v5 = vmul.f32 %v4649_v24, %v139_v22  ;;  %v528_v45 = vmul.f32 %v4649_v24, %v265_v28 }
  0xd5   :  { %v2123_v0 = vpop.f32.mrf.mxu1  ;;  %v3158_v1 = vpop.f32.mrf.mxu0  ;;  %3253 = vmatmul.mubr.msk.bf16.gmra.mxu0 %vm1185_vm1, %v1107_v44  ;;  %v260_v44 = vld [vmem:[%s5651_s0 + $0x790] sm:$0xff]  ;;  %v525_v3 = vmul.f32 %v4649_v24, %v262_v52  ;;  %v526_v6 = vmul.f32 %v4649_v24, %v263_v53  ;;  %v915_v32 = vmax.f32 %v659_v51, 0.0  ;;  %v664_v56 = vadd.f32 %v4617_v2, %v401_v4 }
  0xd6   :  { %2760 = vst [vmem:[%s5654_s4 + $0x408] sm:$0xff] %v2123_v0  ;;  %2637 = vst [vmem:[%s5654_s4 + $0x30] sm:$0xff] %v3158_v1  ;;  %3256 = vmatprep.mubr.msk.bf16.mxu0 %vm1185_vm1, %v1108_v47  ;;  %v523_v62 = vmul.f32 %v4649_v24, %v260_v44  ;;  %v1040_v0 = vmax.f32 %v784_v42, 0.0  ;;  %v1041_v1 = vmax.f32 %v785_v43, 0.0  ;;  %v1043_v43 = vmax.f32 %v787_v20, 0.0 }
  0xd7   :  { %v3286_v14 = vpop.f32.mrf.mxu1  ;;  %3381 = vmatmul.mubr.msk.bf16.gmra.mxu1 %vm1185_vm1, %v1171_v54  ;;  %v1624_v15 = vpop.f32.mrf.mxu0  ;;  %v912_v54 = vmax.f32 %v656_v31, 0.0  ;;  %v914_v31 = vmax.f32 %v658_v10, 0.0  ;;  %v665_v57 = vadd.f32 %v4617_v2, %v402_v5  ;;  %v269_v10 = vld [vmem:[%s5651_s0 + $0x7d8] sm:$0xff] }
  0xd8   :  { %2765 = vst [vmem:[%s5654_s4 + $0x430] sm:$0xff] %v3286_v14  ;;  %2635 = vst [vmem:[%s5654_s4 + $0x20] sm:$0xff] %v1624_v15  ;;  %3384 = vmatprep.mubr.msk.bf16.mxu1 %vm1185_vm1, %v1172_v59  ;;  %v136_v14 = vld [vmem:[%s5651_s0 + $0x3b0] sm:$0xff]  ;;  %v137_v15 = vld [vmem:[%s5651_s0 + $0x3b8] sm:$0xff]  ;;  %v786_v19 = vadd.f32 %v4617_v2, %v523_v62  ;;  %v1176_v23 = vpack.c.bf16 %v1041_v1, %v1040_v0  ;;  %v791_v0 = vadd.f32 %v4617_v2, %v528_v45 }
  0xd9   :  { %v2136_v25 = vpop.f32.mrf.mxu1  ;;  %v3159_v26 = vpop.f32.mrf.mxu0  ;;  %v1112_v11 = vpack.c.bf16 %v913_v55, %v912_v54  ;;  %v399_v33 = vmul.f32 %v4649_v24, %v136_v14  ;;  %v400_v35 = vmul.f32 %v4649_v24, %v137_v15  ;;  %v1113_v52 = vpack.c.bf16 %v915_v32, %v914_v31  ;;  %v142_v1 = vld [vmem:[%s5651_s0 + $0x3e0] sm:$0xff] }
  0xda   :  { %2763 = vst [vmem:[%s5654_s4 + $0x420] sm:$0xff] %v2136_v25  ;;  %2638 = vst [vmem:[%s5654_s4 + $0x38] sm:$0xff] %v3159_v26  ;;  %v788_v25 = vadd.f32 %v4617_v2, %v525_v3  ;;  %v789_v26 = vadd.f32 %v4617_v2, %v526_v6  ;;  %v1042_v42 = vmax.f32 %v786_v19, 0.0  ;;  %v143_v3 = vld [vmem:[%s5651_s0 + $0x3e8] sm:$0xff]  ;;  %v921_v19 = vmax.f32 %v665_v57, 0.0 }
  0xdb   :  { %v3287_v36 = vpop.f32.mrf.mxu1  ;;  %v1627_v37 = vpop.f32.mrf.mxu0  ;;  %v662_v53 = vadd.f32 %v4617_v2, %v399_v33  ;;  %v663_v54 = vadd.f32 %v4617_v2, %v400_v35  ;;  %v405_v20 = vmul.f32 %v4649_v24, %v142_v1  ;;  %v406_v21 = vmul.f32 %v4649_v24, %v143_v3 }
  0xdc   :  { %2766 = vst [vmem:[%s5654_s4 + $0x438] sm:$0xff] %v3287_v36  ;;  %2636 = vst [vmem:[%s5654_s4 + $0x28] sm:$0xff] %v1627_v37  ;;  %v266_v36 = vld [vmem:[%s5651_s0 + $0x7c0] sm:$0xff]  ;;  %v267_v37 = vld [vmem:[%s5651_s0 + $0x7c8] sm:$0xff]  ;;  %v1177_v62 = vpack.c.bf16 %v1043_v43, %v1042_v42  ;;  %v532_v28 = vmul.f32 %v4649_v24, %v269_v10 }
  0xdd   :  { %v2139_v46 = vpop.f32.mrf.mxu1  ;;  %v3162_v47 = vpop.f32.mrf.mxu0  ;;  %3257 = vmatmul.mubr.msk.bf16.gmra.mxu0 %vm1185_vm1, %v1109_v27  ;;  %v264_v27 = vld [vmem:[%s5651_s0 + $0x7b0] sm:$0xff]  ;;  %v529_v48 = vmul.f32 %v4649_v24, %v266_v36  ;;  %v530_v49 = vmul.f32 %v4649_v24, %v267_v37  ;;  %v919_v13 = vmax.f32 %v663_v54, 0.0  ;;  %v668_v4 = vadd.f32 %v4617_v2, %v405_v20 }
  0xde   :  { %2764 = vst [vmem:[%s5654_s4 + $0x428] sm:$0xff] %v2139_v46  ;;  %2641 = vst [vmem:[%s5654_s4 + $0x50] sm:$0xff] %v3162_v47  ;;  %3260 = vmatprep.mubr.msk.bf16.mxu0 %vm1185_vm1, %v1110_v30  ;;  %v527_v44 = vmul.f32 %v4649_v24, %v264_v27  ;;  %v1044_v46 = vmax.f32 %v788_v25, 0.0  ;;  %v1045_v47 = vmax.f32 %v789_v26, 0.0  ;;  %v1047_v26 = vmax.f32 %v791_v0, 0.0 }
  0xdf   :  { %v3290_v58 = vpop.f32.mrf.mxu1  ;;  %3385 = vmatmul.mubr.msk.bf16.gmra.mxu1 %vm1185_vm1, %v1173_v38  ;;  %v1640_v59 = vpop.f32.mrf.mxu0  ;;  %v916_v38 = vmax.f32 %v660_v12, 0.0  ;;  %v918_v12 = vmax.f32 %v662_v53, 0.0  ;;  %v669_v5 = vadd.f32 %v4617_v2, %v406_v21 }
  0xe0   :  { %2769 = vst [vmem:[%s5654_s4 + $0x450] sm:$0xff] %v3290_v58  ;;  %2639 = vst [vmem:[%s5654_s4 + $0x40] sm:$0xff] %v1640_v59  ;;  %3388 = vmatprep.mubr.msk.bf16.mxu1 %vm1185_vm1, %v1174_v41  ;;  %v140_v58 = vld [vmem:[%s5651_s0 + $0x3d0] sm:$0xff]  ;;  %v141_v59 = vld [vmem:[%s5651_s0 + $0x3d8] sm:$0xff]  ;;  %v790_v63 = vadd.f32 %v4617_v2, %v527_v44  ;;  %v1178_v6 = vpack.c.bf16 %v1045_v47, %v1044_v46  ;;  %v795_v46 = vadd.f32 %v4617_v2, %v532_v28 }
  0xe1   :  { %v2152_v7 = vpop.f32.mrf.mxu1  ;;  %v3163_v8 = vpop.f32.mrf.mxu0  ;;  %v1114_v55 = vpack.c.bf16 %v917_v39, %v916_v38  ;;  %v403_v14 = vmul.f32 %v4649_v24, %v140_v58  ;;  %v404_v15 = vmul.f32 %v4649_v24, %v141_v59  ;;  %v1115_v36 = vpack.c.bf16 %v919_v13, %v918_v12 }
  0xe2   :  { %2767 = vst [vmem:[%s5654_s4 + $0x440] sm:$0xff] %v2152_v7  ;;  %2642 = vst [vmem:[%s5654_s4 + $0x58] sm:$0xff] %v3163_v8  ;;  %v792_v7 = vadd.f32 %v4617_v2, %v529_v48  ;;  %v793_v8 = vadd.f32 %v4617_v2, %v530_v49  ;;  %v1046_v25 = vmax.f32 %v790_v63, 0.0  ;;  %v924_v58 = vmax.f32 %v668_v4, 0.0 }
  0xe3   :  { %v3291_v16 = vpop.f32.mrf.mxu1  ;;  %v1643_v17 = vpop.f32.mrf.mxu0  ;;  %v666_v37 = vadd.f32 %v4617_v2, %v403_v14  ;;  %v667_v38 = vadd.f32 %v4617_v2, %v404_v15  ;;  %v925_v59 = vmax.f32 %v669_v5, 0.0  ;;  %v1051_v63 = vmax.f32 %v795_v46, 0.0 }
  0xe4   :  { %2770 = vst [vmem:[%s5654_s4 + $0x458] sm:$0xff] %v3291_v16  ;;  %2640 = vst [vmem:[%s5654_s4 + $0x48] sm:$0xff] %v1643_v17  ;;  %v270_v16 = vld [vmem:[%s5651_s0 + $0x7e0] sm:$0xff]  ;;  %v271_v17 = vld [vmem:[%s5651_s0 + $0x7e8] sm:$0xff]  ;;  %v1179_v44 = vpack.c.bf16 %v1047_v26, %v1046_v25 }
  0xe5   :  { %v2155_v29 = vpop.f32.mrf.mxu1  ;;  %v3166_v30 = vpop.f32.mrf.mxu0  ;;  %3261 = vmatmul.mubr.msk.bf16.gmra.mxu0 %vm1185_vm1, %v1111_v9  ;;  %v268_v9 = vld [vmem:[%s5651_s0 + $0x7d0] sm:$0xff]  ;;  %v533_v31 = vmul.f32 %v4649_v24, %v270_v16  ;;  %v534_v32 = vmul.f32 %v4649_v24, %v271_v17  ;;  %v922_v54 = vmax.f32 %v666_v37, 0.0 }
  0xe6   :  { %2768 = vst [vmem:[%s5654_s4 + $0x448] sm:$0xff] %v2155_v29  ;;  %2645 = vst [vmem:[%s5654_s4 + $0x70] sm:$0xff] %v3166_v30  ;;  %3264 = vmatprep.mubr.msk.bf16.mxu0 %vm1185_vm1, %v1112_v11  ;;  %v531_v27 = vmul.f32 %v4649_v24, %v268_v9  ;;  %v1048_v29 = vmax.f32 %v792_v7, 0.0  ;;  %v1049_v30 = vmax.f32 %v793_v8, 0.0 }
  0xe7   :  { %v3294_v40 = vpop.f32.mrf.mxu1  ;;  %3389 = vmatmul.mubr.msk.bf16.gmra.mxu1 %vm1185_vm1, %v1175_v18  ;;  %v1656_v41 = vpop.f32.mrf.mxu0  ;;  %v920_v18 = vmax.f32 %v664_v56, 0.0  ;;  %v796_v48 = vadd.f32 %v4617_v2, %v533_v31  ;;  %v797_v49 = vadd.f32 %v4617_v2, %v534_v32 }
  0xe8   :  { %2773 = vst [vmem:[%s5654_s4 + $0x470] sm:$0xff] %v3294_v40  ;;  %2643 = vst [vmem:[%s5654_s4 + $0x60] sm:$0xff] %v1656_v41  ;;  %3392 = vmatprep.mubr.msk.bf16.mxu1 %vm1185_vm1, %v1176_v23  ;;  %v144_v40 = vld [vmem:[%s5651_s0 + $0x3f0] sm:$0xff]  ;;  %v145_v41 = vld [vmem:[%s5651_s0 + $0x3f8] sm:$0xff]  ;;  %v794_v45 = vadd.f32 %v4617_v2, %v531_v27  ;;  %v1180_v47 = vpack.c.bf16 %v1049_v30, %v1048_v29 }
  0xe9   :  { %v2168_v50 = vpop.f32.mrf.mxu1  ;;  %v3167_v34 = vpop.f32.mrf.mxu0  ;;  %v1116_v39 = vpack.c.bf16 %v921_v19, %v920_v18  ;;  %v407_v56 = vmul.f32 %v4649_v24, %v144_v40  ;;  %v408_v57 = vmul.f32 %v4649_v24, %v145_v41  ;;  %v1052_v3 = vmax.f32 %v796_v48, 0.0 }
  0xea   :  { %2771 = vst [vmem:[%s5654_s4 + $0x460] sm:$0xff] %v2168_v50  ;;  %2646 = vst [vmem:[%s5654_s4 + $0x78] sm:$0xff] %v3167_v34  ;;  %v272_v50 = vld [vmem:[%s5651_s0 + $0x7f0] sm:$0xff]  ;;  %v273_v34 = vld [vmem:[%s5651_s0 + $0x7f8] sm:$0xff] }
  0xeb   :  { %v3295_v60 = vpop.f32.mrf.mxu1  ;;  %v1659_v61 = vpop.f32.mrf.mxu0  ;;  %v535_v0 = vmul.f32 %v4649_v24, %v272_v50  ;;  %v536_v1 = vmul.f32 %v4649_v24, %v273_v34  ;;  %v670_v10 = vadd.f32 %v4617_v2, %v407_v56  ;;  %v1118_v24 = vpack.c.bf16 %v925_v59, %v924_v58 }
  0xec   :  { %2774 = vst [vmem:[%s5654_s4 + $0x478] sm:$0xff] %v3295_v60  ;;  %2644 = vst [vmem:[%s5654_s4 + $0x68] sm:$0xff] %v1659_v61 }
  0xed   :  { %v2171_v51 = vpop.f32.mrf.mxu1  ;;  %v3170_v11 = vpop.f32.mrf.mxu0  ;;  %3265 = vmatmul.mubr.msk.bf16.gmra.mxu0 %vm1185_vm1, %v1113_v52  ;;  %v798_v14 = vadd.f32 %v4617_v2, %v535_v0  ;;  %v799_v15 = vadd.f32 %v4617_v2, %v536_v1  ;;  %v926_v19 = vmax.f32 %v670_v10, 0.0 }
  0xee   :  { %2772 = vst [vmem:[%s5654_s4 + $0x468] sm:$0xff] %v2171_v51  ;;  %2649 = vst [vmem:[%s5654_s4 + $0x90] sm:$0xff] %v3170_v11  ;;  %3268 = vmatprep.mubr.msk.bf16.mxu0 %vm1185_vm1, %v1114_v55  ;;  %v923_v55 = vmax.f32 %v667_v38, 0.0  ;;  %v671_v51 = vadd.f32 %v4617_v2, %v408_v57 }
  0xef   :  { %v3298_v22 = vpop.f32.mrf.mxu1  ;;  %3393 = vmatmul.mubr.msk.bf16.gmra.mxu1 %vm1185_vm1, %v1177_v62  ;;  %v1672_v23 = vpop.f32.mrf.mxu0  ;;  %v1050_v62 = vmax.f32 %v794_v45, 0.0 }
  0xf0   :  { %2777 = vst [vmem:[%s5654_s4 + $0x490] sm:$0xff] %v3298_v22  ;;  %2647 = vst [vmem:[%s5654_s4 + $0x80] sm:$0xff] %v1672_v23  ;;  %3396 = vmatprep.mubr.msk.bf16.mxu1 %vm1185_vm1, %v1178_v6  ;;  %v1053_v6 = vmax.f32 %v797_v49, 0.0  ;;  %v1117_v9 = vpack.c.bf16 %v923_v55, %v922_v54  ;;  %v927_v20 = vmax.f32 %v671_v51, 0.0  ;;  %v1054_v22 = vmax.f32 %v798_v14, 0.0 }
  0xf1   :  { %v2184_v33 = vpop.f32.mrf.mxu1  ;;  %v3171_v35 = vpop.f32.mrf.mxu0  ;;  %v1181_v13 = vpack.c.bf16 %v1051_v63, %v1050_v62  ;;  %v1055_v23 = vmax.f32 %v799_v15, 0.0 }
  0xf2   :  { %2775 = vst [vmem:[%s5654_s4 + $0x480] sm:$0xff] %v2184_v33  ;;  %2650 = vst [vmem:[%s5654_s4 + $0x98] sm:$0xff] %v3171_v35  ;;  %v1182_v16 = vpack.c.bf16 %v1053_v6, %v1052_v3  ;;  %v1119_v27 = vpack.c.bf16 %v927_v20, %v926_v19 }
  0xf3   :  { %v3299_v42 = vpop.f32.mrf.mxu1  ;;  %v1675_v43 = vpop.f32.mrf.mxu0  ;;  %v1183_v30 = vpack.c.bf16 %v1055_v23, %v1054_v22 }
  0xf4   :  { %2778 = vst [vmem:[%s5654_s4 + $0x498] sm:$0xff] %v3299_v42  ;;  %2648 = vst [vmem:[%s5654_s4 + $0x88] sm:$0xff] %v1675_v43 }
  0xf5   :  { %v2187_v52 = vpop.f32.mrf.mxu1  ;;  %v3174_v53 = vpop.f32.mrf.mxu0  ;;  %3269 = vmatmul.mubr.msk.bf16.gmra.mxu0 %vm1185_vm1, %v1115_v36 }
  0xf6   :  { %2776 = vst [vmem:[%s5654_s4 + $0x488] sm:$0xff] %v2187_v52  ;;  %2653 = vst [vmem:[%s5654_s4 + $0xb0] sm:$0xff] %v3174_v53  ;;  %3272 = vmatprep.mubr.msk.bf16.mxu0 %vm1185_vm1, %v1116_v39 }
  0xf7   :  { %v3302_v60 = vpop.f32.mrf.mxu1  ;;  %3397 = vmatmul.mubr.msk.bf16.gmra.mxu1 %vm1185_vm1, %v1179_v44  ;;  %v1688_v61 = vpop.f32.mrf.mxu0 }
  0xf8   :  { %2781 = vst [vmem:[%s5654_s4 + $0x4b0] sm:$0xff] %v3302_v60  ;;  %2651 = vst [vmem:[%s5654_s4 + $0xa0] sm:$0xff] %v1688_v61  ;;  %3400 = vmatprep.mubr.msk.bf16.mxu1 %vm1185_vm1, %v1180_v47 }
  0xf9   :  { %v2200_v7 = vpop.f32.mrf.mxu1  ;;  %v3175_v8 = vpop.f32.mrf.mxu0 }
  0xfa   :  { %2779 = vst [vmem:[%s5654_s4 + $0x4a0] sm:$0xff] %v2200_v7  ;;  %2654 = vst [vmem:[%s5654_s4 + $0xb8] sm:$0xff] %v3175_v8 }
  0xfb   :  { %v3303_v11 = vpop.f32.mrf.mxu1  ;;  %v1691_v12 = vpop.f32.mrf.mxu0 }
  0xfc   :  { %2782 = vst [vmem:[%s5654_s4 + $0x4b8] sm:$0xff] %v3303_v11  ;;  %2652 = vst [vmem:[%s5654_s4 + $0xa8] sm:$0xff] %v1691_v12 }
  0xfd   :  { %v2203_v17 = vpop.f32.mrf.mxu1  ;;  %v3178_v18 = vpop.f32.mrf.mxu0  ;;  %3273 = vmatmul.mubr.msk.bf16.gmra.mxu0 %vm1185_vm1, %v1117_v9 }
  0xfe   :  { %2780 = vst [vmem:[%s5654_s4 + $0x4a8] sm:$0xff] %v2203_v17  ;;  %2657 = vst [vmem:[%s5654_s4 + $0xd0] sm:$0xff] %v3178_v18  ;;  %3276 = vmatprep.mubr.msk.bf16.mxu0 %vm1185_vm1, %v1118_v24 }
  0xff   :  { %v3306_v2 = vpop.f32.mrf.mxu1  ;;  %3401 = vmatmul.mubr.msk.bf16.gmra.mxu1 %vm1185_vm1, %v1181_v13  ;;  %v1704_v21 = vpop.f32.mrf.mxu0 }
 0x100   :  { %2785 = vst [vmem:[%s5654_s4 + $0x4d0] sm:$0xff] %v3306_v2  ;;  %2655 = vst [vmem:[%s5654_s4 + $0xc0] sm:$0xff] %v1704_v21  ;;  %3404 = vmatprep.mubr.msk.bf16.mxu1 %vm1185_vm1, %v1182_v16 }
 0x101   :  { %v2216_v25 = vpop.f32.mrf.mxu1  ;;  %v3179_v26 = vpop.f32.mrf.mxu0 }
 0x102   :  { %2783 = vst [vmem:[%s5654_s4 + $0x4c0] sm:$0xff] %v2216_v25  ;;  %2658 = vst [vmem:[%s5654_s4 + $0xd8] sm:$0xff] %v3179_v26 }
 0x103   :  { %v3307_v28 = vpop.f32.mrf.mxu1  ;;  %v1707_v29 = vpop.f32.mrf.mxu0 }
 0x104   :  { %2786 = vst [vmem:[%s5654_s4 + $0x4d8] sm:$0xff] %v3307_v28  ;;  %2656 = vst [vmem:[%s5654_s4 + $0xc8] sm:$0xff] %v1707_v29 }
 0x105   :  { %v2219_v31 = vpop.f32.mrf.mxu1  ;;  %v3182_v32 = vpop.f32.mrf.mxu0  ;;  %3277 = vmatmul.mubr.msk.bf16.gmra.mxu0 %vm1185_vm1, %v1119_v27 }
 0x106   :  { %2784 = vst [vmem:[%s5654_s4 + $0x4c8] sm:$0xff] %v2219_v31  ;;  %2661 = vst [vmem:[%s5654_s4 + $0xf0] sm:$0xff] %v3182_v32 }
 0x107   :  { %v3310_v33 = vpop.f32.mrf.mxu1  ;;  %3405 = vmatmul.mubr.msk.bf16.gmra.mxu1 %vm1185_vm1, %v1183_v30  ;;  %v1720_v35 = vpop.f32.mrf.mxu0 }
 0x108   :  { %2789 = vst [vmem:[%s5654_s4 + $0x4f0] sm:$0xff] %v3310_v33  ;;  %2659 = vst [vmem:[%s5654_s4 + $0xe0] sm:$0xff] %v1720_v35 }
 0x109   :  { %v2232_v36 = vpop.f32.mrf.mxu1  ;;  %v3183_v37 = vpop.f32.mrf.mxu0 }
 0x10a   :  { %2787 = vst [vmem:[%s5654_s4 + $0x4e0] sm:$0xff] %v2232_v36  ;;  %2662 = vst [vmem:[%s5654_s4 + $0xf8] sm:$0xff] %v3183_v37 }
 0x10b   :  { %v3311_v38 = vpop.f32.mrf.mxu1  ;;  %v1723_v39 = vpop.f32.mrf.mxu0 }
 0x10c   :  { %2790 = vst [vmem:[%s5654_s4 + $0x4f8] sm:$0xff] %v3311_v38  ;;  %2660 = vst [vmem:[%s5654_s4 + $0xe8] sm:$0xff] %v1723_v39 }
 0x10d   :  { %v2235_v4 = vpop.f32.mrf.mxu1  ;;  %v3186_v5 = vpop.f32.mrf.mxu0 }
 0x10e   :  { %2788 = vst [vmem:[%s5654_s4 + $0x4e8] sm:$0xff] %v2235_v4  ;;  %2665 = vst [vmem:[%s5654_s4 + $0x110] sm:$0xff] %v3186_v5 }
 0x10f   :  { %v3314_v40 = vpop.f32.mrf.mxu1  ;;  %v1736_v41 = vpop.f32.mrf.mxu0 }
 0x110   :  { %2793 = vst [vmem:[%s5654_s4 + $0x510] sm:$0xff] %v3314_v40  ;;  %2663 = vst [vmem:[%s5654_s4 + $0x100] sm:$0xff] %v1736_v41 }
 0x111   :  { %v2248_v42 = vpop.f32.mrf.mxu1  ;;  %v3187_v43 = vpop.f32.mrf.mxu0 }
 0x112   :  { %2791 = vst [vmem:[%s5654_s4 + $0x500] sm:$0xff] %v2248_v42  ;;  %2666 = vst [vmem:[%s5654_s4 + $0x118] sm:$0xff] %v3187_v43 }
 0x113   :  { %v3315_v44 = vpop.f32.mrf.mxu1  ;;  %v1739_v45 = vpop.f32.mrf.mxu0 }
 0x114   :  { %2794 = vst [vmem:[%s5654_s4 + $0x518] sm:$0xff] %v3315_v44  ;;  %2664 = vst [vmem:[%s5654_s4 + $0x108] sm:$0xff] %v1739_v45 }
 0x115   :  { %v2251_v46 = vpop.f32.mrf.mxu1  ;;  %v3190_v47 = vpop.f32.mrf.mxu0 }
 0x116   :  { %2792 = vst [vmem:[%s5654_s4 + $0x508] sm:$0xff] %v2251_v46  ;;  %2669 = vst [vmem:[%s5654_s4 + $0x130] sm:$0xff] %v3190_v47 }
 0x117   :  { %v3318_v48 = vpop.f32.mrf.mxu1  ;;  %v1752_v49 = vpop.f32.mrf.mxu0 }
 0x118   :  { %2797 = vst [vmem:[%s5654_s4 + $0x530] sm:$0xff] %v3318_v48  ;;  %2667 = vst [vmem:[%s5654_s4 + $0x120] sm:$0xff] %v1752_v49 }
 0x119   :  { %v2264_v50 = vpop.f32.mrf.mxu1  ;;  %v3191_v34 = vpop.f32.mrf.mxu0 }
 0x11a   :  { %2795 = vst [vmem:[%s5654_s4 + $0x520] sm:$0xff] %v2264_v50  ;;  %2670 = vst [vmem:[%s5654_s4 + $0x138] sm:$0xff] %v3191_v34 }
 0x11b   :  { %v3319_v52 = vpop.f32.mrf.mxu1  ;;  %v1755_v53 = vpop.f32.mrf.mxu0 }
 0x11c   :  { %2798 = vst [vmem:[%s5654_s4 + $0x538] sm:$0xff] %v3319_v52  ;;  %2668 = vst [vmem:[%s5654_s4 + $0x128] sm:$0xff] %v1755_v53 }
 0x11d   :  { %v2267_v54 = vpop.f32.mrf.mxu1  ;;  %v3194_v55 = vpop.f32.mrf.mxu0 }
 0x11e   :  { %2796 = vst [vmem:[%s5654_s4 + $0x528] sm:$0xff] %v2267_v54  ;;  %2673 = vst [vmem:[%s5654_s4 + $0x150] sm:$0xff] %v3194_v55 }
 0x11f   :  { %v3322_v56 = vpop.f32.mrf.mxu1  ;;  %v1768_v57 = vpop.f32.mrf.mxu0 }
 0x120   :  { %2801 = vst [vmem:[%s5654_s4 + $0x550] sm:$0xff] %v3322_v56  ;;  %2671 = vst [vmem:[%s5654_s4 + $0x140] sm:$0xff] %v1768_v57 }
 0x121   :  { %v2280_v58 = vpop.f32.mrf.mxu1  ;;  %v3195_v59 = vpop.f32.mrf.mxu0 }
 0x122   :  { %2799 = vst [vmem:[%s5654_s4 + $0x540] sm:$0xff] %v2280_v58  ;;  %2674 = vst [vmem:[%s5654_s4 + $0x158] sm:$0xff] %v3195_v59 }
 0x123   :  { %v3323_v60 = vpop.f32.mrf.mxu1  ;;  %v1771_v61 = vpop.f32.mrf.mxu0 }
 0x124   :  { %2802 = vst [vmem:[%s5654_s4 + $0x558] sm:$0xff] %v3323_v60  ;;  %2672 = vst [vmem:[%s5654_s4 + $0x148] sm:$0xff] %v1771_v61 }
 0x125   :  { %v2283_v62 = vpop.f32.mrf.mxu1  ;;  %v3198_v63 = vpop.f32.mrf.mxu0 }
 0x126   :  { %2800 = vst [vmem:[%s5654_s4 + $0x548] sm:$0xff] %v2283_v62  ;;  %2677 = vst [vmem:[%s5654_s4 + $0x170] sm:$0xff] %v3198_v63 }
 0x127   :  { %v3326_v0 = vpop.f32.mrf.mxu1  ;;  %v1784_v1 = vpop.f32.mrf.mxu0 }
 0x128   :  { %2805 = vst [vmem:[%s5654_s4 + $0x570] sm:$0xff] %v3326_v0  ;;  %2675 = vst [vmem:[%s5654_s4 + $0x160] sm:$0xff] %v1784_v1 }
 0x129   :  { %v2296_v3 = vpop.f32.mrf.mxu1  ;;  %v3199_v6 = vpop.f32.mrf.mxu0 }
 0x12a   :  { %2803 = vst [vmem:[%s5654_s4 + $0x560] sm:$0xff] %v2296_v3  ;;  %2678 = vst [vmem:[%s5654_s4 + $0x178] sm:$0xff] %v3199_v6 }
 0x12b   :  { %v3327_v7 = vpop.f32.mrf.mxu1  ;;  %v1787_v8 = vpop.f32.mrf.mxu0 }
 0x12c   :  { %2806 = vst [vmem:[%s5654_s4 + $0x578] sm:$0xff] %v3327_v7  ;;  %2676 = vst [vmem:[%s5654_s4 + $0x168] sm:$0xff] %v1787_v8 }
 0x12d   :  { %v2299_v9 = vpop.f32.mrf.mxu1  ;;  %v3202_v10 = vpop.f32.mrf.mxu0 }
 0x12e   :  { %2804 = vst [vmem:[%s5654_s4 + $0x568] sm:$0xff] %v2299_v9  ;;  %2681 = vst [vmem:[%s5654_s4 + $0x190] sm:$0xff] %v3202_v10 }
 0x12f   :  { %v3330_v51 = vpop.f32.mrf.mxu1  ;;  %v1800_v24 = vpop.f32.mrf.mxu0 }
 0x130   :  { %2809 = vst [vmem:[%s5654_s4 + $0x590] sm:$0xff] %v3330_v51  ;;  %2679 = vst [vmem:[%s5654_s4 + $0x180] sm:$0xff] %v1800_v24 }
 0x131   :  { %v2312_v11 = vpop.f32.mrf.mxu1  ;;  %v3203_v12 = vpop.f32.mrf.mxu0 }
 0x132   :  { %2807 = vst [vmem:[%s5654_s4 + $0x580] sm:$0xff] %v2312_v11  ;;  %2682 = vst [vmem:[%s5654_s4 + $0x198] sm:$0xff] %v3203_v12 }
 0x133   :  { %v3331_v13 = vpop.f32.mrf.mxu1  ;;  %v1803_v14 = vpop.f32.mrf.mxu0 }
 0x134   :  { %2810 = vst [vmem:[%s5654_s4 + $0x598] sm:$0xff] %v3331_v13  ;;  %2680 = vst [vmem:[%s5654_s4 + $0x188] sm:$0xff] %v1803_v14 }
 0x135   :  { %v2315_v15 = vpop.f32.mrf.mxu1  ;;  %v3206_v16 = vpop.f32.mrf.mxu0 }
 0x136   :  { %2808 = vst [vmem:[%s5654_s4 + $0x588] sm:$0xff] %v2315_v15  ;;  %2685 = vst [vmem:[%s5654_s4 + $0x1b0] sm:$0xff] %v3206_v16 }
 0x137   :  { %v3334_v17 = vpop.f32.mrf.mxu1  ;;  %v1816_v18 = vpop.f32.mrf.mxu0 }
 0x138   :  { %2813 = vst [vmem:[%s5654_s4 + $0x5b0] sm:$0xff] %v3334_v17  ;;  %2683 = vst [vmem:[%s5654_s4 + $0x1a0] sm:$0xff] %v1816_v18 }
 0x139   :  { %v2328_v19 = vpop.f32.mrf.mxu1  ;;  %v3207_v20 = vpop.f32.mrf.mxu0 }
 0x13a   :  { %2811 = vst [vmem:[%s5654_s4 + $0x5a0] sm:$0xff] %v2328_v19  ;;  %2686 = vst [vmem:[%s5654_s4 + $0x1b8] sm:$0xff] %v3207_v20 }
 0x13b   :  { %v3335_v2 = vpop.f32.mrf.mxu1  ;;  %v1819_v21 = vpop.f32.mrf.mxu0 }
 0x13c   :  { %2814 = vst [vmem:[%s5654_s4 + $0x5b8] sm:$0xff] %v3335_v2  ;;  %2684 = vst [vmem:[%s5654_s4 + $0x1a8] sm:$0xff] %v1819_v21 }
 0x13d   :  { %v2331_v22 = vpop.f32.mrf.mxu1  ;;  %v3210_v23 = vpop.f32.mrf.mxu0 }
 0x13e   :  { %2812 = vst [vmem:[%s5654_s4 + $0x5a8] sm:$0xff] %v2331_v22  ;;  %2689 = vst [vmem:[%s5654_s4 + $0x1d0] sm:$0xff] %v3210_v23 }
 0x13f   :  { %v3338_v25 = vpop.f32.mrf.mxu1  ;;  %v1832_v26 = vpop.f32.mrf.mxu0 }
 0x140   :  { %2817 = vst [vmem:[%s5654_s4 + $0x5d0] sm:$0xff] %v3338_v25  ;;  %2687 = vst [vmem:[%s5654_s4 + $0x1c0] sm:$0xff] %v1832_v26 }
 0x141   :  { %v2344_v27 = vpop.f32.mrf.mxu1  ;;  %v3211_v28 = vpop.f32.mrf.mxu0 }
 0x142   :  { %2815 = vst [vmem:[%s5654_s4 + $0x5c0] sm:$0xff] %v2344_v27  ;;  %2690 = vst [vmem:[%s5654_s4 + $0x1d8] sm:$0xff] %v3211_v28 }
 0x143   :  { %v3339_v29 = vpop.f32.mrf.mxu1  ;;  %v1835_v30 = vpop.f32.mrf.mxu0 }
 0x144   :  { %2818 = vst [vmem:[%s5654_s4 + $0x5d8] sm:$0xff] %v3339_v29  ;;  %2688 = vst [vmem:[%s5654_s4 + $0x1c8] sm:$0xff] %v1835_v30 }
 0x145   :  { %v2347_v31 = vpop.f32.mrf.mxu1  ;;  %v3214_v32 = vpop.f32.mrf.mxu0 }
 0x146   :  { %2816 = vst [vmem:[%s5654_s4 + $0x5c8] sm:$0xff] %v2347_v31  ;;  %2693 = vst [vmem:[%s5654_s4 + $0x1f0] sm:$0xff] %v3214_v32 }
 0x147   :  { %v3342_v33 = vpop.f32.mrf.mxu1  ;;  %v1848_v35 = vpop.f32.mrf.mxu0 }
 0x148   :  { %2821 = vst [vmem:[%s5654_s4 + $0x5f0] sm:$0xff] %v3342_v33  ;;  %2691 = vst [vmem:[%s5654_s4 + $0x1e0] sm:$0xff] %v1848_v35 }
 0x149   :  { %v2360_v36 = vpop.f32.mrf.mxu1  ;;  %v3215_v37 = vpop.f32.mrf.mxu0 }
 0x14a   :  { %2819 = vst [vmem:[%s5654_s4 + $0x5e0] sm:$0xff] %v2360_v36  ;;  %2694 = vst [vmem:[%s5654_s4 + $0x1f8] sm:$0xff] %v3215_v37 }
 0x14b   :  { %v3343_v38 = vpop.f32.mrf.mxu1  ;;  %v1851_v39 = vpop.f32.mrf.mxu0 }
 0x14c   :  { %2822 = vst [vmem:[%s5654_s4 + $0x5f8] sm:$0xff] %v3343_v38  ;;  %2692 = vst [vmem:[%s5654_s4 + $0x1e8] sm:$0xff] %v1851_v39 }
 0x14d   :  { %v2363_v4 = vpop.f32.mrf.mxu1  ;;  %v3218_v5 = vpop.f32.mrf.mxu0 }
 0x14e   :  { %2820 = vst [vmem:[%s5654_s4 + $0x5e8] sm:$0xff] %v2363_v4  ;;  %2697 = vst [vmem:[%s5654_s4 + $0x210] sm:$0xff] %v3218_v5 }
 0x14f   :  { %v3346_v40 = vpop.f32.mrf.mxu1  ;;  %v1864_v41 = vpop.f32.mrf.mxu0 }
 0x150   :  { %2825 = vst [vmem:[%s5654_s4 + $0x610] sm:$0xff] %v3346_v40  ;;  %2695 = vst [vmem:[%s5654_s4 + $0x200] sm:$0xff] %v1864_v41 }
 0x151   :  { %v2376_v42 = vpop.f32.mrf.mxu1  ;;  %v3219_v43 = vpop.f32.mrf.mxu0 }
 0x152   :  { %2823 = vst [vmem:[%s5654_s4 + $0x600] sm:$0xff] %v2376_v42  ;;  %2698 = vst [vmem:[%s5654_s4 + $0x218] sm:$0xff] %v3219_v43 }
 0x153   :  { %v3347_v44 = vpop.f32.mrf.mxu1  ;;  %v1867_v45 = vpop.f32.mrf.mxu0 }
 0x154   :  { %2826 = vst [vmem:[%s5654_s4 + $0x618] sm:$0xff] %v3347_v44  ;;  %2696 = vst [vmem:[%s5654_s4 + $0x208] sm:$0xff] %v1867_v45 }
 0x155   :  { %v2379_v46 = vpop.f32.mrf.mxu1  ;;  %v3222_v47 = vpop.f32.mrf.mxu0 }
 0x156   :  { %2824 = vst [vmem:[%s5654_s4 + $0x608] sm:$0xff] %v2379_v46  ;;  %2701 = vst [vmem:[%s5654_s4 + $0x230] sm:$0xff] %v3222_v47 }
 0x157   :  { %v3350_v48 = vpop.f32.mrf.mxu1  ;;  %v1880_v49 = vpop.f32.mrf.mxu0 }
 0x158   :  { %2829 = vst [vmem:[%s5654_s4 + $0x630] sm:$0xff] %v3350_v48  ;;  %2699 = vst [vmem:[%s5654_s4 + $0x220] sm:$0xff] %v1880_v49 }
 0x159   :  { %v2392_v50 = vpop.f32.mrf.mxu1  ;;  %v3223_v34 = vpop.f32.mrf.mxu0 }
 0x15a   :  { %2827 = vst [vmem:[%s5654_s4 + $0x620] sm:$0xff] %v2392_v50  ;;  %2702 = vst [vmem:[%s5654_s4 + $0x238] sm:$0xff] %v3223_v34 }
 0x15b   :  { %v3351_v52 = vpop.f32.mrf.mxu1  ;;  %v1883_v53 = vpop.f32.mrf.mxu0 }
 0x15c   :  { %2830 = vst [vmem:[%s5654_s4 + $0x638] sm:$0xff] %v3351_v52  ;;  %2700 = vst [vmem:[%s5654_s4 + $0x228] sm:$0xff] %v1883_v53 }
 0x15d   :  { %v2395_v54 = vpop.f32.mrf.mxu1  ;;  %v3226_v55 = vpop.f32.mrf.mxu0 }
 0x15e   :  { %2828 = vst [vmem:[%s5654_s4 + $0x628] sm:$0xff] %v2395_v54  ;;  %2705 = vst [vmem:[%s5654_s4 + $0x250] sm:$0xff] %v3226_v55 }
 0x15f   :  { %v3354_v56 = vpop.f32.mrf.mxu1  ;;  %v1896_v57 = vpop.f32.mrf.mxu0 }
 0x160   :  { %2833 = vst [vmem:[%s5654_s4 + $0x650] sm:$0xff] %v3354_v56  ;;  %2703 = vst [vmem:[%s5654_s4 + $0x240] sm:$0xff] %v1896_v57 }
 0x161   :  { %v2408_v58 = vpop.f32.mrf.mxu1  ;;  %v3227_v59 = vpop.f32.mrf.mxu0 }
 0x162   :  { %2831 = vst [vmem:[%s5654_s4 + $0x640] sm:$0xff] %v2408_v58  ;;  %2706 = vst [vmem:[%s5654_s4 + $0x258] sm:$0xff] %v3227_v59 }
 0x163   :  { %v3355_v60 = vpop.f32.mrf.mxu1  ;;  %v1899_v61 = vpop.f32.mrf.mxu0 }
 0x164   :  { %2834 = vst [vmem:[%s5654_s4 + $0x658] sm:$0xff] %v3355_v60  ;;  %2704 = vst [vmem:[%s5654_s4 + $0x248] sm:$0xff] %v1899_v61 }
 0x165   :  { %v2411_v62 = vpop.f32.mrf.mxu1  ;;  %v3230_v63 = vpop.f32.mrf.mxu0 }
 0x166   :  { %2832 = vst [vmem:[%s5654_s4 + $0x648] sm:$0xff] %v2411_v62  ;;  %2709 = vst [vmem:[%s5654_s4 + $0x270] sm:$0xff] %v3230_v63 }
 0x167   :  { %v3358_v0 = vpop.f32.mrf.mxu1  ;;  %v1912_v1 = vpop.f32.mrf.mxu0 }
 0x168   :  { %2837 = vst [vmem:[%s5654_s4 + $0x670] sm:$0xff] %v3358_v0  ;;  %2707 = vst [vmem:[%s5654_s4 + $0x260] sm:$0xff] %v1912_v1 }
 0x169   :  { %v2424_v3 = vpop.f32.mrf.mxu1  ;;  %v3231_v6 = vpop.f32.mrf.mxu0 }
 0x16a   :  { %2835 = vst [vmem:[%s5654_s4 + $0x660] sm:$0xff] %v2424_v3  ;;  %2710 = vst [vmem:[%s5654_s4 + $0x278] sm:$0xff] %v3231_v6 }
 0x16b   :  { %v3359_v7 = vpop.f32.mrf.mxu1  ;;  %v1915_v8 = vpop.f32.mrf.mxu0 }
 0x16c   :  { %2838 = vst [vmem:[%s5654_s4 + $0x678] sm:$0xff] %v3359_v7  ;;  %2708 = vst [vmem:[%s5654_s4 + $0x268] sm:$0xff] %v1915_v8 }
 0x16d   :  { %v2427_v9 = vpop.f32.mrf.mxu1  ;;  %v3234_v10 = vpop.f32.mrf.mxu0 }
 0x16e   :  { %2836 = vst [vmem:[%s5654_s4 + $0x668] sm:$0xff] %v2427_v9  ;;  %2713 = vst [vmem:[%s5654_s4 + $0x290] sm:$0xff] %v3234_v10 }
 0x16f   :  { %v3362_v51 = vpop.f32.mrf.mxu1  ;;  %v1928_v24 = vpop.f32.mrf.mxu0 }
 0x170   :  { %2841 = vst [vmem:[%s5654_s4 + $0x690] sm:$0xff] %v3362_v51  ;;  %2711 = vst [vmem:[%s5654_s4 + $0x280] sm:$0xff] %v1928_v24 }
 0x171   :  { %v2440_v11 = vpop.f32.mrf.mxu1  ;;  %v3235_v12 = vpop.f32.mrf.mxu0 }
 0x172   :  { %2839 = vst [vmem:[%s5654_s4 + $0x680] sm:$0xff] %v2440_v11  ;;  %2714 = vst [vmem:[%s5654_s4 + $0x298] sm:$0xff] %v3235_v12 }
 0x173   :  { %v3363_v13 = vpop.f32.mrf.mxu1  ;;  %v1931_v14 = vpop.f32.mrf.mxu0 }
 0x174   :  { %2842 = vst [vmem:[%s5654_s4 + $0x698] sm:$0xff] %v3363_v13  ;;  %2712 = vst [vmem:[%s5654_s4 + $0x288] sm:$0xff] %v1931_v14 }
 0x175   :  { %v2443_v15 = vpop.f32.mrf.mxu1  ;;  %v3238_v16 = vpop.f32.mrf.mxu0 }
 0x176   :  { %2840 = vst [vmem:[%s5654_s4 + $0x688] sm:$0xff] %v2443_v15  ;;  %2717 = vst [vmem:[%s5654_s4 + $0x2b0] sm:$0xff] %v3238_v16 }
 0x177   :  { %v3366_v17 = vpop.f32.mrf.mxu1  ;;  %v1944_v18 = vpop.f32.mrf.mxu0 }
 0x178   :  { %2845 = vst [vmem:[%s5654_s4 + $0x6b0] sm:$0xff] %v3366_v17  ;;  %2715 = vst [vmem:[%s5654_s4 + $0x2a0] sm:$0xff] %v1944_v18 }
 0x179   :  { %v2456_v19 = vpop.f32.mrf.mxu1  ;;  %v3239_v20 = vpop.f32.mrf.mxu0 }
 0x17a   :  { %2843 = vst [vmem:[%s5654_s4 + $0x6a0] sm:$0xff] %v2456_v19  ;;  %2718 = vst [vmem:[%s5654_s4 + $0x2b8] sm:$0xff] %v3239_v20 }
 0x17b   :  { %v3367_v2 = vpop.f32.mrf.mxu1  ;;  %v1947_v21 = vpop.f32.mrf.mxu0 }
 0x17c   :  { %2846 = vst [vmem:[%s5654_s4 + $0x6b8] sm:$0xff] %v3367_v2  ;;  %2716 = vst [vmem:[%s5654_s4 + $0x2a8] sm:$0xff] %v1947_v21 }
 0x17d   :  { %v2459_v22 = vpop.f32.mrf.mxu1  ;;  %v3242_v23 = vpop.f32.mrf.mxu0 }
 0x17e   :  { %2844 = vst [vmem:[%s5654_s4 + $0x6a8] sm:$0xff] %v2459_v22  ;;  %2721 = vst [vmem:[%s5654_s4 + $0x2d0] sm:$0xff] %v3242_v23 }
 0x17f   :  { %v3370_v25 = vpop.f32.mrf.mxu1  ;;  %v1960_v26 = vpop.f32.mrf.mxu0 }
 0x180   :  { %2849 = vst [vmem:[%s5654_s4 + $0x6d0] sm:$0xff] %v3370_v25  ;;  %2719 = vst [vmem:[%s5654_s4 + $0x2c0] sm:$0xff] %v1960_v26 }
 0x181   :  { %v2472_v27 = vpop.f32.mrf.mxu1  ;;  %v3243_v28 = vpop.f32.mrf.mxu0 }
 0x182   :  { %2847 = vst [vmem:[%s5654_s4 + $0x6c0] sm:$0xff] %v2472_v27  ;;  %2722 = vst [vmem:[%s5654_s4 + $0x2d8] sm:$0xff] %v3243_v28 }
 0x183   :  { %v3371_v29 = vpop.f32.mrf.mxu1  ;;  %v1963_v30 = vpop.f32.mrf.mxu0 }
 0x184   :  { %2850 = vst [vmem:[%s5654_s4 + $0x6d8] sm:$0xff] %v3371_v29  ;;  %2720 = vst [vmem:[%s5654_s4 + $0x2c8] sm:$0xff] %v1963_v30 }
 0x185   :  { %v2475_v31 = vpop.f32.mrf.mxu1  ;;  %v3246_v32 = vpop.f32.mrf.mxu0 }
 0x186   :  { %2848 = vst [vmem:[%s5654_s4 + $0x6c8] sm:$0xff] %v2475_v31  ;;  %2725 = vst [vmem:[%s5654_s4 + $0x2f0] sm:$0xff] %v3246_v32 }
 0x187   :  { %v3374_v33 = vpop.f32.mrf.mxu1  ;;  %v1976_v35 = vpop.f32.mrf.mxu0 }
 0x188   :  { %2853 = vst [vmem:[%s5654_s4 + $0x6f0] sm:$0xff] %v3374_v33  ;;  %2723 = vst [vmem:[%s5654_s4 + $0x2e0] sm:$0xff] %v1976_v35 }
 0x189   :  { %v2488_v36 = vpop.f32.mrf.mxu1  ;;  %v3247_v37 = vpop.f32.mrf.mxu0 }
 0x18a   :  { %2851 = vst [vmem:[%s5654_s4 + $0x6e0] sm:$0xff] %v2488_v36  ;;  %2726 = vst [vmem:[%s5654_s4 + $0x2f8] sm:$0xff] %v3247_v37 }
 0x18b   :  { %v3375_v38 = vpop.f32.mrf.mxu1  ;;  %v1979_v39 = vpop.f32.mrf.mxu0 }
 0x18c   :  { %2854 = vst [vmem:[%s5654_s4 + $0x6f8] sm:$0xff] %v3375_v38  ;;  %2724 = vst [vmem:[%s5654_s4 + $0x2e8] sm:$0xff] %v1979_v39 }
 0x18d   :  { %v2491_v4 = vpop.f32.mrf.mxu1  ;;  %v3250_v5 = vpop.f32.mrf.mxu0 }
 0x18e   :  { %2852 = vst [vmem:[%s5654_s4 + $0x6e8] sm:$0xff] %v2491_v4  ;;  %2729 = vst [vmem:[%s5654_s4 + $0x310] sm:$0xff] %v3250_v5 }
 0x18f   :  { %v3378_v40 = vpop.f32.mrf.mxu1  ;;  %v1992_v41 = vpop.f32.mrf.mxu0 }
 0x190   :  { %2857 = vst [vmem:[%s5654_s4 + $0x710] sm:$0xff] %v3378_v40  ;;  %2727 = vst [vmem:[%s5654_s4 + $0x300] sm:$0xff] %v1992_v41 }
 0x191   :  { %v2504_v42 = vpop.f32.mrf.mxu1  ;;  %v3251_v43 = vpop.f32.mrf.mxu0 }
 0x192   :  { %2855 = vst [vmem:[%s5654_s4 + $0x700] sm:$0xff] %v2504_v42  ;;  %2730 = vst [vmem:[%s5654_s4 + $0x318] sm:$0xff] %v3251_v43 }
 0x193   :  { %v3379_v44 = vpop.f32.mrf.mxu1  ;;  %v1995_v45 = vpop.f32.mrf.mxu0 }
 0x194   :  { %2858 = vst [vmem:[%s5654_s4 + $0x718] sm:$0xff] %v3379_v44  ;;  %2728 = vst [vmem:[%s5654_s4 + $0x308] sm:$0xff] %v1995_v45 }
 0x195   :  { %v2507_v46 = vpop.f32.mrf.mxu1  ;;  %v3254_v47 = vpop.f32.mrf.mxu0 }
 0x196   :  { %2856 = vst [vmem:[%s5654_s4 + $0x708] sm:$0xff] %v2507_v46  ;;  %2733 = vst [vmem:[%s5654_s4 + $0x330] sm:$0xff] %v3254_v47 }
 0x197   :  { %v3382_v48 = vpop.f32.mrf.mxu1  ;;  %v2008_v49 = vpop.f32.mrf.mxu0 }
 0x198   :  { %2861 = vst [vmem:[%s5654_s4 + $0x730] sm:$0xff] %v3382_v48  ;;  %2731 = vst [vmem:[%s5654_s4 + $0x320] sm:$0xff] %v2008_v49 }
 0x199   :  { %v2520_v50 = vpop.f32.mrf.mxu1  ;;  %v3255_v34 = vpop.f32.mrf.mxu0 }
 0x19a   :  { %2859 = vst [vmem:[%s5654_s4 + $0x720] sm:$0xff] %v2520_v50  ;;  %2734 = vst [vmem:[%s5654_s4 + $0x338] sm:$0xff] %v3255_v34 }
 0x19b   :  { %v3383_v52 = vpop.f32.mrf.mxu1  ;;  %v2011_v53 = vpop.f32.mrf.mxu0 }
 0x19c   :  { %2862 = vst [vmem:[%s5654_s4 + $0x738] sm:$0xff] %v3383_v52  ;;  %2732 = vst [vmem:[%s5654_s4 + $0x328] sm:$0xff] %v2011_v53 }
 0x19d   :  { %v2523_v54 = vpop.f32.mrf.mxu1  ;;  %v3258_v55 = vpop.f32.mrf.mxu0 }
 0x19e   :  { %2860 = vst [vmem:[%s5654_s4 + $0x728] sm:$0xff] %v2523_v54  ;;  %2737 = vst [vmem:[%s5654_s4 + $0x350] sm:$0xff] %v3258_v55 }
 0x19f   :  { %v3386_v56 = vpop.f32.mrf.mxu1  ;;  %v2024_v57 = vpop.f32.mrf.mxu0 }
 0x1a0   :  { %2865 = vst [vmem:[%s5654_s4 + $0x750] sm:$0xff] %v3386_v56  ;;  %2735 = vst [vmem:[%s5654_s4 + $0x340] sm:$0xff] %v2024_v57 }
 0x1a1   :  { %v2536_v58 = vpop.f32.mrf.mxu1  ;;  %v3259_v59 = vpop.f32.mrf.mxu0 }
 0x1a2   :  { %2863 = vst [vmem:[%s5654_s4 + $0x740] sm:$0xff] %v2536_v58  ;;  %2738 = vst [vmem:[%s5654_s4 + $0x358] sm:$0xff] %v3259_v59 }
 0x1a3   :  { %v3387_v60 = vpop.f32.mrf.mxu1  ;;  %v2027_v61 = vpop.f32.mrf.mxu0 }
 0x1a4   :  { %2866 = vst [vmem:[%s5654_s4 + $0x758] sm:$0xff] %v3387_v60  ;;  %2736 = vst [vmem:[%s5654_s4 + $0x348] sm:$0xff] %v2027_v61 }
 0x1a5   :  { %v2539_v62 = vpop.f32.mrf.mxu1  ;;  %v3262_v63 = vpop.f32.mrf.mxu0 }
 0x1a6   :  { %2864 = vst [vmem:[%s5654_s4 + $0x748] sm:$0xff] %v2539_v62  ;;  %2741 = vst [vmem:[%s5654_s4 + $0x370] sm:$0xff] %v3262_v63 }
 0x1a7   :  { %v3390_v0 = vpop.f32.mrf.mxu1  ;;  %v2040_v1 = vpop.f32.mrf.mxu0 }
 0x1a8   :  { %2869 = vst [vmem:[%s5654_s4 + $0x770] sm:$0xff] %v3390_v0  ;;  %2739 = vst [vmem:[%s5654_s4 + $0x360] sm:$0xff] %v2040_v1 }
 0x1a9   :  { %v2552_v3 = vpop.f32.mrf.mxu1  ;;  %v3263_v6 = vpop.f32.mrf.mxu0 }
 0x1aa   :  { %2867 = vst [vmem:[%s5654_s4 + $0x760] sm:$0xff] %v2552_v3  ;;  %2742 = vst [vmem:[%s5654_s4 + $0x378] sm:$0xff] %v3263_v6 }
 0x1ab   :  { %v3391_v7 = vpop.f32.mrf.mxu1  ;;  %v2043_v8 = vpop.f32.mrf.mxu0 }
 0x1ac   :  { %2870 = vst [vmem:[%s5654_s4 + $0x778] sm:$0xff] %v3391_v7  ;;  %2740 = vst [vmem:[%s5654_s4 + $0x368] sm:$0xff] %v2043_v8 }
 0x1ad   :  { %v2555_v9 = vpop.f32.mrf.mxu1  ;;  %v3266_v10 = vpop.f32.mrf.mxu0 }
 0x1ae   :  { %2868 = vst [vmem:[%s5654_s4 + $0x768] sm:$0xff] %v2555_v9  ;;  %2745 = vst [vmem:[%s5654_s4 + $0x390] sm:$0xff] %v3266_v10 }
 0x1af   :  { %v3394_v51 = vpop.f32.mrf.mxu1  ;;  %v2056_v24 = vpop.f32.mrf.mxu0 }
 0x1b0   :  { %2873 = vst [vmem:[%s5654_s4 + $0x790] sm:$0xff] %v3394_v51  ;;  %2743 = vst [vmem:[%s5654_s4 + $0x380] sm:$0xff] %v2056_v24 }
 0x1b1   :  { %v2568_v11 = vpop.f32.mrf.mxu1  ;;  %v3267_v12 = vpop.f32.mrf.mxu0 }
 0x1b2   :  { %2871 = vst [vmem:[%s5654_s4 + $0x780] sm:$0xff] %v2568_v11  ;;  %2746 = vst [vmem:[%s5654_s4 + $0x398] sm:$0xff] %v3267_v12 }
 0x1b3   :  { %v3395_v13 = vpop.f32.mrf.mxu1  ;;  %v2059_v14 = vpop.f32.mrf.mxu0 }
 0x1b4   :  { %2874 = vst [vmem:[%s5654_s4 + $0x798] sm:$0xff] %v3395_v13  ;;  %2744 = vst [vmem:[%s5654_s4 + $0x388] sm:$0xff] %v2059_v14 }
 0x1b5   :  { %v2571_v15 = vpop.f32.mrf.mxu1  ;;  %v3270_v16 = vpop.f32.mrf.mxu0 }
 0x1b6   :  { %2872 = vst [vmem:[%s5654_s4 + $0x788] sm:$0xff] %v2571_v15  ;;  %2749 = vst [vmem:[%s5654_s4 + $0x3b0] sm:$0xff] %v3270_v16 }
 0x1b7   :  { %v3398_v17 = vpop.f32.mrf.mxu1  ;;  %v2072_v18 = vpop.f32.mrf.mxu0 }
 0x1b8   :  { %2877 = vst [vmem:[%s5654_s4 + $0x7b0] sm:$0xff] %v3398_v17  ;;  %2747 = vst [vmem:[%s5654_s4 + $0x3a0] sm:$0xff] %v2072_v18 }
 0x1b9   :  { %v2584_v19 = vpop.f32.mrf.mxu1  ;;  %v3271_v20 = vpop.f32.mrf.mxu0 }
 0x1ba   :  { %2875 = vst [vmem:[%s5654_s4 + $0x7a0] sm:$0xff] %v2584_v19  ;;  %2750 = vst [vmem:[%s5654_s4 + $0x3b8] sm:$0xff] %v3271_v20 }
 0x1bb   :  { %v3399_v2 = vpop.f32.mrf.mxu1  ;;  %v2075_v21 = vpop.f32.mrf.mxu0 }
 0x1bc   :  { %2878 = vst [vmem:[%s5654_s4 + $0x7b8] sm:$0xff] %v3399_v2  ;;  %2748 = vst [vmem:[%s5654_s4 + $0x3a8] sm:$0xff] %v2075_v21 }
 0x1bd   :  { %v2587_v22 = vpop.f32.mrf.mxu1  ;;  %v3274_v23 = vpop.f32.mrf.mxu0 }
 0x1be   :  { %2876 = vst [vmem:[%s5654_s4 + $0x7a8] sm:$0xff] %v2587_v22  ;;  %2753 = vst [vmem:[%s5654_s4 + $0x3d0] sm:$0xff] %v3274_v23 }
 0x1bf   :  { %v3402_v25 = vpop.f32.mrf.mxu1  ;;  %v2088_v26 = vpop.f32.mrf.mxu0 }
 0x1c0   :  { %2881 = vst [vmem:[%s5654_s4 + $0x7d0] sm:$0xff] %v3402_v25  ;;  %2751 = vst [vmem:[%s5654_s4 + $0x3c0] sm:$0xff] %v2088_v26 }
 0x1c1   :  { %v2600_v27 = vpop.f32.mrf.mxu1  ;;  %v3275_v28 = vpop.f32.mrf.mxu0 }
 0x1c2   :  { %2879 = vst [vmem:[%s5654_s4 + $0x7c0] sm:$0xff] %v2600_v27  ;;  %2754 = vst [vmem:[%s5654_s4 + $0x3d8] sm:$0xff] %v3275_v28 }
 0x1c3   :  { %v3403_v29 = vpop.f32.mrf.mxu1  ;;  %v2091_v30 = vpop.f32.mrf.mxu0 }
 0x1c4   :  { %2882 = vst [vmem:[%s5654_s4 + $0x7d8] sm:$0xff] %v3403_v29  ;;  %2752 = vst [vmem:[%s5654_s4 + $0x3c8] sm:$0xff] %v2091_v30 }
 0x1c5   :  { %v2603_v31 = vpop.f32.mrf.mxu1  ;;  %v3278_v32 = vpop.f32.mrf.mxu0 }
 0x1c6   :  { %2880 = vst [vmem:[%s5654_s4 + $0x7c8] sm:$0xff] %v2603_v31  ;;  %2757 = vst [vmem:[%s5654_s4 + $0x3f0] sm:$0xff] %v3278_v32 }
 0x1c7   :  { %v3406_v33 = vpop.f32.mrf.mxu1  ;;  %v2104_v35 = vpop.f32.mrf.mxu0 }
 0x1c8   :  { %2885 = vst [vmem:[%s5654_s4 + $0x7f0] sm:$0xff] %v3406_v33  ;;  %2755 = vst [vmem:[%s5654_s4 + $0x3e0] sm:$0xff] %v2104_v35 }
 0x1c9   :  { %v2616_v36 = vpop.f32.mrf.mxu1  ;;  %v3279_v37 = vpop.f32.mrf.mxu0 }
 0x1ca   :  { %2883 = vst [vmem:[%s5654_s4 + $0x7e0] sm:$0xff] %v2616_v36  ;;  %2758 = vst [vmem:[%s5654_s4 + $0x3f8] sm:$0xff] %v3279_v37 }
 0x1cb   :  { %v3407_v38 = vpop.f32.mrf.mxu1  ;;  %v2107_v39 = vpop.f32.mrf.mxu0 }
 0x1cc   :  { %2886 = vst [vmem:[%s5654_s4 + $0x7f8] sm:$0xff] %v3407_v38  ;;  %2756 = vst [vmem:[%s5654_s4 + $0x3e8] sm:$0xff] %v2107_v39 }
 0x1cd   :  { %v2619_v4 = vpop.f32.mrf.mxu1 }
 0x1ce   :  { %2884 = vst [vmem:[%s5654_s4 + $0x7e8] sm:$0xff] %v2619_v4 }

// kernel: generator_forward.21
= control target key start
LH: loop header
LB: loop body
LE: loop exit
PB: predicated region body
PF: predicated region fallthrough
CT: control target
= control target key end

     0   :  { %s499_s0 = inlined_call_operand.vmem [shape: f32[512,128], index: 0, kind: input, shape index: {}]   ;;  %s500_s1 = inlined_call_operand.vmem [shape: f32[1,128], index: 1, kind: output, shape index: {0}]   ;;  %s501_s2 = inlined_call_operand.vmem [shape: f32[1,128], index: 2, kind: output, shape index: {1}]  }
   0x1   :  { %v10_v0 = vld [vmem:[%s499_s0] sm:$0xff]  ;;  %v11_v1 = vld [vmem:[%s499_s0 + $0x8] sm:$0xff]  ;;  %v12_v2 = vld [vmem:[%s499_s0 + $0x10] sm:$0xff] }
   0x2   :  { %v13_v3 = vld [vmem:[%s499_s0 + $0x18] sm:$0xff]  ;;  %v74_v4 = vadd.f32 %v11_v1, %v10_v0  ;;  %v144_v5 = vmul.f32 %v10_v0, %v10_v0  ;;  %v145_v6 = vmul.f32 %v11_v1, %v11_v1  ;;  %v146_v7 = vmul.f32 %v12_v2, %v12_v2  ;;  %v14_v8 = vld [vmem:[%s499_s0 + $0x20] sm:$0xff]  ;;  %v15_v12 = vld [vmem:[%s499_s0 + $0x28] sm:$0xff] }
   0x3   :  { %v147_v10 = vmul.f32 %v13_v3, %v13_v3  ;;  %v148_v14 = vmul.f32 %v14_v8, %v14_v8  ;;  %v16_v16 = vld [vmem:[%s499_s0 + $0x30] sm:$0xff]  ;;  %v149_v18 = vmul.f32 %v15_v12, %v15_v12  ;;  %v17_v20 = vld [vmem:[%s499_s0 + $0x38] sm:$0xff]  ;;  %v18_v24 = vld [vmem:[%s499_s0 + $0x40] sm:$0xff] }
   0x4   :  { %v75_v9 = vadd.f32 %v74_v4, %v12_v2  ;;  %v208_v11 = vadd.f32 %v145_v6, %v144_v5  ;;  %v150_v22 = vmul.f32 %v16_v16, %v16_v16  ;;  %v151_v26 = vmul.f32 %v17_v20, %v17_v20  ;;  %v19_v28 = vld [vmem:[%s499_s0 + $0x48] sm:$0xff]  ;;  %v20_v32 = vld [vmem:[%s499_s0 + $0x50] sm:$0xff]  ;;  %v21_v36 = vld [vmem:[%s499_s0 + $0x58] sm:$0xff] }
   0x5   :  { %v152_v30 = vmul.f32 %v18_v24, %v18_v24  ;;  %v153_v34 = vmul.f32 %v19_v28, %v19_v28  ;;  %v154_v38 = vmul.f32 %v20_v32, %v20_v32  ;;  %v22_v40 = vld [vmem:[%s499_s0 + $0x60] sm:$0xff]  ;;  %v155_v42 = vmul.f32 %v21_v36, %v21_v36  ;;  %v23_v44 = vld [vmem:[%s499_s0 + $0x68] sm:$0xff]  ;;  %v24_v48 = vld [vmem:[%s499_s0 + $0x70] sm:$0xff] }
   0x6   :  { %v76_v13 = vadd.f32 %v75_v9, %v13_v3  ;;  %v209_v15 = vadd.f32 %v208_v11, %v146_v7  ;;  %v156_v46 = vmul.f32 %v22_v40, %v22_v40  ;;  %v157_v50 = vmul.f32 %v23_v44, %v23_v44  ;;  %v25_v52 = vld [vmem:[%s499_s0 + $0x78] sm:$0xff]  ;;  %v26_v56 = vld [vmem:[%s499_s0 + $0x80] sm:$0xff]  ;;  %v27_v60 = vld [vmem:[%s499_s0 + $0x88] sm:$0xff] }
   0x7   :  { %v158_v54 = vmul.f32 %v24_v48, %v24_v48  ;;  %v159_v58 = vmul.f32 %v25_v52, %v25_v52  ;;  %v160_v62 = vmul.f32 %v26_v56, %v26_v56  ;;  %v28_v0 = vld [vmem:[%s499_s0 + $0x90] sm:$0xff]  ;;  %v161_v2 = vmul.f32 %v27_v60, %v27_v60  ;;  %v29_v4 = vld [vmem:[%s499_s0 + $0x98] sm:$0xff] }
   0x8   :  { %v77_v17 = vadd.f32 %v76_v13, %v14_v8  ;;  %v210_v19 = vadd.f32 %v209_v15, %v147_v10  ;;  %v162_v6 = vmul.f32 %v28_v0, %v28_v0  ;;  %v30_v8 = vld [vmem:[%s499_s0 + $0xa0] sm:$0xff]  ;;  %v163_v10 = vmul.f32 %v29_v4, %v29_v4 }
   0xa   :  { %v78_v21 = vadd.f32 %v77_v17, %v15_v12  ;;  %v211_v23 = vadd.f32 %v210_v19, %v148_v14  ;;  %v31_v12 = vld [vmem:[%s499_s0 + $0xa8] sm:$0xff]  ;;  %v164_v14 = vmul.f32 %v30_v8, %v30_v8 }
   0xc   :  { %v79_v25 = vadd.f32 %v78_v21, %v16_v16  ;;  %v212_v27 = vadd.f32 %v211_v23, %v149_v18  ;;  %v32_v16 = vld [vmem:[%s499_s0 + $0xb0] sm:$0xff]  ;;  %v165_v18 = vmul.f32 %v31_v12, %v31_v12 }
   0xe   :  { %v80_v29 = vadd.f32 %v79_v25, %v17_v20  ;;  %v213_v31 = vadd.f32 %v212_v27, %v150_v22  ;;  %v33_v20 = vld [vmem:[%s499_s0 + $0xb8] sm:$0xff]  ;;  %v166_v22 = vmul.f32 %v32_v16, %v32_v16 }
  0x10   :  { %v81_v33 = vadd.f32 %v80_v29, %v18_v24  ;;  %v214_v35 = vadd.f32 %v213_v31, %v151_v26  ;;  %v34_v24 = vld [vmem:[%s499_s0 + $0xc0] sm:$0xff]  ;;  %v167_v26 = vmul.f32 %v33_v20, %v33_v20 }
  0x12   :  { %v82_v37 = vadd.f32 %v81_v33, %v19_v28  ;;  %v215_v39 = vadd.f32 %v214_v35, %v152_v30  ;;  %v35_v28 = vld [vmem:[%s499_s0 + $0xc8] sm:$0xff]  ;;  %v168_v30 = vmul.f32 %v34_v24, %v34_v24 }
  0x14   :  { %v83_v41 = vadd.f32 %v82_v37, %v20_v32  ;;  %v216_v43 = vadd.f32 %v215_v39, %v153_v34  ;;  %v36_v32 = vld [vmem:[%s499_s0 + $0xd0] sm:$0xff]  ;;  %v169_v34 = vmul.f32 %v35_v28, %v35_v28 }
  0x16   :  { %v84_v45 = vadd.f32 %v83_v41, %v21_v36  ;;  %v217_v47 = vadd.f32 %v216_v43, %v154_v38  ;;  %v37_v36 = vld [vmem:[%s499_s0 + $0xd8] sm:$0xff]  ;;  %v170_v38 = vmul.f32 %v36_v32, %v36_v32 }
  0x18   :  { %v85_v49 = vadd.f32 %v84_v45, %v22_v40  ;;  %v218_v51 = vadd.f32 %v217_v47, %v155_v42  ;;  %v38_v40 = vld [vmem:[%s499_s0 + $0xe0] sm:$0xff]  ;;  %v171_v42 = vmul.f32 %v37_v36, %v37_v36 }
  0x1a   :  { %v86_v53 = vadd.f32 %v85_v49, %v23_v44  ;;  %v219_v55 = vadd.f32 %v218_v51, %v156_v46  ;;  %v39_v44 = vld [vmem:[%s499_s0 + $0xe8] sm:$0xff]  ;;  %v172_v46 = vmul.f32 %v38_v40, %v38_v40 }
  0x1c   :  { %v87_v57 = vadd.f32 %v86_v53, %v24_v48  ;;  %v220_v59 = vadd.f32 %v219_v55, %v157_v50  ;;  %v40_v48 = vld [vmem:[%s499_s0 + $0xf0] sm:$0xff]  ;;  %v173_v50 = vmul.f32 %v39_v44, %v39_v44 }
  0x1e   :  { %v88_v61 = vadd.f32 %v87_v57, %v25_v52  ;;  %v221_v63 = vadd.f32 %v220_v59, %v158_v54  ;;  %v41_v52 = vld [vmem:[%s499_s0 + $0xf8] sm:$0xff]  ;;  %v174_v54 = vmul.f32 %v40_v48, %v40_v48 }
  0x20   :  { %v89_v1 = vadd.f32 %v88_v61, %v26_v56  ;;  %v222_v3 = vadd.f32 %v221_v63, %v159_v58  ;;  %v42_v56 = vld [vmem:[%s499_s0 + $0x100] sm:$0xff]  ;;  %v175_v58 = vmul.f32 %v41_v52, %v41_v52 }
  0x22   :  { %v90_v5 = vadd.f32 %v89_v1, %v27_v60  ;;  %v223_v7 = vadd.f32 %v222_v3, %v160_v62  ;;  %v43_v60 = vld [vmem:[%s499_s0 + $0x108] sm:$0xff]  ;;  %v176_v62 = vmul.f32 %v42_v56, %v42_v56 }
  0x24   :  { %v91_v9 = vadd.f32 %v90_v5, %v28_v0  ;;  %v224_v11 = vadd.f32 %v223_v7, %v161_v2  ;;  %v44_v0 = vld [vmem:[%s499_s0 + $0x110] sm:$0xff]  ;;  %v177_v2 = vmul.f32 %v43_v60, %v43_v60 }
  0x26   :  { %v92_v13 = vadd.f32 %v91_v9, %v29_v4  ;;  %v225_v15 = vadd.f32 %v224_v11, %v162_v6  ;;  %v45_v4 = vld [vmem:[%s499_s0 + $0x118] sm:$0xff]  ;;  %v178_v6 = vmul.f32 %v44_v0, %v44_v0 }
  0x28   :  { %v93_v17 = vadd.f32 %v92_v13, %v30_v8  ;;  %v226_v19 = vadd.f32 %v225_v15, %v163_v10  ;;  %v46_v8 = vld [vmem:[%s499_s0 + $0x120] sm:$0xff]  ;;  %v179_v10 = vmul.f32 %v45_v4, %v45_v4 }
  0x2a   :  { %v94_v21 = vadd.f32 %v93_v17, %v31_v12  ;;  %v227_v23 = vadd.f32 %v226_v19, %v164_v14  ;;  %v47_v12 = vld [vmem:[%s499_s0 + $0x128] sm:$0xff]  ;;  %v180_v14 = vmul.f32 %v46_v8, %v46_v8 }
  0x2c   :  { %v95_v25 = vadd.f32 %v94_v21, %v32_v16  ;;  %v228_v27 = vadd.f32 %v227_v23, %v165_v18  ;;  %v48_v16 = vld [vmem:[%s499_s0 + $0x130] sm:$0xff]  ;;  %v181_v18 = vmul.f32 %v47_v12, %v47_v12 }
  0x2e   :  { %v96_v29 = vadd.f32 %v95_v25, %v33_v20  ;;  %v229_v31 = vadd.f32 %v228_v27, %v166_v22  ;;  %v49_v20 = vld [vmem:[%s499_s0 + $0x138] sm:$0xff]  ;;  %v182_v22 = vmul.f32 %v48_v16, %v48_v16 }
  0x30   :  { %v97_v33 = vadd.f32 %v96_v29, %v34_v24  ;;  %v230_v35 = vadd.f32 %v229_v31, %v167_v26  ;;  %v50_v24 = vld [vmem:[%s499_s0 + $0x140] sm:$0xff]  ;;  %v183_v26 = vmul.f32 %v49_v20, %v49_v20 }
  0x32   :  { %v98_v37 = vadd.f32 %v97_v33, %v35_v28  ;;  %v231_v39 = vadd.f32 %v230_v35, %v168_v30  ;;  %v51_v28 = vld [vmem:[%s499_s0 + $0x148] sm:$0xff]  ;;  %v184_v30 = vmul.f32 %v50_v24, %v50_v24 }
  0x34   :  { %v99_v41 = vadd.f32 %v98_v37, %v36_v32  ;;  %v232_v43 = vadd.f32 %v231_v39, %v169_v34  ;;  %v52_v32 = vld [vmem:[%s499_s0 + $0x150] sm:$0xff]  ;;  %v185_v34 = vmul.f32 %v51_v28, %v51_v28 }
  0x36   :  { %v100_v45 = vadd.f32 %v99_v41, %v37_v36  ;;  %v233_v47 = vadd.f32 %v232_v43, %v170_v38  ;;  %v53_v36 = vld [vmem:[%s499_s0 + $0x158] sm:$0xff]  ;;  %v186_v38 = vmul.f32 %v52_v32, %v52_v32 }
  0x38   :  { %v101_v49 = vadd.f32 %v100_v45, %v38_v40  ;;  %v234_v51 = vadd.f32 %v233_v47, %v171_v42  ;;  %v54_v40 = vld [vmem:[%s499_s0 + $0x160] sm:$0xff]  ;;  %v187_v42 = vmul.f32 %v53_v36, %v53_v36 }
  0x3a   :  { %v102_v53 = vadd.f32 %v101_v49, %v39_v44  ;;  %v235_v55 = vadd.f32 %v234_v51, %v172_v46  ;;  %v55_v44 = vld [vmem:[%s499_s0 + $0x168] sm:$0xff]  ;;  %v188_v46 = vmul.f32 %v54_v40, %v54_v40 }
  0x3c   :  { %v103_v57 = vadd.f32 %v102_v53, %v40_v48  ;;  %v236_v59 = vadd.f32 %v235_v55, %v173_v50  ;;  %v56_v48 = vld [vmem:[%s499_s0 + $0x170] sm:$0xff]  ;;  %v189_v50 = vmul.f32 %v55_v44, %v55_v44 }
  0x3e   :  { %v104_v61 = vadd.f32 %v103_v57, %v41_v52  ;;  %v237_v63 = vadd.f32 %v236_v59, %v174_v54  ;;  %v57_v52 = vld [vmem:[%s499_s0 + $0x178] sm:$0xff]  ;;  %v190_v54 = vmul.f32 %v56_v48, %v56_v48 }
  0x40   :  { %v105_v1 = vadd.f32 %v104_v61, %v42_v56  ;;  %v238_v3 = vadd.f32 %v237_v63, %v175_v58  ;;  %v58_v56 = vld [vmem:[%s499_s0 + $0x180] sm:$0xff]  ;;  %v191_v58 = vmul.f32 %v57_v52, %v57_v52 }
  0x42   :  { %v106_v5 = vadd.f32 %v105_v1, %v43_v60  ;;  %v239_v7 = vadd.f32 %v238_v3, %v176_v62  ;;  %v59_v60 = vld [vmem:[%s499_s0 + $0x188] sm:$0xff]  ;;  %v192_v62 = vmul.f32 %v58_v56, %v58_v56 }
  0x44   :  { %v107_v9 = vadd.f32 %v106_v5, %v44_v0  ;;  %v240_v11 = vadd.f32 %v239_v7, %v177_v2  ;;  %v60_v0 = vld [vmem:[%s499_s0 + $0x190] sm:$0xff]  ;;  %v193_v2 = vmul.f32 %v59_v60, %v59_v60 }
  0x46   :  { %v108_v13 = vadd.f32 %v107_v9, %v45_v4  ;;  %v241_v15 = vadd.f32 %v240_v11, %v178_v6  ;;  %v61_v4 = vld [vmem:[%s499_s0 + $0x198] sm:$0xff]  ;;  %v194_v6 = vmul.f32 %v60_v0, %v60_v0 }
  0x48   :  { %v109_v17 = vadd.f32 %v108_v13, %v46_v8  ;;  %v242_v19 = vadd.f32 %v241_v15, %v179_v10  ;;  %v62_v8 = vld [vmem:[%s499_s0 + $0x1a0] sm:$0xff]  ;;  %v195_v10 = vmul.f32 %v61_v4, %v61_v4 }
  0x4a   :  { %v110_v21 = vadd.f32 %v109_v17, %v47_v12  ;;  %v243_v23 = vadd.f32 %v242_v19, %v180_v14  ;;  %v63_v12 = vld [vmem:[%s499_s0 + $0x1a8] sm:$0xff]  ;;  %v196_v14 = vmul.f32 %v62_v8, %v62_v8 }
  0x4c   :  { %v111_v25 = vadd.f32 %v110_v21, %v48_v16  ;;  %v244_v27 = vadd.f32 %v243_v23, %v181_v18  ;;  %v64_v16 = vld [vmem:[%s499_s0 + $0x1b0] sm:$0xff]  ;;  %v197_v18 = vmul.f32 %v63_v12, %v63_v12 }
  0x4e   :  { %v112_v29 = vadd.f32 %v111_v25, %v49_v20  ;;  %v245_v31 = vadd.f32 %v244_v27, %v182_v22  ;;  %v65_v20 = vld [vmem:[%s499_s0 + $0x1b8] sm:$0xff]  ;;  %v198_v22 = vmul.f32 %v64_v16, %v64_v16 }
  0x50   :  { %v113_v33 = vadd.f32 %v112_v29, %v50_v24  ;;  %v246_v35 = vadd.f32 %v245_v31, %v183_v26  ;;  %v66_v24 = vld [vmem:[%s499_s0 + $0x1c0] sm:$0xff]  ;;  %v199_v26 = vmul.f32 %v65_v20, %v65_v20 }
  0x52   :  { %v114_v37 = vadd.f32 %v113_v33, %v51_v28  ;;  %v247_v39 = vadd.f32 %v246_v35, %v184_v30  ;;  %v67_v28 = vld [vmem:[%s499_s0 + $0x1c8] sm:$0xff]  ;;  %v200_v30 = vmul.f32 %v66_v24, %v66_v24 }
  0x54   :  { %v115_v41 = vadd.f32 %v114_v37, %v52_v32  ;;  %v248_v43 = vadd.f32 %v247_v39, %v185_v34  ;;  %v68_v32 = vld [vmem:[%s499_s0 + $0x1d0] sm:$0xff]  ;;  %v201_v34 = vmul.f32 %v67_v28, %v67_v28 }
  0x56   :  { %v116_v45 = vadd.f32 %v115_v41, %v53_v36  ;;  %v249_v47 = vadd.f32 %v248_v43, %v186_v38  ;;  %v69_v36 = vld [vmem:[%s499_s0 + $0x1d8] sm:$0xff]  ;;  %v202_v38 = vmul.f32 %v68_v32, %v68_v32 }
  0x58   :  { %v117_v49 = vadd.f32 %v116_v45, %v54_v40  ;;  %v250_v51 = vadd.f32 %v249_v47, %v187_v42  ;;  %v70_v40 = vld [vmem:[%s499_s0 + $0x1e0] sm:$0xff]  ;;  %v203_v42 = vmul.f32 %v69_v36, %v69_v36 }
  0x5a   :  { %v118_v53 = vadd.f32 %v117_v49, %v55_v44  ;;  %v251_v55 = vadd.f32 %v250_v51, %v188_v46  ;;  %v71_v44 = vld [vmem:[%s499_s0 + $0x1e8] sm:$0xff]  ;;  %v204_v46 = vmul.f32 %v70_v40, %v70_v40 }
  0x5c   :  { %v119_v57 = vadd.f32 %v118_v53, %v56_v48  ;;  %v252_v59 = vadd.f32 %v251_v55, %v189_v50  ;;  %v72_v48 = vld [vmem:[%s499_s0 + $0x1f0] sm:$0xff]  ;;  %v205_v50 = vmul.f32 %v71_v44, %v71_v44 }
  0x5e   :  { %v120_v61 = vadd.f32 %v119_v57, %v57_v52  ;;  %v253_v63 = vadd.f32 %v252_v59, %v190_v54  ;;  %v73_v52 = vld [vmem:[%s499_s0 + $0x1f8] sm:$0xff]  ;;  %v206_v54 = vmul.f32 %v72_v48, %v72_v48 }
  0x5f   :  { %v207_v57 = vmul.f32 %v73_v52, %v73_v52 }
  0x60   :  { %v121_v1 = vadd.f32 %v120_v61, %v58_v56  ;;  %v254_v3 = vadd.f32 %v253_v63, %v191_v58 }
  0x62   :  { %v122_v5 = vadd.f32 %v121_v1, %v59_v60  ;;  %v255_v7 = vadd.f32 %v254_v3, %v192_v62 }
  0x64   :  { %v123_v9 = vadd.f32 %v122_v5, %v60_v0  ;;  %v256_v11 = vadd.f32 %v255_v7, %v193_v2 }
  0x66   :  { %v124_v13 = vadd.f32 %v123_v9, %v61_v4  ;;  %v257_v15 = vadd.f32 %v256_v11, %v194_v6 }
  0x68   :  { %v125_v17 = vadd.f32 %v124_v13, %v62_v8  ;;  %v258_v19 = vadd.f32 %v257_v15, %v195_v10 }
  0x6a   :  { %v126_v21 = vadd.f32 %v125_v17, %v63_v12  ;;  %v259_v23 = vadd.f32 %v258_v19, %v196_v14 }
  0x6c   :  { %v127_v25 = vadd.f32 %v126_v21, %v64_v16  ;;  %v260_v27 = vadd.f32 %v259_v23, %v197_v18 }
  0x6e   :  { %v128_v29 = vadd.f32 %v127_v25, %v65_v20  ;;  %v261_v31 = vadd.f32 %v260_v27, %v198_v22 }
  0x70   :  { %v129_v33 = vadd.f32 %v128_v29, %v66_v24  ;;  %v262_v35 = vadd.f32 %v261_v31, %v199_v26 }
  0x72   :  { %v130_v37 = vadd.f32 %v129_v33, %v67_v28  ;;  %v263_v39 = vadd.f32 %v262_v35, %v200_v30 }
  0x74   :  { %v131_v41 = vadd.f32 %v130_v37, %v68_v32  ;;  %v264_v43 = vadd.f32 %v263_v39, %v201_v34 }
  0x76   :  { %v132_v45 = vadd.f32 %v131_v41, %v69_v36  ;;  %v265_v47 = vadd.f32 %v264_v43, %v202_v38 }
  0x78   :  { %v133_v49 = vadd.f32 %v132_v45, %v70_v40  ;;  %v266_v51 = vadd.f32 %v265_v47, %v203_v42 }
  0x7a   :  { %v134_v53 = vadd.f32 %v133_v49, %v71_v44  ;;  %v267_v55 = vadd.f32 %v266_v51, %v204_v46 }
  0x7c   :  { %v135_v56 = vadd.f32 %v134_v53, %v72_v48  ;;  %v268_v58 = vadd.f32 %v267_v55, %v205_v50 }
  0x7e   :  { %v136_v59 = vadd.f32 %v135_v56, %v73_v52  ;;  %v269_v60 = vadd.f32 %v268_v58, %v206_v54 }
  0x80   :  { %v137_v61 = vrot.slane %v136_v59, 4  ;;  %v270_v62 = vadd.f32 %v269_v60, %v207_v57 }
  0x82   :  { %v138_v63 = vadd.f32 %v137_v61, %v136_v59  ;;  %v271_v0 = vrot.slane %v270_v62, 4 }
  0x84   :  { %v139_v1 = vrot.slane %v138_v63, 2  ;;  %v272_v2 = vadd.f32 %v271_v0, %v270_v62 }
  0x86   :  { %v140_v3 = vadd.f32 %v139_v1, %v138_v63  ;;  %v273_v4 = vrot.slane %v272_v2, 2 }
  0x88   :  { %v141_v5 = vrot.slane %v140_v3, 1  ;;  %v274_v6 = vadd.f32 %v273_v4, %v272_v2 }
  0x8a   :  { %v142_v7 = vadd.f32 %v141_v5, %v140_v3  ;;  %v275_v8 = vrot.slane %v274_v6, 1 }
  0x8c   :  { %143 = vst [vmem:[%s500_s1] sm:$0x1] %v142_v7  ;;  %v276_v9 = vadd.f32 %v275_v8, %v274_v6 }
  0x8e   :  { %277 = vst [vmem:[%s501_s2] sm:$0x1] %v276_v9 }

// kernel: generator_forward.22
= control target key start
LH: loop header
LB: loop body
LE: loop exit
PB: predicated region body
PF: predicated region fallthrough
CT: control target
= control target key end

     0   :  { %s7040_s15 = smov 0   ;;  %s9435_s0 = inlined_call_operand.vmem [shape: f32[8192,8], index: 0, kind: input, shape index: {}]   ;;  %s9436_s1 = inlined_call_operand.vmem [shape: f32[1,8], index: 1, kind: input, shape index: {}]   ;;  %s9437_s2 = inlined_call_operand.vmem [shape: f32[1,8], index: 2, kind: input, shape index: {}]   ;;  %s9438_s3 = inlined_call_operand.vmem [shape: bf16[8,128], index: 3, kind: input, shape index: {}]   ;;  %s9439_s4 = inlined_call_operand.vmem [shape: f32[8192,128], index: 4, kind: output, shape index: {}]  }
   0x1 LB: > { %s5943_s16 = sadd.s32 4294967295, %s7013_s15   ;;  %p5947_p0 = scmp.ge.s32.totalorder %s7013_s15, 1  ;;  %s7013_s15 = sphi %s7040_s15, %s14_s15  }
   0x2   : > { %p163_p1 = scmp.lt.s32.totalorder %s7013_s15, 3 }
   0x4   : > { %p164_p2 = pnand %p5947_p0, %p163_p1 }
   0x5   : > { %s5948_s19 = sshll.u32 (!%p164_p2), %s5943_s16, 9 }
   0x6   : > { %167 = sbr.rel (%p164_p2) target bundleno = 730 (0x2da), region = 36  ;;  %p190_p3 = scmp.lt.s32.totalorder (!%p164_p2), %s5948_s19, 1023 }
   0xb   : > { %v2520_v0 = vld [vmem:[%s9438_s3] sm:$0xf]  ;;  %vm3290_vm0 = vcmask 1043456   ;;  %s9441_s19 = smov (!%p190_p3, %s5948_s19), 1023  ;;  %vm2521_vm1 = vcmask 64512  }
   0xc   : > { %6985 = vmatprep.subr.msk.bf16.mxu0 %vm3290_vm0, %v2520_v0  ;;  %6986 = vmatprep.subr.msk.bf16.mxu1 %vm3290_vm0, %v2520_v0  ;;  %v3292_v1 = vsel %vm3290_vm0, %v2520_v0, 0  ;;  %s5949_s20 = sshll.u32 %s9441_s19, 3  ;;  %v7057_v2 = vld [vmem:[%s9436_s1] ss:$0 sm:$0xff] }
   0xd   : > { %6470 = vmatpush3.bf16.msra.mxu0 %v3292_v1  ;;  %6984 = vmatpush3.bf16.msra.mxu1 %v3292_v1  ;;  %s7064_s25 = scalar_lea.vmem %s9435_s0, %s5949_s20  ;;  %v7069_v3 = vld [vmem:[%s9437_s2] ss:$0 sm:$0xff]  ;;  %s7823_s10 = scalar_lea.vmem %s9439_s4, %s5949_s20 }
   0xe   : > { %v202_v4 = vld [vmem:[%s7064_s25] sm:$0xff]  ;;  %v203_v5 = vld [vmem:[%s7064_s25 + $0x8] sm:$0xff]  ;;  %v204_v11 = vld [vmem:[%s7064_s25 + $0x10] sm:$0xff] }
   0xf   : > { %v458_v6 = vld [vmem:[%s7064_s25 + $0x800] sm:$0xff]  ;;  %v721_v7 = vmul.f32 %v7057_v2, %v202_v4  ;;  %v722_v8 = vmul.f32 %v7057_v2, %v203_v5  ;;  %v459_v9 = vld [vmem:[%s7064_s25 + $0x808] sm:$0xff]  ;;  %v205_v12 = vld [vmem:[%s7064_s25 + $0x18] sm:$0xff]  ;;  %v723_v14 = vmul.f32 %v7057_v2, %v204_v11 }
  0x10   : > { %v977_v10 = vmul.f32 %v7057_v2, %v458_v6  ;;  %v978_v13 = vmul.f32 %v7057_v2, %v459_v9  ;;  %v724_v15 = vmul.f32 %v7057_v2, %v205_v12  ;;  %v460_v16 = vld [vmem:[%s7064_s25 + $0x810] sm:$0xff]  ;;  %v461_v17 = vld [vmem:[%s7064_s25 + $0x818] sm:$0xff]  ;;  %v206_v26 = vld [vmem:[%s7064_s25 + $0x20] sm:$0xff] }
  0x11   : > { %v1240_v18 = vadd.f32 %v7069_v3, %v721_v7  ;;  %v1241_v19 = vadd.f32 %v7069_v3, %v722_v8  ;;  %v979_v21 = vmul.f32 %v7057_v2, %v460_v16  ;;  %v1242_v23 = vadd.f32 %v7069_v3, %v723_v14  ;;  %v207_v27 = vld [vmem:[%s7064_s25 + $0x28] sm:$0xff]  ;;  %v462_v32 = vld [vmem:[%s7064_s25 + $0x820] sm:$0xff]  ;;  %v208_v38 = vld [vmem:[%s7064_s25 + $0x30] sm:$0xff] }
  0x12   : > { %v1496_v20 = vadd.f32 %v7069_v3, %v977_v10  ;;  %v1497_v22 = vadd.f32 %v7069_v3, %v978_v13  ;;  %v1243_v24 = vadd.f32 %v7069_v3, %v724_v15  ;;  %v980_v25 = vmul.f32 %v7057_v2, %v461_v17  ;;  %v463_v37 = vld [vmem:[%s7064_s25 + $0x828] sm:$0xff]  ;;  %v209_v43 = vld [vmem:[%s7064_s25 + $0x38] sm:$0xff]  ;;  %v464_v52 = vld [vmem:[%s7064_s25 + $0x830] sm:$0xff] }
  0x13   : > { %v1752_v28 = vmax.f32 %v1240_v18, 0.0  ;;  %v1753_v29 = vmax.f32 %v1241_v19, 0.0  ;;  %v1498_v31 = vadd.f32 %v7069_v3, %v979_v21  ;;  %v1754_v34 = vmax.f32 %v1242_v23, 0.0  ;;  %v465_v53 = vld [vmem:[%s7064_s25 + $0x838] sm:$0xff]  ;;  %v210_v57 = vld [vmem:[%s7064_s25 + $0x40] sm:$0xff]  ;;  %v211_v62 = vld [vmem:[%s7064_s25 + $0x48] sm:$0xff] }
  0x14   : > { %v2008_v30 = vmax.f32 %v1496_v20, 0.0  ;;  %v2009_v33 = vmax.f32 %v1497_v22, 0.0  ;;  %v1755_v35 = vmax.f32 %v1243_v24, 0.0  ;;  %v1499_v36 = vadd.f32 %v7069_v3, %v980_v25  ;;  %v466_v5 = vld [vmem:[%s7064_s25 + $0x840] sm:$0xff]  ;;  %v467_v6 = vld [vmem:[%s7064_s25 + $0x848] sm:$0xff]  ;;  %v212_v15 = vld [vmem:[%s7064_s25 + $0x50] sm:$0xff] }
  0x15   : > { %v2264_v39 = vpack.c.bf16 %v1753_v29, %v1752_v28  ;;  %v2010_v40 = vmax.f32 %v1498_v31, 0.0  ;;  %v725_v41 = vmul.f32 %v7057_v2, %v206_v26  ;;  %v726_v42 = vmul.f32 %v7057_v2, %v207_v27  ;;  %v213_v20 = vld [vmem:[%s7064_s25 + $0x58] sm:$0xff]  ;;  %v468_v21 = vld [vmem:[%s7064_s25 + $0x850] sm:$0xff]  ;;  %v214_v31 = vld [vmem:[%s7064_s25 + $0x60] sm:$0xff] }
  0x16   : > { %v2392_v44 = vpack.c.bf16 %v2009_v33, %v2008_v30  ;;  %v2265_v45 = vpack.c.bf16 %v1755_v35, %v1754_v34  ;;  %v2011_v46 = vmax.f32 %v1499_v36, 0.0  ;;  %v981_v47 = vmul.f32 %v7057_v2, %v462_v32  ;;  %v469_v26 = vld [vmem:[%s7064_s25 + $0x858] sm:$0xff]  ;;  %v215_v36 = vld [vmem:[%s7064_s25 + $0x68] sm:$0xff] }
  0x17   : > { %6471 = vmatprep.mubr.msk.bf16.mxu0 %vm2521_vm1, %v2264_v39  ;;  %v1244_v48 = vadd.f32 %v7069_v3, %v725_v41  ;;  %v1245_v49 = vadd.f32 %v7069_v3, %v726_v42  ;;  %v982_v50 = vmul.f32 %v7057_v2, %v463_v37  ;;  %v727_v51 = vmul.f32 %v7057_v2, %v208_v38  ;;  %v470_v41 = vld [vmem:[%s7064_s25 + $0x860] sm:$0xff] }
  0x18   : > { %6727 = vmatprep.mubr.msk.bf16.mxu1 %vm2521_vm1, %v2392_v44  ;;  %6472 = vmatmul.mubr.msk.bf16.vlgmr.msra.gmra.mxu0 %vm2521_vm1, %v2265_v45  ;;  %v2393_v54 = vpack.c.bf16 %v2011_v46, %v2010_v40  ;;  %v1500_v55 = vadd.f32 %v7069_v3, %v981_v47  ;;  %v728_v56 = vmul.f32 %v7057_v2, %v209_v43  ;;  %v471_v46 = vld [vmem:[%s7064_s25 + $0x868] sm:$0xff]  ;;  %v216_v47 = vld [vmem:[%s7064_s25 + $0x70] sm:$0xff] }
  0x19   : > { %v1756_v58 = vmax.f32 %v1244_v48, 0.0  ;;  %v1757_v59 = vmax.f32 %v1245_v49, 0.0  ;;  %v1501_v60 = vadd.f32 %v7069_v3, %v982_v50  ;;  %v1246_v61 = vadd.f32 %v7069_v3, %v727_v51 }
  0x1a   : > { %6728 = vmatmul.mubr.msk.bf16.vlgmr.msra.gmra.mxu1 %vm2521_vm1, %v2393_v54  ;;  %v2012_v63 = vmax.f32 %v1500_v55, 0.0  ;;  %v1247_v0 = vadd.f32 %v7069_v3, %v728_v56  ;;  %v983_v1 = vmul.f32 %v7057_v2, %v464_v52  ;;  %v984_v4 = vmul.f32 %v7057_v2, %v465_v53  ;;  %v217_v52 = vld [vmem:[%s7064_s25 + $0x78] sm:$0xff] }
  0x1b   : > { %v2266_v7 = vpack.c.bf16 %v1757_v59, %v1756_v58  ;;  %v2013_v8 = vmax.f32 %v1501_v60, 0.0  ;;  %v1758_v9 = vmax.f32 %v1246_v61, 0.0  ;;  %v729_v10 = vmul.f32 %v7057_v2, %v210_v57  ;;  %v472_v61 = vld [vmem:[%s7064_s25 + $0x870] sm:$0xff] }
  0x1c   : > { %v1759_v11 = vmax.f32 %v1247_v0, 0.0  ;;  %v1502_v12 = vadd.f32 %v7069_v3, %v983_v1  ;;  %v1503_v13 = vadd.f32 %v7069_v3, %v984_v4  ;;  %v730_v14 = vmul.f32 %v7057_v2, %v211_v62  ;;  %v473_v62 = vld [vmem:[%s7064_s25 + $0x878] sm:$0xff] }
  0x1d   : > { %6475 = vmatprep.mubr.msk.bf16.mxu0 %vm2521_vm1, %v2266_v7  ;;  %v2394_v16 = vpack.c.bf16 %v2013_v8, %v2012_v63  ;;  %v1248_v17 = vadd.f32 %v7069_v3, %v729_v10  ;;  %v985_v18 = vmul.f32 %v7057_v2, %v466_v5  ;;  %v986_v19 = vmul.f32 %v7057_v2, %v467_v6  ;;  %v218_v5 = vld [vmem:[%s7064_s25 + $0x80] sm:$0xff]  ;;  %v219_v10 = vld [vmem:[%s7064_s25 + $0x88] sm:$0xff] }
  0x1e   : > { %v2267_v22 = vpack.c.bf16 %v1759_v11, %v1758_v9  ;;  %v2014_v23 = vmax.f32 %v1502_v12, 0.0  ;;  %v2015_v24 = vmax.f32 %v1503_v13, 0.0  ;;  %v1249_v25 = vadd.f32 %v7069_v3, %v730_v14 }
  0x1f   : > { %6731 = vmatprep.mubr.msk.bf16.mxu1 %vm2521_vm1, %v2394_v16  ;;  %v1760_v27 = vmax.f32 %v1248_v17, 0.0  ;;  %v1504_v28 = vadd.f32 %v7069_v3, %v985_v18  ;;  %v1505_v29 = vadd.f32 %v7069_v3, %v986_v19  ;;  %v731_v30 = vmul.f32 %v7057_v2, %v212_v15  ;;  %v474_v15 = vld [vmem:[%s7064_s25 + $0x880] sm:$0xff]  ;;  %v475_v16 = vld [vmem:[%s7064_s25 + $0x888] sm:$0xff] }
  0x20   : > { %6476 = vmatmul.mubr.msk.bf16.gmra.mxu0 %vm2521_vm1, %v2267_v22  ;;  %v2395_v32 = vpack.c.bf16 %v2015_v24, %v2014_v23  ;;  %v1761_v33 = vmax.f32 %v1249_v25, 0.0  ;;  %v732_v34 = vmul.f32 %v7057_v2, %v213_v20  ;;  %v987_v35 = vmul.f32 %v7057_v2, %v468_v21  ;;  %v220_v25 = vld [vmem:[%s7064_s25 + $0x90] sm:$0xff] }
  0x21   : > { %v2016_v37 = vmax.f32 %v1504_v28, 0.0  ;;  %v2017_v38 = vmax.f32 %v1505_v29, 0.0  ;;  %v1250_v39 = vadd.f32 %v7069_v3, %v731_v30  ;;  %v988_v40 = vmul.f32 %v7057_v2, %v469_v26  ;;  %v221_v30 = vld [vmem:[%s7064_s25 + $0x98] sm:$0xff] }
  0x22   : > { %6732 = vmatmul.mubr.msk.bf16.gmra.mxu1 %vm2521_vm1, %v2395_v32  ;;  %v2268_v42 = vpack.c.bf16 %v1761_v33, %v1760_v27  ;;  %v1251_v43 = vadd.f32 %v7069_v3, %v732_v34  ;;  %v1506_v44 = vadd.f32 %v7069_v3, %v987_v35  ;;  %v733_v45 = vmul.f32 %v7057_v2, %v214_v31  ;;  %v476_v31 = vld [vmem:[%s7064_s25 + $0x890] sm:$0xff] }
  0x23   : > { %v2396_v48 = vpack.c.bf16 %v2017_v38, %v2016_v37  ;;  %v1762_v49 = vmax.f32 %v1250_v39, 0.0  ;;  %v1507_v50 = vadd.f32 %v7069_v3, %v988_v40  ;;  %v734_v51 = vmul.f32 %v7057_v2, %v215_v36  ;;  %v477_v36 = vld [vmem:[%s7064_s25 + $0x898] sm:$0xff] }
  0x24   : > { %6479 = vmatprep.mubr.msk.bf16.mxu0 %vm2521_vm1, %v2268_v42  ;;  %v1763_v53 = vmax.f32 %v1251_v43, 0.0  ;;  %v2018_v54 = vmax.f32 %v1506_v44, 0.0  ;;  %v1252_v55 = vadd.f32 %v7069_v3, %v733_v45  ;;  %v989_v56 = vmul.f32 %v7057_v2, %v470_v41  ;;  %v222_v41 = vld [vmem:[%s7064_s25 + $0xa0] sm:$0xff] }
  0x25   : > { %6735 = vmatprep.mubr.msk.bf16.mxu1 %vm2521_vm1, %v2396_v48  ;;  %v2019_v57 = vmax.f32 %v1507_v50, 0.0  ;;  %v1253_v58 = vadd.f32 %v7069_v3, %v734_v51  ;;  %v990_v59 = vmul.f32 %v7057_v2, %v471_v46  ;;  %v735_v60 = vmul.f32 %v7057_v2, %v216_v47  ;;  %v223_v46 = vld [vmem:[%s7064_s25 + $0xa8] sm:$0xff]  ;;  %v478_v51 = vld [vmem:[%s7064_s25 + $0x8a0] sm:$0xff] }
  0x26   : > { %v2269_v63 = vpack.c.bf16 %v1763_v53, %v1762_v49  ;;  %v1764_v0 = vmax.f32 %v1252_v55, 0.0  ;;  %v1508_v1 = vadd.f32 %v7069_v3, %v989_v56  ;;  %v736_v4 = vmul.f32 %v7057_v2, %v217_v52  ;;  %v479_v56 = vld [vmem:[%s7064_s25 + $0x8a8] sm:$0xff] }
  0x27   : > { %v2397_v6 = vpack.c.bf16 %v2019_v57, %v2018_v54  ;;  %v1765_v7 = vmax.f32 %v1253_v58, 0.0  ;;  %v1509_v8 = vadd.f32 %v7069_v3, %v990_v59  ;;  %v1254_v9 = vadd.f32 %v7069_v3, %v735_v60  ;;  %v224_v57 = vld [vmem:[%s7064_s25 + $0xb0] sm:$0xff] }
  0x28   : > { %6480 = vmatmul.mubr.msk.bf16.gmra.mxu0 %vm2521_vm1, %v2269_v63  ;;  %v2020_v11 = vmax.f32 %v1508_v1, 0.0  ;;  %v1255_v12 = vadd.f32 %v7069_v3, %v736_v4  ;;  %v991_v13 = vmul.f32 %v7057_v2, %v472_v61  ;;  %v992_v14 = vmul.f32 %v7057_v2, %v473_v62  ;;  %v225_v62 = vld [vmem:[%s7064_s25 + $0xb8] sm:$0xff] }
  0x29   : > { %v2270_v17 = vpack.c.bf16 %v1765_v7, %v1764_v0  ;;  %v2021_v18 = vmax.f32 %v1509_v8, 0.0  ;;  %v1766_v19 = vmax.f32 %v1254_v9, 0.0  ;;  %v737_v20 = vmul.f32 %v7057_v2, %v218_v5  ;;  %v480_v9 = vld [vmem:[%s7064_s25 + $0x8b0] sm:$0xff] }
  0x2a   : > { %6736 = vmatmul.mubr.msk.bf16.gmra.mxu1 %vm2521_vm1, %v2397_v6  ;;  %v1767_v21 = vmax.f32 %v1255_v12, 0.0  ;;  %v1510_v22 = vadd.f32 %v7069_v3, %v991_v13  ;;  %v1511_v23 = vadd.f32 %v7069_v3, %v992_v14  ;;  %v738_v24 = vmul.f32 %v7057_v2, %v219_v10  ;;  %v481_v10 = vld [vmem:[%s7064_s25 + $0x8b8] sm:$0xff] }
  0x2b   : > { %6483 = vmatprep.mubr.msk.bf16.mxu0 %vm2521_vm1, %v2270_v17  ;;  %v2398_v26 = vpack.c.bf16 %v2021_v18, %v2020_v11  ;;  %v1256_v27 = vadd.f32 %v7069_v3, %v737_v20  ;;  %v993_v28 = vmul.f32 %v7057_v2, %v474_v15  ;;  %v994_v29 = vmul.f32 %v7057_v2, %v475_v16  ;;  %v226_v15 = vld [vmem:[%s7064_s25 + $0xc0] sm:$0xff]  ;;  %v227_v20 = vld [vmem:[%s7064_s25 + $0xc8] sm:$0xff] }
  0x2c   : > { %v2271_v32 = vpack.c.bf16 %v1767_v21, %v1766_v19  ;;  %v2022_v33 = vmax.f32 %v1510_v22, 0.0  ;;  %v2023_v34 = vmax.f32 %v1511_v23, 0.0  ;;  %v1257_v35 = vadd.f32 %v7069_v3, %v738_v24 }
  0x2d   : > { %6739 = vmatprep.mubr.msk.bf16.mxu1 %vm2521_vm1, %v2398_v26  ;;  %v1768_v37 = vmax.f32 %v1256_v27, 0.0  ;;  %v1512_v38 = vadd.f32 %v7069_v3, %v993_v28  ;;  %v1513_v39 = vadd.f32 %v7069_v3, %v994_v29  ;;  %v739_v40 = vmul.f32 %v7057_v2, %v220_v25  ;;  %v482_v25 = vld [vmem:[%s7064_s25 + $0x8c0] sm:$0xff]  ;;  %v483_v26 = vld [vmem:[%s7064_s25 + $0x8c8] sm:$0xff] }
  0x2e   : > { %v2399_v42 = vpack.c.bf16 %v2023_v34, %v2022_v33  ;;  %v1769_v43 = vmax.f32 %v1257_v35, 0.0  ;;  %v740_v44 = vmul.f32 %v7057_v2, %v221_v30  ;;  %v995_v45 = vmul.f32 %v7057_v2, %v476_v31  ;;  %v228_v35 = vld [vmem:[%s7064_s25 + $0xd0] sm:$0xff] }
  0x2f   : > { %v2024_v47 = vmax.f32 %v1512_v38, 0.0  ;;  %v2025_v48 = vmax.f32 %v1513_v39, 0.0  ;;  %v1258_v49 = vadd.f32 %v7069_v3, %v739_v40  ;;  %v996_v50 = vmul.f32 %v7057_v2, %v477_v36  ;;  %v229_v40 = vld [vmem:[%s7064_s25 + $0xd8] sm:$0xff] }
  0x30   : > { %6484 = vmatmul.mubr.msk.bf16.gmra.mxu0 %vm2521_vm1, %v2271_v32  ;;  %v2272_v52 = vpack.c.bf16 %v1769_v43, %v1768_v37  ;;  %v1259_v53 = vadd.f32 %v7069_v3, %v740_v44  ;;  %v1514_v54 = vadd.f32 %v7069_v3, %v995_v45  ;;  %v741_v55 = vmul.f32 %v7057_v2, %v222_v41  ;;  %v484_v41 = vld [vmem:[%s7064_s25 + $0x8d0] sm:$0xff] }
  0x31   : > { %v2400_v58 = vpack.c.bf16 %v2025_v48, %v2024_v47  ;;  %v1770_v59 = vmax.f32 %v1258_v49, 0.0  ;;  %v1515_v60 = vadd.f32 %v7069_v3, %v996_v50  ;;  %v742_v61 = vmul.f32 %v7057_v2, %v223_v46  ;;  %v485_v46 = vld [vmem:[%s7064_s25 + $0x8d8] sm:$0xff] }
  0x32   : > { %6740 = vmatmul.mubr.msk.bf16.gmra.mxu1 %vm2521_vm1, %v2399_v42  ;;  %6487 = vmatprep.mubr.msk.bf16.mxu0 %vm2521_vm1, %v2272_v52  ;;  %v1771_v63 = vmax.f32 %v1259_v53, 0.0  ;;  %v2026_v0 = vmax.f32 %v1514_v54, 0.0  ;;  %v1260_v1 = vadd.f32 %v7069_v3, %v741_v55  ;;  %v997_v4 = vmul.f32 %v7057_v2, %v478_v51  ;;  %v230_v51 = vld [vmem:[%s7064_s25 + $0xe0] sm:$0xff] }
  0x33   : > { %6743 = vmatprep.mubr.msk.bf16.mxu1 %vm2521_vm1, %v2400_v58  ;;  %v2027_v5 = vmax.f32 %v1515_v60, 0.0  ;;  %v1261_v6 = vadd.f32 %v7069_v3, %v742_v61  ;;  %v998_v7 = vmul.f32 %v7057_v2, %v479_v56  ;;  %v743_v8 = vmul.f32 %v7057_v2, %v224_v57  ;;  %v231_v56 = vld [vmem:[%s7064_s25 + $0xe8] sm:$0xff]  ;;  %v486_v61 = vld [vmem:[%s7064_s25 + $0x8e0] sm:$0xff] }
  0x34   : > { %v2273_v11 = vpack.c.bf16 %v1771_v63, %v1770_v59  ;;  %v1772_v12 = vmax.f32 %v1260_v1, 0.0  ;;  %v1516_v13 = vadd.f32 %v7069_v3, %v997_v4  ;;  %v744_v14 = vmul.f32 %v7057_v2, %v225_v62  ;;  %v487_v4 = vld [vmem:[%s7064_s25 + $0x8e8] sm:$0xff] }
  0x35   : > { %v2401_v16 = vpack.c.bf16 %v2027_v5, %v2026_v0  ;;  %v1773_v17 = vmax.f32 %v1261_v6, 0.0  ;;  %v1517_v18 = vadd.f32 %v7069_v3, %v998_v7  ;;  %v1262_v19 = vadd.f32 %v7069_v3, %v743_v8  ;;  %v232_v5 = vld [vmem:[%s7064_s25 + $0xf0] sm:$0xff] }
  0x36   : > { %v2028_v21 = vmax.f32 %v1516_v13, 0.0  ;;  %v1263_v22 = vadd.f32 %v7069_v3, %v744_v14  ;;  %v999_v23 = vmul.f32 %v7057_v2, %v480_v9  ;;  %v1000_v24 = vmul.f32 %v7057_v2, %v481_v10  ;;  %v233_v10 = vld [vmem:[%s7064_s25 + $0xf8] sm:$0xff] }
  0x37   : > { %v2274_v27 = vpack.c.bf16 %v1773_v17, %v1772_v12  ;;  %v2029_v28 = vmax.f32 %v1517_v18, 0.0  ;;  %v1774_v29 = vmax.f32 %v1262_v19, 0.0  ;;  %v745_v30 = vmul.f32 %v7057_v2, %v226_v15  ;;  %v488_v19 = vld [vmem:[%s7064_s25 + $0x8f0] sm:$0xff] }
  0x38   : > { %6488 = vmatmul.mubr.msk.bf16.gmra.mxu0 %vm2521_vm1, %v2273_v11  ;;  %v1775_v31 = vmax.f32 %v1263_v22, 0.0  ;;  %v1518_v32 = vadd.f32 %v7069_v3, %v999_v23  ;;  %v1519_v33 = vadd.f32 %v7069_v3, %v1000_v24  ;;  %v746_v34 = vmul.f32 %v7057_v2, %v227_v20  ;;  %v489_v20 = vld [vmem:[%s7064_s25 + $0x8f8] sm:$0xff]  ;;  %v234_v24 = vld [vmem:[%s7064_s25 + $0x100] sm:$0xff] }
  0x39   : > { %6491 = vmatprep.mubr.msk.bf16.mxu0 %vm2521_vm1, %v2274_v27  ;;  %v2402_v36 = vpack.c.bf16 %v2029_v28, %v2028_v21  ;;  %v1264_v37 = vadd.f32 %v7069_v3, %v745_v30  ;;  %v1001_v38 = vmul.f32 %v7057_v2, %v482_v25  ;;  %v1002_v39 = vmul.f32 %v7057_v2, %v483_v26 }
  0x3a   : > { %6744 = vmatmul.mubr.msk.bf16.gmra.mxu1 %vm2521_vm1, %v2401_v16  ;;  %v2275_v42 = vpack.c.bf16 %v1775_v31, %v1774_v29  ;;  %v2030_v43 = vmax.f32 %v1518_v32, 0.0  ;;  %v2031_v44 = vmax.f32 %v1519_v33, 0.0  ;;  %v1265_v45 = vadd.f32 %v7069_v3, %v746_v34  ;;  %v235_v29 = vld [vmem:[%s7064_s25 + $0x108] sm:$0xff]  ;;  %v490_v34 = vld [vmem:[%s7064_s25 + $0x900] sm:$0xff] }
  0x3b   : > { %6747 = vmatprep.mubr.msk.bf16.mxu1 %vm2521_vm1, %v2402_v36  ;;  %v1776_v47 = vmax.f32 %v1264_v37, 0.0  ;;  %v1520_v48 = vadd.f32 %v7069_v3, %v1001_v38  ;;  %v1521_v49 = vadd.f32 %v7069_v3, %v1002_v39  ;;  %v747_v50 = vmul.f32 %v7057_v2, %v228_v35  ;;  %v491_v35 = vld [vmem:[%s7064_s25 + $0x908] sm:$0xff] }
  0x3c   : > { %v2403_v52 = vpack.c.bf16 %v2031_v44, %v2030_v43  ;;  %v1777_v53 = vmax.f32 %v1265_v45, 0.0  ;;  %v748_v54 = vmul.f32 %v7057_v2, %v229_v40  ;;  %v1003_v55 = vmul.f32 %v7057_v2, %v484_v41  ;;  %v236_v44 = vld [vmem:[%s7064_s25 + $0x110] sm:$0xff] }
  0x3d   : > { %v2032_v57 = vmax.f32 %v1520_v48, 0.0  ;;  %v2033_v58 = vmax.f32 %v1521_v49, 0.0  ;;  %v1266_v59 = vadd.f32 %v7069_v3, %v747_v50  ;;  %v1004_v60 = vmul.f32 %v7057_v2, %v485_v46  ;;  %v237_v49 = vld [vmem:[%s7064_s25 + $0x118] sm:$0xff]  ;;  %v492_v50 = vld [vmem:[%s7064_s25 + $0x910] sm:$0xff] }
  0x3e   : > { %v2276_v62 = vpack.c.bf16 %v1777_v53, %v1776_v47  ;;  %v1267_v63 = vadd.f32 %v7069_v3, %v748_v54  ;;  %v1522_v0 = vadd.f32 %v7069_v3, %v1003_v55  ;;  %v749_v1 = vmul.f32 %v7057_v2, %v230_v51  ;;  %v493_v55 = vld [vmem:[%s7064_s25 + $0x918] sm:$0xff] }
  0x3f   : > { %v2404_v6 = vpack.c.bf16 %v2033_v58, %v2032_v57  ;;  %v1778_v7 = vmax.f32 %v1266_v59, 0.0  ;;  %v1523_v8 = vadd.f32 %v7069_v3, %v1004_v60  ;;  %v750_v9 = vmul.f32 %v7057_v2, %v231_v56  ;;  %v238_v60 = vld [vmem:[%s7064_s25 + $0x120] sm:$0xff] }
  0x40   : > { %6492 = vmatmul.mubr.msk.bf16.gmra.mxu0 %vm2521_vm1, %v2275_v42  ;;  %v1779_v11 = vmax.f32 %v1267_v63, 0.0  ;;  %v2034_v12 = vmax.f32 %v1522_v0, 0.0  ;;  %v1268_v13 = vadd.f32 %v7069_v3, %v749_v1  ;;  %v1005_v14 = vmul.f32 %v7057_v2, %v486_v61  ;;  %v239_v0 = vld [vmem:[%s7064_s25 + $0x128] sm:$0xff] }
  0x41   : > { %6495 = vmatprep.mubr.msk.bf16.mxu0 %vm2521_vm1, %v2276_v62  ;;  %v2035_v15 = vmax.f32 %v1523_v8, 0.0  ;;  %v1269_v16 = vadd.f32 %v7069_v3, %v750_v9  ;;  %v1006_v17 = vmul.f32 %v7057_v2, %v487_v4  ;;  %v751_v18 = vmul.f32 %v7057_v2, %v232_v5 }
  0x42   : > { %6748 = vmatmul.mubr.msk.bf16.gmra.mxu1 %vm2521_vm1, %v2403_v52  ;;  %v1780_v21 = vmax.f32 %v1268_v13, 0.0  ;;  %v1524_v22 = vadd.f32 %v7069_v3, %v1005_v14  ;;  %v752_v23 = vmul.f32 %v7057_v2, %v233_v10  ;;  %v2277_v25 = vpack.c.bf16 %v1779_v11, %v1778_v7  ;;  %v494_v7 = vld [vmem:[%s7064_s25 + $0x920] sm:$0xff]  ;;  %v240_v13 = vld [vmem:[%s7064_s25 + $0x130] sm:$0xff] }
  0x43   : > { %6751 = vmatprep.mubr.msk.bf16.mxu1 %vm2521_vm1, %v2404_v6  ;;  %v1781_v26 = vmax.f32 %v1269_v16, 0.0  ;;  %v1525_v27 = vadd.f32 %v7069_v3, %v1006_v17  ;;  %v1270_v28 = vadd.f32 %v7069_v3, %v751_v18  ;;  %v1007_v32 = vmul.f32 %v7057_v2, %v488_v19  ;;  %v241_v18 = vld [vmem:[%s7064_s25 + $0x138] sm:$0xff] }
  0x44   : > { %v2036_v30 = vmax.f32 %v1524_v22, 0.0  ;;  %v1271_v31 = vadd.f32 %v7069_v3, %v752_v23  ;;  %v1008_v33 = vmul.f32 %v7057_v2, %v489_v20  ;;  %v2405_v36 = vpack.c.bf16 %v2035_v15, %v2034_v12  ;;  %v495_v12 = vld [vmem:[%s7064_s25 + $0x928] sm:$0xff] }
  0x45   : > { %v2278_v37 = vpack.c.bf16 %v1781_v26, %v1780_v21  ;;  %v2037_v38 = vmax.f32 %v1525_v27, 0.0  ;;  %v753_v39 = vmul.f32 %v7057_v2, %v234_v24  ;;  %v1782_v40 = vmax.f32 %v1270_v28, 0.0  ;;  %v496_v27 = vld [vmem:[%s7064_s25 + $0x930] sm:$0xff]  ;;  %v497_v28 = vld [vmem:[%s7064_s25 + $0x938] sm:$0xff] }
  0x46   : > { %v1526_v41 = vadd.f32 %v7069_v3, %v1007_v32  ;;  %v1527_v42 = vadd.f32 %v7069_v3, %v1008_v33  ;;  %v754_v43 = vmul.f32 %v7057_v2, %v235_v29  ;;  %v1009_v47 = vmul.f32 %v7057_v2, %v490_v34  ;;  %v242_v33 = vld [vmem:[%s7064_s25 + $0x140] sm:$0xff] }
  0x47   : > { %v2406_v45 = vpack.c.bf16 %v2037_v38, %v2036_v30  ;;  %v1272_v46 = vadd.f32 %v7069_v3, %v753_v39  ;;  %v1010_v48 = vmul.f32 %v7057_v2, %v491_v35  ;;  %v1783_v51 = vmax.f32 %v1271_v31, 0.0 }
  0x48   : > { %6496 = vmatmul.mubr.msk.bf16.gmra.mxu0 %vm2521_vm1, %v2277_v25  ;;  %v2038_v52 = vmax.f32 %v1526_v41, 0.0  ;;  %v2039_v53 = vmax.f32 %v1527_v42, 0.0  ;;  %v1273_v54 = vadd.f32 %v7069_v3, %v754_v43  ;;  %v1528_v57 = vadd.f32 %v7069_v3, %v1009_v47  ;;  %v498_v41 = vld [vmem:[%s7064_s25 + $0x940] sm:$0xff]  ;;  %v499_v42 = vld [vmem:[%s7064_s25 + $0x948] sm:$0xff] }
  0x49   : > { %6499 = vmatprep.mubr.msk.bf16.mxu0 %vm2521_vm1, %v2278_v37  ;;  %v1784_v56 = vmax.f32 %v1272_v46, 0.0  ;;  %v1529_v58 = vadd.f32 %v7069_v3, %v1010_v48  ;;  %v755_v59 = vmul.f32 %v7057_v2, %v236_v44  ;;  %v756_v62 = vmul.f32 %v7057_v2, %v237_v49  ;;  %v243_v37 = vld [vmem:[%s7064_s25 + $0x148] sm:$0xff] }
  0x4a   : > { %6752 = vmatmul.mubr.msk.bf16.gmra.mxu1 %vm2521_vm1, %v2405_v36  ;;  %v1785_v61 = vmax.f32 %v1273_v54, 0.0  ;;  %v1011_v63 = vmul.f32 %v7057_v2, %v492_v50  ;;  %v2040_v1 = vmax.f32 %v1528_v57, 0.0  ;;  %v1012_v6 = vmul.f32 %v7057_v2, %v493_v55  ;;  %v244_v54 = vld [vmem:[%s7064_s25 + $0x150] sm:$0xff]  ;;  %v245_v55 = vld [vmem:[%s7064_s25 + $0x158] sm:$0xff] }
  0x4b   : > { %6755 = vmatprep.mubr.msk.bf16.mxu1 %vm2521_vm1, %v2406_v45  ;;  %v2041_v4 = vmax.f32 %v1529_v58, 0.0  ;;  %v1274_v5 = vadd.f32 %v7069_v3, %v755_v59  ;;  %v2279_v8 = vpack.c.bf16 %v1783_v51, %v1782_v40  ;;  %v1275_v9 = vadd.f32 %v7069_v3, %v756_v62 }
  0x4c   : > { %v1530_v10 = vadd.f32 %v7069_v3, %v1011_v63  ;;  %v757_v11 = vmul.f32 %v7057_v2, %v238_v60  ;;  %v2407_v14 = vpack.c.bf16 %v2039_v53, %v2038_v52  ;;  %v2280_v15 = vpack.c.bf16 %v1785_v61, %v1784_v56  ;;  %v500_v60 = vld [vmem:[%s7064_s25 + $0x950] sm:$0xff] }
  0x4d   : > { %v1531_v16 = vadd.f32 %v7069_v3, %v1012_v6  ;;  %v758_v17 = vmul.f32 %v7057_v2, %v239_v0  ;;  %v2408_v19 = vpack.c.bf16 %v2041_v4, %v2040_v1  ;;  %v1786_v20 = vmax.f32 %v1274_v5, 0.0  ;;  %v501_v1 = vld [vmem:[%s7064_s25 + $0x958] sm:$0xff]  ;;  %v246_v4 = vld [vmem:[%s7064_s25 + $0x160] sm:$0xff] }
  0x4e   : > { %v1276_v21 = vadd.f32 %v7069_v3, %v757_v11  ;;  %v1013_v22 = vmul.f32 %v7057_v2, %v494_v7  ;;  %v1787_v23 = vmax.f32 %v1275_v9, 0.0  ;;  %v1014_v25 = vmul.f32 %v7057_v2, %v495_v12  ;;  %v247_v9 = vld [vmem:[%s7064_s25 + $0x168] sm:$0xff]  ;;  %v502_v11 = vld [vmem:[%s7064_s25 + $0x960] sm:$0xff] }
  0x4f   : > { %v1277_v24 = vadd.f32 %v7069_v3, %v758_v17  ;;  %v759_v26 = vmul.f32 %v7057_v2, %v240_v13  ;;  %v2042_v29 = vmax.f32 %v1530_v10, 0.0  ;;  %v2043_v30 = vmax.f32 %v1531_v16, 0.0  ;;  %v503_v16 = vld [vmem:[%s7064_s25 + $0x968] sm:$0xff] }
  0x50   : > { %6500 = vmatmul.mubr.msk.bf16.gmra.mxu0 %vm2521_vm1, %v2279_v8  ;;  %v1532_v31 = vadd.f32 %v7069_v3, %v1013_v22  ;;  %v760_v32 = vmul.f32 %v7057_v2, %v241_v18  ;;  %v1788_v34 = vmax.f32 %v1276_v21, 0.0  ;;  %v1533_v36 = vadd.f32 %v7069_v3, %v1014_v25 }
  0x51   : > { %6503 = vmatprep.mubr.msk.bf16.mxu0 %vm2521_vm1, %v2280_v15  ;;  %v1789_v35 = vmax.f32 %v1277_v24, 0.0  ;;  %v1278_v38 = vadd.f32 %v7069_v3, %v759_v26  ;;  %v1015_v39 = vmul.f32 %v7057_v2, %v496_v27  ;;  %v1016_v40 = vmul.f32 %v7057_v2, %v497_v28 }
  0x52   : > { %6756 = vmatmul.mubr.msk.bf16.gmra.mxu1 %vm2521_vm1, %v2407_v14  ;;  %v2044_v43 = vmax.f32 %v1532_v31, 0.0  ;;  %v2045_v44 = vmax.f32 %v1533_v36, 0.0  ;;  %v1279_v45 = vadd.f32 %v7069_v3, %v760_v32  ;;  %v761_v46 = vmul.f32 %v7057_v2, %v242_v33  ;;  %v250_v33 = vld [vmem:[%s7064_s25 + $0x180] sm:$0xff] }
  0x53   : > { %6759 = vmatprep.mubr.msk.bf16.mxu1 %vm2521_vm1, %v2408_v19  ;;  %v2281_v47 = vpack.c.bf16 %v1787_v23, %v1786_v20  ;;  %v2409_v48 = vpack.c.bf16 %v2043_v30, %v2042_v29  ;;  %v762_v49 = vmul.f32 %v7057_v2, %v243_v37  ;;  %v2282_v50 = vpack.c.bf16 %v1789_v35, %v1788_v34  ;;  %v248_v29 = vld [vmem:[%s7064_s25 + $0x170] sm:$0xff]  ;;  %v249_v30 = vld [vmem:[%s7064_s25 + $0x178] sm:$0xff] }
  0x54   : > { %v1280_v51 = vadd.f32 %v7069_v3, %v761_v46  ;;  %v1017_v52 = vmul.f32 %v7057_v2, %v498_v41  ;;  %v1018_v53 = vmul.f32 %v7057_v2, %v499_v42  ;;  %v1790_v56 = vmax.f32 %v1278_v38, 0.0  ;;  %v504_v37 = vld [vmem:[%s7064_s25 + $0x970] sm:$0xff]  ;;  %v505_v38 = vld [vmem:[%s7064_s25 + $0x978] sm:$0xff] }
  0x55   : > { %v1534_v57 = vadd.f32 %v7069_v3, %v1015_v39  ;;  %v1535_v58 = vadd.f32 %v7069_v3, %v1016_v40  ;;  %v1281_v59 = vadd.f32 %v7069_v3, %v762_v49  ;;  %v2410_v61 = vpack.c.bf16 %v2045_v44, %v2044_v43  ;;  %v251_v39 = vld [vmem:[%s7064_s25 + $0x188] sm:$0xff]  ;;  %v506_v44 = vld [vmem:[%s7064_s25 + $0x980] sm:$0xff] }
  0x56   : > { %v1791_v62 = vmax.f32 %v1279_v45, 0.0  ;;  %v1536_v63 = vadd.f32 %v7069_v3, %v1017_v52  ;;  %v1537_v0 = vadd.f32 %v7069_v3, %v1018_v53  ;;  %v1792_v5 = vmax.f32 %v1280_v51, 0.0  ;;  %v507_v45 = vld [vmem:[%s7064_s25 + $0x988] sm:$0xff] }
  0x57   : > { %v1793_v6 = vmax.f32 %v1281_v59, 0.0  ;;  %v763_v7 = vmul.f32 %v7057_v2, %v244_v54  ;;  %v764_v8 = vmul.f32 %v7057_v2, %v245_v55  ;;  %v1019_v10 = vmul.f32 %v7057_v2, %v500_v60 }
  0x58   : > { %6504 = vmatmul.mubr.msk.bf16.gmra.mxu0 %vm2521_vm1, %v2281_v47  ;;  %v2046_v12 = vmax.f32 %v1534_v57, 0.0  ;;  %v2047_v13 = vmax.f32 %v1535_v58, 0.0  ;;  %v1020_v14 = vmul.f32 %v7057_v2, %v501_v1  ;;  %v765_v15 = vmul.f32 %v7057_v2, %v246_v4  ;;  %v253_v1 = vld [vmem:[%s7064_s25 + $0x198] sm:$0xff] }
  0x59   : > { %6507 = vmatprep.mubr.msk.bf16.mxu0 %vm2521_vm1, %v2282_v50  ;;  %v2283_v17 = vpack.c.bf16 %v1791_v62, %v1790_v56  ;;  %v2048_v18 = vmax.f32 %v1536_v63, 0.0  ;;  %v2049_v19 = vmax.f32 %v1537_v0, 0.0  ;;  %v766_v20 = vmul.f32 %v7057_v2, %v247_v9  ;;  %v252_v0 = vld [vmem:[%s7064_s25 + $0x190] sm:$0xff] }
  0x5a   : > { %6760 = vmatmul.mubr.msk.bf16.gmra.mxu1 %vm2521_vm1, %v2409_v48  ;;  %v2284_v21 = vpack.c.bf16 %v1793_v6, %v1792_v5  ;;  %v1282_v22 = vadd.f32 %v7069_v3, %v763_v7  ;;  %v1283_v23 = vadd.f32 %v7069_v3, %v764_v8  ;;  %v1021_v24 = vmul.f32 %v7057_v2, %v502_v11  ;;  %v254_v7 = vld [vmem:[%s7064_s25 + $0x1a0] sm:$0xff]  ;;  %v255_v8 = vld [vmem:[%s7064_s25 + $0x1a8] sm:$0xff] }
  0x5b   : > { %6763 = vmatprep.mubr.msk.bf16.mxu1 %vm2521_vm1, %v2410_v61  ;;  %v1538_v25 = vadd.f32 %v7069_v3, %v1019_v10  ;;  %v1284_v26 = vadd.f32 %v7069_v3, %v765_v15  ;;  %v1285_v27 = vadd.f32 %v7069_v3, %v766_v20  ;;  %v1022_v28 = vmul.f32 %v7057_v2, %v503_v16 }
  0x5c   : > { %v2411_v31 = vpack.c.bf16 %v2047_v13, %v2046_v12  ;;  %v1539_v32 = vadd.f32 %v7069_v3, %v1020_v14  ;;  %v2412_v34 = vpack.c.bf16 %v2049_v19, %v2048_v18  ;;  %v1540_v35 = vadd.f32 %v7069_v3, %v1021_v24  ;;  %v508_v12 = vld [vmem:[%s7064_s25 + $0x990] sm:$0xff]  ;;  %v509_v13 = vld [vmem:[%s7064_s25 + $0x998] sm:$0xff]  ;;  %v510_v18 = vld [vmem:[%s7064_s25 + $0x9a0] sm:$0xff] }
  0x5d   : > { %v1541_v36 = vadd.f32 %v7069_v3, %v1022_v28  ;;  %v1794_v40 = vmax.f32 %v1282_v22, 0.0  ;;  %v1795_v41 = vmax.f32 %v1283_v23, 0.0  ;;  %v767_v42 = vmul.f32 %v7057_v2, %v248_v29  ;;  %v511_v19 = vld [vmem:[%s7064_s25 + $0x9a8] sm:$0xff] }
  0x5e   : > { %v768_v43 = vmul.f32 %v7057_v2, %v249_v30  ;;  %v2050_v46 = vmax.f32 %v1538_v25, 0.0  ;;  %v1796_v47 = vmax.f32 %v1284_v26, 0.0  ;;  %v1797_v48 = vmax.f32 %v1285_v27, 0.0 }
  0x5f   : > { %v769_v49 = vmul.f32 %v7057_v2, %v250_v33  ;;  %v2051_v50 = vmax.f32 %v1539_v32, 0.0  ;;  %v1023_v51 = vmul.f32 %v7057_v2, %v504_v37  ;;  %v1024_v52 = vmul.f32 %v7057_v2, %v505_v38 }
  0x60   : > { %6508 = vmatmul.mubr.msk.bf16.gmra.mxu0 %vm2521_vm1, %v2283_v17  ;;  %v770_v53 = vmul.f32 %v7057_v2, %v251_v39  ;;  %v2052_v54 = vmax.f32 %v1540_v35, 0.0  ;;  %v2053_v55 = vmax.f32 %v1541_v36, 0.0  ;;  %v1025_v56 = vmul.f32 %v7057_v2, %v506_v44  ;;  %v256_v39 = vld [vmem:[%s7064_s25 + $0x1b0] sm:$0xff] }
  0x61   : > { %6511 = vmatprep.mubr.msk.bf16.mxu0 %vm2521_vm1, %v2284_v21  ;;  %v1026_v57 = vmul.f32 %v7057_v2, %v507_v45  ;;  %v2285_v58 = vpack.c.bf16 %v1795_v41, %v1794_v40  ;;  %v1286_v59 = vadd.f32 %v7069_v3, %v767_v42  ;;  %v1287_v60 = vadd.f32 %v7069_v3, %v768_v43  ;;  %v257_v40 = vld [vmem:[%s7064_s25 + $0x1b8] sm:$0xff]  ;;  %v258_v42 = vld [vmem:[%s7064_s25 + $0x1c0] sm:$0xff]  ;;  %v259_v43 = vld [vmem:[%s7064_s25 + $0x1c8] sm:$0xff] }
  0x62   : > { %6764 = vmatmul.mubr.msk.bf16.gmra.mxu1 %vm2521_vm1, %v2411_v31  ;;  %v2286_v61 = vpack.c.bf16 %v1797_v48, %v1796_v47  ;;  %v1288_v62 = vadd.f32 %v7069_v3, %v769_v49  ;;  %v1289_v63 = vadd.f32 %v7069_v3, %v770_v53  ;;  %v2413_v4 = vpack.c.bf16 %v2051_v50, %v2050_v46  ;;  %v512_v47 = vld [vmem:[%s7064_s25 + $0x9b0] sm:$0xff]  ;;  %v513_v48 = vld [vmem:[%s7064_s25 + $0x9b8] sm:$0xff] }
  0x63   : > { %6767 = vmatprep.mubr.msk.bf16.mxu1 %vm2521_vm1, %v2412_v34  ;;  %v1542_v5 = vadd.f32 %v7069_v3, %v1023_v51  ;;  %v1543_v6 = vadd.f32 %v7069_v3, %v1024_v52  ;;  %v2414_v9 = vpack.c.bf16 %v2053_v55, %v2052_v54  ;;  %v1544_v10 = vadd.f32 %v7069_v3, %v1025_v56  ;;  %v7437_v34 = vld [vmem:[%s9437_s2] ss:$0 sm:$0xff]  ;;  %v515_v55 = vld [vmem:[%s7064_s25 + $0x9c8] sm:$0xff] }
  0x64   : > { %v1545_v11 = vadd.f32 %v7069_v3, %v1026_v57  ;;  %v1798_v14 = vmax.f32 %v1286_v59, 0.0  ;;  %v1799_v15 = vmax.f32 %v1287_v60, 0.0  ;;  %v771_v16 = vmul.f32 %v7057_v2, %v252_v0  ;;  %v7456_v51 = vld [vmem:[%s9436_s1] ss:$0 sm:$0xff] }
  0x65   : > { %v772_v17 = vmul.f32 %v7057_v2, %v253_v1  ;;  %v1800_v20 = vmax.f32 %v1288_v62, 0.0  ;;  %v1801_v21 = vmax.f32 %v1289_v63, 0.0  ;;  %v773_v22 = vmul.f32 %v7057_v2, %v254_v7  ;;  %v514_v54 = vld [vmem:[%s7064_s25 + $0x9c0] sm:$0xff] }
  0x66   : > { %v774_v23 = vmul.f32 %v7057_v2, %v255_v8  ;;  %v2054_v24 = vmax.f32 %v1542_v5, 0.0  ;;  %v2055_v25 = vmax.f32 %v1543_v6, 0.0  ;;  %v1027_v26 = vmul.f32 %v7057_v2, %v508_v12  ;;  %v260_v12 = vld [vmem:[%s7064_s25 + $0x1d0] sm:$0xff] }
  0x67   : > { %v1028_v27 = vmul.f32 %v7057_v2, %v509_v13  ;;  %v2056_v28 = vmax.f32 %v1544_v10, 0.0  ;;  %v2057_v29 = vmax.f32 %v1545_v11, 0.0  ;;  %v1029_v30 = vmul.f32 %v7057_v2, %v510_v18  ;;  %v261_v13 = vld [vmem:[%s7064_s25 + $0x1d8] sm:$0xff]  ;;  %v263_v18 = vld [vmem:[%s7064_s25 + $0x1e8] sm:$0xff] }
  0x68   : > { %6512 = vmatmul.mubr.msk.bf16.gmra.mxu0 %vm2521_vm1, %v2285_v58  ;;  %v1030_v31 = vmul.f32 %v7057_v2, %v511_v19  ;;  %v2287_v32 = vpack.c.bf16 %v1799_v15, %v1798_v14  ;;  %v1290_v33 = vadd.f32 %v7069_v3, %v771_v16  ;;  %v1291_v35 = vadd.f32 %v7437_v34, %v772_v17  ;;  %v262_v17 = vld [vmem:[%s7064_s25 + $0x1e0] sm:$0xff] }
  0x69   : > { %6515 = vmatprep.mubr.msk.bf16.mxu0 %vm2521_vm1, %v2286_v61  ;;  %v2288_v36 = vpack.c.bf16 %v1801_v21, %v1800_v20  ;;  %v1292_v37 = vadd.f32 %v7437_v34, %v773_v22  ;;  %v1293_v38 = vadd.f32 %v7437_v34, %v774_v23  ;;  %v2415_v2 = vpack.c.bf16 %v2055_v25, %v2054_v24  ;;  %v516_v22 = vld [vmem:[%s7064_s25 + $0x9d0] sm:$0xff]  ;;  %v517_v23 = vld [vmem:[%s7064_s25 + $0x9d8] sm:$0xff] }
  0x6a   : > { %6768 = vmatmul.mubr.msk.bf16.gmra.mxu1 %vm2521_vm1, %v2413_v4  ;;  %v1546_v3 = vadd.f32 %v7437_v34, %v1027_v26  ;;  %v1547_v41 = vadd.f32 %v7437_v34, %v1028_v27  ;;  %v2416_v44 = vpack.c.bf16 %v2057_v29, %v2056_v28  ;;  %v1548_v45 = vadd.f32 %v7437_v34, %v1029_v30  ;;  %v518_v28 = vld [vmem:[%s7064_s25 + $0x9e0] sm:$0xff]  ;;  %v519_v29 = vld [vmem:[%s7064_s25 + $0x9e8] sm:$0xff] }
  0x6b   : > { %6771 = vmatprep.mubr.msk.bf16.mxu1 %vm2521_vm1, %v2414_v9  ;;  %v1549_v46 = vadd.f32 %v7437_v34, %v1030_v31  ;;  %v1802_v49 = vmax.f32 %v1290_v33, 0.0  ;;  %v1803_v50 = vmax.f32 %v1291_v35, 0.0  ;;  %v775_v52 = vmul.f32 %v7456_v51, %v256_v39 }
  0x6c   : > { %v776_v53 = vmul.f32 %v7456_v51, %v257_v40  ;;  %v1804_v56 = vmax.f32 %v1292_v37, 0.0  ;;  %v1805_v57 = vmax.f32 %v1293_v38, 0.0  ;;  %v777_v58 = vmul.f32 %v7456_v51, %v258_v42 }
  0x6d   : > { %v778_v59 = vmul.f32 %v7456_v51, %v259_v43  ;;  %v2058_v60 = vmax.f32 %v1546_v3, 0.0  ;;  %v2059_v61 = vmax.f32 %v1547_v41, 0.0  ;;  %v1031_v62 = vmul.f32 %v7456_v51, %v512_v47  ;;  %v264_v47 = vld [vmem:[%s7064_s25 + $0x1f0] sm:$0xff] }
  0x6e   : > { %v1032_v63 = vmul.f32 %v7456_v51, %v513_v48  ;;  %v2060_v0 = vmax.f32 %v1548_v45, 0.0  ;;  %v2061_v1 = vmax.f32 %v1549_v46, 0.0  ;;  %v1033_v4 = vmul.f32 %v7456_v51, %v514_v54  ;;  %v265_v48 = vld [vmem:[%s7064_s25 + $0x1f8] sm:$0xff]  ;;  %v267_v54 = vld [vmem:[%s7064_s25 + $0x208] sm:$0xff] }
  0x6f   : > { %v1034_v5 = vmul.f32 %v7456_v51, %v515_v55  ;;  %v2289_v6 = vpack.c.bf16 %v1803_v50, %v1802_v49  ;;  %v1294_v7 = vadd.f32 %v7437_v34, %v775_v52  ;;  %v1295_v8 = vadd.f32 %v7437_v34, %v776_v53  ;;  %v266_v53 = vld [vmem:[%s7064_s25 + $0x200] sm:$0xff] }
  0x70   : > { %6516 = vmatmul.mubr.msk.bf16.gmra.mxu0 %vm2521_vm1, %v2287_v32  ;;  %v2290_v9 = vpack.c.bf16 %v1805_v57, %v1804_v56  ;;  %v1296_v10 = vadd.f32 %v7437_v34, %v777_v58  ;;  %v1297_v11 = vadd.f32 %v7437_v34, %v778_v59  ;;  %v2417_v14 = vpack.c.bf16 %v2059_v61, %v2058_v60  ;;  %v520_v58 = vld [vmem:[%s7064_s25 + $0x9f0] sm:$0xff]  ;;  %v521_v59 = vld [vmem:[%s7064_s25 + $0x9f8] sm:$0xff] }
  0x71   : > { %6519 = vmatprep.mubr.msk.bf16.mxu0 %vm2521_vm1, %v2288_v36  ;;  %v1550_v15 = vadd.f32 %v7437_v34, %v1031_v62  ;;  %v1551_v16 = vadd.f32 %v7437_v34, %v1032_v63  ;;  %v2418_v19 = vpack.c.bf16 %v2061_v1, %v2060_v0  ;;  %v1552_v20 = vadd.f32 %v7437_v34, %v1033_v4  ;;  %v522_v0 = vld [vmem:[%s7064_s25 + $0xa00] sm:$0xff]  ;;  %v523_v1 = vld [vmem:[%s7064_s25 + $0xa08] sm:$0xff] }
  0x72   : > { %6772 = vmatmul.mubr.msk.bf16.gmra.mxu1 %vm2521_vm1, %v2415_v2  ;;  %v1553_v21 = vadd.f32 %v7437_v34, %v1034_v5  ;;  %v1806_v24 = vmax.f32 %v1294_v7, 0.0  ;;  %v1807_v25 = vmax.f32 %v1295_v8, 0.0  ;;  %v779_v26 = vmul.f32 %v7456_v51, %v260_v12 }
  0x73   : > { %6775 = vmatprep.mubr.msk.bf16.mxu1 %vm2521_vm1, %v2416_v44  ;;  %v780_v27 = vmul.f32 %v7456_v51, %v261_v13  ;;  %v1808_v30 = vmax.f32 %v1296_v10, 0.0  ;;  %v1809_v31 = vmax.f32 %v1297_v11, 0.0  ;;  %v781_v32 = vmul.f32 %v7456_v51, %v262_v17 }
  0x74   : > { %v782_v33 = vmul.f32 %v7456_v51, %v263_v18  ;;  %v2062_v35 = vmax.f32 %v1550_v15, 0.0  ;;  %v2063_v36 = vmax.f32 %v1551_v16, 0.0  ;;  %v1035_v37 = vmul.f32 %v7456_v51, %v516_v22  ;;  %v268_v22 = vld [vmem:[%s7064_s25 + $0x210] sm:$0xff] }
  0x75   : > { %v1036_v38 = vmul.f32 %v7456_v51, %v517_v23  ;;  %v2064_v39 = vmax.f32 %v1552_v20, 0.0  ;;  %v2065_v40 = vmax.f32 %v1553_v21, 0.0  ;;  %v1037_v2 = vmul.f32 %v7456_v51, %v518_v28  ;;  %v269_v23 = vld [vmem:[%s7064_s25 + $0x218] sm:$0xff]  ;;  %v271_v28 = vld [vmem:[%s7064_s25 + $0x228] sm:$0xff] }
  0x76   : > { %v1038_v3 = vmul.f32 %v7456_v51, %v519_v29  ;;  %v2291_v41 = vpack.c.bf16 %v1807_v25, %v1806_v24  ;;  %v1298_v42 = vadd.f32 %v7437_v34, %v779_v26  ;;  %v1299_v43 = vadd.f32 %v7437_v34, %v780_v27  ;;  %v270_v27 = vld [vmem:[%s7064_s25 + $0x220] sm:$0xff] }
  0x77   : > { %v2292_v44 = vpack.c.bf16 %v1809_v31, %v1808_v30  ;;  %v1300_v45 = vadd.f32 %v7437_v34, %v781_v32  ;;  %v1301_v46 = vadd.f32 %v7437_v34, %v782_v33  ;;  %v2419_v49 = vpack.c.bf16 %v2063_v36, %v2062_v35  ;;  %v524_v32 = vld [vmem:[%s7064_s25 + $0xa10] sm:$0xff]  ;;  %v525_v33 = vld [vmem:[%s7064_s25 + $0xa18] sm:$0xff] }
  0x78   : > { %6520 = vmatmul.mubr.msk.bf16.gmra.mxu0 %vm2521_vm1, %v2289_v6  ;;  %v1554_v50 = vadd.f32 %v7437_v34, %v1035_v37  ;;  %v1555_v52 = vadd.f32 %v7437_v34, %v1036_v38  ;;  %v2420_v55 = vpack.c.bf16 %v2065_v40, %v2064_v39  ;;  %v1556_v56 = vadd.f32 %v7437_v34, %v1037_v2  ;;  %v526_v39 = vld [vmem:[%s7064_s25 + $0xa20] sm:$0xff]  ;;  %v527_v40 = vld [vmem:[%s7064_s25 + $0xa28] sm:$0xff] }
  0x79   : > { %6523 = vmatprep.mubr.msk.bf16.mxu0 %vm2521_vm1, %v2290_v9  ;;  %v1557_v57 = vadd.f32 %v7437_v34, %v1038_v3  ;;  %v1810_v60 = vmax.f32 %v1298_v42, 0.0  ;;  %v1811_v61 = vmax.f32 %v1299_v43, 0.0  ;;  %v783_v62 = vmul.f32 %v7456_v51, %v264_v47 }
  0x7a   : > { %6776 = vmatmul.mubr.msk.bf16.gmra.mxu1 %vm2521_vm1, %v2417_v14  ;;  %v784_v63 = vmul.f32 %v7456_v51, %v265_v48  ;;  %v1812_v4 = vmax.f32 %v1300_v45, 0.0  ;;  %v1813_v5 = vmax.f32 %v1301_v46, 0.0  ;;  %v785_v6 = vmul.f32 %v7456_v51, %v266_v53 }
  0x7b   : > { %6779 = vmatprep.mubr.msk.bf16.mxu1 %vm2521_vm1, %v2418_v19  ;;  %v786_v7 = vmul.f32 %v7456_v51, %v267_v54  ;;  %v2066_v8 = vmax.f32 %v1554_v50, 0.0  ;;  %v2067_v9 = vmax.f32 %v1555_v52, 0.0  ;;  %v1039_v10 = vmul.f32 %v7456_v51, %v520_v58  ;;  %v272_v58 = vld [vmem:[%s7064_s25 + $0x230] sm:$0xff] }
  0x7c   : > { %v1040_v11 = vmul.f32 %v7456_v51, %v521_v59  ;;  %v2068_v12 = vmax.f32 %v1556_v56, 0.0  ;;  %v2069_v13 = vmax.f32 %v1557_v57, 0.0  ;;  %v1041_v14 = vmul.f32 %v7456_v51, %v522_v0  ;;  %v273_v59 = vld [vmem:[%s7064_s25 + $0x238] sm:$0xff]  ;;  %v275_v0 = vld [vmem:[%s7064_s25 + $0x248] sm:$0xff] }
  0x7d   : > { %v1042_v15 = vmul.f32 %v7456_v51, %v523_v1  ;;  %v2293_v16 = vpack.c.bf16 %v1811_v61, %v1810_v60  ;;  %v1302_v17 = vadd.f32 %v7437_v34, %v783_v62  ;;  %v1303_v18 = vadd.f32 %v7437_v34, %v784_v63  ;;  %v274_v63 = vld [vmem:[%s7064_s25 + $0x240] sm:$0xff] }
  0x7e   : > { %v2294_v19 = vpack.c.bf16 %v1813_v5, %v1812_v4  ;;  %v1304_v20 = vadd.f32 %v7437_v34, %v785_v6  ;;  %v1305_v21 = vadd.f32 %v7437_v34, %v786_v7  ;;  %v2421_v24 = vpack.c.bf16 %v2067_v9, %v2066_v8  ;;  %v528_v6 = vld [vmem:[%s7064_s25 + $0xa30] sm:$0xff]  ;;  %v529_v7 = vld [vmem:[%s7064_s25 + $0xa38] sm:$0xff] }
  0x7f   : > { %v1558_v25 = vadd.f32 %v7437_v34, %v1039_v10  ;;  %v1559_v26 = vadd.f32 %v7437_v34, %v1040_v11  ;;  %v2422_v29 = vpack.c.bf16 %v2069_v13, %v2068_v12  ;;  %v1560_v30 = vadd.f32 %v7437_v34, %v1041_v14  ;;  %v530_v12 = vld [vmem:[%s7064_s25 + $0xa40] sm:$0xff]  ;;  %v531_v13 = vld [vmem:[%s7064_s25 + $0xa48] sm:$0xff] }
  0x80   : > { %6524 = vmatmul.mubr.msk.bf16.gmra.mxu0 %vm2521_vm1, %v2291_v41  ;;  %v1561_v31 = vadd.f32 %v7437_v34, %v1042_v15  ;;  %v1814_v35 = vmax.f32 %v1302_v17, 0.0  ;;  %v1815_v36 = vmax.f32 %v1303_v18, 0.0  ;;  %v787_v37 = vmul.f32 %v7456_v51, %v268_v22 }
  0x81   : > { %6527 = vmatprep.mubr.msk.bf16.mxu0 %vm2521_vm1, %v2292_v44  ;;  %v788_v38 = vmul.f32 %v7456_v51, %v269_v23  ;;  %v1816_v2 = vmax.f32 %v1304_v20, 0.0  ;;  %v1817_v3 = vmax.f32 %v1305_v21, 0.0  ;;  %v789_v41 = vmul.f32 %v7456_v51, %v270_v27 }
  0x82   : > { %6780 = vmatmul.mubr.msk.bf16.gmra.mxu1 %vm2521_vm1, %v2419_v49  ;;  %v790_v42 = vmul.f32 %v7456_v51, %v271_v28  ;;  %v2070_v43 = vmax.f32 %v1558_v25, 0.0  ;;  %v2071_v44 = vmax.f32 %v1559_v26, 0.0  ;;  %v1043_v45 = vmul.f32 %v7456_v51, %v524_v32  ;;  %v276_v32 = vld [vmem:[%s7064_s25 + $0x250] sm:$0xff] }
  0x83   : > { %6783 = vmatprep.mubr.msk.bf16.mxu1 %vm2521_vm1, %v2420_v55  ;;  %v1044_v46 = vmul.f32 %v7456_v51, %v525_v33  ;;  %v2072_v47 = vmax.f32 %v1560_v30, 0.0  ;;  %v2073_v48 = vmax.f32 %v1561_v31, 0.0  ;;  %v1045_v49 = vmul.f32 %v7456_v51, %v526_v39  ;;  %v277_v33 = vld [vmem:[%s7064_s25 + $0x258] sm:$0xff]  ;;  %v279_v39 = vld [vmem:[%s7064_s25 + $0x268] sm:$0xff] }
  0x84   : > { %v1046_v50 = vmul.f32 %v7456_v51, %v527_v40  ;;  %v2295_v52 = vpack.c.bf16 %v1815_v36, %v1814_v35  ;;  %v1306_v53 = vadd.f32 %v7437_v34, %v787_v37  ;;  %v1307_v54 = vadd.f32 %v7437_v34, %v788_v38  ;;  %v278_v38 = vld [vmem:[%s7064_s25 + $0x260] sm:$0xff] }
  0x85   : > { %v2296_v55 = vpack.c.bf16 %v1817_v3, %v1816_v2  ;;  %v1308_v56 = vadd.f32 %v7437_v34, %v789_v41  ;;  %v1309_v57 = vadd.f32 %v7437_v34, %v790_v42  ;;  %v2423_v60 = vpack.c.bf16 %v2071_v44, %v2070_v43  ;;  %v532_v41 = vld [vmem:[%s7064_s25 + $0xa50] sm:$0xff]  ;;  %v533_v42 = vld [vmem:[%s7064_s25 + $0xa58] sm:$0xff] }
  0x86   : > { %v1562_v61 = vadd.f32 %v7437_v34, %v1043_v45  ;;  %v1563_v62 = vadd.f32 %v7437_v34, %v1044_v46  ;;  %v2424_v1 = vpack.c.bf16 %v2073_v48, %v2072_v47  ;;  %v1564_v4 = vadd.f32 %v7437_v34, %v1045_v49  ;;  %v534_v47 = vld [vmem:[%s7064_s25 + $0xa60] sm:$0xff]  ;;  %v535_v48 = vld [vmem:[%s7064_s25 + $0xa68] sm:$0xff] }
  0x87   : > { %v1565_v5 = vadd.f32 %v7437_v34, %v1046_v50  ;;  %v1818_v8 = vmax.f32 %v1306_v53, 0.0  ;;  %v1819_v9 = vmax.f32 %v1307_v54, 0.0  ;;  %v791_v10 = vmul.f32 %v7456_v51, %v272_v58 }
  0x88   : > { %6528 = vmatmul.mubr.msk.bf16.gmra.mxu0 %vm2521_vm1, %v2293_v16  ;;  %v792_v11 = vmul.f32 %v7456_v51, %v273_v59  ;;  %v1820_v14 = vmax.f32 %v1308_v56, 0.0  ;;  %v1821_v15 = vmax.f32 %v1309_v57, 0.0  ;;  %v793_v16 = vmul.f32 %v7456_v51, %v274_v63 }
  0x89   : > { %6531 = vmatprep.mubr.msk.bf16.mxu0 %vm2521_vm1, %v2294_v19  ;;  %v794_v17 = vmul.f32 %v7456_v51, %v275_v0  ;;  %v2074_v18 = vmax.f32 %v1562_v61, 0.0  ;;  %v2075_v19 = vmax.f32 %v1563_v62, 0.0  ;;  %v1047_v20 = vmul.f32 %v7456_v51, %v528_v6  ;;  %v280_v6 = vld [vmem:[%s7064_s25 + $0x270] sm:$0xff] }
  0x8a   : > { %6784 = vmatmul.mubr.msk.bf16.gmra.mxu1 %vm2521_vm1, %v2421_v24  ;;  %v1048_v21 = vmul.f32 %v7456_v51, %v529_v7  ;;  %v2076_v22 = vmax.f32 %v1564_v4, 0.0  ;;  %v2077_v23 = vmax.f32 %v1565_v5, 0.0  ;;  %v1049_v24 = vmul.f32 %v7456_v51, %v530_v12  ;;  %v281_v7 = vld [vmem:[%s7064_s25 + $0x278] sm:$0xff]  ;;  %v283_v12 = vld [vmem:[%s7064_s25 + $0x288] sm:$0xff] }
  0x8b   : > { %6787 = vmatprep.mubr.msk.bf16.mxu1 %vm2521_vm1, %v2422_v29  ;;  %v1050_v25 = vmul.f32 %v7456_v51, %v531_v13  ;;  %v2297_v26 = vpack.c.bf16 %v1819_v9, %v1818_v8  ;;  %v1310_v27 = vadd.f32 %v7437_v34, %v791_v10  ;;  %v1311_v28 = vadd.f32 %v7437_v34, %v792_v11  ;;  %v282_v11 = vld [vmem:[%s7064_s25 + $0x280] sm:$0xff] }
  0x8c   : > { %v2298_v29 = vpack.c.bf16 %v1821_v15, %v1820_v14  ;;  %v1312_v30 = vadd.f32 %v7437_v34, %v793_v16  ;;  %v1313_v31 = vadd.f32 %v7437_v34, %v794_v17  ;;  %v2425_v35 = vpack.c.bf16 %v2075_v19, %v2074_v18  ;;  %v536_v16 = vld [vmem:[%s7064_s25 + $0xa70] sm:$0xff]  ;;  %v537_v17 = vld [vmem:[%s7064_s25 + $0xa78] sm:$0xff] }
  0x8d   : > { %v1566_v36 = vadd.f32 %v7437_v34, %v1047_v20  ;;  %v1567_v37 = vadd.f32 %v7437_v34, %v1048_v21  ;;  %v2426_v40 = vpack.c.bf16 %v2077_v23, %v2076_v22  ;;  %v1568_v2 = vadd.f32 %v7437_v34, %v1049_v24  ;;  %v538_v22 = vld [vmem:[%s7064_s25 + $0xa80] sm:$0xff]  ;;  %v539_v23 = vld [vmem:[%s7064_s25 + $0xa88] sm:$0xff] }
  0x8e   : > { %v1569_v3 = vadd.f32 %v7437_v34, %v1050_v25  ;;  %v1822_v43 = vmax.f32 %v1310_v27, 0.0  ;;  %v1823_v44 = vmax.f32 %v1311_v28, 0.0  ;;  %v795_v45 = vmul.f32 %v7456_v51, %v276_v32 }
  0x8f   : > { %v796_v46 = vmul.f32 %v7456_v51, %v277_v33  ;;  %v1824_v49 = vmax.f32 %v1312_v30, 0.0  ;;  %v1825_v50 = vmax.f32 %v1313_v31, 0.0  ;;  %v798_v53 = vmul.f32 %v7456_v51, %v279_v39 }
  0x90   : > { %6532 = vmatmul.mubr.msk.bf16.gmra.mxu0 %vm2521_vm1, %v2295_v52  ;;  %v797_v52 = vmul.f32 %v7456_v51, %v278_v38  ;;  %v2078_v54 = vmax.f32 %v1566_v36, 0.0  ;;  %v1051_v56 = vmul.f32 %v7456_v51, %v532_v41  ;;  %v1052_v57 = vmul.f32 %v7456_v51, %v533_v42  ;;  %v284_v41 = vld [vmem:[%s7064_s25 + $0x290] sm:$0xff]  ;;  %v285_v42 = vld [vmem:[%s7064_s25 + $0x298] sm:$0xff] }
  0x91   : > { %6535 = vmatprep.mubr.msk.bf16.mxu0 %vm2521_vm1, %v2296_v55  ;;  %v2079_v55 = vmax.f32 %v1567_v37, 0.0  ;;  %v2080_v58 = vmax.f32 %v1568_v2, 0.0  ;;  %v2081_v59 = vmax.f32 %v1569_v3, 0.0  ;;  %v1054_v61 = vmul.f32 %v7456_v51, %v535_v48 }
  0x92   : > { %6788 = vmatmul.mubr.msk.bf16.gmra.mxu1 %vm2521_vm1, %v2423_v60  ;;  %v1053_v60 = vmul.f32 %v7456_v51, %v534_v47  ;;  %v2299_v62 = vpack.c.bf16 %v1823_v44, %v1822_v43  ;;  %v1314_v63 = vadd.f32 %v7437_v34, %v795_v45  ;;  %v1315_v0 = vadd.f32 %v7437_v34, %v796_v46  ;;  %v286_v46 = vld [vmem:[%s7064_s25 + $0x2a0] sm:$0xff]  ;;  %v287_v47 = vld [vmem:[%s7064_s25 + $0x2a8] sm:$0xff] }
  0x93   : > { %6791 = vmatprep.mubr.msk.bf16.mxu1 %vm2521_vm1, %v2424_v1  ;;  %v2300_v1 = vpack.c.bf16 %v1825_v50, %v1824_v49  ;;  %v1316_v4 = vadd.f32 %v7437_v34, %v797_v52  ;;  %v1317_v5 = vadd.f32 %v7437_v34, %v798_v53  ;;  %v2427_v8 = vpack.c.bf16 %v2079_v55, %v2078_v54  ;;  %v540_v52 = vld [vmem:[%s7064_s25 + $0xa90] sm:$0xff]  ;;  %v541_v53 = vld [vmem:[%s7064_s25 + $0xa98] sm:$0xff] }
  0x94   : > { %v1570_v9 = vadd.f32 %v7437_v34, %v1051_v56  ;;  %v1571_v10 = vadd.f32 %v7437_v34, %v1052_v57  ;;  %v2428_v13 = vpack.c.bf16 %v2081_v59, %v2080_v58  ;;  %v1572_v14 = vadd.f32 %v7437_v34, %v1053_v60  ;;  %v542_v58 = vld [vmem:[%s7064_s25 + $0xaa0] sm:$0xff]  ;;  %v543_v59 = vld [vmem:[%s7064_s25 + $0xaa8] sm:$0xff] }
  0x95   : > { %v1573_v15 = vadd.f32 %v7437_v34, %v1054_v61  ;;  %v1826_v18 = vmax.f32 %v1314_v63, 0.0  ;;  %v1827_v19 = vmax.f32 %v1315_v0, 0.0  ;;  %v799_v20 = vmul.f32 %v7456_v51, %v280_v6 }
  0x96   : > { %v800_v21 = vmul.f32 %v7456_v51, %v281_v7  ;;  %v1828_v24 = vmax.f32 %v1316_v4, 0.0  ;;  %v1829_v25 = vmax.f32 %v1317_v5, 0.0  ;;  %v802_v27 = vmul.f32 %v7456_v51, %v283_v12 }
  0x97   : > { %v2082_v28 = vmax.f32 %v1570_v9, 0.0  ;;  %v1055_v30 = vmul.f32 %v7456_v51, %v536_v16  ;;  %v1056_v31 = vmul.f32 %v7456_v51, %v537_v17  ;;  %v2084_v32 = vmax.f32 %v1572_v14, 0.0  ;;  %v288_v16 = vld [vmem:[%s7064_s25 + $0x2b0] sm:$0xff]  ;;  %v289_v17 = vld [vmem:[%s7064_s25 + $0x2b8] sm:$0xff] }
  0x98   : > { %6536 = vmatmul.mubr.msk.bf16.gmra.mxu0 %vm2521_vm1, %v2297_v26  ;;  %v801_v26 = vmul.f32 %v7456_v51, %v282_v11  ;;  %v2085_v33 = vmax.f32 %v1573_v15, 0.0  ;;  %v1058_v36 = vmul.f32 %v7456_v51, %v539_v23  ;;  %v2301_v37 = vpack.c.bf16 %v1827_v19, %v1826_v18 }
  0x99   : > { %6539 = vmatprep.mubr.msk.bf16.mxu0 %vm2521_vm1, %v2298_v29  ;;  %v2083_v29 = vmax.f32 %v1571_v10, 0.0  ;;  %v1318_v38 = vadd.f32 %v7437_v34, %v799_v20  ;;  %v1319_v39 = vadd.f32 %v7437_v34, %v800_v21  ;;  %v1321_v3 = vadd.f32 %v7437_v34, %v802_v27  ;;  %v290_v21 = vld [vmem:[%s7064_s25 + $0x2c0] sm:$0xff]  ;;  %v545_v27 = vld [vmem:[%s7064_s25 + $0xab8] sm:$0xff] }
  0x9a   : > { %6792 = vmatmul.mubr.msk.bf16.gmra.mxu1 %vm2521_vm1, %v2425_v35  ;;  %v1057_v35 = vmul.f32 %v7456_v51, %v538_v22  ;;  %v1320_v2 = vadd.f32 %v7437_v34, %v801_v26  ;;  %v1574_v44 = vadd.f32 %v7437_v34, %v1055_v30  ;;  %v1575_v45 = vadd.f32 %v7437_v34, %v1056_v31  ;;  %v291_v22 = vld [vmem:[%s7064_s25 + $0x2c8] sm:$0xff]  ;;  %v544_v26 = vld [vmem:[%s7064_s25 + $0xab0] sm:$0xff] }
  0x9b   : > { %6795 = vmatprep.mubr.msk.bf16.mxu1 %vm2521_vm1, %v2426_v40  ;;  %v2302_v40 = vpack.c.bf16 %v1829_v25, %v1828_v24  ;;  %v2429_v43 = vpack.c.bf16 %v2083_v29, %v2082_v28  ;;  %v2430_v48 = vpack.c.bf16 %v2085_v33, %v2084_v32  ;;  %v1577_v50 = vadd.f32 %v7437_v34, %v1058_v36  ;;  %v546_v32 = vld [vmem:[%s7064_s25 + $0xac0] sm:$0xff]  ;;  %v547_v33 = vld [vmem:[%s7064_s25 + $0xac8] sm:$0xff] }
  0x9c   : > { %v1576_v49 = vadd.f32 %v7437_v34, %v1057_v35  ;;  %v1830_v54 = vmax.f32 %v1318_v38, 0.0  ;;  %v1831_v55 = vmax.f32 %v1319_v39, 0.0  ;;  %v803_v56 = vmul.f32 %v7456_v51, %v284_v41 }
  0x9d   : > { %v804_v57 = vmul.f32 %v7456_v51, %v285_v42  ;;  %v1832_v60 = vmax.f32 %v1320_v2, 0.0  ;;  %v1833_v61 = vmax.f32 %v1321_v3, 0.0  ;;  %v806_v63 = vmul.f32 %v7456_v51, %v287_v47 }
  0x9e   : > { %v2086_v0 = vmax.f32 %v1574_v44, 0.0  ;;  %v1059_v4 = vmul.f32 %v7456_v51, %v540_v52  ;;  %v1060_v5 = vmul.f32 %v7456_v51, %v541_v53  ;;  %v2088_v6 = vmax.f32 %v1576_v49, 0.0  ;;  %v292_v52 = vld [vmem:[%s7064_s25 + $0x2d0] sm:$0xff]  ;;  %v293_v53 = vld [vmem:[%s7064_s25 + $0x2d8] sm:$0xff] }
  0x9f   : > { %v2089_v7 = vmax.f32 %v1577_v50, 0.0  ;;  %v1062_v9 = vmul.f32 %v7456_v51, %v543_v59  ;;  %v2303_v10 = vpack.c.bf16 %v1831_v55, %v1830_v54  ;;  %v1322_v11 = vadd.f32 %v7437_v34, %v803_v56 }
  0xa0   : > { %6540 = vmatmul.mubr.msk.bf16.gmra.mxu0 %vm2521_vm1, %v2299_v62  ;;  %v805_v62 = vmul.f32 %v7456_v51, %v286_v46  ;;  %v1323_v12 = vadd.f32 %v7437_v34, %v804_v57  ;;  %v1325_v15 = vadd.f32 %v7437_v34, %v806_v63  ;;  %v1578_v19 = vadd.f32 %v7437_v34, %v1059_v4  ;;  %v294_v57 = vld [vmem:[%s7064_s25 + $0x2e0] sm:$0xff]  ;;  %v549_v63 = vld [vmem:[%s7064_s25 + $0xad8] sm:$0xff] }
  0xa1   : > { %6543 = vmatprep.mubr.msk.bf16.mxu0 %vm2521_vm1, %v2300_v1  ;;  %v2087_v1 = vmax.f32 %v1575_v45, 0.0  ;;  %v1579_v20 = vadd.f32 %v7437_v34, %v1060_v5  ;;  %v2432_v23 = vpack.c.bf16 %v2089_v7, %v2088_v6  ;;  %v1581_v25 = vadd.f32 %v7437_v34, %v1062_v9  ;;  %v550_v6 = vld [vmem:[%s7064_s25 + $0xae0] sm:$0xff]  ;;  %v551_v7 = vld [vmem:[%s7064_s25 + $0xae8] sm:$0xff] }
  0xa2   : > { %6796 = vmatmul.mubr.msk.bf16.gmra.mxu1 %vm2521_vm1, %v2427_v8  ;;  %v1061_v8 = vmul.f32 %v7456_v51, %v542_v58  ;;  %v1324_v14 = vadd.f32 %v7437_v34, %v805_v62  ;;  %v1834_v28 = vmax.f32 %v1322_v11, 0.0  ;;  %v1835_v29 = vmax.f32 %v1323_v12, 0.0  ;;  %v295_v58 = vld [vmem:[%s7064_s25 + $0x2e8] sm:$0xff]  ;;  %v548_v62 = vld [vmem:[%s7064_s25 + $0xad0] sm:$0xff] }
  0xa3   : > { %6799 = vmatprep.mubr.msk.bf16.mxu1 %vm2521_vm1, %v2428_v13  ;;  %v2304_v13 = vpack.c.bf16 %v1833_v61, %v1832_v60  ;;  %v2431_v18 = vpack.c.bf16 %v2087_v1, %v2086_v0  ;;  %v807_v30 = vmul.f32 %v7456_v51, %v288_v16  ;;  %v808_v31 = vmul.f32 %v7456_v51, %v289_v17 }
  0xa4   : > { %v1580_v24 = vadd.f32 %v7437_v34, %v1061_v8  ;;  %v1836_v35 = vmax.f32 %v1324_v14, 0.0  ;;  %v1837_v36 = vmax.f32 %v1325_v15, 0.0  ;;  %v810_v38 = vmul.f32 %v7456_v51, %v291_v22 }
  0xa5   : > { %v2090_v39 = vmax.f32 %v1578_v19, 0.0  ;;  %v1063_v2 = vmul.f32 %v7456_v51, %v544_v26  ;;  %v1064_v3 = vmul.f32 %v7456_v51, %v545_v27  ;;  %v2093_v42 = vmax.f32 %v1581_v25, 0.0  ;;  %v296_v26 = vld [vmem:[%s7064_s25 + $0x2f0] sm:$0xff]  ;;  %v297_v27 = vld [vmem:[%s7064_s25 + $0x2f8] sm:$0xff] }
  0xa6   : > { %v2092_v41 = vmax.f32 %v1580_v24, 0.0  ;;  %v1066_v44 = vmul.f32 %v7456_v51, %v547_v33  ;;  %v2305_v45 = vpack.c.bf16 %v1835_v29, %v1834_v28  ;;  %v1326_v46 = vadd.f32 %v7437_v34, %v807_v30 }
  0xa7   : > { %v1327_v47 = vadd.f32 %v7437_v34, %v808_v31  ;;  %v1329_v50 = vadd.f32 %v7437_v34, %v810_v38  ;;  %v1582_v55 = vadd.f32 %v7437_v34, %v1063_v2  ;;  %v1583_v56 = vadd.f32 %v7437_v34, %v1064_v3  ;;  %v298_v31 = vld [vmem:[%s7064_s25 + $0x300] sm:$0xff]  ;;  %v553_v38 = vld [vmem:[%s7064_s25 + $0xaf8] sm:$0xff] }
  0xa8   : > { %6544 = vmatmul.mubr.msk.bf16.gmra.mxu0 %vm2521_vm1, %v2301_v37  ;;  %v809_v37 = vmul.f32 %v7456_v51, %v290_v21  ;;  %v2434_v59 = vpack.c.bf16 %v2093_v42, %v2092_v41  ;;  %v1585_v61 = vadd.f32 %v7437_v34, %v1066_v44  ;;  %v1838_v0 = vmax.f32 %v1326_v46, 0.0  ;;  %v554_v41 = vld [vmem:[%s7064_s25 + $0xb00] sm:$0xff]  ;;  %v555_v42 = vld [vmem:[%s7064_s25 + $0xb08] sm:$0xff] }
  0xa9   : > { %6547 = vmatprep.mubr.msk.bf16.mxu0 %vm2521_vm1, %v2302_v40  ;;  %v2091_v40 = vmax.f32 %v1579_v20, 0.0  ;;  %v1839_v1 = vmax.f32 %v1327_v47, 0.0  ;;  %v811_v4 = vmul.f32 %v7456_v51, %v292_v52  ;;  %v812_v5 = vmul.f32 %v7456_v51, %v293_v53 }
  0xaa   : > { %6800 = vmatmul.mubr.msk.bf16.gmra.mxu1 %vm2521_vm1, %v2429_v43  ;;  %v1065_v43 = vmul.f32 %v7456_v51, %v546_v32  ;;  %v1328_v49 = vadd.f32 %v7437_v34, %v809_v37  ;;  %v1841_v9 = vmax.f32 %v1329_v50, 0.0  ;;  %v814_v11 = vmul.f32 %v7456_v51, %v295_v58  ;;  %v299_v32 = vld [vmem:[%s7064_s25 + $0x308] sm:$0xff]  ;;  %v552_v37 = vld [vmem:[%s7064_s25 + $0xaf0] sm:$0xff] }
  0xab   : > { %6803 = vmatprep.mubr.msk.bf16.mxu1 %vm2521_vm1, %v2430_v48  ;;  %v2306_v48 = vpack.c.bf16 %v1837_v36, %v1836_v35  ;;  %v2433_v54 = vpack.c.bf16 %v2091_v40, %v2090_v39  ;;  %v2094_v12 = vmax.f32 %v1582_v55, 0.0  ;;  %v1067_v14 = vmul.f32 %v7456_v51, %v548_v62  ;;  %v300_v62 = vld [vmem:[%s7064_s25 + $0x310] sm:$0xff] }
  0xac   : > { %v1584_v60 = vadd.f32 %v7437_v34, %v1065_v43  ;;  %v1840_v8 = vmax.f32 %v1328_v49, 0.0  ;;  %v1068_v15 = vmul.f32 %v7456_v51, %v549_v63  ;;  %v2097_v17 = vmax.f32 %v1585_v61, 0.0  ;;  %v301_v63 = vld [vmem:[%s7064_s25 + $0x318] sm:$0xff] }
  0xad   : > { %v1070_v19 = vmul.f32 %v7456_v51, %v551_v7  ;;  %v2307_v20 = vpack.c.bf16 %v1839_v1, %v1838_v0  ;;  %v1330_v21 = vadd.f32 %v7437_v34, %v811_v4  ;;  %v1331_v22 = vadd.f32 %v7437_v34, %v812_v5  ;;  %v302_v5 = vld [vmem:[%s7064_s25 + $0x320] sm:$0xff] }
  0xae   : > { %v2096_v16 = vmax.f32 %v1584_v60, 0.0  ;;  %v1333_v25 = vadd.f32 %v7437_v34, %v814_v11  ;;  %v1586_v29 = vadd.f32 %v7437_v34, %v1067_v14  ;;  %v1587_v30 = vadd.f32 %v7437_v34, %v1068_v15  ;;  %v557_v11 = vld [vmem:[%s7064_s25 + $0xb18] sm:$0xff] }
  0xaf   : > { %v1589_v36 = vadd.f32 %v7437_v34, %v1070_v19  ;;  %v1842_v39 = vmax.f32 %v1330_v21, 0.0  ;;  %v1843_v40 = vmax.f32 %v1331_v22, 0.0  ;;  %v815_v2 = vmul.f32 %v7456_v51, %v296_v26 }
  0xb0   : > { %6548 = vmatmul.mubr.msk.bf16.gmra.mxu0 %vm2521_vm1, %v2303_v10  ;;  %v813_v10 = vmul.f32 %v7456_v51, %v294_v57  ;;  %v2436_v33 = vpack.c.bf16 %v2097_v17, %v2096_v16  ;;  %v816_v3 = vmul.f32 %v7456_v51, %v297_v27  ;;  %v1845_v44 = vmax.f32 %v1333_v25, 0.0  ;;  %v558_v16 = vld [vmem:[%s7064_s25 + $0xb20] sm:$0xff]  ;;  %v559_v17 = vld [vmem:[%s7064_s25 + $0xb28] sm:$0xff] }
  0xb1   : > { %6551 = vmatprep.mubr.msk.bf16.mxu0 %vm2521_vm1, %v2304_v13  ;;  %v2095_v13 = vmax.f32 %v1583_v56, 0.0  ;;  %v818_v46 = vmul.f32 %v7456_v51, %v299_v32  ;;  %v2098_v47 = vmax.f32 %v1586_v29, 0.0  ;;  %v1071_v49 = vmul.f32 %v7456_v51, %v552_v37  ;;  %v304_v37 = vld [vmem:[%s7064_s25 + $0x330] sm:$0xff] }
  0xb2   : > { %6804 = vmatmul.mubr.msk.bf16.gmra.mxu1 %vm2521_vm1, %v2431_v18  ;;  %v1069_v18 = vmul.f32 %v7456_v51, %v550_v6  ;;  %v1332_v24 = vadd.f32 %v7437_v34, %v813_v10  ;;  %v1072_v50 = vmul.f32 %v7456_v51, %v553_v38  ;;  %v2101_v53 = vmax.f32 %v1589_v36, 0.0  ;;  %v303_v6 = vld [vmem:[%s7064_s25 + $0x328] sm:$0xff]  ;;  %v556_v10 = vld [vmem:[%s7064_s25 + $0xb10] sm:$0xff]  ;;  %v305_v38 = vld [vmem:[%s7064_s25 + $0x338] sm:$0xff] }
  0xb3   : > { %6807 = vmatprep.mubr.msk.bf16.mxu1 %vm2521_vm1, %v2432_v23  ;;  %v2308_v23 = vpack.c.bf16 %v1841_v9, %v1840_v8  ;;  %v2435_v28 = vpack.c.bf16 %v2095_v13, %v2094_v12  ;;  %v1074_v55 = vmul.f32 %v7456_v51, %v555_v42  ;;  %v2309_v56 = vpack.c.bf16 %v1843_v40, %v1842_v39 }
  0xb4   : > { %v1588_v35 = vadd.f32 %v7437_v34, %v1069_v18  ;;  %v1844_v43 = vmax.f32 %v1332_v24, 0.0  ;;  %v1334_v57 = vadd.f32 %v7437_v34, %v815_v2  ;;  %v1335_v58 = vadd.f32 %v7437_v34, %v816_v3  ;;  %v306_v3 = vld [vmem:[%s7064_s25 + $0x340] sm:$0xff] }
  0xb5   : > { %v1337_v61 = vadd.f32 %v7437_v34, %v818_v46  ;;  %v1590_v1 = vadd.f32 %v7437_v34, %v1071_v49  ;;  %v1591_v4 = vadd.f32 %v7437_v34, %v1072_v50  ;;  %v1593_v9 = vadd.f32 %v7437_v34, %v1074_v55  ;;  %v561_v46 = vld [vmem:[%s7064_s25 + $0xb38] sm:$0xff] }
  0xb6   : > { %v2100_v52 = vmax.f32 %v1588_v35, 0.0  ;;  %v1846_v12 = vmax.f32 %v1334_v57, 0.0  ;;  %v1847_v13 = vmax.f32 %v1335_v58, 0.0  ;;  %v819_v14 = vmul.f32 %v7456_v51, %v300_v62 }
  0xb7   : > { %v820_v15 = vmul.f32 %v7456_v51, %v301_v63  ;;  %v1849_v19 = vmax.f32 %v1337_v61, 0.0  ;;  %v822_v21 = vmul.f32 %v7456_v51, %v303_v6  ;;  %v2102_v22 = vmax.f32 %v1590_v1, 0.0 }
  0xb8   : > { %6552 = vmatmul.mubr.msk.bf16.gmra.mxu0 %vm2521_vm1, %v2305_v45  ;;  %v817_v45 = vmul.f32 %v7456_v51, %v298_v31  ;;  %v2438_v7 = vpack.c.bf16 %v2101_v53, %v2100_v52  ;;  %v1075_v24 = vmul.f32 %v7456_v51, %v556_v10  ;;  %v1076_v25 = vmul.f32 %v7456_v51, %v557_v11  ;;  %v562_v52 = vld [vmem:[%s7064_s25 + $0xb40] sm:$0xff]  ;;  %v563_v53 = vld [vmem:[%s7064_s25 + $0xb48] sm:$0xff]  ;;  %v308_v10 = vld [vmem:[%s7064_s25 + $0x350] sm:$0xff] }
  0xb9   : > { %6555 = vmatprep.mubr.msk.bf16.mxu0 %vm2521_vm1, %v2306_v48  ;;  %v2099_v48 = vmax.f32 %v1587_v30, 0.0  ;;  %v2105_v27 = vmax.f32 %v1593_v9, 0.0  ;;  %v1078_v29 = vmul.f32 %v7456_v51, %v559_v17  ;;  %v2311_v30 = vpack.c.bf16 %v1847_v13, %v1846_v12  ;;  %v309_v11 = vld [vmem:[%s7064_s25 + $0x358] sm:$0xff] }
  0xba   : > { %6808 = vmatmul.mubr.msk.bf16.gmra.mxu1 %vm2521_vm1, %v2433_v54  ;;  %v1073_v54 = vmul.f32 %v7456_v51, %v554_v41  ;;  %v1336_v60 = vadd.f32 %v7437_v34, %v817_v45  ;;  %v1338_v31 = vadd.f32 %v7437_v34, %v819_v14  ;;  %v1339_v32 = vadd.f32 %v7437_v34, %v820_v15  ;;  %v307_v41 = vld [vmem:[%s7064_s25 + $0x348] sm:$0xff]  ;;  %v560_v45 = vld [vmem:[%s7064_s25 + $0xb30] sm:$0xff]  ;;  %v310_v14 = vld [vmem:[%s7064_s25 + $0x360] sm:$0xff] }
  0xbb   : > { %6811 = vmatprep.mubr.msk.bf16.mxu1 %vm2521_vm1, %v2434_v59  ;;  %v2310_v59 = vpack.c.bf16 %v1845_v44, %v1844_v43  ;;  %v2437_v0 = vpack.c.bf16 %v2099_v48, %v2098_v47  ;;  %v1341_v36 = vadd.f32 %v7437_v34, %v822_v21  ;;  %v1594_v40 = vadd.f32 %v7437_v34, %v1075_v24  ;;  %v311_v15 = vld [vmem:[%s7064_s25 + $0x368] sm:$0xff]  ;;  %v7837_v24 = vld [vmem:[%s9436_s1] ss:$0 sm:$0xff] }
  0xbc   : > { %v1592_v8 = vadd.f32 %v7437_v34, %v1073_v54  ;;  %v1848_v18 = vmax.f32 %v1336_v60, 0.0  ;;  %v1595_v2 = vadd.f32 %v7437_v34, %v1076_v25  ;;  %v1597_v44 = vadd.f32 %v7437_v34, %v1078_v29 }
  0xbd   : > { %v1850_v47 = vmax.f32 %v1338_v31, 0.0  ;;  %v1851_v48 = vmax.f32 %v1339_v32, 0.0  ;;  %v823_v49 = vmul.f32 %v7456_v51, %v304_v37  ;;  %v824_v50 = vmul.f32 %v7456_v51, %v305_v38 }
  0xbe   : > { %v2104_v26 = vmax.f32 %v1592_v8, 0.0  ;;  %v1853_v55 = vmax.f32 %v1341_v36, 0.0  ;;  %v2106_v57 = vmax.f32 %v1594_v40, 0.0  ;;  %v2107_v58 = vmax.f32 %v1595_v2, 0.0 }
  0xbf   : > { %v1080_v60 = vmul.f32 %v7456_v51, %v561_v46  ;;  %v2109_v62 = vmax.f32 %v1597_v44, 0.0  ;;  %v1081_v63 = vmul.f32 %v7456_v51, %v562_v52  ;;  %v2313_v1 = vpack.c.bf16 %v1851_v48, %v1850_v47  ;;  %v313_v52 = vld [vmem:[%s7064_s25 + $0x378] sm:$0xff] }
  0xc0   : > { %6556 = vmatmul.mubr.msk.bf16.gmra.mxu0 %vm2521_vm1, %v2307_v20  ;;  %v821_v20 = vmul.f32 %v7456_v51, %v302_v5  ;;  %v2440_v42 = vpack.c.bf16 %v2105_v27, %v2104_v26  ;;  %v827_v25 = vmul.f32 %v7837_v24, %v308_v10  ;;  %v828_v26 = vmul.f32 %v7837_v24, %v309_v11  ;;  %v566_v27 = vld [vmem:[%s7064_s25 + $0xb60] sm:$0xff]  ;;  %v571_v10 = vld [vmem:[%s7064_s25 + $0xb88] sm:$0xff] }
  0xc1   : > { %6559 = vmatprep.mubr.msk.bf16.mxu0 %vm2521_vm1, %v2308_v23  ;;  %v2103_v23 = vmax.f32 %v1591_v4, 0.0  ;;  %v7810_v4 = vld [vmem:[%s9437_s2] ss:$0 sm:$0xff]  ;;  %v829_v31 = vmul.f32 %v7837_v24, %v310_v14  ;;  %v830_v32 = vmul.f32 %v7837_v24, %v311_v15 }
  0xc2   : > { %6812 = vmatmul.mubr.msk.bf16.gmra.mxu1 %vm2521_vm1, %v2435_v28  ;;  %v1077_v28 = vmul.f32 %v7456_v51, %v558_v16  ;;  %v1340_v35 = vadd.f32 %v7437_v34, %v821_v20  ;;  %v1342_v5 = vadd.f32 %v7810_v4, %v823_v49  ;;  %v1343_v6 = vadd.f32 %v7810_v4, %v824_v50  ;;  %v565_v20 = vld [vmem:[%s7064_s25 + $0xb58] sm:$0xff]  ;;  %v312_v50 = vld [vmem:[%s7064_s25 + $0x370] sm:$0xff] }
  0xc3   : > { %6815 = vmatprep.mubr.msk.bf16.mxu1 %vm2521_vm1, %v2436_v33  ;;  %v2312_v33 = vpack.c.bf16 %v1849_v19, %v1848_v18  ;;  %v2439_v39 = vpack.c.bf16 %v2103_v23, %v2102_v22  ;;  %v1599_v13 = vadd.f32 %v7810_v4, %v1080_v60  ;;  %v1600_v17 = vadd.f32 %v7810_v4, %v1081_v63  ;;  %v564_v19 = vld [vmem:[%s7064_s25 + $0xb50] sm:$0xff]  ;;  %v569_v63 = vld [vmem:[%s7064_s25 + $0xb78] sm:$0xff] }
  0xc4   : > { %v1596_v43 = vadd.f32 %v7437_v34, %v1077_v28  ;;  %v1852_v54 = vmax.f32 %v1340_v35, 0.0  ;;  %v826_v34 = vmul.f32 %v7456_v51, %v307_v41  ;;  %v1854_v22 = vmax.f32 %v1342_v5, 0.0  ;;  %v567_v28 = vld [vmem:[%s7064_s25 + $0xb68] sm:$0xff] }
  0xc5   : > { %v1855_v23 = vmax.f32 %v1343_v6, 0.0  ;;  %v2111_v37 = vmax.f32 %v1599_v13, 0.0  ;;  %v1083_v38 = vmul.f32 %v7837_v24, %v564_v19  ;;  %v2112_v40 = vmax.f32 %v1600_v17, 0.0 }
  0xc6   : > { %v2108_v61 = vmax.f32 %v1596_v43, 0.0  ;;  %v1345_v9 = vadd.f32 %v7810_v4, %v826_v34  ;;  %v1086_v41 = vmul.f32 %v7837_v24, %v567_v28  ;;  %v1347_v46 = vadd.f32 %v7810_v4, %v828_v26 }
  0xc7   : > { %v2315_v44 = vpack.c.bf16 %v1855_v23, %v1854_v22  ;;  %v1348_v48 = vadd.f32 %v7810_v4, %v829_v31  ;;  %v1349_v49 = vadd.f32 %v7810_v4, %v830_v32  ;;  %v1088_v19 = vmul.f32 %v7837_v24, %v569_v63 }
  0xc8   : > { %6560 = vmatmul.mubr.msk.bf16.gmra.mxu0 %vm2521_vm1, %v2309_v56  ;;  %v825_v56 = vmul.f32 %v7456_v51, %v306_v3  ;;  %v2442_v16 = vpack.c.bf16 %v2109_v62, %v2108_v61  ;;  %v1085_v3 = vmul.f32 %v7837_v24, %v566_v27  ;;  %v1605_v61 = vadd.f32 %v7810_v4, %v1086_v41  ;;  %v568_v62 = vld [vmem:[%s7064_s25 + $0xb70] sm:$0xff] }
  0xc9   : > { %6563 = vmatprep.mubr.msk.bf16.mxu0 %vm2521_vm1, %v2310_v59  ;;  %v1079_v59 = vmul.f32 %v7456_v51, %v560_v45  ;;  %v1346_v45 = vadd.f32 %v7810_v4, %v827_v25  ;;  %v1859_v6 = vmax.f32 %v1347_v46, 0.0  ;;  %v1860_v11 = vmax.f32 %v1348_v48, 0.0 }
  0xca   : > { %6816 = vmatmul.mubr.msk.bf16.gmra.mxu1 %vm2521_vm1, %v2437_v0  ;;  %v1082_v0 = vmul.f32 %v7456_v51, %v563_v53  ;;  %v1344_v8 = vadd.f32 %v7810_v4, %v825_v56  ;;  %v2441_v51 = vpack.c.bf16 %v2107_v58, %v2106_v57  ;;  %v1602_v56 = vadd.f32 %v7810_v4, %v1083_v38  ;;  %v314_v57 = vld [vmem:[%s7064_s25 + $0x380] sm:$0xff]  ;;  %v315_v58 = vld [vmem:[%s7064_s25 + $0x388] sm:$0xff] }
  0xcb   : > { %6819 = vmatprep.mubr.msk.bf16.mxu1 %vm2521_vm1, %v2438_v7  ;;  %v2314_v7 = vpack.c.bf16 %v1853_v55, %v1852_v54  ;;  %v1598_v12 = vadd.f32 %v7810_v4, %v1079_v59  ;;  %v1604_v60 = vadd.f32 %v7810_v4, %v1085_v3  ;;  %v1858_v5 = vmax.f32 %v1346_v45, 0.0  ;;  %v319_v3 = vld [vmem:[%s7064_s25 + $0x3a8] sm:$0xff]  ;;  %v573_v45 = vld [vmem:[%s7064_s25 + $0xb98] sm:$0xff] }
  0xcc   : > { %v1601_v18 = vadd.f32 %v7810_v4, %v1082_v0  ;;  %v1856_v29 = vmax.f32 %v1344_v8, 0.0  ;;  %v832_v8 = vmul.f32 %v7837_v24, %v313_v52  ;;  %v834_v13 = vmul.f32 %v7837_v24, %v315_v58 }
  0xcd   : > { %v2110_v36 = vmax.f32 %v1598_v12, 0.0  ;;  %v833_v12 = vmul.f32 %v7837_v24, %v314_v57  ;;  %v1090_v23 = vmul.f32 %v7837_v24, %v571_v10  ;;  %v2317_v27 = vpack.c.bf16 %v1859_v6, %v1858_v5 }
  0xce   : > { %v2113_v2 = vmax.f32 %v1601_v18, 0.0  ;;  %v1087_v18 = vmul.f32 %v7837_v24, %v568_v62  ;;  %v1353_v32 = vadd.f32 %v7810_v4, %v834_v13  ;;  %v838_v57 = vmul.f32 %v7837_v24, %v319_v3 }
  0xcf   : > { %v2443_v55 = vpack.c.bf16 %v2111_v37, %v2110_v36  ;;  %v1352_v31 = vadd.f32 %v7810_v4, %v833_v12  ;;  %v1092_v63 = vmul.f32 %v7837_v24, %v573_v45 }
  0xd0   : > { %6564 = vmatmul.mubr.msk.bf16.gmra.mxu0 %vm2521_vm1, %v2311_v30  ;;  %v1857_v30 = vmax.f32 %v1345_v9, 0.0  ;;  %v2444_v59 = vpack.c.bf16 %v2113_v2, %v2112_v40  ;;  %v570_v9 = vld [vmem:[%s7064_s25 + $0xb80] sm:$0xff]  ;;  %v1607_v40 = vadd.f32 %v7810_v4, %v1088_v19  ;;  %v1357_v13 = vadd.f32 %v7810_v4, %v838_v57 }
  0xd1   : > { %6567 = vmatprep.mubr.msk.bf16.mxu0 %vm2521_vm1, %v2312_v33  ;;  %v1089_v22 = vmul.f32 %v7837_v24, %v570_v9  ;;  %v318_v2 = vld [vmem:[%s7064_s25 + $0x3a0] sm:$0xff] }
  0xd2   : > { %6820 = vmatmul.mubr.msk.bf16.gmra.mxu1 %vm2521_vm1, %v2439_v39  ;;  %v1084_v39 = vmul.f32 %v7837_v24, %v565_v20  ;;  %v2316_v47 = vpack.c.bf16 %v1857_v30, %v1856_v29  ;;  %v2116_v20 = vmax.f32 %v1604_v60, 0.0  ;;  %v1351_v29 = vadd.f32 %v7810_v4, %v832_v8 }
  0xd3   : > { %6823 = vmatprep.mubr.msk.bf16.mxu1 %vm2521_vm1, %v2440_v42 }
  0xd4   : > { %v1603_v34 = vadd.f32 %v7810_v4, %v1084_v39  ;;  %v1606_v39 = vadd.f32 %v7810_v4, %v1087_v18 }
  0xd6   : > { %v2115_v17 = vmax.f32 %v1603_v34, 0.0  ;;  %v837_v34 = vmul.f32 %v7837_v24, %v318_v2  ;;  %v2118_v60 = vmax.f32 %v1606_v39, 0.0  ;;  %v1869_v39 = vmax.f32 %v1357_v13, 0.0 }
  0xd8   : > { %v6473_v21 = vpop.f32.mrf.mxu0  ;;  %6568 = vmatmul.mubr.msk.bf16.gmra.mxu0 %vm2521_vm1, %v2313_v1  ;;  %v1356_v12 = vadd.f32 %v7810_v4, %v837_v34 }
  0xd9   : > { %5377 = vst [vmem:[%s7823_s10 + $0x10] sm:$0xff] %v6473_v21  ;;  %6571 = vmatprep.mubr.msk.bf16.mxu0 %vm2521_vm1, %v2314_v7  ;;  %v831_v7 = vmul.f32 %v7837_v24, %v312_v50  ;;  %v2117_v21 = vmax.f32 %v1605_v61, 0.0  ;;  %v2119_v61 = vmax.f32 %v1607_v40, 0.0 }
  0xda   : > { %v6729_v33 = vpop.f32.mrf.mxu1  ;;  %6824 = vmatmul.mubr.msk.bf16.gmra.mxu1 %vm2521_vm1, %v2441_v51  ;;  %v3328_v35 = vpop.f32.mrf.mxu0  ;;  %v1861_v51 = vmax.f32 %v1349_v49, 0.0  ;;  %v1863_v49 = vmax.f32 %v1351_v29, 0.0 }
  0xdb   : > { %5633 = vst [vmem:[%s7823_s10 + $0x810] sm:$0xff] %v6729_v33  ;;  %5375 = vst [vmem:[%s7823_s10] sm:$0xff] %v3328_v35  ;;  %6827 = vmatprep.mubr.msk.bf16.mxu1 %vm2521_vm1, %v2442_v16  ;;  %v2114_v16 = vmax.f32 %v1602_v56, 0.0  ;;  %v1350_v28 = vadd.f32 %v7810_v4, %v831_v7  ;;  %v316_v33 = vld [vmem:[%s7064_s25 + $0x390] sm:$0xff]  ;;  %v317_v35 = vld [vmem:[%s7064_s25 + $0x398] sm:$0xff]  ;;  %v2446_v41 = vpack.c.bf16 %v2117_v21, %v2116_v20  ;;  %v1865_v56 = vmax.f32 %v1353_v32, 0.0 }
  0xdc   : > { %v4352_v42 = vpop.f32.mrf.mxu1  ;;  %v6474_v43 = vpop.f32.mrf.mxu0  ;;  %v2318_v30 = vpack.c.bf16 %v1861_v51, %v1860_v11  ;;  %v835_v50 = vmul.f32 %v7837_v24, %v316_v33  ;;  %v836_v52 = vmul.f32 %v7837_v24, %v317_v35  ;;  %v2447_v18 = vpack.c.bf16 %v2119_v61, %v2118_v60  ;;  %v322_v21 = vld [vmem:[%s7064_s25 + $0x3c0] sm:$0xff] }
  0xdd   : > { %5631 = vst [vmem:[%s7823_s10 + $0x800] sm:$0xff] %v4352_v42  ;;  %5378 = vst [vmem:[%s7823_s10 + $0x18] sm:$0xff] %v6474_v43  ;;  %v2445_v38 = vpack.c.bf16 %v2115_v17, %v2114_v16  ;;  %v1608_v42 = vadd.f32 %v7810_v4, %v1089_v22  ;;  %v1609_v43 = vadd.f32 %v7810_v4, %v1090_v23  ;;  %v1862_v48 = vmax.f32 %v1350_v28, 0.0  ;;  %v323_v22 = vld [vmem:[%s7064_s25 + $0x3c8] sm:$0xff]  ;;  %v577_v28 = vld [vmem:[%s7064_s25 + $0xbb8] sm:$0xff] }
  0xde   : > { %v6730_v53 = vpop.f32.mrf.mxu1  ;;  %v3331_v54 = vpop.f32.mrf.mxu0  ;;  %v1354_v10 = vadd.f32 %v7810_v4, %v835_v50  ;;  %v1355_v11 = vadd.f32 %v7810_v4, %v836_v52  ;;  %v1611_v20 = vadd.f32 %v7810_v4, %v1092_v63  ;;  %v841_v40 = vmul.f32 %v7837_v24, %v322_v21 }
  0xdf   : > { %5634 = vst [vmem:[%s7823_s10 + $0x818] sm:$0xff] %v6730_v53  ;;  %5376 = vst [vmem:[%s7823_s10 + $0x8] sm:$0xff] %v3331_v54  ;;  %v574_v53 = vld [vmem:[%s7064_s25 + $0xba0] sm:$0xff]  ;;  %v575_v54 = vld [vmem:[%s7064_s25 + $0xba8] sm:$0xff]  ;;  %v2319_v9 = vpack.c.bf16 %v1863_v49, %v1862_v48  ;;  %v842_v2 = vmul.f32 %v7837_v24, %v323_v22  ;;  %v1096_v45 = vmul.f32 %v7837_v24, %v577_v28 }
  0xe0   : > { %v4355_v0 = vpop.f32.mrf.mxu1  ;;  %v6477_v1 = vpop.f32.mrf.mxu0  ;;  %6572 = vmatmul.mubr.msk.bf16.gmra.mxu0 %vm2521_vm1, %v2315_v44  ;;  %v572_v44 = vld [vmem:[%s7064_s25 + $0xb90] sm:$0xff]  ;;  %v1093_v5 = vmul.f32 %v7837_v24, %v574_v53  ;;  %v1094_v6 = vmul.f32 %v7837_v24, %v575_v54  ;;  %v1867_v32 = vmax.f32 %v1355_v11, 0.0  ;;  %v1360_v34 = vadd.f32 %v7810_v4, %v841_v40 }
  0xe1   : > { %5632 = vst [vmem:[%s7823_s10 + $0x808] sm:$0xff] %v4355_v0  ;;  %5381 = vst [vmem:[%s7823_s10 + $0x30] sm:$0xff] %v6477_v1  ;;  %6575 = vmatprep.mubr.msk.bf16.mxu0 %vm2521_vm1, %v2316_v47  ;;  %v1091_v62 = vmul.f32 %v7837_v24, %v572_v44  ;;  %v2120_v0 = vmax.f32 %v1608_v42, 0.0  ;;  %v2121_v1 = vmax.f32 %v1609_v43, 0.0  ;;  %v2123_v43 = vmax.f32 %v1611_v20, 0.0 }
  0xe2   : > { %v6733_v14 = vpop.f32.mrf.mxu1  ;;  %6828 = vmatmul.mubr.msk.bf16.gmra.mxu1 %vm2521_vm1, %v2443_v55  ;;  %v3344_v15 = vpop.f32.mrf.mxu0  ;;  %v1864_v55 = vmax.f32 %v1352_v31, 0.0  ;;  %v1866_v31 = vmax.f32 %v1354_v10, 0.0  ;;  %v1361_v57 = vadd.f32 %v7810_v4, %v842_v2  ;;  %v581_v10 = vld [vmem:[%s7064_s25 + $0xbd8] sm:$0xff] }
  0xe3   : > { %5637 = vst [vmem:[%s7823_s10 + $0x830] sm:$0xff] %v6733_v14  ;;  %5379 = vst [vmem:[%s7823_s10 + $0x20] sm:$0xff] %v3344_v15  ;;  %6831 = vmatprep.mubr.msk.bf16.mxu1 %vm2521_vm1, %v2444_v59  ;;  %v320_v14 = vld [vmem:[%s7064_s25 + $0x3b0] sm:$0xff]  ;;  %v321_v15 = vld [vmem:[%s7064_s25 + $0x3b8] sm:$0xff]  ;;  %v1610_v19 = vadd.f32 %v7810_v4, %v1091_v62  ;;  %v2448_v23 = vpack.c.bf16 %v2121_v1, %v2120_v0  ;;  %v1615_v0 = vadd.f32 %v7810_v4, %v1096_v45 }
  0xe4   : > { %v4368_v25 = vpop.f32.mrf.mxu1  ;;  %v6478_v26 = vpop.f32.mrf.mxu0  ;;  %v2320_v51 = vpack.c.bf16 %v1865_v56, %v1864_v55  ;;  %v839_v33 = vmul.f32 %v7837_v24, %v320_v14  ;;  %v840_v35 = vmul.f32 %v7837_v24, %v321_v15  ;;  %v2321_v53 = vpack.c.bf16 %v1867_v32, %v1866_v31  ;;  %v326_v1 = vld [vmem:[%s7064_s25 + $0x3e0] sm:$0xff] }
  0xe5   : > { %5635 = vst [vmem:[%s7823_s10 + $0x820] sm:$0xff] %v4368_v25  ;;  %5382 = vst [vmem:[%s7823_s10 + $0x38] sm:$0xff] %v6478_v26  ;;  %v1612_v25 = vadd.f32 %v7810_v4, %v1093_v5  ;;  %v1613_v26 = vadd.f32 %v7810_v4, %v1094_v6  ;;  %v2122_v42 = vmax.f32 %v1610_v19, 0.0  ;;  %v327_v5 = vld [vmem:[%s7064_s25 + $0x3e8] sm:$0xff]  ;;  %v1873_v19 = vmax.f32 %v1361_v57, 0.0 }
  0xe6   : > { %v6734_v36 = vpop.f32.mrf.mxu1  ;;  %v3347_v37 = vpop.f32.mrf.mxu0  ;;  %v1358_v54 = vadd.f32 %v7810_v4, %v839_v33  ;;  %v1359_v55 = vadd.f32 %v7810_v4, %v840_v35  ;;  %v845_v20 = vmul.f32 %v7837_v24, %v326_v1  ;;  %v846_v21 = vmul.f32 %v7837_v24, %v327_v5 }
  0xe7   : > { %5638 = vst [vmem:[%s7823_s10 + $0x838] sm:$0xff] %v6734_v36  ;;  %5380 = vst [vmem:[%s7823_s10 + $0x28] sm:$0xff] %v3347_v37  ;;  %v578_v36 = vld [vmem:[%s7064_s25 + $0xbc0] sm:$0xff]  ;;  %v579_v37 = vld [vmem:[%s7064_s25 + $0xbc8] sm:$0xff]  ;;  %v2449_v62 = vpack.c.bf16 %v2123_v43, %v2122_v42  ;;  %v1100_v28 = vmul.f32 %v7837_v24, %v581_v10 }
  0xe8   : > { %v4371_v46 = vpop.f32.mrf.mxu1  ;;  %v6481_v47 = vpop.f32.mrf.mxu0  ;;  %6576 = vmatmul.mubr.msk.bf16.gmra.mxu0 %vm2521_vm1, %v2317_v27  ;;  %v576_v27 = vld [vmem:[%s7064_s25 + $0xbb0] sm:$0xff]  ;;  %v1097_v48 = vmul.f32 %v7837_v24, %v578_v36  ;;  %v1098_v49 = vmul.f32 %v7837_v24, %v579_v37  ;;  %v1871_v13 = vmax.f32 %v1359_v55, 0.0  ;;  %v1364_v40 = vadd.f32 %v7810_v4, %v845_v20 }
  0xe9   : > { %5636 = vst [vmem:[%s7823_s10 + $0x828] sm:$0xff] %v4371_v46  ;;  %5385 = vst [vmem:[%s7823_s10 + $0x50] sm:$0xff] %v6481_v47  ;;  %6579 = vmatprep.mubr.msk.bf16.mxu0 %vm2521_vm1, %v2318_v30  ;;  %v1095_v44 = vmul.f32 %v7837_v24, %v576_v27  ;;  %v2124_v46 = vmax.f32 %v1612_v25, 0.0  ;;  %v2125_v47 = vmax.f32 %v1613_v26, 0.0  ;;  %v2127_v26 = vmax.f32 %v1615_v0, 0.0 }
  0xea   : > { %v6737_v58 = vpop.f32.mrf.mxu1  ;;  %6832 = vmatmul.mubr.msk.bf16.gmra.mxu1 %vm2521_vm1, %v2445_v38  ;;  %v3360_v59 = vpop.f32.mrf.mxu0  ;;  %v1868_v38 = vmax.f32 %v1356_v12, 0.0  ;;  %v1870_v12 = vmax.f32 %v1358_v54, 0.0  ;;  %v1365_v2 = vadd.f32 %v7810_v4, %v846_v21  ;;  %v585_v54 = vld [vmem:[%s7064_s25 + $0xbf8] sm:$0xff] }
  0xeb   : > { %5641 = vst [vmem:[%s7823_s10 + $0x850] sm:$0xff] %v6737_v58  ;;  %5383 = vst [vmem:[%s7823_s10 + $0x40] sm:$0xff] %v3360_v59  ;;  %6835 = vmatprep.mubr.msk.bf16.mxu1 %vm2521_vm1, %v2446_v41  ;;  %v324_v58 = vld [vmem:[%s7064_s25 + $0x3d0] sm:$0xff]  ;;  %v325_v59 = vld [vmem:[%s7064_s25 + $0x3d8] sm:$0xff]  ;;  %v1614_v63 = vadd.f32 %v7810_v4, %v1095_v44  ;;  %v2450_v6 = vpack.c.bf16 %v2125_v47, %v2124_v46  ;;  %v1619_v46 = vadd.f32 %v7810_v4, %v1100_v28 }
  0xec   : > { %v4384_v7 = vpop.f32.mrf.mxu1  ;;  %v6482_v8 = vpop.f32.mrf.mxu0  ;;  %v2322_v56 = vpack.c.bf16 %v1869_v39, %v1868_v38  ;;  %v843_v14 = vmul.f32 %v7837_v24, %v324_v58  ;;  %v844_v15 = vmul.f32 %v7837_v24, %v325_v59  ;;  %v2323_v36 = vpack.c.bf16 %v1871_v13, %v1870_v12  ;;  %v330_v47 = vld [vmem:[%s7064_s25 + $0x400] sm:$0xff] }
  0xed   : > { %5639 = vst [vmem:[%s7823_s10 + $0x840] sm:$0xff] %v4384_v7  ;;  %5386 = vst [vmem:[%s7823_s10 + $0x58] sm:$0xff] %v6482_v8  ;;  %v1616_v7 = vadd.f32 %v7810_v4, %v1097_v48  ;;  %v1617_v8 = vadd.f32 %v7810_v4, %v1098_v49  ;;  %v2126_v25 = vmax.f32 %v1614_v63, 0.0  ;;  %v331_v48 = vld [vmem:[%s7064_s25 + $0x408] sm:$0xff]  ;;  %v1877_v63 = vmax.f32 %v1365_v2, 0.0 }
  0xee   : > { %v6738_v16 = vpop.f32.mrf.mxu1  ;;  %v3363_v17 = vpop.f32.mrf.mxu0  ;;  %v1362_v37 = vadd.f32 %v7810_v4, %v843_v14  ;;  %v1363_v38 = vadd.f32 %v7810_v4, %v844_v15  ;;  %v849_v0 = vmul.f32 %v7837_v24, %v330_v47  ;;  %v850_v1 = vmul.f32 %v7837_v24, %v331_v48 }
  0xef   : > { %5642 = vst [vmem:[%s7823_s10 + $0x858] sm:$0xff] %v6738_v16  ;;  %5384 = vst [vmem:[%s7823_s10 + $0x48] sm:$0xff] %v3363_v17  ;;  %v582_v16 = vld [vmem:[%s7064_s25 + $0xbe0] sm:$0xff]  ;;  %v583_v17 = vld [vmem:[%s7064_s25 + $0xbe8] sm:$0xff]  ;;  %v2451_v44 = vpack.c.bf16 %v2127_v26, %v2126_v25  ;;  %v1104_v10 = vmul.f32 %v7837_v24, %v585_v54 }
  0xf0   : > { %v4387_v29 = vpop.f32.mrf.mxu1  ;;  %v6485_v30 = vpop.f32.mrf.mxu0  ;;  %6580 = vmatmul.mubr.msk.bf16.gmra.mxu0 %vm2521_vm1, %v2319_v9  ;;  %v580_v9 = vld [vmem:[%s7064_s25 + $0xbd0] sm:$0xff]  ;;  %v1101_v31 = vmul.f32 %v7837_v24, %v582_v16  ;;  %v1102_v32 = vmul.f32 %v7837_v24, %v583_v17  ;;  %v1875_v57 = vmax.f32 %v1363_v38, 0.0  ;;  %v1368_v20 = vadd.f32 %v7810_v4, %v849_v0 }
  0xf1   : > { %5640 = vst [vmem:[%s7823_s10 + $0x848] sm:$0xff] %v4387_v29  ;;  %5389 = vst [vmem:[%s7823_s10 + $0x70] sm:$0xff] %v6485_v30  ;;  %6583 = vmatprep.mubr.msk.bf16.mxu0 %vm2521_vm1, %v2320_v51  ;;  %v1099_v27 = vmul.f32 %v7837_v24, %v580_v9  ;;  %v2128_v29 = vmax.f32 %v1616_v7, 0.0  ;;  %v2129_v30 = vmax.f32 %v1617_v8, 0.0  ;;  %v2131_v8 = vmax.f32 %v1619_v46, 0.0 }
  0xf2   : > { %v6741_v3 = vpop.f32.mrf.mxu1  ;;  %6836 = vmatmul.mubr.msk.bf16.gmra.mxu1 %vm2521_vm1, %v2447_v18  ;;  %v3376_v41 = vpop.f32.mrf.mxu0  ;;  %v1872_v18 = vmax.f32 %v1360_v34, 0.0  ;;  %v1874_v34 = vmax.f32 %v1362_v37, 0.0  ;;  %v1369_v21 = vadd.f32 %v7810_v4, %v850_v1  ;;  %v589_v37 = vld [vmem:[%s7064_s25 + $0xc18] sm:$0xff] }
  0xf3   : > { %5645 = vst [vmem:[%s7823_s10 + $0x870] sm:$0xff] %v6741_v3  ;;  %5387 = vst [vmem:[%s7823_s10 + $0x60] sm:$0xff] %v3376_v41  ;;  %6839 = vmatprep.mubr.msk.bf16.mxu1 %vm2521_vm1, %v2448_v23  ;;  %v328_v3 = vld [vmem:[%s7064_s25 + $0x3f0] sm:$0xff]  ;;  %v329_v41 = vld [vmem:[%s7064_s25 + $0x3f8] sm:$0xff]  ;;  %v1618_v45 = vadd.f32 %v7810_v4, %v1099_v27  ;;  %v2452_v49 = vpack.c.bf16 %v2129_v30, %v2128_v29  ;;  %v1623_v29 = vadd.f32 %v7810_v4, %v1104_v10 }
  0xf4   : > { %v4400_v50 = vpop.f32.mrf.mxu1  ;;  %v6486_v52 = vpop.f32.mrf.mxu0  ;;  %v2324_v39 = vpack.c.bf16 %v1873_v19, %v1872_v18  ;;  %v847_v58 = vmul.f32 %v7837_v24, %v328_v3  ;;  %v848_v59 = vmul.f32 %v7837_v24, %v329_v41  ;;  %v2325_v16 = vpack.c.bf16 %v1875_v57, %v1874_v34  ;;  %v334_v30 = vld [vmem:[%s7064_s25 + $0x420] sm:$0xff] }
  0xf5   : > { %5643 = vst [vmem:[%s7823_s10 + $0x860] sm:$0xff] %v4400_v50  ;;  %5390 = vst [vmem:[%s7823_s10 + $0x78] sm:$0xff] %v6486_v52  ;;  %v1620_v50 = vadd.f32 %v7810_v4, %v1101_v31  ;;  %v1621_v52 = vadd.f32 %v7810_v4, %v1102_v32  ;;  %v2130_v7 = vmax.f32 %v1618_v45, 0.0  ;;  %v335_v31 = vld [vmem:[%s7064_s25 + $0x428] sm:$0xff]  ;;  %v1881_v45 = vmax.f32 %v1369_v21, 0.0 }
  0xf6   : > { %v6742_v60 = vpop.f32.mrf.mxu1  ;;  %v3379_v61 = vpop.f32.mrf.mxu0  ;;  %v1366_v17 = vadd.f32 %v7810_v4, %v847_v58  ;;  %v1367_v18 = vadd.f32 %v7810_v4, %v848_v59  ;;  %v853_v46 = vmul.f32 %v7837_v24, %v334_v30  ;;  %v854_v47 = vmul.f32 %v7837_v24, %v335_v31 }
  0xf7   : > { %5646 = vst [vmem:[%s7823_s10 + $0x878] sm:$0xff] %v6742_v60  ;;  %5388 = vst [vmem:[%s7823_s10 + $0x68] sm:$0xff] %v3379_v61  ;;  %v586_v60 = vld [vmem:[%s7064_s25 + $0xc00] sm:$0xff]  ;;  %v587_v61 = vld [vmem:[%s7064_s25 + $0xc08] sm:$0xff]  ;;  %v2453_v27 = vpack.c.bf16 %v2131_v8, %v2130_v7  ;;  %v1108_v54 = vmul.f32 %v7837_v24, %v589_v37 }
  0xf8   : > { %v4403_v11 = vpop.f32.mrf.mxu1  ;;  %v6489_v51 = vpop.f32.mrf.mxu0  ;;  %6584 = vmatmul.mubr.msk.bf16.gmra.mxu0 %vm2521_vm1, %v2321_v53  ;;  %v584_v53 = vld [vmem:[%s7064_s25 + $0xbf0] sm:$0xff]  ;;  %v1105_v12 = vmul.f32 %v7837_v24, %v586_v60  ;;  %v1106_v13 = vmul.f32 %v7837_v24, %v587_v61  ;;  %v1879_v2 = vmax.f32 %v1367_v18, 0.0  ;;  %v1372_v0 = vadd.f32 %v7810_v4, %v853_v46 }
  0xf9   : > { %5644 = vst [vmem:[%s7823_s10 + $0x868] sm:$0xff] %v4403_v11  ;;  %5393 = vst [vmem:[%s7823_s10 + $0x90] sm:$0xff] %v6489_v51  ;;  %6587 = vmatprep.mubr.msk.bf16.mxu0 %vm2521_vm1, %v2322_v56  ;;  %v1103_v9 = vmul.f32 %v7837_v24, %v584_v53  ;;  %v2132_v11 = vmax.f32 %v1620_v50, 0.0  ;;  %v2133_v51 = vmax.f32 %v1621_v52, 0.0  ;;  %v2135_v52 = vmax.f32 %v1623_v29, 0.0 }
  0xfa   : > { %v6745_v22 = vpop.f32.mrf.mxu1  ;;  %6840 = vmatmul.mubr.msk.bf16.gmra.mxu1 %vm2521_vm1, %v2449_v62  ;;  %v3392_v23 = vpop.f32.mrf.mxu0  ;;  %v1876_v62 = vmax.f32 %v1364_v40, 0.0  ;;  %v1878_v40 = vmax.f32 %v1366_v17, 0.0  ;;  %v1373_v1 = vadd.f32 %v7810_v4, %v854_v47  ;;  %v593_v17 = vld [vmem:[%s7064_s25 + $0xc38] sm:$0xff] }
  0xfb   : > { %5649 = vst [vmem:[%s7823_s10 + $0x890] sm:$0xff] %v6745_v22  ;;  %5391 = vst [vmem:[%s7823_s10 + $0x80] sm:$0xff] %v3392_v23  ;;  %6843 = vmatprep.mubr.msk.bf16.mxu1 %vm2521_vm1, %v2450_v6  ;;  %v332_v22 = vld [vmem:[%s7064_s25 + $0x410] sm:$0xff]  ;;  %v333_v23 = vld [vmem:[%s7064_s25 + $0x418] sm:$0xff]  ;;  %v1622_v28 = vadd.f32 %v7810_v4, %v1103_v9  ;;  %v2454_v32 = vpack.c.bf16 %v2133_v51, %v2132_v11  ;;  %v1627_v11 = vadd.f32 %v7810_v4, %v1108_v54 }
  0xfc   : > { %v4416_v33 = vpop.f32.mrf.mxu1  ;;  %v6490_v35 = vpop.f32.mrf.mxu0  ;;  %v2326_v19 = vpack.c.bf16 %v1877_v63, %v1876_v62  ;;  %v851_v3 = vmul.f32 %v7837_v24, %v332_v22  ;;  %v852_v41 = vmul.f32 %v7837_v24, %v333_v23  ;;  %v2327_v60 = vpack.c.bf16 %v1879_v2, %v1878_v40  ;;  %v338_v51 = vld [vmem:[%s7064_s25 + $0x440] sm:$0xff] }
  0xfd   : > { %5647 = vst [vmem:[%s7823_s10 + $0x880] sm:$0xff] %v4416_v33  ;;  %5394 = vst [vmem:[%s7823_s10 + $0x98] sm:$0xff] %v6490_v35  ;;  %v1624_v33 = vadd.f32 %v7810_v4, %v1105_v12  ;;  %v1625_v35 = vadd.f32 %v7810_v4, %v1106_v13  ;;  %v2134_v50 = vmax.f32 %v1622_v28, 0.0  ;;  %v339_v12 = vld [vmem:[%s7064_s25 + $0x448] sm:$0xff]  ;;  %v1885_v28 = vmax.f32 %v1373_v1, 0.0 }
  0xfe   : > { %v6746_v42 = vpop.f32.mrf.mxu1  ;;  %v3395_v43 = vpop.f32.mrf.mxu0  ;;  %v1370_v61 = vadd.f32 %v7810_v4, %v851_v3  ;;  %v1371_v62 = vadd.f32 %v7810_v4, %v852_v41  ;;  %v857_v29 = vmul.f32 %v7837_v24, %v338_v51  ;;  %v858_v30 = vmul.f32 %v7837_v24, %v339_v12 }
  0xff   : > { %5650 = vst [vmem:[%s7823_s10 + $0x898] sm:$0xff] %v6746_v42  ;;  %5392 = vst [vmem:[%s7823_s10 + $0x88] sm:$0xff] %v3395_v43  ;;  %v590_v42 = vld [vmem:[%s7064_s25 + $0xc20] sm:$0xff]  ;;  %v591_v43 = vld [vmem:[%s7064_s25 + $0xc28] sm:$0xff]  ;;  %v2455_v9 = vpack.c.bf16 %v2135_v52, %v2134_v50  ;;  %v1112_v37 = vmul.f32 %v7837_v24, %v593_v17 }
 0x100   : > { %v4419_v55 = vpop.f32.mrf.mxu1  ;;  %v6493_v56 = vpop.f32.mrf.mxu0  ;;  %6588 = vmatmul.mubr.msk.bf16.gmra.mxu0 %vm2521_vm1, %v2323_v36  ;;  %v588_v36 = vld [vmem:[%s7064_s25 + $0xc10] sm:$0xff]  ;;  %v1109_v34 = vmul.f32 %v7837_v24, %v590_v42  ;;  %v1110_v57 = vmul.f32 %v7837_v24, %v591_v43  ;;  %v1883_v21 = vmax.f32 %v1371_v62, 0.0  ;;  %v1376_v46 = vadd.f32 %v7810_v4, %v857_v29 }
 0x101   : > { %5648 = vst [vmem:[%s7823_s10 + $0x888] sm:$0xff] %v4419_v55  ;;  %5397 = vst [vmem:[%s7823_s10 + $0xb0] sm:$0xff] %v6493_v56  ;;  %6591 = vmatprep.mubr.msk.bf16.mxu0 %vm2521_vm1, %v2324_v39  ;;  %v1107_v53 = vmul.f32 %v7837_v24, %v588_v36  ;;  %v2136_v55 = vmax.f32 %v1624_v33, 0.0  ;;  %v2137_v56 = vmax.f32 %v1625_v35, 0.0  ;;  %v2139_v35 = vmax.f32 %v1627_v11, 0.0 }
 0x102   : > { %v6749_v5 = vpop.f32.mrf.mxu1  ;;  %6844 = vmatmul.mubr.msk.bf16.gmra.mxu1 %vm2521_vm1, %v2451_v44  ;;  %v3408_v6 = vpop.f32.mrf.mxu0  ;;  %v1880_v44 = vmax.f32 %v1368_v20, 0.0  ;;  %v1882_v20 = vmax.f32 %v1370_v61, 0.0  ;;  %v1377_v47 = vadd.f32 %v7810_v4, %v858_v30  ;;  %v597_v61 = vld [vmem:[%s7064_s25 + $0xc58] sm:$0xff] }
 0x103   : > { %5653 = vst [vmem:[%s7823_s10 + $0x8b0] sm:$0xff] %v6749_v5  ;;  %5395 = vst [vmem:[%s7823_s10 + $0xa0] sm:$0xff] %v3408_v6  ;;  %6847 = vmatprep.mubr.msk.bf16.mxu1 %vm2521_vm1, %v2452_v49  ;;  %v336_v5 = vld [vmem:[%s7064_s25 + $0x430] sm:$0xff]  ;;  %v337_v6 = vld [vmem:[%s7064_s25 + $0x438] sm:$0xff]  ;;  %v1626_v10 = vadd.f32 %v7810_v4, %v1107_v53  ;;  %v2456_v13 = vpack.c.bf16 %v2137_v56, %v2136_v55  ;;  %v1631_v55 = vadd.f32 %v7810_v4, %v1112_v37 }
 0x104   : > { %v4432_v14 = vpop.f32.mrf.mxu1  ;;  %v6494_v15 = vpop.f32.mrf.mxu0  ;;  %v2328_v63 = vpack.c.bf16 %v1881_v45, %v1880_v44  ;;  %v855_v22 = vmul.f32 %v7837_v24, %v336_v5  ;;  %v856_v23 = vmul.f32 %v7837_v24, %v337_v6  ;;  %v2329_v42 = vpack.c.bf16 %v1883_v21, %v1882_v20  ;;  %v342_v56 = vld [vmem:[%s7064_s25 + $0x460] sm:$0xff] }
 0x105   : > { %5651 = vst [vmem:[%s7823_s10 + $0x8a0] sm:$0xff] %v4432_v14  ;;  %5398 = vst [vmem:[%s7823_s10 + $0xb8] sm:$0xff] %v6494_v15  ;;  %v1628_v14 = vadd.f32 %v7810_v4, %v1109_v34  ;;  %v1629_v15 = vadd.f32 %v7810_v4, %v1110_v57  ;;  %v2138_v33 = vmax.f32 %v1626_v10, 0.0  ;;  %v343_v34 = vld [vmem:[%s7064_s25 + $0x468] sm:$0xff]  ;;  %v1889_v10 = vmax.f32 %v1377_v47, 0.0 }
 0x106   : > { %v6750_v25 = vpop.f32.mrf.mxu1  ;;  %v3411_v26 = vpop.f32.mrf.mxu0  ;;  %v1374_v43 = vadd.f32 %v7810_v4, %v855_v22  ;;  %v1375_v44 = vadd.f32 %v7810_v4, %v856_v23  ;;  %v861_v11 = vmul.f32 %v7837_v24, %v342_v56  ;;  %v862_v51 = vmul.f32 %v7837_v24, %v343_v34 }
 0x107   : > { %5654 = vst [vmem:[%s7823_s10 + $0x8b8] sm:$0xff] %v6750_v25  ;;  %5396 = vst [vmem:[%s7823_s10 + $0xa8] sm:$0xff] %v3411_v26  ;;  %v594_v25 = vld [vmem:[%s7064_s25 + $0xc40] sm:$0xff]  ;;  %v595_v26 = vld [vmem:[%s7064_s25 + $0xc48] sm:$0xff]  ;;  %v2457_v53 = vpack.c.bf16 %v2139_v35, %v2138_v33  ;;  %v1116_v17 = vmul.f32 %v7837_v24, %v597_v61 }
 0x108   : > { %v4435_v38 = vpop.f32.mrf.mxu1  ;;  %v6497_v39 = vpop.f32.mrf.mxu0  ;;  %6592 = vmatmul.mubr.msk.bf16.gmra.mxu0 %vm2521_vm1, %v2325_v16  ;;  %v592_v16 = vld [vmem:[%s7064_s25 + $0xc30] sm:$0xff]  ;;  %v1113_v40 = vmul.f32 %v7837_v24, %v594_v25  ;;  %v1114_v2 = vmul.f32 %v7837_v24, %v595_v26  ;;  %v1887_v1 = vmax.f32 %v1375_v44, 0.0  ;;  %v1380_v29 = vadd.f32 %v7810_v4, %v861_v11 }
 0x109   : > { %5652 = vst [vmem:[%s7823_s10 + $0x8a8] sm:$0xff] %v4435_v38  ;;  %5401 = vst [vmem:[%s7823_s10 + $0xd0] sm:$0xff] %v6497_v39  ;;  %6595 = vmatprep.mubr.msk.bf16.mxu0 %vm2521_vm1, %v2326_v19  ;;  %v1111_v36 = vmul.f32 %v7837_v24, %v592_v16  ;;  %v2140_v38 = vmax.f32 %v1628_v14, 0.0  ;;  %v2141_v39 = vmax.f32 %v1629_v15, 0.0  ;;  %v2143_v15 = vmax.f32 %v1631_v55, 0.0 }
 0x10a   : > { %v6753_v48 = vpop.f32.mrf.mxu1  ;;  %6848 = vmatmul.mubr.msk.bf16.gmra.mxu1 %vm2521_vm1, %v2453_v27  ;;  %v3424_v49 = vpop.f32.mrf.mxu0  ;;  %v1884_v27 = vmax.f32 %v1372_v0, 0.0  ;;  %v1886_v0 = vmax.f32 %v1374_v43, 0.0  ;;  %v1381_v30 = vadd.f32 %v7810_v4, %v862_v51  ;;  %v600_v43 = vld [vmem:[%s7064_s25 + $0xc70] sm:$0xff]  ;;  %v8177_v55 = vld [vmem:[%s9436_s1] ss:$0 sm:$0xff] }
 0x10b   : > { %5657 = vst [vmem:[%s7823_s10 + $0x8d0] sm:$0xff] %v6753_v48  ;;  %5399 = vst [vmem:[%s7823_s10 + $0xc0] sm:$0xff] %v3424_v49  ;;  %6851 = vmatprep.mubr.msk.bf16.mxu1 %vm2521_vm1, %v2454_v32  ;;  %v340_v48 = vld [vmem:[%s7064_s25 + $0x450] sm:$0xff]  ;;  %v341_v49 = vld [vmem:[%s7064_s25 + $0x458] sm:$0xff]  ;;  %v1630_v54 = vadd.f32 %v7810_v4, %v1111_v36  ;;  %v2458_v57 = vpack.c.bf16 %v2141_v39, %v2140_v38  ;;  %v1635_v38 = vadd.f32 %v7810_v4, %v1116_v17 }
 0x10c   : > { %v4448_v58 = vpop.f32.mrf.mxu1  ;;  %v6498_v59 = vpop.f32.mrf.mxu0  ;;  %v2330_v45 = vpack.c.bf16 %v1885_v28, %v1884_v27  ;;  %v859_v5 = vmul.f32 %v7837_v24, %v340_v48  ;;  %v860_v6 = vmul.f32 %v7837_v24, %v341_v49  ;;  %v2331_v25 = vpack.c.bf16 %v1887_v1, %v1886_v0  ;;  %v346_v39 = vld [vmem:[%s7064_s25 + $0x480] sm:$0xff] }
 0x10d   : > { %5655 = vst [vmem:[%s7823_s10 + $0x8c0] sm:$0xff] %v4448_v58  ;;  %5402 = vst [vmem:[%s7823_s10 + $0xd8] sm:$0xff] %v6498_v59  ;;  %v1632_v58 = vadd.f32 %v7810_v4, %v1113_v40  ;;  %v1633_v59 = vadd.f32 %v7810_v4, %v1114_v2  ;;  %v2142_v14 = vmax.f32 %v1630_v54, 0.0  ;;  %v347_v40 = vld [vmem:[%s7064_s25 + $0x488] sm:$0xff]  ;;  %v1893_v54 = vmax.f32 %v1381_v30, 0.0 }
 0x10e   : > { %v6754_v7 = vpop.f32.mrf.mxu1  ;;  %v3427_v8 = vpop.f32.mrf.mxu0  ;;  %v1378_v26 = vadd.f32 %v7810_v4, %v859_v5  ;;  %v1379_v27 = vadd.f32 %v7810_v4, %v860_v6  ;;  %v865_v56 = vmul.f32 %v8177_v55, %v346_v39  ;;  %v866_v34 = vmul.f32 %v8177_v55, %v347_v40 }
 0x10f   : > { %5658 = vst [vmem:[%s7823_s10 + $0x8d8] sm:$0xff] %v6754_v7  ;;  %5400 = vst [vmem:[%s7823_s10 + $0xc8] sm:$0xff] %v3427_v8  ;;  %v598_v7 = vld [vmem:[%s7064_s25 + $0xc60] sm:$0xff]  ;;  %v599_v8 = vld [vmem:[%s7064_s25 + $0xc68] sm:$0xff]  ;;  %v2459_v36 = vpack.c.bf16 %v2143_v15, %v2142_v14 }
 0x110   : > { %v4451_v18 = vpop.f32.mrf.mxu1  ;;  %v6501_v19 = vpop.f32.mrf.mxu0  ;;  %6596 = vmatmul.mubr.msk.bf16.gmra.mxu0 %vm2521_vm1, %v2327_v60  ;;  %v596_v60 = vld [vmem:[%s7064_s25 + $0xc50] sm:$0xff]  ;;  %v1117_v20 = vmul.f32 %v7837_v24, %v598_v7  ;;  %v1118_v21 = vmul.f32 %v7837_v24, %v599_v8  ;;  %v1891_v47 = vmax.f32 %v1379_v27, 0.0 }
 0x111   : > { %5656 = vst [vmem:[%s7823_s10 + $0x8c8] sm:$0xff] %v4451_v18  ;;  %5405 = vst [vmem:[%s7823_s10 + $0xf0] sm:$0xff] %v6501_v19  ;;  %6599 = vmatprep.mubr.msk.bf16.mxu0 %vm2521_vm1, %v2328_v63  ;;  %v1115_v16 = vmul.f32 %v7837_v24, %v596_v60  ;;  %v2144_v18 = vmax.f32 %v1632_v58, 0.0  ;;  %v2145_v19 = vmax.f32 %v1633_v59, 0.0  ;;  %v2147_v59 = vmax.f32 %v1635_v38, 0.0 }
 0x112   : > { %v6757_v31 = vpop.f32.mrf.mxu1  ;;  %6852 = vmatmul.mubr.msk.bf16.gmra.mxu1 %vm2521_vm1, %v2455_v9  ;;  %v3440_v32 = vpop.f32.mrf.mxu0  ;;  %v1888_v9 = vmax.f32 %v1376_v46, 0.0  ;;  %v1890_v46 = vmax.f32 %v1378_v26, 0.0  ;;  %v1119_v60 = vmul.f32 %v8177_v55, %v600_v43  ;;  %v605_v26 = vld [vmem:[%s7064_s25 + $0xc98] sm:$0xff] }
 0x113   : > { %5661 = vst [vmem:[%s7823_s10 + $0x8f0] sm:$0xff] %v6757_v31  ;;  %5403 = vst [vmem:[%s7823_s10 + $0xe0] sm:$0xff] %v3440_v32  ;;  %6855 = vmatprep.mubr.msk.bf16.mxu1 %vm2521_vm1, %v2456_v13  ;;  %v344_v31 = vld [vmem:[%s7064_s25 + $0x470] sm:$0xff]  ;;  %v345_v32 = vld [vmem:[%s7064_s25 + $0x478] sm:$0xff]  ;;  %v1634_v37 = vadd.f32 %v7810_v4, %v1115_v16  ;;  %v2460_v2 = vpack.c.bf16 %v2145_v19, %v2144_v18 }
 0x114   : > { %v4464_v3 = vpop.f32.mrf.mxu1  ;;  %v6502_v41 = vpop.f32.mrf.mxu0  ;;  %v2332_v28 = vpack.c.bf16 %v1889_v10, %v1888_v9  ;;  %v601_v4 = vld [vmem:[%s7064_s25 + $0xc78] sm:$0xff]  ;;  %v863_v48 = vmul.f32 %v7837_v24, %v344_v31  ;;  %v864_v49 = vmul.f32 %v7837_v24, %v345_v32  ;;  %v2333_v7 = vpack.c.bf16 %v1891_v47, %v1890_v46  ;;  %v350_v19 = vld [vmem:[%s7064_s25 + $0x4a0] sm:$0xff] }
 0x115   : > { %5659 = vst [vmem:[%s7823_s10 + $0x8e0] sm:$0xff] %v4464_v3  ;;  %5406 = vst [vmem:[%s7823_s10 + $0xf8] sm:$0xff] %v6502_v41  ;;  %v8160_v3 = vld [vmem:[%s9437_s2] ss:$0 sm:$0xff]  ;;  %v2146_v58 = vmax.f32 %v1634_v37, 0.0  ;;  %v1120_v61 = vmul.f32 %v8177_v55, %v601_v4  ;;  %v869_v38 = vmul.f32 %v8177_v55, %v350_v19  ;;  %v1124_v4 = vmul.f32 %v8177_v55, %v605_v26 }
 0x116   : > { %v6758_v50 = vpop.f32.mrf.mxu1  ;;  %v3443_v52 = vpop.f32.mrf.mxu0  ;;  %v1636_v41 = vadd.f32 %v8160_v3, %v1117_v20  ;;  %v1382_v8 = vadd.f32 %v8160_v3, %v863_v48  ;;  %v1383_v9 = vadd.f32 %v8160_v3, %v864_v49  ;;  %v1384_v11 = vadd.f32 %v8160_v3, %v865_v56  ;;  %v351_v20 = vld [vmem:[%s7064_s25 + $0x4a8] sm:$0xff] }
 0x117   : > { %5662 = vst [vmem:[%s7823_s10 + $0x8f8] sm:$0xff] %v6758_v50  ;;  %5404 = vst [vmem:[%s7823_s10 + $0xe8] sm:$0xff] %v3443_v52  ;;  %v602_v50 = vld [vmem:[%s7064_s25 + $0xc80] sm:$0xff]  ;;  %v603_v52 = vld [vmem:[%s7064_s25 + $0xc88] sm:$0xff]  ;;  %v1385_v51 = vadd.f32 %v8160_v3, %v866_v34  ;;  %v2461_v16 = vpack.c.bf16 %v2147_v59, %v2146_v58  ;;  %v1638_v17 = vadd.f32 %v8160_v3, %v1119_v60 }
 0x118   : > { %v4467_v62 = vpop.f32.mrf.mxu1  ;;  %v6505_v63 = vpop.f32.mrf.mxu0  ;;  %6600 = vmatmul.mubr.msk.bf16.gmra.mxu0 %vm2521_vm1, %v2329_v42  ;;  %v1637_v42 = vadd.f32 %v8160_v3, %v1118_v21  ;;  %v1121_v0 = vmul.f32 %v8177_v55, %v602_v50  ;;  %v1122_v1 = vmul.f32 %v8177_v55, %v603_v52  ;;  %v1639_v18 = vadd.f32 %v8160_v3, %v1120_v61 }
 0x119   : > { %5660 = vst [vmem:[%s7823_s10 + $0x8e8] sm:$0xff] %v4467_v62  ;;  %5409 = vst [vmem:[%s7823_s10 + $0x110] sm:$0xff] %v6505_v63  ;;  %6603 = vmatprep.mubr.msk.bf16.mxu0 %vm2521_vm1, %v2330_v45  ;;  %v2148_v62 = vmax.f32 %v1636_v41, 0.0  ;;  %v1895_v30 = vmax.f32 %v1383_v9, 0.0  ;;  %v1897_v37 = vmax.f32 %v1385_v51, 0.0  ;;  %v870_v39 = vmul.f32 %v8177_v55, %v351_v20 }
 0x11a   : > { %v6761_v12 = vpop.f32.mrf.mxu1  ;;  %6856 = vmatmul.mubr.msk.bf16.gmra.mxu1 %vm2521_vm1, %v2457_v53  ;;  %v3456_v13 = vpop.f32.mrf.mxu0  ;;  %v1892_v53 = vmax.f32 %v1380_v29, 0.0  ;;  %v2149_v63 = vmax.f32 %v1637_v42, 0.0  ;;  %v1894_v29 = vmax.f32 %v1382_v8, 0.0  ;;  %v2150_v41 = vmax.f32 %v1638_v17, 0.0  ;;  %v609_v8 = vld [vmem:[%s7064_s25 + $0xcb8] sm:$0xff] }
 0x11b   : > { %5665 = vst [vmem:[%s7823_s10 + $0x910] sm:$0xff] %v6761_v12  ;;  %5407 = vst [vmem:[%s7823_s10 + $0x100] sm:$0xff] %v3456_v13  ;;  %6859 = vmatprep.mubr.msk.bf16.mxu1 %vm2521_vm1, %v2458_v57  ;;  %v348_v12 = vld [vmem:[%s7064_s25 + $0x490] sm:$0xff]  ;;  %v349_v13 = vld [vmem:[%s7064_s25 + $0x498] sm:$0xff]  ;;  %v2151_v42 = vmax.f32 %v1639_v18, 0.0  ;;  %v1388_v56 = vadd.f32 %v8160_v3, %v869_v38  ;;  %v1389_v34 = vadd.f32 %v8160_v3, %v870_v39 }
 0x11c   : > { %v4480_v22 = vpop.f32.mrf.mxu1  ;;  %v6506_v23 = vpop.f32.mrf.mxu0  ;;  %v2334_v10 = vpack.c.bf16 %v1893_v54, %v1892_v53  ;;  %v2462_v21 = vpack.c.bf16 %v2149_v63, %v2148_v62  ;;  %v867_v31 = vmul.f32 %v8177_v55, %v348_v12  ;;  %v868_v32 = vmul.f32 %v8177_v55, %v349_v13  ;;  %v354_v63 = vld [vmem:[%s7064_s25 + $0x4c0] sm:$0xff] }
 0x11d   : > { %5663 = vst [vmem:[%s7823_s10 + $0x900] sm:$0xff] %v4480_v22  ;;  %5410 = vst [vmem:[%s7823_s10 + $0x118] sm:$0xff] %v6506_v23  ;;  %v1640_v22 = vadd.f32 %v8160_v3, %v1121_v0  ;;  %v1641_v23 = vadd.f32 %v8160_v3, %v1122_v1  ;;  %v2335_v50 = vpack.c.bf16 %v1895_v30, %v1894_v29  ;;  %v355_v0 = vld [vmem:[%s7064_s25 + $0x4c8] sm:$0xff]  ;;  %v1901_v17 = vmax.f32 %v1389_v34, 0.0 }
 0x11e   : > { %v6762_v33 = vpop.f32.mrf.mxu1  ;;  %v3459_v35 = vpop.f32.mrf.mxu0  ;;  %v1386_v52 = vadd.f32 %v8160_v3, %v867_v31  ;;  %v1387_v53 = vadd.f32 %v8160_v3, %v868_v32  ;;  %v2463_v60 = vpack.c.bf16 %v2151_v42, %v2150_v41  ;;  %v1643_v62 = vadd.f32 %v8160_v3, %v1124_v4 }
 0x11f   : > { %5666 = vst [vmem:[%s7823_s10 + $0x918] sm:$0xff] %v6762_v33  ;;  %5408 = vst [vmem:[%s7823_s10 + $0x108] sm:$0xff] %v3459_v35  ;;  %v606_v33 = vld [vmem:[%s7064_s25 + $0xca0] sm:$0xff]  ;;  %v607_v35 = vld [vmem:[%s7064_s25 + $0xca8] sm:$0xff]  ;;  %v873_v18 = vmul.f32 %v8177_v55, %v354_v63  ;;  %v874_v19 = vmul.f32 %v8177_v55, %v355_v0  ;;  %v1128_v26 = vmul.f32 %v8177_v55, %v609_v8 }
 0x120   : > { %v4483_v44 = vpop.f32.mrf.mxu1  ;;  %v6509_v45 = vpop.f32.mrf.mxu0  ;;  %6604 = vmatmul.mubr.msk.bf16.gmra.mxu0 %vm2521_vm1, %v2331_v25  ;;  %v604_v25 = vld [vmem:[%s7064_s25 + $0xc90] sm:$0xff]  ;;  %v1125_v46 = vmul.f32 %v8177_v55, %v606_v33  ;;  %v1126_v47 = vmul.f32 %v8177_v55, %v607_v35  ;;  %v1899_v51 = vmax.f32 %v1387_v53, 0.0 }
 0x121   : > { %5664 = vst [vmem:[%s7823_s10 + $0x908] sm:$0xff] %v4483_v44  ;;  %5413 = vst [vmem:[%s7823_s10 + $0x130] sm:$0xff] %v6509_v45  ;;  %6607 = vmatprep.mubr.msk.bf16.mxu0 %vm2521_vm1, %v2332_v28  ;;  %v1123_v43 = vmul.f32 %v8177_v55, %v604_v25  ;;  %v2152_v44 = vmax.f32 %v1640_v22, 0.0  ;;  %v2153_v45 = vmax.f32 %v1641_v23, 0.0  ;;  %v2155_v23 = vmax.f32 %v1643_v62, 0.0 }
 0x122   : > { %v6765_v24 = vpop.f32.mrf.mxu1  ;;  %6860 = vmatmul.mubr.msk.bf16.gmra.mxu1 %vm2521_vm1, %v2459_v36  ;;  %v3472_v57 = vpop.f32.mrf.mxu0  ;;  %v1896_v36 = vmax.f32 %v1384_v11, 0.0  ;;  %v1898_v11 = vmax.f32 %v1386_v52, 0.0  ;;  %v1392_v38 = vadd.f32 %v8160_v3, %v873_v18  ;;  %v1393_v39 = vadd.f32 %v8160_v3, %v874_v19  ;;  %v613_v52 = vld [vmem:[%s7064_s25 + $0xcd8] sm:$0xff] }
 0x123   : > { %5669 = vst [vmem:[%s7823_s10 + $0x930] sm:$0xff] %v6765_v24  ;;  %5411 = vst [vmem:[%s7823_s10 + $0x120] sm:$0xff] %v3472_v57  ;;  %6863 = vmatprep.mubr.msk.bf16.mxu1 %vm2521_vm1, %v2460_v2  ;;  %v352_v24 = vld [vmem:[%s7064_s25 + $0x4b0] sm:$0xff]  ;;  %v353_v57 = vld [vmem:[%s7064_s25 + $0x4b8] sm:$0xff]  ;;  %v1642_v61 = vadd.f32 %v8160_v3, %v1123_v43  ;;  %v2464_v1 = vpack.c.bf16 %v2153_v45, %v2152_v44  ;;  %v1647_v44 = vadd.f32 %v8160_v3, %v1128_v26 }
 0x124   : > { %v4496_v5 = vpop.f32.mrf.mxu1  ;;  %v6510_v6 = vpop.f32.mrf.mxu0  ;;  %v2336_v54 = vpack.c.bf16 %v1897_v37, %v1896_v36  ;;  %v871_v12 = vmul.f32 %v8177_v55, %v352_v24  ;;  %v872_v13 = vmul.f32 %v8177_v55, %v353_v57  ;;  %v2337_v33 = vpack.c.bf16 %v1899_v51, %v1898_v11  ;;  %v358_v45 = vld [vmem:[%s7064_s25 + $0x4e0] sm:$0xff] }
 0x125   : > { %5667 = vst [vmem:[%s7823_s10 + $0x920] sm:$0xff] %v4496_v5  ;;  %5414 = vst [vmem:[%s7823_s10 + $0x138] sm:$0xff] %v6510_v6  ;;  %v1644_v5 = vadd.f32 %v8160_v3, %v1125_v46  ;;  %v1645_v6 = vadd.f32 %v8160_v3, %v1126_v47  ;;  %v2154_v22 = vmax.f32 %v1642_v61, 0.0  ;;  %v359_v46 = vld [vmem:[%s7064_s25 + $0x4e8] sm:$0xff]  ;;  %v1905_v61 = vmax.f32 %v1393_v39, 0.0 }
 0x126   : > { %v6766_v14 = vpop.f32.mrf.mxu1  ;;  %v3475_v15 = vpop.f32.mrf.mxu0  ;;  %v1390_v35 = vadd.f32 %v8160_v3, %v871_v12  ;;  %v1391_v36 = vadd.f32 %v8160_v3, %v872_v13  ;;  %v877_v62 = vmul.f32 %v8177_v55, %v358_v45  ;;  %v878_v63 = vmul.f32 %v8177_v55, %v359_v46 }
 0x127   : > { %5670 = vst [vmem:[%s7823_s10 + $0x938] sm:$0xff] %v6766_v14  ;;  %5412 = vst [vmem:[%s7823_s10 + $0x128] sm:$0xff] %v3475_v15  ;;  %v610_v14 = vld [vmem:[%s7064_s25 + $0xcc0] sm:$0xff]  ;;  %v611_v15 = vld [vmem:[%s7064_s25 + $0xcc8] sm:$0xff]  ;;  %v2465_v43 = vpack.c.bf16 %v2155_v23, %v2154_v22  ;;  %v1132_v8 = vmul.f32 %v8177_v55, %v613_v52 }
 0x128   : > { %v4499_v27 = vpop.f32.mrf.mxu1  ;;  %v6513_v28 = vpop.f32.mrf.mxu0  ;;  %6608 = vmatmul.mubr.msk.bf16.gmra.mxu0 %vm2521_vm1, %v2333_v7  ;;  %v608_v7 = vld [vmem:[%s7064_s25 + $0xcb0] sm:$0xff]  ;;  %v1129_v29 = vmul.f32 %v8177_v55, %v610_v14  ;;  %v1130_v30 = vmul.f32 %v8177_v55, %v611_v15  ;;  %v1903_v34 = vmax.f32 %v1391_v36, 0.0  ;;  %v1396_v18 = vadd.f32 %v8160_v3, %v877_v62 }
 0x129   : > { %5668 = vst [vmem:[%s7823_s10 + $0x928] sm:$0xff] %v4499_v27  ;;  %5417 = vst [vmem:[%s7823_s10 + $0x150] sm:$0xff] %v6513_v28  ;;  %6611 = vmatprep.mubr.msk.bf16.mxu0 %vm2521_vm1, %v2334_v10  ;;  %v1127_v25 = vmul.f32 %v8177_v55, %v608_v7  ;;  %v2156_v27 = vmax.f32 %v1644_v5, 0.0  ;;  %v2157_v28 = vmax.f32 %v1645_v6, 0.0  ;;  %v2159_v6 = vmax.f32 %v1647_v44, 0.0 }
 0x12a   : > { %v6769_v40 = vpop.f32.mrf.mxu1  ;;  %6864 = vmatmul.mubr.msk.bf16.gmra.mxu1 %vm2521_vm1, %v2461_v16  ;;  %v3488_v2 = vpop.f32.mrf.mxu0  ;;  %v1900_v16 = vmax.f32 %v1388_v56, 0.0  ;;  %v1902_v56 = vmax.f32 %v1390_v35, 0.0  ;;  %v1397_v19 = vadd.f32 %v8160_v3, %v878_v63  ;;  %v617_v35 = vld [vmem:[%s7064_s25 + $0xcf8] sm:$0xff] }
 0x12b   : > { %5673 = vst [vmem:[%s7823_s10 + $0x950] sm:$0xff] %v6769_v40  ;;  %5415 = vst [vmem:[%s7823_s10 + $0x140] sm:$0xff] %v3488_v2  ;;  %6867 = vmatprep.mubr.msk.bf16.mxu1 %vm2521_vm1, %v2462_v21  ;;  %v356_v40 = vld [vmem:[%s7064_s25 + $0x4d0] sm:$0xff]  ;;  %v357_v2 = vld [vmem:[%s7064_s25 + $0x4d8] sm:$0xff]  ;;  %v1646_v4 = vadd.f32 %v8160_v3, %v1127_v25  ;;  %v2466_v47 = vpack.c.bf16 %v2157_v28, %v2156_v27  ;;  %v1651_v27 = vadd.f32 %v8160_v3, %v1132_v8 }
 0x12c   : > { %v4512_v48 = vpop.f32.mrf.mxu1  ;;  %v6514_v49 = vpop.f32.mrf.mxu0  ;;  %v2338_v37 = vpack.c.bf16 %v1901_v17, %v1900_v16  ;;  %v875_v24 = vmul.f32 %v8177_v55, %v356_v40  ;;  %v876_v57 = vmul.f32 %v8177_v55, %v357_v2  ;;  %v2339_v14 = vpack.c.bf16 %v1903_v34, %v1902_v56  ;;  %v362_v28 = vld [vmem:[%s7064_s25 + $0x500] sm:$0xff] }
 0x12d   : > { %5671 = vst [vmem:[%s7823_s10 + $0x940] sm:$0xff] %v4512_v48  ;;  %5418 = vst [vmem:[%s7823_s10 + $0x158] sm:$0xff] %v6514_v49  ;;  %v1648_v48 = vadd.f32 %v8160_v3, %v1129_v29  ;;  %v1649_v49 = vadd.f32 %v8160_v3, %v1130_v30  ;;  %v2158_v5 = vmax.f32 %v1646_v4, 0.0  ;;  %v363_v29 = vld [vmem:[%s7064_s25 + $0x508] sm:$0xff]  ;;  %v1909_v4 = vmax.f32 %v1397_v19, 0.0 }
 0x12e   : > { %v6770_v58 = vpop.f32.mrf.mxu1  ;;  %v3491_v59 = vpop.f32.mrf.mxu0  ;;  %v1394_v15 = vadd.f32 %v8160_v3, %v875_v24  ;;  %v1395_v16 = vadd.f32 %v8160_v3, %v876_v57  ;;  %v881_v44 = vmul.f32 %v8177_v55, %v362_v28  ;;  %v882_v45 = vmul.f32 %v8177_v55, %v363_v29 }
 0x12f   : > { %5674 = vst [vmem:[%s7823_s10 + $0x958] sm:$0xff] %v6770_v58  ;;  %5416 = vst [vmem:[%s7823_s10 + $0x148] sm:$0xff] %v3491_v59  ;;  %v614_v58 = vld [vmem:[%s7064_s25 + $0xce0] sm:$0xff]  ;;  %v615_v59 = vld [vmem:[%s7064_s25 + $0xce8] sm:$0xff]  ;;  %v2467_v25 = vpack.c.bf16 %v2159_v6, %v2158_v5  ;;  %v1136_v52 = vmul.f32 %v8177_v55, %v617_v35 }
 0x130   : > { %v4515_v9 = vpop.f32.mrf.mxu1  ;;  %v6517_v10 = vpop.f32.mrf.mxu0  ;;  %6612 = vmatmul.mubr.msk.bf16.gmra.mxu0 %vm2521_vm1, %v2335_v50  ;;  %v612_v50 = vld [vmem:[%s7064_s25 + $0xcd0] sm:$0xff]  ;;  %v1133_v11 = vmul.f32 %v8177_v55, %v614_v58  ;;  %v1134_v51 = vmul.f32 %v8177_v55, %v615_v59  ;;  %v1907_v39 = vmax.f32 %v1395_v16, 0.0  ;;  %v1400_v62 = vadd.f32 %v8160_v3, %v881_v44 }
 0x131   : > { %5672 = vst [vmem:[%s7823_s10 + $0x948] sm:$0xff] %v4515_v9  ;;  %5421 = vst [vmem:[%s7823_s10 + $0x170] sm:$0xff] %v6517_v10  ;;  %6615 = vmatprep.mubr.msk.bf16.mxu0 %vm2521_vm1, %v2336_v54  ;;  %v1131_v7 = vmul.f32 %v8177_v55, %v612_v50  ;;  %v2160_v9 = vmax.f32 %v1648_v48, 0.0  ;;  %v2161_v10 = vmax.f32 %v1649_v49, 0.0  ;;  %v2163_v49 = vmax.f32 %v1651_v27, 0.0 }
 0x132   : > { %v6773_v20 = vpop.f32.mrf.mxu1  ;;  %6868 = vmatmul.mubr.msk.bf16.gmra.mxu1 %vm2521_vm1, %v2463_v60  ;;  %v3504_v21 = vpop.f32.mrf.mxu0  ;;  %v1904_v60 = vmax.f32 %v1392_v38, 0.0  ;;  %v1906_v38 = vmax.f32 %v1394_v15, 0.0  ;;  %v1401_v63 = vadd.f32 %v8160_v3, %v882_v45  ;;  %v621_v15 = vld [vmem:[%s7064_s25 + $0xd18] sm:$0xff] }
 0x133   : > { %5677 = vst [vmem:[%s7823_s10 + $0x970] sm:$0xff] %v6773_v20  ;;  %5419 = vst [vmem:[%s7823_s10 + $0x160] sm:$0xff] %v3504_v21  ;;  %6871 = vmatprep.mubr.msk.bf16.mxu1 %vm2521_vm1, %v2464_v1  ;;  %v360_v20 = vld [vmem:[%s7064_s25 + $0x4f0] sm:$0xff]  ;;  %v361_v21 = vld [vmem:[%s7064_s25 + $0x4f8] sm:$0xff]  ;;  %v1650_v26 = vadd.f32 %v8160_v3, %v1131_v7  ;;  %v2468_v30 = vpack.c.bf16 %v2161_v10, %v2160_v9  ;;  %v1655_v9 = vadd.f32 %v8160_v3, %v1136_v52 }
 0x134   : > { %v4528_v31 = vpop.f32.mrf.mxu1  ;;  %v6518_v32 = vpop.f32.mrf.mxu0  ;;  %v2340_v17 = vpack.c.bf16 %v1905_v61, %v1904_v60  ;;  %v879_v40 = vmul.f32 %v8177_v55, %v360_v20  ;;  %v880_v2 = vmul.f32 %v8177_v55, %v361_v21  ;;  %v2341_v58 = vpack.c.bf16 %v1907_v39, %v1906_v38  ;;  %v366_v10 = vld [vmem:[%s7064_s25 + $0x520] sm:$0xff] }
 0x135   : > { %5675 = vst [vmem:[%s7823_s10 + $0x960] sm:$0xff] %v4528_v31  ;;  %5422 = vst [vmem:[%s7823_s10 + $0x178] sm:$0xff] %v6518_v32  ;;  %v1652_v31 = vadd.f32 %v8160_v3, %v1133_v11  ;;  %v1653_v32 = vadd.f32 %v8160_v3, %v1134_v51  ;;  %v2162_v48 = vmax.f32 %v1650_v26, 0.0  ;;  %v367_v11 = vld [vmem:[%s7064_s25 + $0x528] sm:$0xff]  ;;  %v1913_v26 = vmax.f32 %v1401_v63, 0.0 }
 0x136   : > { %v6774_v41 = vpop.f32.mrf.mxu1  ;;  %v3507_v42 = vpop.f32.mrf.mxu0  ;;  %v1398_v59 = vadd.f32 %v8160_v3, %v879_v40  ;;  %v1399_v60 = vadd.f32 %v8160_v3, %v880_v2  ;;  %v885_v27 = vmul.f32 %v8177_v55, %v366_v10  ;;  %v886_v28 = vmul.f32 %v8177_v55, %v367_v11 }
 0x137   : > { %5678 = vst [vmem:[%s7823_s10 + $0x978] sm:$0xff] %v6774_v41  ;;  %5420 = vst [vmem:[%s7823_s10 + $0x168] sm:$0xff] %v3507_v42  ;;  %v618_v41 = vld [vmem:[%s7064_s25 + $0xd00] sm:$0xff]  ;;  %v619_v42 = vld [vmem:[%s7064_s25 + $0xd08] sm:$0xff]  ;;  %v2469_v7 = vpack.c.bf16 %v2163_v49, %v2162_v48  ;;  %v1140_v35 = vmul.f32 %v8177_v55, %v621_v15 }
 0x138   : > { %v4531_v53 = vpop.f32.mrf.mxu1  ;;  %v6521_v54 = vpop.f32.mrf.mxu0  ;;  %6616 = vmatmul.mubr.msk.bf16.gmra.mxu0 %vm2521_vm1, %v2337_v33  ;;  %v616_v33 = vld [vmem:[%s7064_s25 + $0xcf0] sm:$0xff]  ;;  %v1137_v56 = vmul.f32 %v8177_v55, %v618_v41  ;;  %v1138_v34 = vmul.f32 %v8177_v55, %v619_v42  ;;  %v1911_v19 = vmax.f32 %v1399_v60, 0.0  ;;  %v1404_v44 = vadd.f32 %v8160_v3, %v885_v27 }
 0x139   : > { %5676 = vst [vmem:[%s7823_s10 + $0x968] sm:$0xff] %v4531_v53  ;;  %5425 = vst [vmem:[%s7823_s10 + $0x190] sm:$0xff] %v6521_v54  ;;  %6619 = vmatprep.mubr.msk.bf16.mxu0 %vm2521_vm1, %v2338_v37  ;;  %v1135_v50 = vmul.f32 %v8177_v55, %v616_v33  ;;  %v2164_v53 = vmax.f32 %v1652_v31, 0.0  ;;  %v2165_v54 = vmax.f32 %v1653_v32, 0.0  ;;  %v2167_v32 = vmax.f32 %v1655_v9, 0.0 }
 0x13a   : > { %v6777_v0 = vpop.f32.mrf.mxu1  ;;  %6872 = vmatmul.mubr.msk.bf16.gmra.mxu1 %vm2521_vm1, %v2465_v43  ;;  %v3520_v1 = vpop.f32.mrf.mxu0  ;;  %v1908_v43 = vmax.f32 %v1396_v18, 0.0  ;;  %v1910_v18 = vmax.f32 %v1398_v59, 0.0  ;;  %v1405_v45 = vadd.f32 %v8160_v3, %v886_v28  ;;  %v625_v59 = vld [vmem:[%s7064_s25 + $0xd38] sm:$0xff] }
 0x13b   : > { %5681 = vst [vmem:[%s7823_s10 + $0x990] sm:$0xff] %v6777_v0  ;;  %5423 = vst [vmem:[%s7823_s10 + $0x180] sm:$0xff] %v3520_v1  ;;  %6875 = vmatprep.mubr.msk.bf16.mxu1 %vm2521_vm1, %v2466_v47  ;;  %v364_v0 = vld [vmem:[%s7064_s25 + $0x510] sm:$0xff]  ;;  %v365_v1 = vld [vmem:[%s7064_s25 + $0x518] sm:$0xff]  ;;  %v1654_v8 = vadd.f32 %v8160_v3, %v1135_v50  ;;  %v2470_v51 = vpack.c.bf16 %v2165_v54, %v2164_v53  ;;  %v1659_v53 = vadd.f32 %v8160_v3, %v1140_v35 }
 0x13c   : > { %v4544_v12 = vpop.f32.mrf.mxu1  ;;  %v6522_v13 = vpop.f32.mrf.mxu0  ;;  %v2342_v61 = vpack.c.bf16 %v1909_v4, %v1908_v43  ;;  %v883_v20 = vmul.f32 %v8177_v55, %v364_v0  ;;  %v884_v21 = vmul.f32 %v8177_v55, %v365_v1  ;;  %v2343_v41 = vpack.c.bf16 %v1911_v19, %v1910_v18  ;;  %v370_v54 = vld [vmem:[%s7064_s25 + $0x540] sm:$0xff] }
 0x13d   : > { %5679 = vst [vmem:[%s7823_s10 + $0x980] sm:$0xff] %v4544_v12  ;;  %5426 = vst [vmem:[%s7823_s10 + $0x198] sm:$0xff] %v6522_v13  ;;  %v1656_v12 = vadd.f32 %v8160_v3, %v1137_v56  ;;  %v1657_v13 = vadd.f32 %v8160_v3, %v1138_v34  ;;  %v2166_v31 = vmax.f32 %v1654_v8, 0.0  ;;  %v371_v56 = vld [vmem:[%s7064_s25 + $0x548] sm:$0xff]  ;;  %v1917_v8 = vmax.f32 %v1405_v45, 0.0 }
 0x13e   : > { %v6778_v22 = vpop.f32.mrf.mxu1  ;;  %v3523_v23 = vpop.f32.mrf.mxu0  ;;  %v1402_v42 = vadd.f32 %v8160_v3, %v883_v20  ;;  %v1403_v43 = vadd.f32 %v8160_v3, %v884_v21  ;;  %v889_v9 = vmul.f32 %v8177_v55, %v370_v54  ;;  %v890_v10 = vmul.f32 %v8177_v55, %v371_v56 }
 0x13f   : > { %5682 = vst [vmem:[%s7823_s10 + $0x998] sm:$0xff] %v6778_v22  ;;  %5424 = vst [vmem:[%s7823_s10 + $0x188] sm:$0xff] %v3523_v23  ;;  %v622_v22 = vld [vmem:[%s7064_s25 + $0xd20] sm:$0xff]  ;;  %v623_v23 = vld [vmem:[%s7064_s25 + $0xd28] sm:$0xff]  ;;  %v2471_v50 = vpack.c.bf16 %v2167_v32, %v2166_v31  ;;  %v1144_v15 = vmul.f32 %v8177_v55, %v625_v59 }
 0x140   : > { %v4547_v36 = vpop.f32.mrf.mxu1  ;;  %v6525_v37 = vpop.f32.mrf.mxu0  ;;  %6620 = vmatmul.mubr.msk.bf16.gmra.mxu0 %vm2521_vm1, %v2339_v14  ;;  %v620_v14 = vld [vmem:[%s7064_s25 + $0xd10] sm:$0xff]  ;;  %v1141_v38 = vmul.f32 %v8177_v55, %v622_v22  ;;  %v1142_v39 = vmul.f32 %v8177_v55, %v623_v23  ;;  %v1915_v63 = vmax.f32 %v1403_v43, 0.0  ;;  %v1408_v27 = vadd.f32 %v8160_v3, %v889_v9 }
 0x141   : > { %5680 = vst [vmem:[%s7823_s10 + $0x988] sm:$0xff] %v4547_v36  ;;  %5429 = vst [vmem:[%s7823_s10 + $0x1b0] sm:$0xff] %v6525_v37  ;;  %6623 = vmatprep.mubr.msk.bf16.mxu0 %vm2521_vm1, %v2340_v17  ;;  %v1139_v33 = vmul.f32 %v8177_v55, %v620_v14  ;;  %v2168_v36 = vmax.f32 %v1656_v12, 0.0  ;;  %v2169_v37 = vmax.f32 %v1657_v13, 0.0  ;;  %v2171_v13 = vmax.f32 %v1659_v53, 0.0 }
 0x142   : > { %v6781_v46 = vpop.f32.mrf.mxu1  ;;  %6876 = vmatmul.mubr.msk.bf16.gmra.mxu1 %vm2521_vm1, %v2467_v25  ;;  %v3536_v47 = vpop.f32.mrf.mxu0  ;;  %v1912_v25 = vmax.f32 %v1400_v62, 0.0  ;;  %v1914_v62 = vmax.f32 %v1402_v42, 0.0  ;;  %v1409_v28 = vadd.f32 %v8160_v3, %v890_v10  ;;  %v629_v42 = vld [vmem:[%s7064_s25 + $0xd58] sm:$0xff] }
 0x143   : > { %5685 = vst [vmem:[%s7823_s10 + $0x9b0] sm:$0xff] %v6781_v46  ;;  %5427 = vst [vmem:[%s7823_s10 + $0x1a0] sm:$0xff] %v3536_v47  ;;  %6879 = vmatprep.mubr.msk.bf16.mxu1 %vm2521_vm1, %v2468_v30  ;;  %v368_v46 = vld [vmem:[%s7064_s25 + $0x530] sm:$0xff]  ;;  %v369_v47 = vld [vmem:[%s7064_s25 + $0x538] sm:$0xff]  ;;  %v1658_v52 = vadd.f32 %v8160_v3, %v1139_v33  ;;  %v2472_v34 = vpack.c.bf16 %v2169_v37, %v2168_v36  ;;  %v1663_v36 = vadd.f32 %v8160_v3, %v1144_v15 }
 0x144   : > { %v4560_v24 = vpop.f32.mrf.mxu1  ;;  %v6526_v57 = vpop.f32.mrf.mxu0  ;;  %v2344_v4 = vpack.c.bf16 %v1913_v26, %v1912_v25  ;;  %v887_v0 = vmul.f32 %v8177_v55, %v368_v46  ;;  %v888_v1 = vmul.f32 %v8177_v55, %v369_v47  ;;  %v2345_v22 = vpack.c.bf16 %v1915_v63, %v1914_v62  ;;  %v374_v37 = vld [vmem:[%s7064_s25 + $0x560] sm:$0xff] }
 0x145   : > { %5683 = vst [vmem:[%s7823_s10 + $0x9a0] sm:$0xff] %v4560_v24  ;;  %5430 = vst [vmem:[%s7823_s10 + $0x1b8] sm:$0xff] %v6526_v57  ;;  %v1660_v24 = vadd.f32 %v8160_v3, %v1141_v38  ;;  %v1661_v57 = vadd.f32 %v8160_v3, %v1142_v39  ;;  %v2170_v12 = vmax.f32 %v1658_v52, 0.0  ;;  %v375_v38 = vld [vmem:[%s7064_s25 + $0x568] sm:$0xff]  ;;  %v1921_v52 = vmax.f32 %v1409_v28, 0.0 }
 0x146   : > { %v6782_v5 = vpop.f32.mrf.mxu1  ;;  %v3539_v6 = vpop.f32.mrf.mxu0  ;;  %v1406_v23 = vadd.f32 %v8160_v3, %v887_v0  ;;  %v1407_v25 = vadd.f32 %v8160_v3, %v888_v1  ;;  %v893_v53 = vmul.f32 %v8177_v55, %v374_v37  ;;  %v894_v54 = vmul.f32 %v8177_v55, %v375_v38 }
 0x147   : > { %5686 = vst [vmem:[%s7823_s10 + $0x9b8] sm:$0xff] %v6782_v5  ;;  %5428 = vst [vmem:[%s7823_s10 + $0x1a8] sm:$0xff] %v3539_v6  ;;  %v626_v5 = vld [vmem:[%s7064_s25 + $0xd40] sm:$0xff]  ;;  %v627_v6 = vld [vmem:[%s7064_s25 + $0xd48] sm:$0xff]  ;;  %v2473_v33 = vpack.c.bf16 %v2171_v13, %v2170_v12  ;;  %v1148_v59 = vmul.f32 %v8177_v55, %v629_v42 }
 0x148   : > { %v4563_v16 = vpop.f32.mrf.mxu1  ;;  %v6529_v17 = vpop.f32.mrf.mxu0  ;;  %6624 = vmatmul.mubr.msk.bf16.gmra.mxu0 %vm2521_vm1, %v2341_v58  ;;  %v624_v58 = vld [vmem:[%s7064_s25 + $0xd30] sm:$0xff]  ;;  %v1145_v18 = vmul.f32 %v8177_v55, %v626_v5  ;;  %v1146_v19 = vmul.f32 %v8177_v55, %v627_v6  ;;  %v1919_v45 = vmax.f32 %v1407_v25, 0.0  ;;  %v1412_v9 = vadd.f32 %v8160_v3, %v893_v53 }
 0x149   : > { %5684 = vst [vmem:[%s7823_s10 + $0x9a8] sm:$0xff] %v4563_v16  ;;  %5433 = vst [vmem:[%s7823_s10 + $0x1d0] sm:$0xff] %v6529_v17  ;;  %6627 = vmatprep.mubr.msk.bf16.mxu0 %vm2521_vm1, %v2342_v61  ;;  %v1143_v14 = vmul.f32 %v8177_v55, %v624_v58  ;;  %v2172_v16 = vmax.f32 %v1660_v24, 0.0  ;;  %v2173_v17 = vmax.f32 %v1661_v57, 0.0  ;;  %v2175_v57 = vmax.f32 %v1663_v36, 0.0 }
 0x14a   : > { %v6785_v29 = vpop.f32.mrf.mxu1  ;;  %6880 = vmatmul.mubr.msk.bf16.gmra.mxu1 %vm2521_vm1, %v2469_v7  ;;  %v3552_v30 = vpop.f32.mrf.mxu0  ;;  %v1916_v7 = vmax.f32 %v1404_v44, 0.0  ;;  %v1918_v44 = vmax.f32 %v1406_v23, 0.0  ;;  %v1413_v10 = vadd.f32 %v8160_v3, %v894_v54  ;;  %v633_v23 = vld [vmem:[%s7064_s25 + $0xd78] sm:$0xff] }
 0x14b   : > { %5689 = vst [vmem:[%s7823_s10 + $0x9d0] sm:$0xff] %v6785_v29  ;;  %5431 = vst [vmem:[%s7823_s10 + $0x1c0] sm:$0xff] %v3552_v30  ;;  %6883 = vmatprep.mubr.msk.bf16.mxu1 %vm2521_vm1, %v2470_v51  ;;  %v372_v29 = vld [vmem:[%s7064_s25 + $0x550] sm:$0xff]  ;;  %v373_v30 = vld [vmem:[%s7064_s25 + $0x558] sm:$0xff]  ;;  %v1662_v35 = vadd.f32 %v8160_v3, %v1143_v14  ;;  %v2474_v39 = vpack.c.bf16 %v2173_v17, %v2172_v16  ;;  %v1667_v16 = vadd.f32 %v8160_v3, %v1148_v59 }
 0x14c   : > { %v4576_v40 = vpop.f32.mrf.mxu1  ;;  %v6530_v2 = vpop.f32.mrf.mxu0  ;;  %v2346_v26 = vpack.c.bf16 %v1917_v8, %v1916_v7  ;;  %v891_v46 = vmul.f32 %v8177_v55, %v372_v29  ;;  %v892_v47 = vmul.f32 %v8177_v55, %v373_v30  ;;  %v2347_v5 = vpack.c.bf16 %v1919_v45, %v1918_v44  ;;  %v378_v17 = vld [vmem:[%s7064_s25 + $0x580] sm:$0xff] }
 0x14d   : > { %5687 = vst [vmem:[%s7823_s10 + $0x9c0] sm:$0xff] %v4576_v40  ;;  %5434 = vst [vmem:[%s7823_s10 + $0x1d8] sm:$0xff] %v6530_v2  ;;  %v1664_v40 = vadd.f32 %v8160_v3, %v1145_v18  ;;  %v1665_v2 = vadd.f32 %v8160_v3, %v1146_v19  ;;  %v2174_v24 = vmax.f32 %v1662_v35, 0.0  ;;  %v379_v18 = vld [vmem:[%s7064_s25 + $0x588] sm:$0xff]  ;;  %v1925_v35 = vmax.f32 %v1413_v10, 0.0 }
 0x14e   : > { %v6786_v48 = vpop.f32.mrf.mxu1  ;;  %v3555_v49 = vpop.f32.mrf.mxu0  ;;  %v1410_v6 = vadd.f32 %v8160_v3, %v891_v46  ;;  %v1411_v7 = vadd.f32 %v8160_v3, %v892_v47  ;;  %v897_v36 = vmul.f32 %v8177_v55, %v378_v17  ;;  %v898_v37 = vmul.f32 %v8177_v55, %v379_v18 }
 0x14f   : > { %5690 = vst [vmem:[%s7823_s10 + $0x9d8] sm:$0xff] %v6786_v48  ;;  %5432 = vst [vmem:[%s7823_s10 + $0x1c8] sm:$0xff] %v3555_v49  ;;  %v630_v48 = vld [vmem:[%s7064_s25 + $0xd60] sm:$0xff]  ;;  %v631_v49 = vld [vmem:[%s7064_s25 + $0xd68] sm:$0xff]  ;;  %v2475_v14 = vpack.c.bf16 %v2175_v57, %v2174_v24  ;;  %v1152_v42 = vmul.f32 %v8177_v55, %v633_v23 }
 0x150   : > { %v4579_v60 = vpop.f32.mrf.mxu1  ;;  %v6533_v61 = vpop.f32.mrf.mxu0  ;;  %6628 = vmatmul.mubr.msk.bf16.gmra.mxu0 %vm2521_vm1, %v2343_v41  ;;  %v628_v41 = vld [vmem:[%s7064_s25 + $0xd50] sm:$0xff]  ;;  %v1149_v62 = vmul.f32 %v8177_v55, %v630_v48  ;;  %v1150_v63 = vmul.f32 %v8177_v55, %v631_v49  ;;  %v1923_v28 = vmax.f32 %v1411_v7, 0.0  ;;  %v1416_v53 = vadd.f32 %v8160_v3, %v897_v36 }
 0x151   : > { %5688 = vst [vmem:[%s7823_s10 + $0x9c8] sm:$0xff] %v4579_v60  ;;  %5437 = vst [vmem:[%s7823_s10 + $0x1f0] sm:$0xff] %v6533_v61  ;;  %6631 = vmatprep.mubr.msk.bf16.mxu0 %vm2521_vm1, %v2344_v4  ;;  %v1147_v58 = vmul.f32 %v8177_v55, %v628_v41  ;;  %v2176_v60 = vmax.f32 %v1664_v40, 0.0  ;;  %v2177_v61 = vmax.f32 %v1665_v2, 0.0  ;;  %v2179_v2 = vmax.f32 %v1667_v16, 0.0 }
 0x152   : > { %v6789_v11 = vpop.f32.mrf.mxu1  ;;  %6884 = vmatmul.mubr.msk.bf16.gmra.mxu1 %vm2521_vm1, %v2471_v50  ;;  %v3568_v51 = vpop.f32.mrf.mxu0  ;;  %v1920_v50 = vmax.f32 %v1408_v27, 0.0  ;;  %v1922_v27 = vmax.f32 %v1410_v6, 0.0  ;;  %v1417_v54 = vadd.f32 %v8160_v3, %v898_v37  ;;  %v637_v6 = vld [vmem:[%s7064_s25 + $0xd98] sm:$0xff] }
 0x153   : > { %5693 = vst [vmem:[%s7823_s10 + $0x9f0] sm:$0xff] %v6789_v11  ;;  %5435 = vst [vmem:[%s7823_s10 + $0x1e0] sm:$0xff] %v3568_v51  ;;  %6887 = vmatprep.mubr.msk.bf16.mxu1 %vm2521_vm1, %v2472_v34  ;;  %v376_v11 = vld [vmem:[%s7064_s25 + $0x570] sm:$0xff]  ;;  %v377_v51 = vld [vmem:[%s7064_s25 + $0x578] sm:$0xff]  ;;  %v1666_v15 = vadd.f32 %v8160_v3, %v1147_v58  ;;  %v2476_v19 = vpack.c.bf16 %v2177_v61, %v2176_v60  ;;  %v1671_v60 = vadd.f32 %v8160_v3, %v1152_v42 }
 0x154   : > { %v4592_v20 = vpop.f32.mrf.mxu1  ;;  %v6534_v21 = vpop.f32.mrf.mxu0  ;;  %v2348_v8 = vpack.c.bf16 %v1921_v52, %v1920_v50  ;;  %v895_v29 = vmul.f32 %v8177_v55, %v376_v11  ;;  %v896_v30 = vmul.f32 %v8177_v55, %v377_v51  ;;  %v2349_v48 = vpack.c.bf16 %v1923_v28, %v1922_v27  ;;  %v382_v61 = vld [vmem:[%s7064_s25 + $0x5a0] sm:$0xff] }
 0x155   : > { %5691 = vst [vmem:[%s7823_s10 + $0x9e0] sm:$0xff] %v4592_v20  ;;  %5438 = vst [vmem:[%s7823_s10 + $0x1f8] sm:$0xff] %v6534_v21  ;;  %v1668_v20 = vadd.f32 %v8160_v3, %v1149_v62  ;;  %v1669_v21 = vadd.f32 %v8160_v3, %v1150_v63  ;;  %v2178_v40 = vmax.f32 %v1666_v15, 0.0  ;;  %v383_v62 = vld [vmem:[%s7064_s25 + $0x5a8] sm:$0xff]  ;;  %v901_v15 = vmul.f32 %v8177_v55, %v382_v61 }
 0x156   : > { %v6790_v31 = vpop.f32.mrf.mxu1  ;;  %v3571_v32 = vpop.f32.mrf.mxu0  ;;  %v1414_v49 = vadd.f32 %v8160_v3, %v895_v29  ;;  %v1415_v50 = vadd.f32 %v8160_v3, %v896_v30  ;;  %v902_v16 = vmul.f32 %v8177_v55, %v383_v62 }
 0x157   : > { %5694 = vst [vmem:[%s7823_s10 + $0x9f8] sm:$0xff] %v6790_v31  ;;  %5436 = vst [vmem:[%s7823_s10 + $0x1e8] sm:$0xff] %v3571_v32  ;;  %v634_v31 = vld [vmem:[%s7064_s25 + $0xd80] sm:$0xff]  ;;  %v635_v32 = vld [vmem:[%s7064_s25 + $0xd88] sm:$0xff]  ;;  %v2477_v58 = vpack.c.bf16 %v2179_v2, %v2178_v40 }
 0x158   : > { %v4595_v43 = vpop.f32.mrf.mxu1  ;;  %v6537_v4 = vpop.f32.mrf.mxu0  ;;  %6632 = vmatmul.mubr.msk.bf16.gmra.mxu0 %vm2521_vm1, %v2345_v22  ;;  %v632_v22 = vld [vmem:[%s7064_s25 + $0xd70] sm:$0xff]  ;;  %v1153_v44 = vmul.f32 %v8177_v55, %v634_v31  ;;  %v1154_v45 = vmul.f32 %v8177_v55, %v635_v32  ;;  %v1927_v10 = vmax.f32 %v1415_v50, 0.0  ;;  %v8521_v31 = vld [vmem:[%s9437_s2] ss:$0 sm:$0xff] }
 0x159   : > { %5692 = vst [vmem:[%s7823_s10 + $0x9e8] sm:$0xff] %v4595_v43  ;;  %5441 = vst [vmem:[%s7823_s10 + $0x210] sm:$0xff] %v6537_v4  ;;  %6635 = vmatprep.mubr.msk.bf16.mxu0 %vm2521_vm1, %v2346_v26  ;;  %v1151_v41 = vmul.f32 %v8177_v55, %v632_v22  ;;  %v2180_v43 = vmax.f32 %v1668_v20, 0.0  ;;  %v2181_v4 = vmax.f32 %v1669_v21, 0.0  ;;  %v2183_v20 = vmax.f32 %v1671_v60, 0.0 }
 0x15a   : > { %v6793_v56 = vpop.f32.mrf.mxu1  ;;  %6888 = vmatmul.mubr.msk.bf16.gmra.mxu1 %vm2521_vm1, %v2473_v33  ;;  %v3584_v34 = vpop.f32.mrf.mxu0  ;;  %v1924_v33 = vmax.f32 %v1412_v9, 0.0  ;;  %v1926_v9 = vmax.f32 %v1414_v49, 0.0  ;;  %v8510_v22 = vld [vmem:[%s9436_s1] ss:$0 sm:$0xff]  ;;  %v1420_v36 = vadd.f32 %v8521_v31, %v901_v15  ;;  %v1421_v37 = vadd.f32 %v8521_v31, %v902_v16  ;;  %v641_v49 = vld [vmem:[%s7064_s25 + $0xdb8] sm:$0xff] }
 0x15b   : > { %5697 = vst [vmem:[%s7823_s10 + $0xa10] sm:$0xff] %v6793_v56  ;;  %5439 = vst [vmem:[%s7823_s10 + $0x200] sm:$0xff] %v3584_v34  ;;  %6891 = vmatprep.mubr.msk.bf16.mxu1 %vm2521_vm1, %v2474_v39  ;;  %v380_v56 = vld [vmem:[%s7064_s25 + $0x590] sm:$0xff]  ;;  %v381_v34 = vld [vmem:[%s7064_s25 + $0x598] sm:$0xff]  ;;  %v1670_v59 = vadd.f32 %v8160_v3, %v1151_v41  ;;  %v2478_v63 = vpack.c.bf16 %v2181_v4, %v2180_v43  ;;  %v1156_v23 = vmul.f32 %v8510_v22, %v637_v6 }
 0x15c   : > { %v4608_v0 = vpop.f32.mrf.mxu1  ;;  %v6538_v1 = vpop.f32.mrf.mxu0  ;;  %v2350_v52 = vpack.c.bf16 %v1925_v35, %v1924_v33  ;;  %v899_v11 = vmul.f32 %v8177_v55, %v380_v56  ;;  %v900_v51 = vmul.f32 %v8177_v55, %v381_v34  ;;  %v2351_v30 = vpack.c.bf16 %v1927_v10, %v1926_v9  ;;  %v386_v4 = vld [vmem:[%s7064_s25 + $0x5c0] sm:$0xff] }
 0x15d   : > { %5695 = vst [vmem:[%s7823_s10 + $0xa00] sm:$0xff] %v4608_v0  ;;  %5442 = vst [vmem:[%s7823_s10 + $0x218] sm:$0xff] %v6538_v1  ;;  %v1672_v0 = vadd.f32 %v8160_v3, %v1153_v44  ;;  %v1673_v1 = vadd.f32 %v8160_v3, %v1154_v45  ;;  %v1928_v3 = vmax.f32 %v1416_v53, 0.0  ;;  %v1675_v43 = vadd.f32 %v8521_v31, %v1156_v23  ;;  %v387_v44 = vld [vmem:[%s7064_s25 + $0x5c8] sm:$0xff] }
 0x15e   : > { %v6794_v12 = vpop.f32.mrf.mxu1  ;;  %v3587_v13 = vpop.f32.mrf.mxu0  ;;  %v1418_v32 = vadd.f32 %v8521_v31, %v899_v11  ;;  %v1419_v33 = vadd.f32 %v8521_v31, %v900_v51  ;;  %v905_v60 = vmul.f32 %v8510_v22, %v386_v4  ;;  %v906_v61 = vmul.f32 %v8510_v22, %v387_v44 }
 0x15f   : > { %5698 = vst [vmem:[%s7823_s10 + $0xa18] sm:$0xff] %v6794_v12  ;;  %5440 = vst [vmem:[%s7823_s10 + $0x208] sm:$0xff] %v3587_v13  ;;  %v638_v12 = vld [vmem:[%s7064_s25 + $0xda0] sm:$0xff]  ;;  %v639_v13 = vld [vmem:[%s7064_s25 + $0xda8] sm:$0xff]  ;;  %v1160_v6 = vmul.f32 %v8510_v22, %v641_v49 }
 0x160   : > { %v4611_v25 = vpop.f32.mrf.mxu1  ;;  %v6541_v26 = vpop.f32.mrf.mxu0  ;;  %6636 = vmatmul.mubr.msk.bf16.gmra.mxu0 %vm2521_vm1, %v2347_v5  ;;  %v636_v5 = vld [vmem:[%s7064_s25 + $0xd90] sm:$0xff]  ;;  %v1157_v27 = vmul.f32 %v8510_v22, %v638_v12  ;;  %v1930_v53 = vmax.f32 %v1418_v32, 0.0  ;;  %v1424_v15 = vadd.f32 %v8521_v31, %v905_v60  ;;  %v1425_v16 = vadd.f32 %v8521_v31, %v906_v61  ;;  %v645_v32 = vld [vmem:[%s7064_s25 + $0xdd8] sm:$0xff] }
 0x161   : > { %5696 = vst [vmem:[%s7823_s10 + $0xa08] sm:$0xff] %v4611_v25  ;;  %5445 = vst [vmem:[%s7823_s10 + $0x230] sm:$0xff] %v6541_v26  ;;  %6639 = vmatprep.mubr.msk.bf16.mxu0 %vm2521_vm1, %v2348_v8  ;;  %v1155_v21 = vmul.f32 %v8177_v55, %v636_v5  ;;  %v2184_v25 = vmax.f32 %v1672_v0, 0.0  ;;  %v2185_v26 = vmax.f32 %v1673_v1, 0.0  ;;  %v1158_v55 = vmul.f32 %v8510_v22, %v639_v13 }
 0x162   : > { %v6797_v38 = vpop.f32.mrf.mxu1  ;;  %6892 = vmatmul.mubr.msk.bf16.gmra.mxu1 %vm2521_vm1, %v2475_v14  ;;  %v3600_v39 = vpop.f32.mrf.mxu0  ;;  %v1929_v14 = vmax.f32 %v1417_v54, 0.0  ;;  %v1931_v54 = vmax.f32 %v1419_v33, 0.0  ;;  %v2187_v1 = vmax.f32 %v1675_v43, 0.0  ;;  %v1164_v49 = vmul.f32 %v8510_v22, %v645_v32 }
 0x163   : > { %5701 = vst [vmem:[%s7823_s10 + $0xa30] sm:$0xff] %v6797_v38  ;;  %5443 = vst [vmem:[%s7823_s10 + $0x220] sm:$0xff] %v3600_v39  ;;  %6895 = vmatprep.mubr.msk.bf16.mxu1 %vm2521_vm1, %v2476_v19  ;;  %v2182_v19 = vmax.f32 %v1670_v59, 0.0  ;;  %v384_v38 = vld [vmem:[%s7064_s25 + $0x5b0] sm:$0xff]  ;;  %v385_v39 = vld [vmem:[%s7064_s25 + $0x5b8] sm:$0xff]  ;;  %v1674_v42 = vadd.f32 %v8521_v31, %v1155_v21  ;;  %v2480_v45 = vpack.c.bf16 %v2185_v26, %v2184_v25  ;;  %v1933_v59 = vmax.f32 %v1421_v37, 0.0 }
 0x164   : > { %v4624_v46 = vpop.f32.mrf.mxu1  ;;  %v6542_v47 = vpop.f32.mrf.mxu0  ;;  %v2352_v35 = vpack.c.bf16 %v1929_v14, %v1928_v3  ;;  %v903_v56 = vmul.f32 %v8510_v22, %v384_v38  ;;  %v904_v34 = vmul.f32 %v8510_v22, %v385_v39  ;;  %v2353_v12 = vpack.c.bf16 %v1931_v54, %v1930_v53  ;;  %v390_v26 = vld [vmem:[%s7064_s25 + $0x5e0] sm:$0xff] }
 0x165   : > { %5699 = vst [vmem:[%s7823_s10 + $0xa20] sm:$0xff] %v4624_v46  ;;  %5446 = vst [vmem:[%s7823_s10 + $0x238] sm:$0xff] %v6542_v47  ;;  %v2479_v41 = vpack.c.bf16 %v2183_v20, %v2182_v19  ;;  %v1676_v46 = vadd.f32 %v8521_v31, %v1157_v27  ;;  %v1677_v47 = vadd.f32 %v8521_v31, %v1158_v55  ;;  %v2186_v0 = vmax.f32 %v1674_v42, 0.0  ;;  %v391_v27 = vld [vmem:[%s7064_s25 + $0x5e8] sm:$0xff] }
 0x166   : > { %v6798_v24 = vpop.f32.mrf.mxu1  ;;  %v3603_v57 = vpop.f32.mrf.mxu0  ;;  %v1422_v13 = vadd.f32 %v8521_v31, %v903_v56  ;;  %v1423_v3 = vadd.f32 %v8521_v31, %v904_v34  ;;  %v1679_v25 = vadd.f32 %v8521_v31, %v1160_v6  ;;  %v1937_v42 = vmax.f32 %v1425_v16, 0.0 }
 0x167   : > { %5702 = vst [vmem:[%s7823_s10 + $0xa38] sm:$0xff] %v6798_v24  ;;  %5444 = vst [vmem:[%s7823_s10 + $0x228] sm:$0xff] %v3603_v57  ;;  %v642_v24 = vld [vmem:[%s7064_s25 + $0xdc0] sm:$0xff]  ;;  %v643_v57 = vld [vmem:[%s7064_s25 + $0xdc8] sm:$0xff]  ;;  %v2481_v21 = vpack.c.bf16 %v2187_v1, %v2186_v0  ;;  %v909_v43 = vmul.f32 %v8510_v22, %v390_v26  ;;  %v910_v4 = vmul.f32 %v8510_v22, %v391_v27 }
 0x168   : > { %v4627_v7 = vpop.f32.mrf.mxu1  ;;  %v6545_v8 = vpop.f32.mrf.mxu0  ;;  %6640 = vmatmul.mubr.msk.bf16.gmra.mxu0 %vm2521_vm1, %v2349_v48  ;;  %v640_v48 = vld [vmem:[%s7064_s25 + $0xdb0] sm:$0xff]  ;;  %v1161_v9 = vmul.f32 %v8510_v22, %v642_v24  ;;  %v1162_v10 = vmul.f32 %v8510_v22, %v643_v57  ;;  %v1935_v37 = vmax.f32 %v1423_v3, 0.0 }
 0x169   : > { %5700 = vst [vmem:[%s7823_s10 + $0xa28] sm:$0xff] %v4627_v7  ;;  %5449 = vst [vmem:[%s7823_s10 + $0x250] sm:$0xff] %v6545_v8  ;;  %6643 = vmatprep.mubr.msk.bf16.mxu0 %vm2521_vm1, %v2350_v52  ;;  %v1159_v5 = vmul.f32 %v8510_v22, %v640_v48  ;;  %v2188_v7 = vmax.f32 %v1676_v46, 0.0  ;;  %v2189_v8 = vmax.f32 %v1677_v47, 0.0  ;;  %v2191_v47 = vmax.f32 %v1679_v25, 0.0 }
 0x16a   : > { %v6801_v17 = vpop.f32.mrf.mxu1  ;;  %6896 = vmatmul.mubr.msk.bf16.gmra.mxu1 %vm2521_vm1, %v2477_v58  ;;  %v3616_v18 = vpop.f32.mrf.mxu0  ;;  %v1932_v58 = vmax.f32 %v1420_v36, 0.0  ;;  %v1934_v36 = vmax.f32 %v1422_v13, 0.0  ;;  %v1428_v60 = vadd.f32 %v8521_v31, %v909_v43  ;;  %v1429_v61 = vadd.f32 %v8521_v31, %v910_v4  ;;  %v649_v13 = vld [vmem:[%s7064_s25 + $0xdf8] sm:$0xff] }
 0x16b   : > { %5705 = vst [vmem:[%s7823_s10 + $0xa50] sm:$0xff] %v6801_v17  ;;  %5447 = vst [vmem:[%s7823_s10 + $0x240] sm:$0xff] %v3616_v18  ;;  %6899 = vmatprep.mubr.msk.bf16.mxu1 %vm2521_vm1, %v2478_v63  ;;  %v388_v17 = vld [vmem:[%s7064_s25 + $0x5d0] sm:$0xff]  ;;  %v389_v18 = vld [vmem:[%s7064_s25 + $0x5d8] sm:$0xff]  ;;  %v1678_v23 = vadd.f32 %v8521_v31, %v1159_v5  ;;  %v2482_v55 = vpack.c.bf16 %v2189_v8, %v2188_v7  ;;  %v1683_v7 = vadd.f32 %v8521_v31, %v1164_v49 }
 0x16c   : > { %v4640_v28 = vpop.f32.mrf.mxu1  ;;  %v6546_v29 = vpop.f32.mrf.mxu0  ;;  %v2354_v14 = vpack.c.bf16 %v1933_v59, %v1932_v58  ;;  %v907_v38 = vmul.f32 %v8510_v22, %v388_v17  ;;  %v908_v39 = vmul.f32 %v8510_v22, %v389_v18  ;;  %v2355_v24 = vpack.c.bf16 %v1935_v37, %v1934_v36  ;;  %v394_v8 = vld [vmem:[%s7064_s25 + $0x600] sm:$0xff] }
 0x16d   : > { %5703 = vst [vmem:[%s7823_s10 + $0xa40] sm:$0xff] %v4640_v28  ;;  %5450 = vst [vmem:[%s7823_s10 + $0x258] sm:$0xff] %v6546_v29  ;;  %v1680_v28 = vadd.f32 %v8521_v31, %v1161_v9  ;;  %v1681_v29 = vadd.f32 %v8521_v31, %v1162_v10  ;;  %v2190_v46 = vmax.f32 %v1678_v23, 0.0  ;;  %v395_v9 = vld [vmem:[%s7064_s25 + $0x608] sm:$0xff]  ;;  %v1941_v23 = vmax.f32 %v1429_v61, 0.0 }
 0x16e   : > { %v6802_v40 = vpop.f32.mrf.mxu1  ;;  %v3619_v2 = vpop.f32.mrf.mxu0  ;;  %v1426_v57 = vadd.f32 %v8521_v31, %v907_v38  ;;  %v1427_v58 = vadd.f32 %v8521_v31, %v908_v39  ;;  %v913_v25 = vmul.f32 %v8510_v22, %v394_v8  ;;  %v914_v26 = vmul.f32 %v8510_v22, %v395_v9 }
 0x16f   : > { %5706 = vst [vmem:[%s7823_s10 + $0xa58] sm:$0xff] %v6802_v40  ;;  %5448 = vst [vmem:[%s7823_s10 + $0x248] sm:$0xff] %v3619_v2  ;;  %v646_v40 = vld [vmem:[%s7064_s25 + $0xde0] sm:$0xff]  ;;  %v647_v2 = vld [vmem:[%s7064_s25 + $0xde8] sm:$0xff]  ;;  %v2483_v5 = vpack.c.bf16 %v2191_v47, %v2190_v46  ;;  %v1168_v32 = vmul.f32 %v8510_v22, %v649_v13 }
 0x170   : > { %v4643_v50 = vpop.f32.mrf.mxu1  ;;  %v6549_v52 = vpop.f32.mrf.mxu0  ;;  %6644 = vmatmul.mubr.msk.bf16.gmra.mxu0 %vm2521_vm1, %v2351_v30  ;;  %v644_v30 = vld [vmem:[%s7064_s25 + $0xdd0] sm:$0xff]  ;;  %v1165_v53 = vmul.f32 %v8510_v22, %v646_v40  ;;  %v1166_v54 = vmul.f32 %v8510_v22, %v647_v2  ;;  %v1939_v16 = vmax.f32 %v1427_v58, 0.0  ;;  %v1432_v43 = vadd.f32 %v8521_v31, %v913_v25 }
 0x171   : > { %5704 = vst [vmem:[%s7823_s10 + $0xa48] sm:$0xff] %v4643_v50  ;;  %5453 = vst [vmem:[%s7823_s10 + $0x270] sm:$0xff] %v6549_v52  ;;  %6647 = vmatprep.mubr.msk.bf16.mxu0 %vm2521_vm1, %v2352_v35  ;;  %v1163_v48 = vmul.f32 %v8510_v22, %v644_v30  ;;  %v2192_v50 = vmax.f32 %v1680_v28, 0.0  ;;  %v2193_v52 = vmax.f32 %v1681_v29, 0.0  ;;  %v2195_v29 = vmax.f32 %v1683_v7, 0.0 }
 0x172   : > { %v6805_v62 = vpop.f32.mrf.mxu1  ;;  %6900 = vmatmul.mubr.msk.bf16.gmra.mxu1 %vm2521_vm1, %v2479_v41  ;;  %v3632_v63 = vpop.f32.mrf.mxu0  ;;  %v1936_v41 = vmax.f32 %v1424_v15, 0.0  ;;  %v1938_v15 = vmax.f32 %v1426_v57, 0.0  ;;  %v1433_v4 = vadd.f32 %v8521_v31, %v914_v26  ;;  %v653_v57 = vld [vmem:[%s7064_s25 + $0xe18] sm:$0xff] }
 0x173   : > { %5709 = vst [vmem:[%s7823_s10 + $0xa70] sm:$0xff] %v6805_v62  ;;  %5451 = vst [vmem:[%s7823_s10 + $0x260] sm:$0xff] %v3632_v63  ;;  %6903 = vmatprep.mubr.msk.bf16.mxu1 %vm2521_vm1, %v2480_v45  ;;  %v392_v62 = vld [vmem:[%s7064_s25 + $0x5f0] sm:$0xff]  ;;  %v393_v63 = vld [vmem:[%s7064_s25 + $0x5f8] sm:$0xff]  ;;  %v1682_v6 = vadd.f32 %v8521_v31, %v1163_v48  ;;  %v2484_v10 = vpack.c.bf16 %v2193_v52, %v2192_v50  ;;  %v1687_v50 = vadd.f32 %v8521_v31, %v1168_v32 }
 0x174   : > { %v4656_v11 = vpop.f32.mrf.mxu1  ;;  %v6550_v51 = vpop.f32.mrf.mxu0  ;;  %v2356_v59 = vpack.c.bf16 %v1937_v42, %v1936_v41  ;;  %v911_v17 = vmul.f32 %v8510_v22, %v392_v62  ;;  %v912_v18 = vmul.f32 %v8510_v22, %v393_v63  ;;  %v2357_v40 = vpack.c.bf16 %v1939_v16, %v1938_v15  ;;  %v398_v52 = vld [vmem:[%s7064_s25 + $0x620] sm:$0xff] }
 0x175   : > { %5707 = vst [vmem:[%s7823_s10 + $0xa60] sm:$0xff] %v4656_v11  ;;  %5454 = vst [vmem:[%s7823_s10 + $0x278] sm:$0xff] %v6550_v51  ;;  %v1684_v11 = vadd.f32 %v8521_v31, %v1165_v53  ;;  %v1685_v51 = vadd.f32 %v8521_v31, %v1166_v54  ;;  %v2194_v28 = vmax.f32 %v1682_v6, 0.0  ;;  %v399_v53 = vld [vmem:[%s7064_s25 + $0x628] sm:$0xff]  ;;  %v1945_v6 = vmax.f32 %v1433_v4, 0.0 }
 0x176   : > { %v6806_v19 = vpop.f32.mrf.mxu1  ;;  %v3635_v20 = vpop.f32.mrf.mxu0  ;;  %v1430_v2 = vadd.f32 %v8521_v31, %v911_v17  ;;  %v1431_v41 = vadd.f32 %v8521_v31, %v912_v18  ;;  %v917_v7 = vmul.f32 %v8510_v22, %v398_v52  ;;  %v918_v8 = vmul.f32 %v8510_v22, %v399_v53 }
 0x177   : > { %5710 = vst [vmem:[%s7823_s10 + $0xa78] sm:$0xff] %v6806_v19  ;;  %5452 = vst [vmem:[%s7823_s10 + $0x268] sm:$0xff] %v3635_v20  ;;  %v650_v19 = vld [vmem:[%s7064_s25 + $0xe00] sm:$0xff]  ;;  %v651_v20 = vld [vmem:[%s7064_s25 + $0xe08] sm:$0xff]  ;;  %v2485_v48 = vpack.c.bf16 %v2195_v29, %v2194_v28  ;;  %v1172_v13 = vmul.f32 %v8510_v22, %v653_v57 }
 0x178   : > { %v4659_v33 = vpop.f32.mrf.mxu1  ;;  %v6553_v35 = vpop.f32.mrf.mxu0  ;;  %6648 = vmatmul.mubr.msk.bf16.gmra.mxu0 %vm2521_vm1, %v2353_v12  ;;  %v648_v12 = vld [vmem:[%s7064_s25 + $0xdf0] sm:$0xff]  ;;  %v1169_v36 = vmul.f32 %v8510_v22, %v650_v19  ;;  %v1170_v37 = vmul.f32 %v8510_v22, %v651_v20  ;;  %v1943_v61 = vmax.f32 %v1431_v41, 0.0  ;;  %v1436_v25 = vadd.f32 %v8521_v31, %v917_v7 }
 0x179   : > { %5708 = vst [vmem:[%s7823_s10 + $0xa68] sm:$0xff] %v4659_v33  ;;  %5457 = vst [vmem:[%s7823_s10 + $0x290] sm:$0xff] %v6553_v35  ;;  %6651 = vmatprep.mubr.msk.bf16.mxu0 %vm2521_vm1, %v2354_v14  ;;  %v1167_v30 = vmul.f32 %v8510_v22, %v648_v12  ;;  %v2196_v33 = vmax.f32 %v1684_v11, 0.0  ;;  %v2197_v35 = vmax.f32 %v1685_v51, 0.0  ;;  %v2199_v51 = vmax.f32 %v1687_v50, 0.0 }
 0x17a   : > { %v6809_v44 = vpop.f32.mrf.mxu1  ;;  %6904 = vmatmul.mubr.msk.bf16.gmra.mxu1 %vm2521_vm1, %v2481_v21  ;;  %v3648_v45 = vpop.f32.mrf.mxu0  ;;  %v1940_v21 = vmax.f32 %v1428_v60, 0.0  ;;  %v1942_v60 = vmax.f32 %v1430_v2, 0.0  ;;  %v1437_v26 = vadd.f32 %v8521_v31, %v918_v8  ;;  %v657_v2 = vld [vmem:[%s7064_s25 + $0xe38] sm:$0xff] }
 0x17b   : > { %5713 = vst [vmem:[%s7823_s10 + $0xa90] sm:$0xff] %v6809_v44  ;;  %5455 = vst [vmem:[%s7823_s10 + $0x280] sm:$0xff] %v3648_v45  ;;  %6907 = vmatprep.mubr.msk.bf16.mxu1 %vm2521_vm1, %v2482_v55  ;;  %v396_v44 = vld [vmem:[%s7064_s25 + $0x610] sm:$0xff]  ;;  %v397_v45 = vld [vmem:[%s7064_s25 + $0x618] sm:$0xff]  ;;  %v1686_v49 = vadd.f32 %v8521_v31, %v1167_v30  ;;  %v2486_v54 = vpack.c.bf16 %v2197_v35, %v2196_v33  ;;  %v1691_v33 = vadd.f32 %v8521_v31, %v1172_v13 }
 0x17c   : > { %v4672_v56 = vpop.f32.mrf.mxu1  ;;  %v6554_v34 = vpop.f32.mrf.mxu0  ;;  %v2358_v42 = vpack.c.bf16 %v1941_v23, %v1940_v21  ;;  %v915_v62 = vmul.f32 %v8510_v22, %v396_v44  ;;  %v916_v63 = vmul.f32 %v8510_v22, %v397_v45  ;;  %v2359_v19 = vpack.c.bf16 %v1943_v61, %v1942_v60  ;;  %v402_v35 = vld [vmem:[%s7064_s25 + $0x640] sm:$0xff] }
 0x17d   : > { %5711 = vst [vmem:[%s7823_s10 + $0xa80] sm:$0xff] %v4672_v56  ;;  %5458 = vst [vmem:[%s7823_s10 + $0x298] sm:$0xff] %v6554_v34  ;;  %v1688_v56 = vadd.f32 %v8521_v31, %v1169_v36  ;;  %v1689_v34 = vadd.f32 %v8521_v31, %v1170_v37  ;;  %v2198_v11 = vmax.f32 %v1686_v49, 0.0  ;;  %v403_v36 = vld [vmem:[%s7064_s25 + $0x648] sm:$0xff]  ;;  %v1949_v49 = vmax.f32 %v1437_v26, 0.0 }
 0x17e   : > { %v6810_v0 = vpop.f32.mrf.mxu1  ;;  %v3651_v1 = vpop.f32.mrf.mxu0  ;;  %v1434_v20 = vadd.f32 %v8521_v31, %v915_v62  ;;  %v1435_v21 = vadd.f32 %v8521_v31, %v916_v63  ;;  %v921_v50 = vmul.f32 %v8510_v22, %v402_v35  ;;  %v922_v52 = vmul.f32 %v8510_v22, %v403_v36 }
 0x17f   : > { %5714 = vst [vmem:[%s7823_s10 + $0xa98] sm:$0xff] %v6810_v0  ;;  %5456 = vst [vmem:[%s7823_s10 + $0x288] sm:$0xff] %v3651_v1  ;;  %v654_v0 = vld [vmem:[%s7064_s25 + $0xe20] sm:$0xff]  ;;  %v655_v1 = vld [vmem:[%s7064_s25 + $0xe28] sm:$0xff]  ;;  %v2487_v30 = vpack.c.bf16 %v2199_v51, %v2198_v11  ;;  %v1176_v57 = vmul.f32 %v8510_v22, %v657_v2 }
 0x180   : > { %v4675_v3 = vpop.f32.mrf.mxu1  ;;  %v6557_v14 = vpop.f32.mrf.mxu0  ;;  %6652 = vmatmul.mubr.msk.bf16.gmra.mxu0 %vm2521_vm1, %v2355_v24  ;;  %v652_v24 = vld [vmem:[%s7064_s25 + $0xe10] sm:$0xff]  ;;  %v1173_v15 = vmul.f32 %v8510_v22, %v654_v0  ;;  %v1174_v16 = vmul.f32 %v8510_v22, %v655_v1  ;;  %v1947_v4 = vmax.f32 %v1435_v21, 0.0  ;;  %v1440_v7 = vadd.f32 %v8521_v31, %v921_v50 }
 0x181   : > { %5712 = vst [vmem:[%s7823_s10 + $0xa88] sm:$0xff] %v4675_v3  ;;  %5461 = vst [vmem:[%s7823_s10 + $0x2b0] sm:$0xff] %v6557_v14  ;;  %6655 = vmatprep.mubr.msk.bf16.mxu0 %vm2521_vm1, %v2356_v59  ;;  %v1171_v12 = vmul.f32 %v8510_v22, %v652_v24  ;;  %v2200_v3 = vmax.f32 %v1688_v56, 0.0  ;;  %v2201_v14 = vmax.f32 %v1689_v34, 0.0  ;;  %v2203_v34 = vmax.f32 %v1691_v33, 0.0 }
 0x182   : > { %v6813_v27 = vpop.f32.mrf.mxu1  ;;  %6908 = vmatmul.mubr.msk.bf16.gmra.mxu1 %vm2521_vm1, %v2483_v5  ;;  %v3664_v55 = vpop.f32.mrf.mxu0  ;;  %v1944_v5 = vmax.f32 %v1432_v43, 0.0  ;;  %v1946_v43 = vmax.f32 %v1434_v20, 0.0  ;;  %v1441_v8 = vadd.f32 %v8521_v31, %v922_v52  ;;  %v661_v20 = vld [vmem:[%s7064_s25 + $0xe58] sm:$0xff] }
 0x183   : > { %5717 = vst [vmem:[%s7823_s10 + $0xab0] sm:$0xff] %v6813_v27  ;;  %5459 = vst [vmem:[%s7823_s10 + $0x2a0] sm:$0xff] %v3664_v55  ;;  %6911 = vmatprep.mubr.msk.bf16.mxu1 %vm2521_vm1, %v2484_v10  ;;  %v400_v27 = vld [vmem:[%s7064_s25 + $0x630] sm:$0xff]  ;;  %v401_v55 = vld [vmem:[%s7064_s25 + $0x638] sm:$0xff]  ;;  %v1690_v32 = vadd.f32 %v8521_v31, %v1171_v12  ;;  %v2488_v37 = vpack.c.bf16 %v2201_v14, %v2200_v3  ;;  %v1695_v3 = vadd.f32 %v8521_v31, %v1176_v57 }
 0x184   : > { %v4688_v38 = vpop.f32.mrf.mxu1  ;;  %v6558_v39 = vpop.f32.mrf.mxu0  ;;  %v2360_v23 = vpack.c.bf16 %v1945_v6, %v1944_v5  ;;  %v919_v44 = vmul.f32 %v8510_v22, %v400_v27  ;;  %v920_v45 = vmul.f32 %v8510_v22, %v401_v55  ;;  %v2361_v0 = vpack.c.bf16 %v1947_v4, %v1946_v43  ;;  %v406_v14 = vld [vmem:[%s7064_s25 + $0x660] sm:$0xff] }
 0x185   : > { %5715 = vst [vmem:[%s7823_s10 + $0xaa0] sm:$0xff] %v4688_v38  ;;  %5462 = vst [vmem:[%s7823_s10 + $0x2b8] sm:$0xff] %v6558_v39  ;;  %v1692_v38 = vadd.f32 %v8521_v31, %v1173_v15  ;;  %v1693_v39 = vadd.f32 %v8521_v31, %v1174_v16  ;;  %v2202_v56 = vmax.f32 %v1690_v32, 0.0  ;;  %v407_v15 = vld [vmem:[%s7064_s25 + $0x668] sm:$0xff]  ;;  %v1953_v32 = vmax.f32 %v1441_v8, 0.0 }
 0x186   : > { %v6814_v46 = vpop.f32.mrf.mxu1  ;;  %v3667_v47 = vpop.f32.mrf.mxu0  ;;  %v1438_v1 = vadd.f32 %v8521_v31, %v919_v44  ;;  %v1439_v5 = vadd.f32 %v8521_v31, %v920_v45  ;;  %v925_v33 = vmul.f32 %v8510_v22, %v406_v14  ;;  %v926_v35 = vmul.f32 %v8510_v22, %v407_v15 }
 0x187   : > { %5718 = vst [vmem:[%s7823_s10 + $0xab8] sm:$0xff] %v6814_v46  ;;  %5460 = vst [vmem:[%s7823_s10 + $0x2a8] sm:$0xff] %v3667_v47  ;;  %v658_v46 = vld [vmem:[%s7064_s25 + $0xe40] sm:$0xff]  ;;  %v659_v47 = vld [vmem:[%s7064_s25 + $0xe48] sm:$0xff]  ;;  %v2489_v12 = vpack.c.bf16 %v2203_v34, %v2202_v56  ;;  %v1180_v2 = vmul.f32 %v8510_v22, %v661_v20 }
 0x188   : > { %v4691_v58 = vpop.f32.mrf.mxu1  ;;  %v6561_v59 = vpop.f32.mrf.mxu0  ;;  %6656 = vmatmul.mubr.msk.bf16.gmra.mxu0 %vm2521_vm1, %v2357_v40  ;;  %v656_v40 = vld [vmem:[%s7064_s25 + $0xe30] sm:$0xff]  ;;  %v1177_v60 = vmul.f32 %v8510_v22, %v658_v46  ;;  %v1178_v61 = vmul.f32 %v8510_v22, %v659_v47  ;;  %v1951_v26 = vmax.f32 %v1439_v5, 0.0  ;;  %v1444_v50 = vadd.f32 %v8521_v31, %v925_v33 }
 0x189   : > { %5716 = vst [vmem:[%s7823_s10 + $0xaa8] sm:$0xff] %v4691_v58  ;;  %5465 = vst [vmem:[%s7823_s10 + $0x2d0] sm:$0xff] %v6561_v59  ;;  %6659 = vmatprep.mubr.msk.bf16.mxu0 %vm2521_vm1, %v2358_v42  ;;  %v1175_v24 = vmul.f32 %v8510_v22, %v656_v40  ;;  %v2204_v58 = vmax.f32 %v1692_v38, 0.0  ;;  %v2205_v59 = vmax.f32 %v1693_v39, 0.0  ;;  %v2207_v39 = vmax.f32 %v1695_v3, 0.0 }
 0x18a   : > { %v6817_v9 = vpop.f32.mrf.mxu1  ;;  %6912 = vmatmul.mubr.msk.bf16.gmra.mxu1 %vm2521_vm1, %v2485_v48  ;;  %v3680_v10 = vpop.f32.mrf.mxu0  ;;  %v1948_v48 = vmax.f32 %v1436_v25, 0.0  ;;  %v1950_v25 = vmax.f32 %v1438_v1, 0.0  ;;  %v1445_v52 = vadd.f32 %v8521_v31, %v926_v35  ;;  %v665_v1 = vld [vmem:[%s7064_s25 + $0xe78] sm:$0xff] }
 0x18b   : > { %5721 = vst [vmem:[%s7823_s10 + $0xad0] sm:$0xff] %v6817_v9  ;;  %5463 = vst [vmem:[%s7823_s10 + $0x2c0] sm:$0xff] %v3680_v10  ;;  %6915 = vmatprep.mubr.msk.bf16.mxu1 %vm2521_vm1, %v2486_v54  ;;  %v404_v9 = vld [vmem:[%s7064_s25 + $0x650] sm:$0xff]  ;;  %v405_v10 = vld [vmem:[%s7064_s25 + $0x658] sm:$0xff]  ;;  %v1694_v13 = vadd.f32 %v8521_v31, %v1175_v24  ;;  %v2490_v16 = vpack.c.bf16 %v2205_v59, %v2204_v58  ;;  %v1699_v58 = vadd.f32 %v8521_v31, %v1180_v2 }
 0x18c   : > { %v4704_v17 = vpop.f32.mrf.mxu1  ;;  %v6562_v18 = vpop.f32.mrf.mxu0  ;;  %v2362_v6 = vpack.c.bf16 %v1949_v49, %v1948_v48  ;;  %v923_v27 = vmul.f32 %v8510_v22, %v404_v9  ;;  %v924_v55 = vmul.f32 %v8510_v22, %v405_v10  ;;  %v2363_v46 = vpack.c.bf16 %v1951_v26, %v1950_v25  ;;  %v410_v59 = vld [vmem:[%s7064_s25 + $0x680] sm:$0xff] }
 0x18d   : > { %5719 = vst [vmem:[%s7823_s10 + $0xac0] sm:$0xff] %v4704_v17  ;;  %5466 = vst [vmem:[%s7823_s10 + $0x2d8] sm:$0xff] %v6562_v18  ;;  %v1696_v17 = vadd.f32 %v8521_v31, %v1177_v60  ;;  %v1697_v18 = vadd.f32 %v8521_v31, %v1178_v61  ;;  %v2206_v38 = vmax.f32 %v1694_v13, 0.0  ;;  %v411_v60 = vld [vmem:[%s7064_s25 + $0x688] sm:$0xff]  ;;  %v1957_v13 = vmax.f32 %v1445_v52, 0.0 }
 0x18e   : > { %v6818_v28 = vpop.f32.mrf.mxu1  ;;  %v3683_v29 = vpop.f32.mrf.mxu0  ;;  %v1442_v47 = vadd.f32 %v8521_v31, %v923_v27  ;;  %v1443_v48 = vadd.f32 %v8521_v31, %v924_v55  ;;  %v929_v3 = vmul.f32 %v8510_v22, %v410_v59  ;;  %v930_v14 = vmul.f32 %v8510_v22, %v411_v60 }
 0x18f   : > { %5722 = vst [vmem:[%s7823_s10 + $0xad8] sm:$0xff] %v6818_v28  ;;  %5464 = vst [vmem:[%s7823_s10 + $0x2c8] sm:$0xff] %v3683_v29  ;;  %v662_v28 = vld [vmem:[%s7064_s25 + $0xe60] sm:$0xff]  ;;  %v663_v29 = vld [vmem:[%s7064_s25 + $0xe68] sm:$0xff]  ;;  %v2491_v24 = vpack.c.bf16 %v2207_v39, %v2206_v38  ;;  %v1184_v20 = vmul.f32 %v8510_v22, %v665_v1 }
 0x190   : > { %v4707_v41 = vpop.f32.mrf.mxu1  ;;  %v6565_v42 = vpop.f32.mrf.mxu0  ;;  %6660 = vmatmul.mubr.msk.bf16.gmra.mxu0 %vm2521_vm1, %v2359_v19  ;;  %v660_v19 = vld [vmem:[%s7064_s25 + $0xe50] sm:$0xff]  ;;  %v1181_v43 = vmul.f32 %v8510_v22, %v662_v28  ;;  %v1182_v4 = vmul.f32 %v8510_v22, %v663_v29  ;;  %v1955_v8 = vmax.f32 %v1443_v48, 0.0  ;;  %v1448_v33 = vadd.f32 %v8521_v31, %v929_v3 }
 0x191   : > { %5720 = vst [vmem:[%s7823_s10 + $0xac8] sm:$0xff] %v4707_v41  ;;  %5469 = vst [vmem:[%s7823_s10 + $0x2f0] sm:$0xff] %v6565_v42  ;;  %6663 = vmatprep.mubr.msk.bf16.mxu0 %vm2521_vm1, %v2360_v23  ;;  %v1179_v40 = vmul.f32 %v8510_v22, %v660_v19  ;;  %v2208_v41 = vmax.f32 %v1696_v17, 0.0  ;;  %v2209_v42 = vmax.f32 %v1697_v18, 0.0  ;;  %v2211_v18 = vmax.f32 %v1699_v58, 0.0 }
 0x192   : > { %v6821_v53 = vpop.f32.mrf.mxu1  ;;  %6916 = vmatmul.mubr.msk.bf16.gmra.mxu1 %vm2521_vm1, %v2487_v30  ;;  %v3696_v54 = vpop.f32.mrf.mxu0  ;;  %v1952_v30 = vmax.f32 %v1440_v7, 0.0  ;;  %v1954_v7 = vmax.f32 %v1442_v47, 0.0  ;;  %v1449_v35 = vadd.f32 %v8521_v31, %v930_v14  ;;  %v669_v47 = vld [vmem:[%s7064_s25 + $0xe98] sm:$0xff] }
 0x193   : > { %5725 = vst [vmem:[%s7823_s10 + $0xaf0] sm:$0xff] %v6821_v53  ;;  %5467 = vst [vmem:[%s7823_s10 + $0x2e0] sm:$0xff] %v3696_v54  ;;  %6919 = vmatprep.mubr.msk.bf16.mxu1 %vm2521_vm1, %v2488_v37  ;;  %v408_v53 = vld [vmem:[%s7064_s25 + $0x670] sm:$0xff]  ;;  %v409_v54 = vld [vmem:[%s7064_s25 + $0x678] sm:$0xff]  ;;  %v1698_v57 = vadd.f32 %v8521_v31, %v1179_v40  ;;  %v2492_v61 = vpack.c.bf16 %v2209_v42, %v2208_v41  ;;  %v1703_v41 = vadd.f32 %v8521_v31, %v1184_v20 }
 0x194   : > { %v4720_v62 = vpop.f32.mrf.mxu1  ;;  %v6566_v63 = vpop.f32.mrf.mxu0  ;;  %v2364_v49 = vpack.c.bf16 %v1953_v32, %v1952_v30  ;;  %v927_v9 = vmul.f32 %v8510_v22, %v408_v53  ;;  %v928_v10 = vmul.f32 %v8510_v22, %v409_v54  ;;  %v2365_v28 = vpack.c.bf16 %v1955_v8, %v1954_v7  ;;  %v414_v42 = vld [vmem:[%s7064_s25 + $0x6a0] sm:$0xff] }
 0x195   : > { %5723 = vst [vmem:[%s7823_s10 + $0xae0] sm:$0xff] %v4720_v62  ;;  %5470 = vst [vmem:[%s7823_s10 + $0x2f8] sm:$0xff] %v6566_v63  ;;  %v1700_v62 = vadd.f32 %v8521_v31, %v1181_v43  ;;  %v1701_v63 = vadd.f32 %v8521_v31, %v1182_v4  ;;  %v2210_v17 = vmax.f32 %v1698_v57, 0.0  ;;  %v415_v43 = vld [vmem:[%s7064_s25 + $0x6a8] sm:$0xff]  ;;  %v1961_v57 = vmax.f32 %v1449_v35, 0.0 }
 0x196   : > { %v6822_v11 = vpop.f32.mrf.mxu1  ;;  %v3699_v51 = vpop.f32.mrf.mxu0  ;;  %v1446_v29 = vadd.f32 %v8521_v31, %v927_v9  ;;  %v1447_v30 = vadd.f32 %v8521_v31, %v928_v10  ;;  %v933_v58 = vmul.f32 %v8510_v22, %v414_v42  ;;  %v934_v59 = vmul.f32 %v8510_v22, %v415_v43 }
 0x197   : > { %5726 = vst [vmem:[%s7823_s10 + $0xaf8] sm:$0xff] %v6822_v11  ;;  %5468 = vst [vmem:[%s7823_s10 + $0x2e8] sm:$0xff] %v3699_v51  ;;  %v666_v11 = vld [vmem:[%s7064_s25 + $0xe80] sm:$0xff]  ;;  %v667_v51 = vld [vmem:[%s7064_s25 + $0xe88] sm:$0xff]  ;;  %v2493_v40 = vpack.c.bf16 %v2211_v18, %v2210_v17  ;;  %v1188_v1 = vmul.f32 %v8510_v22, %v669_v47 }
 0x198   : > { %v4723_v21 = vpop.f32.mrf.mxu1  ;;  %v6569_v23 = vpop.f32.mrf.mxu0  ;;  %6664 = vmatmul.mubr.msk.bf16.gmra.mxu0 %vm2521_vm1, %v2361_v0  ;;  %v664_v0 = vld [vmem:[%s7064_s25 + $0xe70] sm:$0xff]  ;;  %v1185_v25 = vmul.f32 %v8510_v22, %v666_v11  ;;  %v1186_v26 = vmul.f32 %v8510_v22, %v667_v51  ;;  %v1959_v52 = vmax.f32 %v1447_v30, 0.0  ;;  %v1452_v3 = vadd.f32 %v8521_v31, %v933_v58 }
 0x199   : > { %5724 = vst [vmem:[%s7823_s10 + $0xae8] sm:$0xff] %v4723_v21  ;;  %5473 = vst [vmem:[%s7823_s10 + $0x310] sm:$0xff] %v6569_v23  ;;  %6667 = vmatprep.mubr.msk.bf16.mxu0 %vm2521_vm1, %v2362_v6  ;;  %v1183_v19 = vmul.f32 %v8510_v22, %v664_v0  ;;  %v2212_v21 = vmax.f32 %v1700_v62, 0.0  ;;  %v2213_v23 = vmax.f32 %v1701_v63, 0.0  ;;  %v2215_v63 = vmax.f32 %v1703_v41, 0.0 }
 0x19a   : > { %v6825_v36 = vpop.f32.mrf.mxu1  ;;  %6920 = vmatmul.mubr.msk.bf16.gmra.mxu1 %vm2521_vm1, %v2489_v12  ;;  %v3712_v37 = vpop.f32.mrf.mxu0  ;;  %v1956_v12 = vmax.f32 %v1444_v50, 0.0  ;;  %v1958_v50 = vmax.f32 %v1446_v29, 0.0  ;;  %v1453_v14 = vadd.f32 %v8521_v31, %v934_v59  ;;  %v673_v29 = vld [vmem:[%s7064_s25 + $0xeb8] sm:$0xff] }
 0x19b   : > { %5729 = vst [vmem:[%s7823_s10 + $0xb10] sm:$0xff] %v6825_v36  ;;  %5471 = vst [vmem:[%s7823_s10 + $0x300] sm:$0xff] %v3712_v37  ;;  %6923 = vmatprep.mubr.msk.bf16.mxu1 %vm2521_vm1, %v2490_v16  ;;  %v412_v36 = vld [vmem:[%s7064_s25 + $0x690] sm:$0xff]  ;;  %v413_v37 = vld [vmem:[%s7064_s25 + $0x698] sm:$0xff]  ;;  %v1702_v2 = vadd.f32 %v8521_v31, %v1183_v19  ;;  %v2494_v4 = vpack.c.bf16 %v2213_v23, %v2212_v21  ;;  %v1707_v21 = vadd.f32 %v8521_v31, %v1188_v1 }
 0x19c   : > { %v4736_v44 = vpop.f32.mrf.mxu1  ;;  %v6570_v45 = vpop.f32.mrf.mxu0  ;;  %v2366_v32 = vpack.c.bf16 %v1957_v13, %v1956_v12  ;;  %v931_v53 = vmul.f32 %v8510_v22, %v412_v36  ;;  %v932_v54 = vmul.f32 %v8510_v22, %v413_v37  ;;  %v2367_v11 = vpack.c.bf16 %v1959_v52, %v1958_v50  ;;  %v418_v23 = vld [vmem:[%s7064_s25 + $0x6c0] sm:$0xff] }
 0x19d   : > { %5727 = vst [vmem:[%s7823_s10 + $0xb00] sm:$0xff] %v4736_v44  ;;  %5474 = vst [vmem:[%s7823_s10 + $0x318] sm:$0xff] %v6570_v45  ;;  %v1704_v44 = vadd.f32 %v8521_v31, %v1185_v25  ;;  %v1705_v45 = vadd.f32 %v8521_v31, %v1186_v26  ;;  %v2214_v62 = vmax.f32 %v1702_v2, 0.0  ;;  %v419_v25 = vld [vmem:[%s7064_s25 + $0x6c8] sm:$0xff]  ;;  %v1965_v2 = vmax.f32 %v1453_v14, 0.0 }
 0x19e   : > { %v6826_v56 = vpop.f32.mrf.mxu1  ;;  %v3715_v34 = vpop.f32.mrf.mxu0  ;;  %v1450_v51 = vadd.f32 %v8521_v31, %v931_v53  ;;  %v1451_v12 = vadd.f32 %v8521_v31, %v932_v54  ;;  %v937_v41 = vmul.f32 %v8510_v22, %v418_v23  ;;  %v938_v42 = vmul.f32 %v8510_v22, %v419_v25  ;;  %v8874_v14 = vld [vmem:[%s9436_s1] ss:$0 sm:$0xff] }
 0x19f   : > { %5730 = vst [vmem:[%s7823_s10 + $0xb18] sm:$0xff] %v6826_v56  ;;  %5472 = vst [vmem:[%s7823_s10 + $0x308] sm:$0xff] %v3715_v34  ;;  %v670_v56 = vld [vmem:[%s7064_s25 + $0xea0] sm:$0xff]  ;;  %v671_v34 = vld [vmem:[%s7064_s25 + $0xea8] sm:$0xff]  ;;  %v2495_v19 = vpack.c.bf16 %v2215_v63, %v2214_v62  ;;  %v1192_v47 = vmul.f32 %v8510_v22, %v673_v29 }
 0x1a0   : > { %v4739_v5 = vpop.f32.mrf.mxu1  ;;  %v6573_v6 = vpop.f32.mrf.mxu0  ;;  %6668 = vmatmul.mubr.msk.bf16.gmra.mxu0 %vm2521_vm1, %v2363_v46  ;;  %v668_v46 = vld [vmem:[%s7064_s25 + $0xe90] sm:$0xff]  ;;  %v1189_v7 = vmul.f32 %v8510_v22, %v670_v56  ;;  %v1190_v8 = vmul.f32 %v8510_v22, %v671_v34  ;;  %v1963_v35 = vmax.f32 %v1451_v12, 0.0  ;;  %v1456_v58 = vadd.f32 %v8521_v31, %v937_v41 }
 0x1a1   : > { %5728 = vst [vmem:[%s7823_s10 + $0xb08] sm:$0xff] %v4739_v5  ;;  %5477 = vst [vmem:[%s7823_s10 + $0x330] sm:$0xff] %v6573_v6  ;;  %6671 = vmatprep.mubr.msk.bf16.mxu0 %vm2521_vm1, %v2364_v49  ;;  %v1187_v0 = vmul.f32 %v8510_v22, %v668_v46  ;;  %v2216_v5 = vmax.f32 %v1704_v44, 0.0  ;;  %v2217_v6 = vmax.f32 %v1705_v45, 0.0  ;;  %v2219_v45 = vmax.f32 %v1707_v21, 0.0 }
 0x1a2   : > { %v6829_v15 = vpop.f32.mrf.mxu1  ;;  %6924 = vmatmul.mubr.msk.bf16.gmra.mxu1 %vm2521_vm1, %v2491_v24  ;;  %v3728_v16 = vpop.f32.mrf.mxu0  ;;  %v1960_v24 = vmax.f32 %v1448_v33, 0.0  ;;  %v1962_v33 = vmax.f32 %v1450_v51, 0.0  ;;  %v1457_v59 = vadd.f32 %v8521_v31, %v938_v42 }
 0x1a3   : > { %5733 = vst [vmem:[%s7823_s10 + $0xb30] sm:$0xff] %v6829_v15  ;;  %5475 = vst [vmem:[%s7823_s10 + $0x320] sm:$0xff] %v3728_v16  ;;  %6927 = vmatprep.mubr.msk.bf16.mxu1 %vm2521_vm1, %v2492_v61  ;;  %v416_v15 = vld [vmem:[%s7064_s25 + $0x6b0] sm:$0xff]  ;;  %v417_v16 = vld [vmem:[%s7064_s25 + $0x6b8] sm:$0xff]  ;;  %v1706_v20 = vadd.f32 %v8521_v31, %v1187_v0  ;;  %v2496_v26 = vpack.c.bf16 %v2217_v6, %v2216_v5 }
 0x1a4   : > { %v4752_v27 = vpop.f32.mrf.mxu1  ;;  %v6574_v55 = vpop.f32.mrf.mxu0  ;;  %v2368_v13 = vpack.c.bf16 %v1961_v57, %v1960_v24  ;;  %v935_v36 = vmul.f32 %v8510_v22, %v416_v15  ;;  %v936_v37 = vmul.f32 %v8510_v22, %v417_v16  ;;  %v2369_v56 = vpack.c.bf16 %v1963_v35, %v1962_v33  ;;  %v8858_v0 = vld [vmem:[%s9437_s2] ss:$0 sm:$0xff] }
 0x1a5   : > { %5731 = vst [vmem:[%s7823_s10 + $0xb20] sm:$0xff] %v4752_v27  ;;  %5478 = vst [vmem:[%s7823_s10 + $0x338] sm:$0xff] %v6574_v55  ;;  %v1708_v27 = vadd.f32 %v8521_v31, %v1189_v7  ;;  %v1709_v55 = vadd.f32 %v8521_v31, %v1190_v8  ;;  %v2218_v44 = vmax.f32 %v1706_v20, 0.0  ;;  %v1711_v5 = vadd.f32 %v8858_v0, %v1192_v47  ;;  %v422_v6 = vld [vmem:[%s7064_s25 + $0x6e0] sm:$0xff]  ;;  %v423_v7 = vld [vmem:[%s7064_s25 + $0x6e8] sm:$0xff] }
 0x1a6   : > { %v6830_v38 = vpop.f32.mrf.mxu1  ;;  %v3731_v39 = vpop.f32.mrf.mxu0  ;;  %v1454_v34 = vadd.f32 %v8521_v31, %v935_v36  ;;  %v1455_v24 = vadd.f32 %v8521_v31, %v936_v37  ;;  %v1969_v20 = vmax.f32 %v1457_v59, 0.0  ;;  %v941_v21 = vmul.f32 %v8874_v14, %v422_v6 }
 0x1a7   : > { %5734 = vst [vmem:[%s7823_s10 + $0xb38] sm:$0xff] %v6830_v38  ;;  %5476 = vst [vmem:[%s7823_s10 + $0x328] sm:$0xff] %v3731_v39  ;;  %v674_v38 = vld [vmem:[%s7064_s25 + $0xec0] sm:$0xff]  ;;  %v675_v39 = vld [vmem:[%s7064_s25 + $0xec8] sm:$0xff]  ;;  %v2497_v63 = vpack.c.bf16 %v2219_v45, %v2218_v44  ;;  %v942_v23 = vmul.f32 %v8874_v14, %v423_v7 }
 0x1a8   : > { %v4755_v48 = vpop.f32.mrf.mxu1  ;;  %v6577_v49 = vpop.f32.mrf.mxu0  ;;  %6672 = vmatmul.mubr.msk.bf16.gmra.mxu0 %vm2521_vm1, %v2365_v28  ;;  %v672_v28 = vld [vmem:[%s7064_s25 + $0xeb0] sm:$0xff]  ;;  %v1193_v50 = vmul.f32 %v8510_v22, %v674_v38  ;;  %v1194_v52 = vmul.f32 %v8510_v22, %v675_v39  ;;  %v1460_v41 = vadd.f32 %v8858_v0, %v941_v21 }
 0x1a9   : > { %5732 = vst [vmem:[%s7823_s10 + $0xb28] sm:$0xff] %v4755_v48  ;;  %5481 = vst [vmem:[%s7823_s10 + $0x350] sm:$0xff] %v6577_v49  ;;  %6675 = vmatprep.mubr.msk.bf16.mxu0 %vm2521_vm1, %v2366_v32  ;;  %v1191_v46 = vmul.f32 %v8510_v22, %v672_v28  ;;  %v2220_v48 = vmax.f32 %v1708_v27, 0.0  ;;  %v2221_v49 = vmax.f32 %v1709_v55, 0.0  ;;  %v420_v22 = vld [vmem:[%s7064_s25 + $0x6d0] sm:$0xff]  ;;  %v2223_v55 = vmax.f32 %v1711_v5, 0.0 }
 0x1aa   : > { %v6833_v60 = vpop.f32.mrf.mxu1  ;;  %6928 = vmatmul.mubr.msk.bf16.gmra.mxu1 %vm2521_vm1, %v2493_v40  ;;  %v3744_v61 = vpop.f32.mrf.mxu0  ;;  %v1964_v40 = vmax.f32 %v1452_v3, 0.0  ;;  %v1712_v8 = vadd.f32 %v8858_v0, %v1193_v50  ;;  %v1967_v3 = vmax.f32 %v1455_v24, 0.0  ;;  %v939_v15 = vmul.f32 %v8874_v14, %v420_v22  ;;  %v427_v50 = vld [vmem:[%s7064_s25 + $0x708] sm:$0xff] }
 0x1ab   : > { %5737 = vst [vmem:[%s7823_s10 + $0xb50] sm:$0xff] %v6833_v60  ;;  %5479 = vst [vmem:[%s7823_s10 + $0x340] sm:$0xff] %v3744_v61  ;;  %6931 = vmatprep.mubr.msk.bf16.mxu1 %vm2521_vm1, %v2494_v4  ;;  %v421_v60 = vld [vmem:[%s7064_s25 + $0x6d8] sm:$0xff]  ;;  %v1710_v1 = vadd.f32 %v8858_v0, %v1191_v46  ;;  %v2498_v31 = vpack.c.bf16 %v2221_v49, %v2220_v48  ;;  %v1461_v42 = vadd.f32 %v8858_v0, %v942_v23  ;;  %v426_v49 = vld [vmem:[%s7064_s25 + $0x700] sm:$0xff] }
 0x1ac   : > { %v4768_v9 = vpop.f32.mrf.mxu1  ;;  %v6578_v10 = vpop.f32.mrf.mxu0  ;;  %v2370_v57 = vpack.c.bf16 %v1965_v2, %v1964_v40  ;;  %v940_v16 = vmul.f32 %v8874_v14, %v421_v60  ;;  %v1458_v39 = vadd.f32 %v8858_v0, %v939_v15  ;;  %v945_v5 = vmul.f32 %v8874_v14, %v426_v49 }
 0x1ad   : > { %5735 = vst [vmem:[%s7823_s10 + $0xb40] sm:$0xff] %v4768_v9  ;;  %5482 = vst [vmem:[%s7823_s10 + $0x358] sm:$0xff] %v6578_v10  ;;  %v1713_v9 = vadd.f32 %v8858_v0, %v1194_v52  ;;  %v676_v10 = vld [vmem:[%s7064_s25 + $0xed0] sm:$0xff]  ;;  %v2222_v27 = vmax.f32 %v1710_v1, 0.0  ;;  %v1973_v1 = vmax.f32 %v1461_v42, 0.0  ;;  %v946_v6 = vmul.f32 %v8874_v14, %v427_v50 }
 0x1ae   : > { %v6834_v17 = vpop.f32.mrf.mxu1  ;;  %v3747_v18 = vpop.f32.mrf.mxu0  ;;  %v1195_v28 = vmul.f32 %v8874_v14, %v676_v10  ;;  %v1459_v40 = vadd.f32 %v8858_v0, %v940_v16  ;;  %v1464_v21 = vadd.f32 %v8858_v0, %v945_v5 }
 0x1af   : > { %5738 = vst [vmem:[%s7823_s10 + $0xb58] sm:$0xff] %v6834_v17  ;;  %5480 = vst [vmem:[%s7823_s10 + $0x348] sm:$0xff] %v3747_v18  ;;  %v678_v17 = vld [vmem:[%s7064_s25 + $0xee0] sm:$0xff]  ;;  %v679_v18 = vld [vmem:[%s7064_s25 + $0xee8] sm:$0xff]  ;;  %v2499_v46 = vpack.c.bf16 %v2223_v55, %v2222_v27  ;;  %v1465_v23 = vadd.f32 %v8858_v0, %v946_v6 }
 0x1b0   : > { %v4771_v30 = vpop.f32.mrf.mxu1  ;;  %v6581_v32 = vpop.f32.mrf.mxu0  ;;  %6676 = vmatmul.mubr.msk.bf16.gmra.mxu0 %vm2521_vm1, %v2367_v11  ;;  %v677_v11 = vld [vmem:[%s7064_s25 + $0xed8] sm:$0xff]  ;;  %v1197_v33 = vmul.f32 %v8874_v14, %v678_v17  ;;  %v1198_v35 = vmul.f32 %v8874_v14, %v679_v18  ;;  %v1714_v47 = vadd.f32 %v8858_v0, %v1195_v28  ;;  %v1971_v59 = vmax.f32 %v1459_v40, 0.0 }
 0x1b1   : > { %5736 = vst [vmem:[%s7823_s10 + $0xb48] sm:$0xff] %v4771_v30  ;;  %5485 = vst [vmem:[%s7823_s10 + $0x370] sm:$0xff] %v6581_v32  ;;  %6679 = vmatprep.mubr.msk.bf16.mxu0 %vm2521_vm1, %v2368_v13  ;;  %v1966_v13 = vmax.f32 %v1454_v34, 0.0  ;;  %v1196_v29 = vmul.f32 %v8874_v14, %v677_v11  ;;  %v2224_v30 = vmax.f32 %v1712_v8, 0.0  ;;  %v2225_v32 = vmax.f32 %v1713_v9, 0.0  ;;  %v681_v34 = vld [vmem:[%s7064_s25 + $0xef8] sm:$0xff] }
 0x1b2   : > { %v6837_v43 = vpop.f32.mrf.mxu1  ;;  %6932 = vmatmul.mubr.msk.bf16.gmra.mxu1 %vm2521_vm1, %v2495_v19  ;;  %v3760_v4 = vpop.f32.mrf.mxu0  ;;  %v1968_v19 = vmax.f32 %v1456_v58, 0.0  ;;  %v1970_v58 = vmax.f32 %v1458_v39, 0.0  ;;  %v2226_v8 = vmax.f32 %v1714_v47, 0.0  ;;  %v1200_v11 = vmul.f32 %v8874_v14, %v681_v34  ;;  %v685_v39 = vld [vmem:[%s7064_s25 + $0xf18] sm:$0xff] }
 0x1b3   : > { %5741 = vst [vmem:[%s7823_s10 + $0xb70] sm:$0xff] %v6837_v43  ;;  %5483 = vst [vmem:[%s7823_s10 + $0x360] sm:$0xff] %v3760_v4  ;;  %6935 = vmatprep.mubr.msk.bf16.mxu1 %vm2521_vm1, %v2496_v26  ;;  %v2371_v38 = vpack.c.bf16 %v1967_v3, %v1966_v13  ;;  %v424_v43 = vld [vmem:[%s7064_s25 + $0x6f0] sm:$0xff]  ;;  %v425_v4 = vld [vmem:[%s7064_s25 + $0x6f8] sm:$0xff]  ;;  %v1715_v48 = vadd.f32 %v8858_v0, %v1196_v29  ;;  %v2500_v52 = vpack.c.bf16 %v2225_v32, %v2224_v30 }
 0x1b4   : > { %v4784_v53 = vpop.f32.mrf.mxu1  ;;  %v6582_v54 = vpop.f32.mrf.mxu0  ;;  %v2372_v2 = vpack.c.bf16 %v1969_v20, %v1968_v19  ;;  %v943_v22 = vmul.f32 %v8874_v14, %v424_v43  ;;  %v944_v60 = vmul.f32 %v8874_v14, %v425_v4  ;;  %v2373_v17 = vpack.c.bf16 %v1971_v59, %v1970_v58  ;;  %v430_v32 = vld [vmem:[%s7064_s25 + $0x720] sm:$0xff] }
 0x1b5   : > { %5739 = vst [vmem:[%s7823_s10 + $0xb60] sm:$0xff] %v4784_v53  ;;  %5486 = vst [vmem:[%s7823_s10 + $0x378] sm:$0xff] %v6582_v54  ;;  %v1716_v53 = vadd.f32 %v8858_v0, %v1197_v33  ;;  %v1717_v54 = vadd.f32 %v8858_v0, %v1198_v35  ;;  %v2227_v9 = vmax.f32 %v1715_v48, 0.0  ;;  %v1719_v30 = vadd.f32 %v8858_v0, %v1200_v11  ;;  %v431_v33 = vld [vmem:[%s7064_s25 + $0x728] sm:$0xff] }
 0x1b6   : > { %v6838_v61 = vpop.f32.mrf.mxu1  ;;  %v3763_v62 = vpop.f32.mrf.mxu0  ;;  %v1462_v18 = vadd.f32 %v8858_v0, %v943_v22  ;;  %v1463_v19 = vadd.f32 %v8858_v0, %v944_v60  ;;  %v1977_v47 = vmax.f32 %v1465_v23, 0.0  ;;  %v949_v48 = vmul.f32 %v8874_v14, %v430_v32 }
 0x1b7   : > { %5742 = vst [vmem:[%s7823_s10 + $0xb78] sm:$0xff] %v6838_v61  ;;  %5484 = vst [vmem:[%s7823_s10 + $0x368] sm:$0xff] %v3763_v62  ;;  %v682_v61 = vld [vmem:[%s7064_s25 + $0xf00] sm:$0xff]  ;;  %v683_v62 = vld [vmem:[%s7064_s25 + $0xf08] sm:$0xff]  ;;  %v2501_v28 = vpack.c.bf16 %v2227_v9, %v2226_v8  ;;  %v950_v49 = vmul.f32 %v8874_v14, %v431_v33  ;;  %v1204_v34 = vmul.f32 %v8874_v14, %v685_v39 }
 0x1b8   : > { %v4787_v51 = vpop.f32.mrf.mxu1  ;;  %v6585_v12 = vpop.f32.mrf.mxu0  ;;  %6680 = vmatmul.mubr.msk.bf16.gmra.mxu0 %vm2521_vm1, %v2369_v56  ;;  %v680_v56 = vld [vmem:[%s7064_s25 + $0xef0] sm:$0xff]  ;;  %v1201_v13 = vmul.f32 %v8874_v14, %v682_v61  ;;  %v1202_v3 = vmul.f32 %v8874_v14, %v683_v62  ;;  %v1975_v42 = vmax.f32 %v1463_v19, 0.0  ;;  %v1468_v5 = vadd.f32 %v8858_v0, %v949_v48 }
 0x1b9   : > { %5740 = vst [vmem:[%s7823_s10 + $0xb68] sm:$0xff] %v4787_v51  ;;  %5489 = vst [vmem:[%s7823_s10 + $0x390] sm:$0xff] %v6585_v12  ;;  %6683 = vmatprep.mubr.msk.bf16.mxu0 %vm2521_vm1, %v2370_v57  ;;  %v1199_v10 = vmul.f32 %v8874_v14, %v680_v56  ;;  %v2228_v51 = vmax.f32 %v1716_v53, 0.0  ;;  %v2229_v12 = vmax.f32 %v1717_v54, 0.0  ;;  %v2231_v54 = vmax.f32 %v1719_v30, 0.0 }
 0x1ba   : > { %v6841_v25 = vpop.f32.mrf.mxu1  ;;  %6936 = vmatmul.mubr.msk.bf16.gmra.mxu1 %vm2521_vm1, %v2497_v63  ;;  %v3776_v26 = vpop.f32.mrf.mxu0  ;;  %v1972_v63 = vmax.f32 %v1460_v41, 0.0  ;;  %v1974_v41 = vmax.f32 %v1462_v18, 0.0  ;;  %v1469_v6 = vadd.f32 %v8858_v0, %v950_v49  ;;  %v689_v18 = vld [vmem:[%s7064_s25 + $0xf38] sm:$0xff] }
 0x1bb   : > { %5745 = vst [vmem:[%s7823_s10 + $0xb90] sm:$0xff] %v6841_v25  ;;  %5487 = vst [vmem:[%s7823_s10 + $0x380] sm:$0xff] %v3776_v26  ;;  %6939 = vmatprep.mubr.msk.bf16.mxu1 %vm2521_vm1, %v2498_v31  ;;  %v428_v25 = vld [vmem:[%s7064_s25 + $0x710] sm:$0xff]  ;;  %v429_v26 = vld [vmem:[%s7064_s25 + $0x718] sm:$0xff]  ;;  %v1718_v29 = vadd.f32 %v8858_v0, %v1199_v10  ;;  %v2502_v35 = vpack.c.bf16 %v2229_v12, %v2228_v51  ;;  %v1723_v51 = vadd.f32 %v8858_v0, %v1204_v34 }
 0x1bc   : > { %v4800_v36 = vpop.f32.mrf.mxu1  ;;  %v6586_v37 = vpop.f32.mrf.mxu0  ;;  %v2374_v20 = vpack.c.bf16 %v1973_v1, %v1972_v63  ;;  %v947_v43 = vmul.f32 %v8874_v14, %v428_v25  ;;  %v948_v4 = vmul.f32 %v8874_v14, %v429_v26  ;;  %v2375_v61 = vpack.c.bf16 %v1975_v42, %v1974_v41  ;;  %v434_v12 = vld [vmem:[%s7064_s25 + $0x740] sm:$0xff] }
 0x1bd   : > { %5743 = vst [vmem:[%s7823_s10 + $0xb80] sm:$0xff] %v4800_v36  ;;  %5490 = vst [vmem:[%s7823_s10 + $0x398] sm:$0xff] %v6586_v37  ;;  %v1720_v36 = vadd.f32 %v8858_v0, %v1201_v13  ;;  %v1721_v37 = vadd.f32 %v8858_v0, %v1202_v3  ;;  %v2230_v53 = vmax.f32 %v1718_v29, 0.0  ;;  %v435_v13 = vld [vmem:[%s7064_s25 + $0x748] sm:$0xff]  ;;  %v1981_v29 = vmax.f32 %v1469_v6, 0.0 }
 0x1be   : > { %v6842_v44 = vpop.f32.mrf.mxu1  ;;  %v3779_v45 = vpop.f32.mrf.mxu0  ;;  %v1466_v62 = vadd.f32 %v8858_v0, %v947_v43  ;;  %v1467_v63 = vadd.f32 %v8858_v0, %v948_v4  ;;  %v953_v30 = vmul.f32 %v8874_v14, %v434_v12  ;;  %v954_v32 = vmul.f32 %v8874_v14, %v435_v13 }
 0x1bf   : > { %5746 = vst [vmem:[%s7823_s10 + $0xb98] sm:$0xff] %v6842_v44  ;;  %5488 = vst [vmem:[%s7823_s10 + $0x388] sm:$0xff] %v3779_v45  ;;  %v686_v44 = vld [vmem:[%s7064_s25 + $0xf20] sm:$0xff]  ;;  %v687_v45 = vld [vmem:[%s7064_s25 + $0xf28] sm:$0xff]  ;;  %v2503_v10 = vpack.c.bf16 %v2231_v54, %v2230_v53  ;;  %v1208_v39 = vmul.f32 %v8874_v14, %v689_v18 }
 0x1c0   : > { %v4803_v24 = vpop.f32.mrf.mxu1  ;;  %v6589_v57 = vpop.f32.mrf.mxu0  ;;  %6684 = vmatmul.mubr.msk.bf16.gmra.mxu0 %vm2521_vm1, %v2371_v38  ;;  %v684_v38 = vld [vmem:[%s7064_s25 + $0xf10] sm:$0xff]  ;;  %v1205_v58 = vmul.f32 %v8874_v14, %v686_v44  ;;  %v1206_v59 = vmul.f32 %v8874_v14, %v687_v45  ;;  %v1979_v23 = vmax.f32 %v1467_v63, 0.0  ;;  %v1472_v48 = vadd.f32 %v8858_v0, %v953_v30 }
 0x1c1   : > { %5744 = vst [vmem:[%s7823_s10 + $0xb88] sm:$0xff] %v4803_v24  ;;  %5493 = vst [vmem:[%s7823_s10 + $0x3b0] sm:$0xff] %v6589_v57  ;;  %6687 = vmatprep.mubr.msk.bf16.mxu0 %vm2521_vm1, %v2372_v2  ;;  %v1203_v56 = vmul.f32 %v8874_v14, %v684_v38  ;;  %v2232_v24 = vmax.f32 %v1720_v36, 0.0  ;;  %v2233_v57 = vmax.f32 %v1721_v37, 0.0  ;;  %v2235_v37 = vmax.f32 %v1723_v51, 0.0 }
 0x1c2   : > { %v6845_v7 = vpop.f32.mrf.mxu1  ;;  %6940 = vmatmul.mubr.msk.bf16.gmra.mxu1 %vm2521_vm1, %v2499_v46  ;;  %v3792_v31 = vpop.f32.mrf.mxu0  ;;  %v1976_v46 = vmax.f32 %v1464_v21, 0.0  ;;  %v1978_v21 = vmax.f32 %v1466_v62, 0.0  ;;  %v1473_v49 = vadd.f32 %v8858_v0, %v954_v32  ;;  %v693_v62 = vld [vmem:[%s7064_s25 + $0xf58] sm:$0xff] }
 0x1c3   : > { %5749 = vst [vmem:[%s7823_s10 + $0xbb0] sm:$0xff] %v6845_v7  ;;  %5491 = vst [vmem:[%s7823_s10 + $0x3a0] sm:$0xff] %v3792_v31  ;;  %6943 = vmatprep.mubr.msk.bf16.mxu1 %vm2521_vm1, %v2500_v52  ;;  %v432_v7 = vld [vmem:[%s7064_s25 + $0x730] sm:$0xff]  ;;  %v433_v31 = vld [vmem:[%s7064_s25 + $0x738] sm:$0xff]  ;;  %v1722_v11 = vadd.f32 %v8858_v0, %v1203_v56  ;;  %v2504_v3 = vpack.c.bf16 %v2233_v57, %v2232_v24  ;;  %v1727_v24 = vadd.f32 %v8858_v0, %v1208_v39 }
 0x1c4   : > { %v4816_v15 = vpop.f32.mrf.mxu1  ;;  %v6590_v16 = vpop.f32.mrf.mxu0  ;;  %v2376_v1 = vpack.c.bf16 %v1977_v47, %v1976_v46  ;;  %v951_v25 = vmul.f32 %v8874_v14, %v432_v7  ;;  %v952_v26 = vmul.f32 %v8874_v14, %v433_v31  ;;  %v2377_v44 = vpack.c.bf16 %v1979_v23, %v1978_v21  ;;  %v438_v57 = vld [vmem:[%s7064_s25 + $0x760] sm:$0xff] }
 0x1c5   : > { %5747 = vst [vmem:[%s7823_s10 + $0xba0] sm:$0xff] %v4816_v15  ;;  %5494 = vst [vmem:[%s7823_s10 + $0x3b8] sm:$0xff] %v6590_v16  ;;  %v1724_v15 = vadd.f32 %v8858_v0, %v1205_v58  ;;  %v1725_v16 = vadd.f32 %v8858_v0, %v1206_v59  ;;  %v2234_v36 = vmax.f32 %v1722_v11, 0.0  ;;  %v439_v58 = vld [vmem:[%s7064_s25 + $0x768] sm:$0xff]  ;;  %v1985_v11 = vmax.f32 %v1473_v49, 0.0 }
 0x1c6   : > { %v6846_v27 = vpop.f32.mrf.mxu1  ;;  %v3795_v55 = vpop.f32.mrf.mxu0  ;;  %v1470_v45 = vadd.f32 %v8858_v0, %v951_v25  ;;  %v1471_v46 = vadd.f32 %v8858_v0, %v952_v26  ;;  %v957_v51 = vmul.f32 %v8874_v14, %v438_v57  ;;  %v958_v12 = vmul.f32 %v8874_v14, %v439_v58 }
 0x1c7   : > { %5750 = vst [vmem:[%s7823_s10 + $0xbb8] sm:$0xff] %v6846_v27  ;;  %5492 = vst [vmem:[%s7823_s10 + $0x3a8] sm:$0xff] %v3795_v55  ;;  %v690_v27 = vld [vmem:[%s7064_s25 + $0xf40] sm:$0xff]  ;;  %v691_v55 = vld [vmem:[%s7064_s25 + $0xf48] sm:$0xff]  ;;  %v2505_v56 = vpack.c.bf16 %v2235_v37, %v2234_v36  ;;  %v1212_v18 = vmul.f32 %v8874_v14, %v693_v62 }
 0x1c8   : > { %v4819_v40 = vpop.f32.mrf.mxu1  ;;  %v6593_v2 = vpop.f32.mrf.mxu0  ;;  %6688 = vmatmul.mubr.msk.bf16.gmra.mxu0 %vm2521_vm1, %v2373_v17  ;;  %v688_v17 = vld [vmem:[%s7064_s25 + $0xf30] sm:$0xff]  ;;  %v1209_v41 = vmul.f32 %v8874_v14, %v690_v27  ;;  %v1210_v42 = vmul.f32 %v8874_v14, %v691_v55  ;;  %v1983_v6 = vmax.f32 %v1471_v46, 0.0  ;;  %v1476_v30 = vadd.f32 %v8858_v0, %v957_v51 }
 0x1c9   : > { %5748 = vst [vmem:[%s7823_s10 + $0xba8] sm:$0xff] %v4819_v40  ;;  %5497 = vst [vmem:[%s7823_s10 + $0x3d0] sm:$0xff] %v6593_v2  ;;  %6691 = vmatprep.mubr.msk.bf16.mxu0 %vm2521_vm1, %v2374_v20  ;;  %v1207_v38 = vmul.f32 %v8874_v14, %v688_v17  ;;  %v2236_v40 = vmax.f32 %v1724_v15, 0.0  ;;  %v2237_v2 = vmax.f32 %v1725_v16, 0.0  ;;  %v2239_v16 = vmax.f32 %v1727_v24, 0.0 }
 0x1ca   : > { %v6849_v50 = vpop.f32.mrf.mxu1  ;;  %6944 = vmatmul.mubr.msk.bf16.gmra.mxu1 %vm2521_vm1, %v2501_v28  ;;  %v3808_v52 = vpop.f32.mrf.mxu0  ;;  %v1980_v28 = vmax.f32 %v1468_v5, 0.0  ;;  %v1982_v5 = vmax.f32 %v1470_v45, 0.0  ;;  %v1477_v32 = vadd.f32 %v8858_v0, %v958_v12  ;;  %v697_v45 = vld [vmem:[%s7064_s25 + $0xf78] sm:$0xff] }
 0x1cb   : > { %5753 = vst [vmem:[%s7823_s10 + $0xbd0] sm:$0xff] %v6849_v50  ;;  %5495 = vst [vmem:[%s7823_s10 + $0x3c0] sm:$0xff] %v3808_v52  ;;  %6947 = vmatprep.mubr.msk.bf16.mxu1 %vm2521_vm1, %v2502_v35  ;;  %v436_v50 = vld [vmem:[%s7064_s25 + $0x750] sm:$0xff]  ;;  %v437_v52 = vld [vmem:[%s7064_s25 + $0x758] sm:$0xff]  ;;  %v1726_v34 = vadd.f32 %v8858_v0, %v1207_v38  ;;  %v2506_v59 = vpack.c.bf16 %v2237_v2, %v2236_v40  ;;  %v1731_v40 = vadd.f32 %v8858_v0, %v1212_v18 }
 0x1cc   : > { %v4832_v22 = vpop.f32.mrf.mxu1  ;;  %v6594_v60 = vpop.f32.mrf.mxu0  ;;  %v2378_v47 = vpack.c.bf16 %v1981_v29, %v1980_v28  ;;  %v955_v7 = vmul.f32 %v8874_v14, %v436_v50  ;;  %v956_v31 = vmul.f32 %v8874_v14, %v437_v52  ;;  %v2379_v27 = vpack.c.bf16 %v1983_v6, %v1982_v5  ;;  %v442_v2 = vld [vmem:[%s7064_s25 + $0x780] sm:$0xff] }
 0x1cd   : > { %5751 = vst [vmem:[%s7823_s10 + $0xbc0] sm:$0xff] %v4832_v22  ;;  %5498 = vst [vmem:[%s7823_s10 + $0x3d8] sm:$0xff] %v6594_v60  ;;  %v1728_v22 = vadd.f32 %v8858_v0, %v1209_v41  ;;  %v1729_v60 = vadd.f32 %v8858_v0, %v1210_v42  ;;  %v2238_v15 = vmax.f32 %v1726_v34, 0.0  ;;  %v443_v41 = vld [vmem:[%s7064_s25 + $0x788] sm:$0xff]  ;;  %v1989_v34 = vmax.f32 %v1477_v32, 0.0 }
 0x1ce   : > { %v6850_v8 = vpop.f32.mrf.mxu1  ;;  %v3811_v9 = vpop.f32.mrf.mxu0  ;;  %v1474_v55 = vadd.f32 %v8858_v0, %v955_v7  ;;  %v1475_v28 = vadd.f32 %v8858_v0, %v956_v31  ;;  %v961_v24 = vmul.f32 %v8874_v14, %v442_v2  ;;  %v962_v57 = vmul.f32 %v8874_v14, %v443_v41 }
 0x1cf   : > { %5754 = vst [vmem:[%s7823_s10 + $0xbd8] sm:$0xff] %v6850_v8  ;;  %5496 = vst [vmem:[%s7823_s10 + $0x3c8] sm:$0xff] %v3811_v9  ;;  %v694_v8 = vld [vmem:[%s7064_s25 + $0xf60] sm:$0xff]  ;;  %v695_v9 = vld [vmem:[%s7064_s25 + $0xf68] sm:$0xff]  ;;  %v2507_v38 = vpack.c.bf16 %v2239_v16, %v2238_v15  ;;  %v1216_v62 = vmul.f32 %v8874_v14, %v697_v45 }
 0x1d0   : > { %v4835_v19 = vpop.f32.mrf.mxu1  ;;  %v6597_v20 = vpop.f32.mrf.mxu0  ;;  %6692 = vmatmul.mubr.msk.bf16.gmra.mxu0 %vm2521_vm1, %v2375_v61  ;;  %v692_v61 = vld [vmem:[%s7064_s25 + $0xf50] sm:$0xff]  ;;  %v1213_v21 = vmul.f32 %v8874_v14, %v694_v8  ;;  %v1214_v23 = vmul.f32 %v8874_v14, %v695_v9  ;;  %v1987_v49 = vmax.f32 %v1475_v28, 0.0  ;;  %v1480_v51 = vadd.f32 %v8858_v0, %v961_v24 }
 0x1d1   : > { %5752 = vst [vmem:[%s7823_s10 + $0xbc8] sm:$0xff] %v4835_v19  ;;  %5501 = vst [vmem:[%s7823_s10 + $0x3f0] sm:$0xff] %v6597_v20  ;;  %6695 = vmatprep.mubr.msk.bf16.mxu0 %vm2521_vm1, %v2376_v1  ;;  %v1211_v17 = vmul.f32 %v8874_v14, %v692_v61  ;;  %v2240_v19 = vmax.f32 %v1728_v22, 0.0  ;;  %v2241_v20 = vmax.f32 %v1729_v60, 0.0  ;;  %v2243_v60 = vmax.f32 %v1731_v40, 0.0 }
 0x1d2   : > { %v6853_v33 = vpop.f32.mrf.mxu1  ;;  %6948 = vmatmul.mubr.msk.bf16.gmra.mxu1 %vm2521_vm1, %v2503_v10  ;;  %v3824_v35 = vpop.f32.mrf.mxu0  ;;  %v1984_v10 = vmax.f32 %v1472_v48, 0.0  ;;  %v1986_v48 = vmax.f32 %v1474_v55, 0.0  ;;  %v1481_v12 = vadd.f32 %v8858_v0, %v962_v57  ;;  %v701_v55 = vld [vmem:[%s7064_s25 + $0xf98] sm:$0xff] }
 0x1d3   : > { %5757 = vst [vmem:[%s7823_s10 + $0xbf0] sm:$0xff] %v6853_v33  ;;  %5499 = vst [vmem:[%s7823_s10 + $0x3e0] sm:$0xff] %v3824_v35  ;;  %6951 = vmatprep.mubr.msk.bf16.mxu1 %vm2521_vm1, %v2504_v3  ;;  %v440_v33 = vld [vmem:[%s7064_s25 + $0x770] sm:$0xff]  ;;  %v441_v35 = vld [vmem:[%s7064_s25 + $0x778] sm:$0xff]  ;;  %v1730_v39 = vadd.f32 %v8858_v0, %v1211_v17  ;;  %v2508_v42 = vpack.c.bf16 %v2241_v20, %v2240_v19  ;;  %v1735_v19 = vadd.f32 %v8858_v0, %v1216_v62 }
 0x1d4   : > { %v4848_v43 = vpop.f32.mrf.mxu1  ;;  %v6598_v4 = vpop.f32.mrf.mxu0  ;;  %v2380_v29 = vpack.c.bf16 %v1985_v11, %v1984_v10  ;;  %v959_v50 = vmul.f32 %v8874_v14, %v440_v33  ;;  %v960_v52 = vmul.f32 %v8874_v14, %v441_v35  ;;  %v2381_v8 = vpack.c.bf16 %v1987_v49, %v1986_v48  ;;  %v446_v20 = vld [vmem:[%s7064_s25 + $0x7a0] sm:$0xff] }
 0x1d5   : > { %5755 = vst [vmem:[%s7823_s10 + $0xbe0] sm:$0xff] %v4848_v43  ;;  %5502 = vst [vmem:[%s7823_s10 + $0x3f8] sm:$0xff] %v6598_v4  ;;  %v1732_v43 = vadd.f32 %v8858_v0, %v1213_v21  ;;  %v1733_v4 = vadd.f32 %v8858_v0, %v1214_v23  ;;  %v2242_v22 = vmax.f32 %v1730_v39, 0.0  ;;  %v447_v21 = vld [vmem:[%s7064_s25 + $0x7a8] sm:$0xff]  ;;  %v1993_v39 = vmax.f32 %v1481_v12, 0.0 }
 0x1d6   : > { %v6854_v53 = vpop.f32.mrf.mxu1  ;;  %v3827_v54 = vpop.f32.mrf.mxu0  ;;  %v1478_v9 = vadd.f32 %v8858_v0, %v959_v50  ;;  %v1479_v10 = vadd.f32 %v8858_v0, %v960_v52  ;;  %v965_v40 = vmul.f32 %v8874_v14, %v446_v20  ;;  %v966_v2 = vmul.f32 %v8874_v14, %v447_v21 }
 0x1d7   : > { %5758 = vst [vmem:[%s7823_s10 + $0xbf8] sm:$0xff] %v6854_v53  ;;  %5500 = vst [vmem:[%s7823_s10 + $0x3e8] sm:$0xff] %v3827_v54  ;;  %v698_v53 = vld [vmem:[%s7064_s25 + $0xf80] sm:$0xff]  ;;  %v699_v54 = vld [vmem:[%s7064_s25 + $0xf88] sm:$0xff]  ;;  %v2509_v17 = vpack.c.bf16 %v2243_v60, %v2242_v22  ;;  %v1220_v45 = vmul.f32 %v8874_v14, %v701_v55 }
 0x1d8   : > { %v4851_v63 = vpop.f32.mrf.mxu1  ;;  %v6601_v1 = vpop.f32.mrf.mxu0  ;;  %6696 = vmatmul.mubr.msk.bf16.gmra.mxu0 %vm2521_vm1, %v2377_v44  ;;  %v696_v44 = vld [vmem:[%s7064_s25 + $0xf70] sm:$0xff]  ;;  %v1217_v5 = vmul.f32 %v8874_v14, %v698_v53  ;;  %v1218_v6 = vmul.f32 %v8874_v14, %v699_v54  ;;  %v1991_v32 = vmax.f32 %v1479_v10, 0.0  ;;  %v1484_v24 = vadd.f32 %v8858_v0, %v965_v40 }
 0x1d9   : > { %5756 = vst [vmem:[%s7823_s10 + $0xbe8] sm:$0xff] %v4851_v63  ;;  %5505 = vst [vmem:[%s7823_s10 + $0x410] sm:$0xff] %v6601_v1  ;;  %6699 = vmatprep.mubr.msk.bf16.mxu0 %vm2521_vm1, %v2378_v47  ;;  %v1215_v61 = vmul.f32 %v8874_v14, %v696_v44  ;;  %v2244_v63 = vmax.f32 %v1732_v43, 0.0  ;;  %v2245_v1 = vmax.f32 %v1733_v4, 0.0  ;;  %v2247_v4 = vmax.f32 %v1735_v19, 0.0 }
 0x1da   : > { %v6857_v13 = vpop.f32.mrf.mxu1  ;;  %6952 = vmatmul.mubr.msk.bf16.gmra.mxu1 %vm2521_vm1, %v2505_v56  ;;  %v3840_v3 = vpop.f32.mrf.mxu0  ;;  %v1988_v56 = vmax.f32 %v1476_v30, 0.0  ;;  %v1990_v30 = vmax.f32 %v1478_v9, 0.0  ;;  %v1485_v57 = vadd.f32 %v8858_v0, %v966_v2  ;;  %v705_v9 = vld [vmem:[%s7064_s25 + $0xfb8] sm:$0xff] }
 0x1db   : > { %5761 = vst [vmem:[%s7823_s10 + $0xc10] sm:$0xff] %v6857_v13  ;;  %5503 = vst [vmem:[%s7823_s10 + $0x400] sm:$0xff] %v3840_v3  ;;  %6955 = vmatprep.mubr.msk.bf16.mxu1 %vm2521_vm1, %v2506_v59  ;;  %v444_v13 = vld [vmem:[%s7064_s25 + $0x790] sm:$0xff]  ;;  %v445_v3 = vld [vmem:[%s7064_s25 + $0x798] sm:$0xff]  ;;  %v1734_v18 = vadd.f32 %v8858_v0, %v1215_v61  ;;  %v2510_v23 = vpack.c.bf16 %v2245_v1, %v2244_v63  ;;  %v1739_v63 = vadd.f32 %v8858_v0, %v1220_v45 }
 0x1dc   : > { %v4864_v25 = vpop.f32.mrf.mxu1  ;;  %v6602_v26 = vpop.f32.mrf.mxu0  ;;  %v2382_v11 = vpack.c.bf16 %v1989_v34, %v1988_v56  ;;  %v963_v33 = vmul.f32 %v8874_v14, %v444_v13  ;;  %v964_v35 = vmul.f32 %v8874_v14, %v445_v3  ;;  %v2383_v53 = vpack.c.bf16 %v1991_v32, %v1990_v30  ;;  %v450_v1 = vld [vmem:[%s7064_s25 + $0x7c0] sm:$0xff] }
 0x1dd   : > { %5759 = vst [vmem:[%s7823_s10 + $0xc00] sm:$0xff] %v4864_v25  ;;  %5506 = vst [vmem:[%s7823_s10 + $0x418] sm:$0xff] %v6602_v26  ;;  %v1736_v25 = vadd.f32 %v8858_v0, %v1217_v5  ;;  %v1737_v26 = vadd.f32 %v8858_v0, %v1218_v6  ;;  %v2246_v43 = vmax.f32 %v1734_v18, 0.0  ;;  %v451_v5 = vld [vmem:[%s7064_s25 + $0x7c8] sm:$0xff]  ;;  %v1997_v18 = vmax.f32 %v1485_v57, 0.0 }
 0x1de   : > { %v6858_v36 = vpop.f32.mrf.mxu1  ;;  %v3843_v37 = vpop.f32.mrf.mxu0  ;;  %v1482_v54 = vadd.f32 %v8858_v0, %v963_v33  ;;  %v1483_v56 = vadd.f32 %v8858_v0, %v964_v35  ;;  %v969_v19 = vmul.f32 %v8874_v14, %v450_v1  ;;  %v970_v20 = vmul.f32 %v8874_v14, %v451_v5 }
 0x1df   : > { %5762 = vst [vmem:[%s7823_s10 + $0xc18] sm:$0xff] %v6858_v36  ;;  %5504 = vst [vmem:[%s7823_s10 + $0x408] sm:$0xff] %v3843_v37  ;;  %v702_v36 = vld [vmem:[%s7064_s25 + $0xfa0] sm:$0xff]  ;;  %v703_v37 = vld [vmem:[%s7064_s25 + $0xfa8] sm:$0xff]  ;;  %v2511_v61 = vpack.c.bf16 %v2247_v4, %v2246_v43  ;;  %v1224_v55 = vmul.f32 %v8874_v14, %v705_v9 }
 0x1e0   : > { %v4867_v46 = vpop.f32.mrf.mxu1  ;;  %v6605_v47 = vpop.f32.mrf.mxu0  ;;  %6700 = vmatmul.mubr.msk.bf16.gmra.mxu0 %vm2521_vm1, %v2379_v27  ;;  %v700_v27 = vld [vmem:[%s7064_s25 + $0xf90] sm:$0xff]  ;;  %v1221_v48 = vmul.f32 %v8874_v14, %v702_v36  ;;  %v1222_v49 = vmul.f32 %v8874_v14, %v703_v37  ;;  %v1995_v12 = vmax.f32 %v1483_v56, 0.0  ;;  %v1488_v40 = vadd.f32 %v8858_v0, %v969_v19 }
 0x1e1   : > { %5760 = vst [vmem:[%s7823_s10 + $0xc08] sm:$0xff] %v4867_v46  ;;  %5509 = vst [vmem:[%s7823_s10 + $0x430] sm:$0xff] %v6605_v47  ;;  %6703 = vmatprep.mubr.msk.bf16.mxu0 %vm2521_vm1, %v2380_v29  ;;  %v1219_v44 = vmul.f32 %v8874_v14, %v700_v27  ;;  %v2248_v46 = vmax.f32 %v1736_v25, 0.0  ;;  %v2249_v47 = vmax.f32 %v1737_v26, 0.0  ;;  %v2251_v26 = vmax.f32 %v1739_v63, 0.0 }
 0x1e2   : > { %v6861_v58 = vpop.f32.mrf.mxu1  ;;  %6956 = vmatmul.mubr.msk.bf16.gmra.mxu1 %vm2521_vm1, %v2507_v38  ;;  %v3856_v59 = vpop.f32.mrf.mxu0  ;;  %v1992_v38 = vmax.f32 %v1480_v51, 0.0  ;;  %v1994_v51 = vmax.f32 %v1482_v54, 0.0  ;;  %v1489_v2 = vadd.f32 %v8858_v0, %v970_v20  ;;  %v709_v54 = vld [vmem:[%s7064_s25 + $0xfd8] sm:$0xff] }
 0x1e3   : > { %5765 = vst [vmem:[%s7823_s10 + $0xc30] sm:$0xff] %v6861_v58  ;;  %5507 = vst [vmem:[%s7823_s10 + $0x420] sm:$0xff] %v3856_v59  ;;  %6959 = vmatprep.mubr.msk.bf16.mxu1 %vm2521_vm1, %v2508_v42  ;;  %v448_v58 = vld [vmem:[%s7064_s25 + $0x7b0] sm:$0xff]  ;;  %v449_v59 = vld [vmem:[%s7064_s25 + $0x7b8] sm:$0xff]  ;;  %v1738_v62 = vadd.f32 %v8858_v0, %v1219_v44  ;;  %v2512_v6 = vpack.c.bf16 %v2249_v47, %v2248_v46  ;;  %v1743_v46 = vadd.f32 %v8858_v0, %v1224_v55 }
 0x1e4   : > { %v4880_v7 = vpop.f32.mrf.mxu1  ;;  %v6606_v31 = vpop.f32.mrf.mxu0  ;;  %v2384_v34 = vpack.c.bf16 %v1993_v39, %v1992_v38  ;;  %v967_v13 = vmul.f32 %v8874_v14, %v448_v58  ;;  %v968_v3 = vmul.f32 %v8874_v14, %v449_v59  ;;  %v2385_v36 = vpack.c.bf16 %v1995_v12, %v1994_v51  ;;  %v454_v47 = vld [vmem:[%s7064_s25 + $0x7e0] sm:$0xff] }
 0x1e5   : > { %5763 = vst [vmem:[%s7823_s10 + $0xc20] sm:$0xff] %v4880_v7  ;;  %5510 = vst [vmem:[%s7823_s10 + $0x438] sm:$0xff] %v6606_v31  ;;  %v1740_v7 = vadd.f32 %v8858_v0, %v1221_v48  ;;  %v1741_v31 = vadd.f32 %v8858_v0, %v1222_v49  ;;  %v2250_v25 = vmax.f32 %v1738_v62, 0.0  ;;  %v455_v48 = vld [vmem:[%s7064_s25 + $0x7e8] sm:$0xff]  ;;  %v2001_v62 = vmax.f32 %v1489_v2, 0.0 }
 0x1e6   : > { %v6862_v15 = vpop.f32.mrf.mxu1  ;;  %v3859_v16 = vpop.f32.mrf.mxu0  ;;  %v1486_v37 = vadd.f32 %v8858_v0, %v967_v13  ;;  %v1487_v38 = vadd.f32 %v8858_v0, %v968_v3  ;;  %v973_v63 = vmul.f32 %v8874_v14, %v454_v47  ;;  %v974_v1 = vmul.f32 %v8874_v14, %v455_v48 }
 0x1e7   : > { %5766 = vst [vmem:[%s7823_s10 + $0xc38] sm:$0xff] %v6862_v15  ;;  %5508 = vst [vmem:[%s7823_s10 + $0x428] sm:$0xff] %v3859_v16  ;;  %v706_v15 = vld [vmem:[%s7064_s25 + $0xfc0] sm:$0xff]  ;;  %v707_v16 = vld [vmem:[%s7064_s25 + $0xfc8] sm:$0xff]  ;;  %v2513_v44 = vpack.c.bf16 %v2251_v26, %v2250_v25  ;;  %v1228_v9 = vmul.f32 %v8874_v14, %v709_v54 }
 0x1e8   : > { %v4883_v28 = vpop.f32.mrf.mxu1  ;;  %v6609_v29 = vpop.f32.mrf.mxu0  ;;  %6704 = vmatmul.mubr.msk.bf16.gmra.mxu0 %vm2521_vm1, %v2381_v8  ;;  %v704_v8 = vld [vmem:[%s7064_s25 + $0xfb0] sm:$0xff]  ;;  %v1225_v30 = vmul.f32 %v8874_v14, %v706_v15  ;;  %v1226_v32 = vmul.f32 %v8874_v14, %v707_v16  ;;  %v1999_v57 = vmax.f32 %v1487_v38, 0.0  ;;  %v1492_v19 = vadd.f32 %v8858_v0, %v973_v63 }
 0x1e9   : > { %5764 = vst [vmem:[%s7823_s10 + $0xc28] sm:$0xff] %v4883_v28  ;;  %5513 = vst [vmem:[%s7823_s10 + $0x450] sm:$0xff] %v6609_v29  ;;  %6707 = vmatprep.mubr.msk.bf16.mxu0 %vm2521_vm1, %v2382_v11  ;;  %v1223_v27 = vmul.f32 %v8874_v14, %v704_v8  ;;  %v2252_v28 = vmax.f32 %v1740_v7, 0.0  ;;  %v2253_v29 = vmax.f32 %v1741_v31, 0.0  ;;  %v2255_v31 = vmax.f32 %v1743_v46, 0.0 }
 0x1ea   : > { %v6865_v41 = vpop.f32.mrf.mxu1  ;;  %6960 = vmatmul.mubr.msk.bf16.gmra.mxu1 %vm2521_vm1, %v2509_v17  ;;  %v3872_v42 = vpop.f32.mrf.mxu0  ;;  %v1996_v17 = vmax.f32 %v1484_v24, 0.0  ;;  %v1998_v24 = vmax.f32 %v1486_v37, 0.0  ;;  %v1493_v20 = vadd.f32 %v8858_v0, %v974_v1 }
 0x1eb   : > { %5769 = vst [vmem:[%s7823_s10 + $0xc50] sm:$0xff] %v6865_v41  ;;  %5511 = vst [vmem:[%s7823_s10 + $0x440] sm:$0xff] %v3872_v42  ;;  %6963 = vmatprep.mubr.msk.bf16.mxu1 %vm2521_vm1, %v2510_v23  ;;  %v452_v41 = vld [vmem:[%s7064_s25 + $0x7d0] sm:$0xff]  ;;  %v453_v42 = vld [vmem:[%s7064_s25 + $0x7d8] sm:$0xff]  ;;  %v1742_v45 = vadd.f32 %v8858_v0, %v1223_v27  ;;  %v2514_v49 = vpack.c.bf16 %v2253_v29, %v2252_v28  ;;  %v1747_v28 = vadd.f32 %v8858_v0, %v1228_v9 }
 0x1ec   : > { %v4896_v50 = vpop.f32.mrf.mxu1  ;;  %v6610_v52 = vpop.f32.mrf.mxu0  ;;  %v2386_v39 = vpack.c.bf16 %v1997_v18, %v1996_v17  ;;  %v971_v58 = vmul.f32 %v8874_v14, %v452_v41  ;;  %v972_v59 = vmul.f32 %v8874_v14, %v453_v42  ;;  %v2387_v15 = vpack.c.bf16 %v1999_v57, %v1998_v24 }
 0x1ed   : > { %5767 = vst [vmem:[%s7823_s10 + $0xc40] sm:$0xff] %v4896_v50  ;;  %5514 = vst [vmem:[%s7823_s10 + $0x458] sm:$0xff] %v6610_v52  ;;  %v1744_v50 = vadd.f32 %v8858_v0, %v1225_v30  ;;  %v1745_v52 = vadd.f32 %v8858_v0, %v1226_v32  ;;  %v2254_v7 = vmax.f32 %v1742_v45, 0.0  ;;  %v2004_v41 = vmax.f32 %v1492_v19, 0.0  ;;  %v7005_v45 = vld [vmem:[%s9436_s1] ss:$0 sm:$0xff] }
 0x1ee   : > { %v6866_v22 = vpop.f32.mrf.mxu1  ;;  %v3875_v60 = vpop.f32.mrf.mxu0  ;;  %v1490_v16 = vadd.f32 %v8858_v0, %v971_v58  ;;  %v1491_v17 = vadd.f32 %v8858_v0, %v972_v59 }
 0x1ef   : > { %5770 = vst [vmem:[%s7823_s10 + $0xc58] sm:$0xff] %v6866_v22  ;;  %5512 = vst [vmem:[%s7823_s10 + $0x448] sm:$0xff] %v3875_v60  ;;  %v710_v22 = vld [vmem:[%s7064_s25 + $0xfe0] sm:$0xff]  ;;  %v711_v60 = vld [vmem:[%s7064_s25 + $0xfe8] sm:$0xff]  ;;  %v2515_v27 = vpack.c.bf16 %v2255_v31, %v2254_v7 }
 0x1f0   : > { %v4899_v10 = vpop.f32.mrf.mxu1  ;;  %v6613_v11 = vpop.f32.mrf.mxu0  ;;  %6708 = vmatmul.mubr.msk.bf16.gmra.mxu0 %vm2521_vm1, %v2383_v53  ;;  %v708_v53 = vld [vmem:[%s7064_s25 + $0xfd0] sm:$0xff]  ;;  %v1229_v51 = vmul.f32 %v8874_v14, %v710_v22  ;;  %v1230_v12 = vmul.f32 %v8874_v14, %v711_v60  ;;  %v2002_v38 = vmax.f32 %v1490_v16, 0.0 }
 0x1f1   : > { %5768 = vst [vmem:[%s7823_s10 + $0xc48] sm:$0xff] %v4899_v10  ;;  %5517 = vst [vmem:[%s7823_s10 + $0x470] sm:$0xff] %v6613_v11  ;;  %6711 = vmatprep.mubr.msk.bf16.mxu0 %vm2521_vm1, %v2384_v34  ;;  %v1227_v8 = vmul.f32 %v8874_v14, %v708_v53  ;;  %v2256_v10 = vmax.f32 %v1744_v50, 0.0  ;;  %v2257_v11 = vmax.f32 %v1745_v52, 0.0  ;;  %v7006_v53 = vld [vmem:[%s9437_s2] ss:$0 sm:$0xff] }
 0x1f2   : > { %v6869_v21 = vpop.f32.mrf.mxu1  ;;  %6964 = vmatmul.mubr.msk.bf16.gmra.mxu1 %vm2521_vm1, %v2511_v61  ;;  %v3888_v23 = vpop.f32.mrf.mxu0  ;;  %v2000_v61 = vmax.f32 %v1488_v40, 0.0  ;;  %v1748_v30 = vadd.f32 %v8858_v0, %v1229_v51  ;;  %v1749_v32 = vadd.f32 %v8858_v0, %v1230_v12 }
 0x1f3   : > { %5773 = vst [vmem:[%s7823_s10 + $0xc70] sm:$0xff] %v6869_v21  ;;  %5515 = vst [vmem:[%s7823_s10 + $0x460] sm:$0xff] %v3888_v23  ;;  %6967 = vmatprep.mubr.msk.bf16.mxu1 %vm2521_vm1, %v2512_v6  ;;  %v456_v21 = vld [vmem:[%s7064_s25 + $0x7f0] sm:$0xff]  ;;  %v457_v23 = vld [vmem:[%s7064_s25 + $0x7f8] sm:$0xff]  ;;  %v1746_v55 = vadd.f32 %v8858_v0, %v1227_v8  ;;  %v2516_v29 = vpack.c.bf16 %v2257_v11, %v2256_v10  ;;  %v2005_v0 = vmax.f32 %v1493_v20, 0.0 }
 0x1f4   : > { %v4912_v33 = vpop.f32.mrf.mxu1  ;;  %v6614_v35 = vpop.f32.mrf.mxu0  ;;  %v2388_v18 = vpack.c.bf16 %v2001_v62, %v2000_v61  ;;  %v975_v40 = vmul.f32 %v8874_v14, %v456_v21  ;;  %v976_v2 = vmul.f32 %v8874_v14, %v457_v23  ;;  %v2260_v47 = vmax.f32 %v1748_v30, 0.0 }
 0x1f5   : > { %5771 = vst [vmem:[%s7823_s10 + $0xc60] sm:$0xff] %v4912_v33  ;;  %5518 = vst [vmem:[%s7823_s10 + $0x478] sm:$0xff] %v6614_v35  ;;  %v712_v33 = vld [vmem:[%s7064_s25 + $0xff0] sm:$0xff]  ;;  %v713_v35 = vld [vmem:[%s7064_s25 + $0xff8] sm:$0xff]  ;;  %v2261_v48 = vmax.f32 %v1749_v32, 0.0 }
 0x1f6   : > { %v6870_v43 = vpop.f32.mrf.mxu1  ;;  %v3891_v4 = vpop.f32.mrf.mxu0  ;;  %v1231_v46 = vmul.f32 %v7005_v45, %v712_v33  ;;  %v1232_v14 = vmul.f32 %v7005_v45, %v713_v35  ;;  %v1494_v54 = vadd.f32 %v7006_v53, %v975_v40 }
 0x1f7   : > { %5774 = vst [vmem:[%s7823_s10 + $0xc78] sm:$0xff] %v6870_v43  ;;  %5516 = vst [vmem:[%s7823_s10 + $0x468] sm:$0xff] %v3891_v4  ;;  %v2258_v4 = vmax.f32 %v1746_v55, 0.0  ;;  %v2518_v60 = vpack.c.bf16 %v2261_v48, %v2260_v47 }
 0x1f8   : > { %v4915_v56 = vpop.f32.mrf.mxu1  ;;  %v6617_v34 = vpop.f32.mrf.mxu0  ;;  %6712 = vmatmul.mubr.msk.bf16.gmra.mxu0 %vm2521_vm1, %v2385_v36  ;;  %v1750_v59 = vadd.f32 %v7006_v53, %v1231_v46  ;;  %v1751_v22 = vadd.f32 %v7006_v53, %v1232_v14  ;;  %v2006_v63 = vmax.f32 %v1494_v54, 0.0 }
 0x1f9   : > { %5772 = vst [vmem:[%s7823_s10 + $0xc68] sm:$0xff] %v4915_v56  ;;  %5521 = vst [vmem:[%s7823_s10 + $0x490] sm:$0xff] %v6617_v34  ;;  %6715 = vmatprep.mubr.msk.bf16.mxu0 %vm2521_vm1, %v2386_v39  ;;  %v2003_v39 = vmax.f32 %v1491_v17, 0.0  ;;  %v1495_v56 = vadd.f32 %v7006_v53, %v976_v2  ;;  %v2390_v34 = vpack.c.bf16 %v2005_v0, %v2004_v41 }
 0x1fa   : > { %v6873_v5 = vpop.f32.mrf.mxu1  ;;  %6968 = vmatmul.mubr.msk.bf16.gmra.mxu1 %vm2521_vm1, %v2513_v44  ;;  %v3904_v6 = vpop.f32.mrf.mxu0  ;;  %v2259_v44 = vmax.f32 %v1747_v28, 0.0  ;;  %v2262_v7 = vmax.f32 %v1750_v59, 0.0  ;;  %v2263_v31 = vmax.f32 %v1751_v22, 0.0 }
 0x1fb   : > { %5777 = vst [vmem:[%s7823_s10 + $0xc90] sm:$0xff] %v6873_v5  ;;  %5519 = vst [vmem:[%s7823_s10 + $0x480] sm:$0xff] %v3904_v6  ;;  %6971 = vmatprep.mubr.msk.bf16.mxu1 %vm2521_vm1, %v2514_v49  ;;  %v2389_v52 = vpack.c.bf16 %v2003_v39, %v2002_v38  ;;  %v2007_v1 = vmax.f32 %v1495_v56, 0.0 }
 0x1fc   : > { %v4928_v13 = vpop.f32.mrf.mxu1  ;;  %v6618_v3 = vpop.f32.mrf.mxu0  ;;  %v2517_v58 = vpack.c.bf16 %v2259_v44, %v2258_v4  ;;  %v2519_v12 = vpack.c.bf16 %v2263_v31, %v2262_v7 }
 0x1fd   : > { %5775 = vst [vmem:[%s7823_s10 + $0xc80] sm:$0xff] %v4928_v13  ;;  %5522 = vst [vmem:[%s7823_s10 + $0x498] sm:$0xff] %v6618_v3  ;;  %v2391_v10 = vpack.c.bf16 %v2007_v1, %v2006_v63 }
 0x1fe   : > { %v6874_v25 = vpop.f32.mrf.mxu1  ;;  %v3907_v26 = vpop.f32.mrf.mxu0 }
 0x1ff   : > { %5778 = vst [vmem:[%s7823_s10 + $0xc98] sm:$0xff] %v6874_v25  ;;  %5520 = vst [vmem:[%s7823_s10 + $0x488] sm:$0xff] %v3907_v26 }
 0x200   : > { %v4931_v36 = vpop.f32.mrf.mxu1  ;;  %v6621_v37 = vpop.f32.mrf.mxu0  ;;  %6716 = vmatmul.mubr.msk.bf16.gmra.mxu0 %vm2521_vm1, %v2387_v15 }
 0x201   : > { %5776 = vst [vmem:[%s7823_s10 + $0xc88] sm:$0xff] %v4931_v36  ;;  %5525 = vst [vmem:[%s7823_s10 + $0x4b0] sm:$0xff] %v6621_v37  ;;  %6719 = vmatprep.mubr.msk.bf16.mxu0 %vm2521_vm1, %v2388_v18 }
 0x202   : > { %v6877_v42 = vpop.f32.mrf.mxu1  ;;  %6972 = vmatmul.mubr.msk.bf16.gmra.mxu1 %vm2521_vm1, %v2515_v27  ;;  %v3920_v43 = vpop.f32.mrf.mxu0 }
 0x203   : > { %5781 = vst [vmem:[%s7823_s10 + $0xcb0] sm:$0xff] %v6877_v42  ;;  %5523 = vst [vmem:[%s7823_s10 + $0x4a0] sm:$0xff] %v3920_v43  ;;  %6975 = vmatprep.mubr.msk.bf16.mxu1 %vm2521_vm1, %v2516_v29 }
 0x204   : > { %v4944_v49 = vpop.f32.mrf.mxu1  ;;  %v6622_v50 = vpop.f32.mrf.mxu0 }
 0x205   : > { %5779 = vst [vmem:[%s7823_s10 + $0xca0] sm:$0xff] %v4944_v49  ;;  %5526 = vst [vmem:[%s7823_s10 + $0x4b8] sm:$0xff] %v6622_v50 }
 0x206   : > { %v6878_v24 = vpop.f32.mrf.mxu1  ;;  %v3923_v57 = vpop.f32.mrf.mxu0 }
 0x207   : > { %5782 = vst [vmem:[%s7823_s10 + $0xcb8] sm:$0xff] %v6878_v24  ;;  %5524 = vst [vmem:[%s7823_s10 + $0x4a8] sm:$0xff] %v3923_v57 }
 0x208   : > { %v4947_v61 = vpop.f32.mrf.mxu1  ;;  %v6625_v62 = vpop.f32.mrf.mxu0  ;;  %6720 = vmatmul.mubr.msk.bf16.gmra.mxu0 %vm2521_vm1, %v2389_v52 }
 0x209   : > { %5780 = vst [vmem:[%s7823_s10 + $0xca8] sm:$0xff] %v4947_v61  ;;  %5529 = vst [vmem:[%s7823_s10 + $0x4d0] sm:$0xff] %v6625_v62  ;;  %6723 = vmatprep.mubr.msk.bf16.mxu0 %vm2521_vm1, %v2390_v34 }
 0x20a   : > { %v6881_v5 = vpop.f32.mrf.mxu1  ;;  %6976 = vmatmul.mubr.msk.bf16.gmra.mxu1 %vm2521_vm1, %v2517_v58  ;;  %v3936_v6 = vpop.f32.mrf.mxu0 }
 0x20b   : > { %5785 = vst [vmem:[%s7823_s10 + $0xcd0] sm:$0xff] %v6881_v5  ;;  %5527 = vst [vmem:[%s7823_s10 + $0x4c0] sm:$0xff] %v3936_v6  ;;  %6979 = vmatprep.mubr.msk.bf16.mxu1 %vm2521_vm1, %v2518_v60 }
 0x20c   : > { %v4960_v8 = vpop.f32.mrf.mxu1  ;;  %v6626_v9 = vpop.f32.mrf.mxu0 }
 0x20d   : > { %5783 = vst [vmem:[%s7823_s10 + $0xcc0] sm:$0xff] %v4960_v8  ;;  %5530 = vst [vmem:[%s7823_s10 + $0x4d8] sm:$0xff] %v6626_v9 }
 0x20e   : > { %v6882_v11 = vpop.f32.mrf.mxu1  ;;  %v3939_v51 = vpop.f32.mrf.mxu0 }
 0x20f   : > { %5786 = vst [vmem:[%s7823_s10 + $0xcd8] sm:$0xff] %v6882_v11  ;;  %5528 = vst [vmem:[%s7823_s10 + $0x4c8] sm:$0xff] %v3939_v51 }
 0x210   : > { %v4963_v13 = vpop.f32.mrf.mxu1  ;;  %v6629_v3 = vpop.f32.mrf.mxu0  ;;  %6724 = vmatmul.mubr.msk.bf16.gmra.mxu0 %vm2521_vm1, %v2391_v10 }
 0x211   : > { %5784 = vst [vmem:[%s7823_s10 + $0xcc8] sm:$0xff] %v4963_v13  ;;  %5533 = vst [vmem:[%s7823_s10 + $0x4f0] sm:$0xff] %v6629_v3 }
 0x212   : > { %v6885_v15 = vpop.f32.mrf.mxu1  ;;  %6980 = vmatmul.mubr.msk.bf16.gmra.mxu1 %vm2521_vm1, %v2519_v12  ;;  %v3952_v16 = vpop.f32.mrf.mxu0 }
 0x213   : > { %5789 = vst [vmem:[%s7823_s10 + $0xcf0] sm:$0xff] %v6885_v15  ;;  %5531 = vst [vmem:[%s7823_s10 + $0x4e0] sm:$0xff] %v3952_v16 }
 0x214   : > { %v4976_v17 = vpop.f32.mrf.mxu1  ;;  %v6630_v18 = vpop.f32.mrf.mxu0 }
 0x215   : > { %5787 = vst [vmem:[%s7823_s10 + $0xce0] sm:$0xff] %v4976_v17  ;;  %5534 = vst [vmem:[%s7823_s10 + $0x4f8] sm:$0xff] %v6630_v18 }
 0x216   : > { %v6886_v19 = vpop.f32.mrf.mxu1  ;;  %v3955_v20 = vpop.f32.mrf.mxu0 }
 0x217   : > { %5790 = vst [vmem:[%s7823_s10 + $0xcf8] sm:$0xff] %v6886_v19  ;;  %5532 = vst [vmem:[%s7823_s10 + $0x4e8] sm:$0xff] %v3955_v20 }
 0x218   : > { %v4979_v21 = vpop.f32.mrf.mxu1  ;;  %v6633_v23 = vpop.f32.mrf.mxu0 }
 0x219   : > { %5788 = vst [vmem:[%s7823_s10 + $0xce8] sm:$0xff] %v4979_v21  ;;  %5537 = vst [vmem:[%s7823_s10 + $0x510] sm:$0xff] %v6633_v23 }
 0x21a   : > { %v6889_v25 = vpop.f32.mrf.mxu1  ;;  %v3968_v26 = vpop.f32.mrf.mxu0 }
 0x21b   : > { %5793 = vst [vmem:[%s7823_s10 + $0xd10] sm:$0xff] %v6889_v25  ;;  %5535 = vst [vmem:[%s7823_s10 + $0x500] sm:$0xff] %v3968_v26 }
 0x21c   : > { %v4992_v27 = vpop.f32.mrf.mxu1  ;;  %v6634_v55 = vpop.f32.mrf.mxu0 }
 0x21d   : > { %5791 = vst [vmem:[%s7823_s10 + $0xd00] sm:$0xff] %v4992_v27  ;;  %5538 = vst [vmem:[%s7823_s10 + $0x518] sm:$0xff] %v6634_v55 }
 0x21e   : > { %v6890_v28 = vpop.f32.mrf.mxu1  ;;  %v3971_v29 = vpop.f32.mrf.mxu0 }
 0x21f   : > { %5794 = vst [vmem:[%s7823_s10 + $0xd18] sm:$0xff] %v6890_v28  ;;  %5536 = vst [vmem:[%s7823_s10 + $0x508] sm:$0xff] %v3971_v29 }
 0x220   : > { %v4995_v30 = vpop.f32.mrf.mxu1  ;;  %v6637_v32 = vpop.f32.mrf.mxu0 }
 0x221   : > { %5792 = vst [vmem:[%s7823_s10 + $0xd08] sm:$0xff] %v4995_v30  ;;  %5541 = vst [vmem:[%s7823_s10 + $0x530] sm:$0xff] %v6637_v32 }
 0x222   : > { %v6893_v33 = vpop.f32.mrf.mxu1  ;;  %v3984_v35 = vpop.f32.mrf.mxu0 }
 0x223   : > { %5797 = vst [vmem:[%s7823_s10 + $0xd30] sm:$0xff] %v6893_v33  ;;  %5539 = vst [vmem:[%s7823_s10 + $0x520] sm:$0xff] %v3984_v35 }
 0x224   : > { %v5008_v36 = vpop.f32.mrf.mxu1  ;;  %v6638_v37 = vpop.f32.mrf.mxu0 }
 0x225   : > { %5795 = vst [vmem:[%s7823_s10 + $0xd20] sm:$0xff] %v5008_v36  ;;  %5542 = vst [vmem:[%s7823_s10 + $0x538] sm:$0xff] %v6638_v37 }
 0x226   : > { %v6894_v38 = vpop.f32.mrf.mxu1  ;;  %v3987_v39 = vpop.f32.mrf.mxu0 }
 0x227   : > { %5798 = vst [vmem:[%s7823_s10 + $0xd38] sm:$0xff] %v6894_v38  ;;  %5540 = vst [vmem:[%s7823_s10 + $0x528] sm:$0xff] %v3987_v39 }
 0x228   : > { %v5011_v40 = vpop.f32.mrf.mxu1  ;;  %v6641_v2 = vpop.f32.mrf.mxu0 }
 0x229   : > { %5796 = vst [vmem:[%s7823_s10 + $0xd28] sm:$0xff] %v5011_v40  ;;  %5545 = vst [vmem:[%s7823_s10 + $0x550] sm:$0xff] %v6641_v2 }
 0x22a   : > { %v6897_v41 = vpop.f32.mrf.mxu1  ;;  %v4000_v0 = vpop.f32.mrf.mxu0 }
 0x22b   : > { %5801 = vst [vmem:[%s7823_s10 + $0xd50] sm:$0xff] %v6897_v41  ;;  %5543 = vst [vmem:[%s7823_s10 + $0x540] sm:$0xff] %v4000_v0 }
 0x22c   : > { %v5024_v42 = vpop.f32.mrf.mxu1  ;;  %v6642_v43 = vpop.f32.mrf.mxu0 }
 0x22d   : > { %5799 = vst [vmem:[%s7823_s10 + $0xd40] sm:$0xff] %v5024_v42  ;;  %5546 = vst [vmem:[%s7823_s10 + $0x558] sm:$0xff] %v6642_v43 }
 0x22e   : > { %v6898_v4 = vpop.f32.mrf.mxu1  ;;  %v4003_v44 = vpop.f32.mrf.mxu0 }
 0x22f   : > { %5802 = vst [vmem:[%s7823_s10 + $0xd58] sm:$0xff] %v6898_v4  ;;  %5544 = vst [vmem:[%s7823_s10 + $0x548] sm:$0xff] %v4003_v44 }
 0x230   : > { %v5027_v45 = vpop.f32.mrf.mxu1  ;;  %v6645_v46 = vpop.f32.mrf.mxu0 }
 0x231   : > { %5800 = vst [vmem:[%s7823_s10 + $0xd48] sm:$0xff] %v5027_v45  ;;  %5549 = vst [vmem:[%s7823_s10 + $0x570] sm:$0xff] %v6645_v46 }
 0x232   : > { %v6901_v14 = vpop.f32.mrf.mxu1  ;;  %v4016_v47 = vpop.f32.mrf.mxu0 }
 0x233   : > { %5805 = vst [vmem:[%s7823_s10 + $0xd70] sm:$0xff] %v6901_v14  ;;  %5547 = vst [vmem:[%s7823_s10 + $0x560] sm:$0xff] %v4016_v47 }
 0x234   : > { %v5040_v48 = vpop.f32.mrf.mxu1  ;;  %v6646_v49 = vpop.f32.mrf.mxu0 }
 0x235   : > { %5803 = vst [vmem:[%s7823_s10 + $0xd60] sm:$0xff] %v5040_v48  ;;  %5550 = vst [vmem:[%s7823_s10 + $0x578] sm:$0xff] %v6646_v49 }
 0x236   : > { %v6902_v50 = vpop.f32.mrf.mxu1  ;;  %v4019_v52 = vpop.f32.mrf.mxu0 }
 0x237   : > { %5806 = vst [vmem:[%s7823_s10 + $0xd78] sm:$0xff] %v6902_v50  ;;  %5548 = vst [vmem:[%s7823_s10 + $0x568] sm:$0xff] %v4019_v52 }
 0x238   : > { %v5043_v53 = vpop.f32.mrf.mxu1  ;;  %v6649_v54 = vpop.f32.mrf.mxu0 }
 0x239   : > { %5804 = vst [vmem:[%s7823_s10 + $0xd68] sm:$0xff] %v5043_v53  ;;  %5553 = vst [vmem:[%s7823_s10 + $0x590] sm:$0xff] %v6649_v54 }
 0x23a   : > { %v6905_v56 = vpop.f32.mrf.mxu1  ;;  %v4032_v34 = vpop.f32.mrf.mxu0 }
 0x23b   : > { %5809 = vst [vmem:[%s7823_s10 + $0xd90] sm:$0xff] %v6905_v56  ;;  %5551 = vst [vmem:[%s7823_s10 + $0x580] sm:$0xff] %v4032_v34 }
 0x23c   : > { %v5056_v24 = vpop.f32.mrf.mxu1  ;;  %v6650_v57 = vpop.f32.mrf.mxu0 }
 0x23d   : > { %5807 = vst [vmem:[%s7823_s10 + $0xd80] sm:$0xff] %v5056_v24  ;;  %5554 = vst [vmem:[%s7823_s10 + $0x598] sm:$0xff] %v6650_v57 }
 0x23e   : > { %v6906_v58 = vpop.f32.mrf.mxu1  ;;  %v4035_v59 = vpop.f32.mrf.mxu0 }
 0x23f   : > { %5810 = vst [vmem:[%s7823_s10 + $0xd98] sm:$0xff] %v6906_v58  ;;  %5552 = vst [vmem:[%s7823_s10 + $0x588] sm:$0xff] %v4035_v59 }
 0x240   : > { %v5059_v22 = vpop.f32.mrf.mxu1  ;;  %v6653_v60 = vpop.f32.mrf.mxu0 }
 0x241   : > { %5808 = vst [vmem:[%s7823_s10 + $0xd88] sm:$0xff] %v5059_v22  ;;  %5557 = vst [vmem:[%s7823_s10 + $0x5b0] sm:$0xff] %v6653_v60 }
 0x242   : > { %v6909_v61 = vpop.f32.mrf.mxu1  ;;  %v4048_v62 = vpop.f32.mrf.mxu0 }
 0x243   : > { %5813 = vst [vmem:[%s7823_s10 + $0xdb0] sm:$0xff] %v6909_v61  ;;  %5555 = vst [vmem:[%s7823_s10 + $0x5a0] sm:$0xff] %v4048_v62 }
 0x244   : > { %v5072_v63 = vpop.f32.mrf.mxu1  ;;  %v6654_v1 = vpop.f32.mrf.mxu0 }
 0x245   : > { %5811 = vst [vmem:[%s7823_s10 + $0xda0] sm:$0xff] %v5072_v63  ;;  %5558 = vst [vmem:[%s7823_s10 + $0x5b8] sm:$0xff] %v6654_v1 }
 0x246   : > { %v6910_v5 = vpop.f32.mrf.mxu1  ;;  %v4051_v6 = vpop.f32.mrf.mxu0 }
 0x247   : > { %5814 = vst [vmem:[%s7823_s10 + $0xdb8] sm:$0xff] %v6910_v5  ;;  %5556 = vst [vmem:[%s7823_s10 + $0x5a8] sm:$0xff] %v4051_v6 }
 0x248   : > { %v5075_v7 = vpop.f32.mrf.mxu1  ;;  %v6657_v31 = vpop.f32.mrf.mxu0 }
 0x249   : > { %5812 = vst [vmem:[%s7823_s10 + $0xda8] sm:$0xff] %v5075_v7  ;;  %5561 = vst [vmem:[%s7823_s10 + $0x5d0] sm:$0xff] %v6657_v31 }
 0x24a   : > { %v6913_v8 = vpop.f32.mrf.mxu1  ;;  %v4064_v9 = vpop.f32.mrf.mxu0 }
 0x24b   : > { %5817 = vst [vmem:[%s7823_s10 + $0xdd0] sm:$0xff] %v6913_v8  ;;  %5559 = vst [vmem:[%s7823_s10 + $0x5c0] sm:$0xff] %v4064_v9 }
 0x24c   : > { %v5088_v10 = vpop.f32.mrf.mxu1  ;;  %v6658_v11 = vpop.f32.mrf.mxu0 }
 0x24d   : > { %5815 = vst [vmem:[%s7823_s10 + $0xdc0] sm:$0xff] %v5088_v10  ;;  %5562 = vst [vmem:[%s7823_s10 + $0x5d8] sm:$0xff] %v6658_v11 }
 0x24e   : > { %v6914_v51 = vpop.f32.mrf.mxu1  ;;  %v4067_v12 = vpop.f32.mrf.mxu0 }
 0x24f   : > { %5818 = vst [vmem:[%s7823_s10 + $0xdd8] sm:$0xff] %v6914_v51  ;;  %5560 = vst [vmem:[%s7823_s10 + $0x5c8] sm:$0xff] %v4067_v12 }
 0x250   : > { %v5091_v13 = vpop.f32.mrf.mxu1  ;;  %v6661_v3 = vpop.f32.mrf.mxu0 }
 0x251   : > { %5816 = vst [vmem:[%s7823_s10 + $0xdc8] sm:$0xff] %v5091_v13  ;;  %5565 = vst [vmem:[%s7823_s10 + $0x5f0] sm:$0xff] %v6661_v3 }
 0x252   : > { %v6917_v15 = vpop.f32.mrf.mxu1  ;;  %v4080_v16 = vpop.f32.mrf.mxu0 }
 0x253   : > { %5821 = vst [vmem:[%s7823_s10 + $0xdf0] sm:$0xff] %v6917_v15  ;;  %5563 = vst [vmem:[%s7823_s10 + $0x5e0] sm:$0xff] %v4080_v16 }
 0x254   : > { %v5104_v17 = vpop.f32.mrf.mxu1  ;;  %v6662_v18 = vpop.f32.mrf.mxu0 }
 0x255   : > { %5819 = vst [vmem:[%s7823_s10 + $0xde0] sm:$0xff] %v5104_v17  ;;  %5566 = vst [vmem:[%s7823_s10 + $0x5f8] sm:$0xff] %v6662_v18 }
 0x256   : > { %v6918_v19 = vpop.f32.mrf.mxu1  ;;  %v4083_v20 = vpop.f32.mrf.mxu0 }
 0x257   : > { %5822 = vst [vmem:[%s7823_s10 + $0xdf8] sm:$0xff] %v6918_v19  ;;  %5564 = vst [vmem:[%s7823_s10 + $0x5e8] sm:$0xff] %v4083_v20 }
 0x258   : > { %v5107_v21 = vpop.f32.mrf.mxu1  ;;  %v6665_v23 = vpop.f32.mrf.mxu0 }
 0x259   : > { %5820 = vst [vmem:[%s7823_s10 + $0xde8] sm:$0xff] %v5107_v21  ;;  %5569 = vst [vmem:[%s7823_s10 + $0x610] sm:$0xff] %v6665_v23 }
 0x25a   : > { %v6921_v25 = vpop.f32.mrf.mxu1  ;;  %v4096_v26 = vpop.f32.mrf.mxu0 }
 0x25b   : > { %5825 = vst [vmem:[%s7823_s10 + $0xe10] sm:$0xff] %v6921_v25  ;;  %5567 = vst [vmem:[%s7823_s10 + $0x600] sm:$0xff] %v4096_v26 }
 0x25c   : > { %v5120_v27 = vpop.f32.mrf.mxu1  ;;  %v6666_v55 = vpop.f32.mrf.mxu0 }
 0x25d   : > { %5823 = vst [vmem:[%s7823_s10 + $0xe00] sm:$0xff] %v5120_v27  ;;  %5570 = vst [vmem:[%s7823_s10 + $0x618] sm:$0xff] %v6666_v55 }
 0x25e   : > { %v6922_v28 = vpop.f32.mrf.mxu1  ;;  %v4099_v29 = vpop.f32.mrf.mxu0 }
 0x25f   : > { %5826 = vst [vmem:[%s7823_s10 + $0xe18] sm:$0xff] %v6922_v28  ;;  %5568 = vst [vmem:[%s7823_s10 + $0x608] sm:$0xff] %v4099_v29 }
 0x260   : > { %v5123_v30 = vpop.f32.mrf.mxu1  ;;  %v6669_v32 = vpop.f32.mrf.mxu0 }
 0x261   : > { %5824 = vst [vmem:[%s7823_s10 + $0xe08] sm:$0xff] %v5123_v30  ;;  %5573 = vst [vmem:[%s7823_s10 + $0x630] sm:$0xff] %v6669_v32 }
 0x262   : > { %v6925_v33 = vpop.f32.mrf.mxu1  ;;  %v4112_v35 = vpop.f32.mrf.mxu0 }
 0x263   : > { %5829 = vst [vmem:[%s7823_s10 + $0xe30] sm:$0xff] %v6925_v33  ;;  %5571 = vst [vmem:[%s7823_s10 + $0x620] sm:$0xff] %v4112_v35 }
 0x264   : > { %v5136_v36 = vpop.f32.mrf.mxu1  ;;  %v6670_v37 = vpop.f32.mrf.mxu0 }
 0x265   : > { %5827 = vst [vmem:[%s7823_s10 + $0xe20] sm:$0xff] %v5136_v36  ;;  %5574 = vst [vmem:[%s7823_s10 + $0x638] sm:$0xff] %v6670_v37 }
 0x266   : > { %v6926_v38 = vpop.f32.mrf.mxu1  ;;  %v4115_v39 = vpop.f32.mrf.mxu0 }
 0x267   : > { %5830 = vst [vmem:[%s7823_s10 + $0xe38] sm:$0xff] %v6926_v38  ;;  %5572 = vst [vmem:[%s7823_s10 + $0x628] sm:$0xff] %v4115_v39 }
 0x268   : > { %v5139_v40 = vpop.f32.mrf.mxu1  ;;  %v6673_v2 = vpop.f32.mrf.mxu0 }
 0x269   : > { %5828 = vst [vmem:[%s7823_s10 + $0xe28] sm:$0xff] %v5139_v40  ;;  %5577 = vst [vmem:[%s7823_s10 + $0x650] sm:$0xff] %v6673_v2 }
 0x26a   : > { %v6929_v41 = vpop.f32.mrf.mxu1  ;;  %v4128_v0 = vpop.f32.mrf.mxu0 }
 0x26b   : > { %5833 = vst [vmem:[%s7823_s10 + $0xe50] sm:$0xff] %v6929_v41  ;;  %5575 = vst [vmem:[%s7823_s10 + $0x640] sm:$0xff] %v4128_v0 }
 0x26c   : > { %v5152_v42 = vpop.f32.mrf.mxu1  ;;  %v6674_v43 = vpop.f32.mrf.mxu0 }
 0x26d   : > { %5831 = vst [vmem:[%s7823_s10 + $0xe40] sm:$0xff] %v5152_v42  ;;  %5578 = vst [vmem:[%s7823_s10 + $0x658] sm:$0xff] %v6674_v43 }
 0x26e   : > { %v6930_v4 = vpop.f32.mrf.mxu1  ;;  %v4131_v44 = vpop.f32.mrf.mxu0 }
 0x26f   : > { %5834 = vst [vmem:[%s7823_s10 + $0xe58] sm:$0xff] %v6930_v4  ;;  %5576 = vst [vmem:[%s7823_s10 + $0x648] sm:$0xff] %v4131_v44 }
 0x270   : > { %v5155_v45 = vpop.f32.mrf.mxu1  ;;  %v6677_v46 = vpop.f32.mrf.mxu0 }
 0x271   : > { %5832 = vst [vmem:[%s7823_s10 + $0xe48] sm:$0xff] %v5155_v45  ;;  %5581 = vst [vmem:[%s7823_s10 + $0x670] sm:$0xff] %v6677_v46 }
 0x272   : > { %v6933_v14 = vpop.f32.mrf.mxu1  ;;  %v4144_v47 = vpop.f32.mrf.mxu0 }
 0x273   : > { %5837 = vst [vmem:[%s7823_s10 + $0xe70] sm:$0xff] %v6933_v14  ;;  %5579 = vst [vmem:[%s7823_s10 + $0x660] sm:$0xff] %v4144_v47 }
 0x274   : > { %v5168_v48 = vpop.f32.mrf.mxu1  ;;  %v6678_v49 = vpop.f32.mrf.mxu0 }
 0x275   : > { %5835 = vst [vmem:[%s7823_s10 + $0xe60] sm:$0xff] %v5168_v48  ;;  %5582 = vst [vmem:[%s7823_s10 + $0x678] sm:$0xff] %v6678_v49 }
 0x276   : > { %v6934_v50 = vpop.f32.mrf.mxu1  ;;  %v4147_v52 = vpop.f32.mrf.mxu0 }
 0x277   : > { %5838 = vst [vmem:[%s7823_s10 + $0xe78] sm:$0xff] %v6934_v50  ;;  %5580 = vst [vmem:[%s7823_s10 + $0x668] sm:$0xff] %v4147_v52 }
 0x278   : > { %v5171_v53 = vpop.f32.mrf.mxu1  ;;  %v6681_v54 = vpop.f32.mrf.mxu0 }
 0x279   : > { %5836 = vst [vmem:[%s7823_s10 + $0xe68] sm:$0xff] %v5171_v53  ;;  %5585 = vst [vmem:[%s7823_s10 + $0x690] sm:$0xff] %v6681_v54 }
 0x27a   : > { %v6937_v56 = vpop.f32.mrf.mxu1  ;;  %v4160_v34 = vpop.f32.mrf.mxu0 }
 0x27b   : > { %5841 = vst [vmem:[%s7823_s10 + $0xe90] sm:$0xff] %v6937_v56  ;;  %5583 = vst [vmem:[%s7823_s10 + $0x680] sm:$0xff] %v4160_v34 }
 0x27c   : > { %v5184_v24 = vpop.f32.mrf.mxu1  ;;  %v6682_v57 = vpop.f32.mrf.mxu0 }
 0x27d   : > { %5839 = vst [vmem:[%s7823_s10 + $0xe80] sm:$0xff] %v5184_v24  ;;  %5586 = vst [vmem:[%s7823_s10 + $0x698] sm:$0xff] %v6682_v57 }
 0x27e   : > { %v6938_v58 = vpop.f32.mrf.mxu1  ;;  %v4163_v59 = vpop.f32.mrf.mxu0 }
 0x27f   : > { %5842 = vst [vmem:[%s7823_s10 + $0xe98] sm:$0xff] %v6938_v58  ;;  %5584 = vst [vmem:[%s7823_s10 + $0x688] sm:$0xff] %v4163_v59 }
 0x280   : > { %v5187_v22 = vpop.f32.mrf.mxu1  ;;  %v6685_v60 = vpop.f32.mrf.mxu0 }
 0x281   : > { %5840 = vst [vmem:[%s7823_s10 + $0xe88] sm:$0xff] %v5187_v22  ;;  %5589 = vst [vmem:[%s7823_s10 + $0x6b0] sm:$0xff] %v6685_v60 }
 0x282   : > { %v6941_v61 = vpop.f32.mrf.mxu1  ;;  %v4176_v62 = vpop.f32.mrf.mxu0 }
 0x283   : > { %5845 = vst [vmem:[%s7823_s10 + $0xeb0] sm:$0xff] %v6941_v61  ;;  %5587 = vst [vmem:[%s7823_s10 + $0x6a0] sm:$0xff] %v4176_v62 }
 0x284   : > { %v5200_v63 = vpop.f32.mrf.mxu1  ;;  %v6686_v1 = vpop.f32.mrf.mxu0 }
 0x285   : > { %5843 = vst [vmem:[%s7823_s10 + $0xea0] sm:$0xff] %v5200_v63  ;;  %5590 = vst [vmem:[%s7823_s10 + $0x6b8] sm:$0xff] %v6686_v1 }
 0x286   : > { %v6942_v5 = vpop.f32.mrf.mxu1  ;;  %v4179_v6 = vpop.f32.mrf.mxu0 }
 0x287   : > { %5846 = vst [vmem:[%s7823_s10 + $0xeb8] sm:$0xff] %v6942_v5  ;;  %5588 = vst [vmem:[%s7823_s10 + $0x6a8] sm:$0xff] %v4179_v6 }
 0x288   : > { %v5203_v7 = vpop.f32.mrf.mxu1  ;;  %v6689_v31 = vpop.f32.mrf.mxu0 }
 0x289   : > { %5844 = vst [vmem:[%s7823_s10 + $0xea8] sm:$0xff] %v5203_v7  ;;  %5593 = vst [vmem:[%s7823_s10 + $0x6d0] sm:$0xff] %v6689_v31 }
 0x28a   : > { %v6945_v8 = vpop.f32.mrf.mxu1  ;;  %v4192_v9 = vpop.f32.mrf.mxu0 }
 0x28b   : > { %5849 = vst [vmem:[%s7823_s10 + $0xed0] sm:$0xff] %v6945_v8  ;;  %5591 = vst [vmem:[%s7823_s10 + $0x6c0] sm:$0xff] %v4192_v9 }
 0x28c   : > { %v5216_v10 = vpop.f32.mrf.mxu1  ;;  %v6690_v11 = vpop.f32.mrf.mxu0 }
 0x28d   : > { %5847 = vst [vmem:[%s7823_s10 + $0xec0] sm:$0xff] %v5216_v10  ;;  %5594 = vst [vmem:[%s7823_s10 + $0x6d8] sm:$0xff] %v6690_v11 }
 0x28e   : > { %v6946_v51 = vpop.f32.mrf.mxu1  ;;  %v4195_v12 = vpop.f32.mrf.mxu0 }
 0x28f   : > { %5850 = vst [vmem:[%s7823_s10 + $0xed8] sm:$0xff] %v6946_v51  ;;  %5592 = vst [vmem:[%s7823_s10 + $0x6c8] sm:$0xff] %v4195_v12 }
 0x290   : > { %v5219_v13 = vpop.f32.mrf.mxu1  ;;  %v6693_v3 = vpop.f32.mrf.mxu0 }
 0x291   : > { %5848 = vst [vmem:[%s7823_s10 + $0xec8] sm:$0xff] %v5219_v13  ;;  %5597 = vst [vmem:[%s7823_s10 + $0x6f0] sm:$0xff] %v6693_v3 }
 0x292   : > { %v6949_v15 = vpop.f32.mrf.mxu1  ;;  %v4208_v16 = vpop.f32.mrf.mxu0 }
 0x293   : > { %5853 = vst [vmem:[%s7823_s10 + $0xef0] sm:$0xff] %v6949_v15  ;;  %5595 = vst [vmem:[%s7823_s10 + $0x6e0] sm:$0xff] %v4208_v16 }
 0x294   : > { %v5232_v17 = vpop.f32.mrf.mxu1  ;;  %v6694_v18 = vpop.f32.mrf.mxu0 }
 0x295   : > { %5851 = vst [vmem:[%s7823_s10 + $0xee0] sm:$0xff] %v5232_v17  ;;  %5598 = vst [vmem:[%s7823_s10 + $0x6f8] sm:$0xff] %v6694_v18 }
 0x296   : > { %v6950_v19 = vpop.f32.mrf.mxu1  ;;  %v4211_v20 = vpop.f32.mrf.mxu0 }
 0x297   : > { %5854 = vst [vmem:[%s7823_s10 + $0xef8] sm:$0xff] %v6950_v19  ;;  %5596 = vst [vmem:[%s7823_s10 + $0x6e8] sm:$0xff] %v4211_v20 }
 0x298   : > { %v5235_v21 = vpop.f32.mrf.mxu1  ;;  %v6697_v23 = vpop.f32.mrf.mxu0 }
 0x299   : > { %5852 = vst [vmem:[%s7823_s10 + $0xee8] sm:$0xff] %v5235_v21  ;;  %5601 = vst [vmem:[%s7823_s10 + $0x710] sm:$0xff] %v6697_v23 }
 0x29a   : > { %v6953_v25 = vpop.f32.mrf.mxu1  ;;  %v4224_v26 = vpop.f32.mrf.mxu0 }
 0x29b   : > { %5857 = vst [vmem:[%s7823_s10 + $0xf10] sm:$0xff] %v6953_v25  ;;  %5599 = vst [vmem:[%s7823_s10 + $0x700] sm:$0xff] %v4224_v26 }
 0x29c   : > { %v5248_v27 = vpop.f32.mrf.mxu1  ;;  %v6698_v55 = vpop.f32.mrf.mxu0 }
 0x29d   : > { %5855 = vst [vmem:[%s7823_s10 + $0xf00] sm:$0xff] %v5248_v27  ;;  %5602 = vst [vmem:[%s7823_s10 + $0x718] sm:$0xff] %v6698_v55 }
 0x29e   : > { %v6954_v28 = vpop.f32.mrf.mxu1  ;;  %v4227_v29 = vpop.f32.mrf.mxu0 }
 0x29f   : > { %5858 = vst [vmem:[%s7823_s10 + $0xf18] sm:$0xff] %v6954_v28  ;;  %5600 = vst [vmem:[%s7823_s10 + $0x708] sm:$0xff] %v4227_v29 }
 0x2a0   : > { %v5251_v30 = vpop.f32.mrf.mxu1  ;;  %v6701_v32 = vpop.f32.mrf.mxu0 }
 0x2a1   : > { %5856 = vst [vmem:[%s7823_s10 + $0xf08] sm:$0xff] %v5251_v30  ;;  %5605 = vst [vmem:[%s7823_s10 + $0x730] sm:$0xff] %v6701_v32 }
 0x2a2   : > { %v6957_v33 = vpop.f32.mrf.mxu1  ;;  %v4240_v35 = vpop.f32.mrf.mxu0 }
 0x2a3   : > { %5861 = vst [vmem:[%s7823_s10 + $0xf30] sm:$0xff] %v6957_v33  ;;  %5603 = vst [vmem:[%s7823_s10 + $0x720] sm:$0xff] %v4240_v35 }
 0x2a4   : > { %v5264_v36 = vpop.f32.mrf.mxu1  ;;  %v6702_v37 = vpop.f32.mrf.mxu0 }
 0x2a5   : > { %5859 = vst [vmem:[%s7823_s10 + $0xf20] sm:$0xff] %v5264_v36  ;;  %5606 = vst [vmem:[%s7823_s10 + $0x738] sm:$0xff] %v6702_v37 }
 0x2a6   : > { %v6958_v38 = vpop.f32.mrf.mxu1  ;;  %v4243_v39 = vpop.f32.mrf.mxu0 }
 0x2a7   : > { %5862 = vst [vmem:[%s7823_s10 + $0xf38] sm:$0xff] %v6958_v38  ;;  %5604 = vst [vmem:[%s7823_s10 + $0x728] sm:$0xff] %v4243_v39 }
 0x2a8   : > { %v5267_v40 = vpop.f32.mrf.mxu1  ;;  %v6705_v2 = vpop.f32.mrf.mxu0 }
 0x2a9   : > { %5860 = vst [vmem:[%s7823_s10 + $0xf28] sm:$0xff] %v5267_v40  ;;  %5609 = vst [vmem:[%s7823_s10 + $0x750] sm:$0xff] %v6705_v2 }
 0x2aa   : > { %v6961_v41 = vpop.f32.mrf.mxu1  ;;  %v4256_v0 = vpop.f32.mrf.mxu0 }
 0x2ab   : > { %5865 = vst [vmem:[%s7823_s10 + $0xf50] sm:$0xff] %v6961_v41  ;;  %5607 = vst [vmem:[%s7823_s10 + $0x740] sm:$0xff] %v4256_v0 }
 0x2ac   : > { %v5280_v42 = vpop.f32.mrf.mxu1  ;;  %v6706_v43 = vpop.f32.mrf.mxu0 }
 0x2ad   : > { %5863 = vst [vmem:[%s7823_s10 + $0xf40] sm:$0xff] %v5280_v42  ;;  %5610 = vst [vmem:[%s7823_s10 + $0x758] sm:$0xff] %v6706_v43 }
 0x2ae   : > { %v6962_v4 = vpop.f32.mrf.mxu1  ;;  %v4259_v44 = vpop.f32.mrf.mxu0 }
 0x2af   : > { %5866 = vst [vmem:[%s7823_s10 + $0xf58] sm:$0xff] %v6962_v4  ;;  %5608 = vst [vmem:[%s7823_s10 + $0x748] sm:$0xff] %v4259_v44 }
 0x2b0   : > { %v5283_v45 = vpop.f32.mrf.mxu1  ;;  %v6709_v46 = vpop.f32.mrf.mxu0 }
 0x2b1   : > { %5864 = vst [vmem:[%s7823_s10 + $0xf48] sm:$0xff] %v5283_v45  ;;  %5613 = vst [vmem:[%s7823_s10 + $0x770] sm:$0xff] %v6709_v46 }
 0x2b2   : > { %v6965_v14 = vpop.f32.mrf.mxu1  ;;  %v4272_v47 = vpop.f32.mrf.mxu0 }
 0x2b3   : > { %5869 = vst [vmem:[%s7823_s10 + $0xf70] sm:$0xff] %v6965_v14  ;;  %5611 = vst [vmem:[%s7823_s10 + $0x760] sm:$0xff] %v4272_v47 }
 0x2b4   : > { %v5296_v48 = vpop.f32.mrf.mxu1  ;;  %v6710_v49 = vpop.f32.mrf.mxu0 }
 0x2b5   : > { %5867 = vst [vmem:[%s7823_s10 + $0xf60] sm:$0xff] %v5296_v48  ;;  %5614 = vst [vmem:[%s7823_s10 + $0x778] sm:$0xff] %v6710_v49 }
 0x2b6   : > { %v6966_v50 = vpop.f32.mrf.mxu1  ;;  %v4275_v52 = vpop.f32.mrf.mxu0 }
 0x2b7   : > { %5870 = vst [vmem:[%s7823_s10 + $0xf78] sm:$0xff] %v6966_v50  ;;  %5612 = vst [vmem:[%s7823_s10 + $0x768] sm:$0xff] %v4275_v52 }
 0x2b8   : > { %v5299_v53 = vpop.f32.mrf.mxu1  ;;  %v6713_v54 = vpop.f32.mrf.mxu0 }
 0x2b9   : > { %5868 = vst [vmem:[%s7823_s10 + $0xf68] sm:$0xff] %v5299_v53  ;;  %5617 = vst [vmem:[%s7823_s10 + $0x790] sm:$0xff] %v6713_v54 }
 0x2ba   : > { %v6969_v56 = vpop.f32.mrf.mxu1  ;;  %v4288_v34 = vpop.f32.mrf.mxu0 }
 0x2bb   : > { %5873 = vst [vmem:[%s7823_s10 + $0xf90] sm:$0xff] %v6969_v56  ;;  %5615 = vst [vmem:[%s7823_s10 + $0x780] sm:$0xff] %v4288_v34 }
 0x2bc   : > { %v5312_v24 = vpop.f32.mrf.mxu1  ;;  %v6714_v57 = vpop.f32.mrf.mxu0 }
 0x2bd   : > { %5871 = vst [vmem:[%s7823_s10 + $0xf80] sm:$0xff] %v5312_v24  ;;  %5618 = vst [vmem:[%s7823_s10 + $0x798] sm:$0xff] %v6714_v57 }
 0x2be   : > { %v6970_v58 = vpop.f32.mrf.mxu1  ;;  %v4291_v59 = vpop.f32.mrf.mxu0 }
 0x2bf   : > { %5874 = vst [vmem:[%s7823_s10 + $0xf98] sm:$0xff] %v6970_v58  ;;  %5616 = vst [vmem:[%s7823_s10 + $0x788] sm:$0xff] %v4291_v59 }
 0x2c0   : > { %v5315_v22 = vpop.f32.mrf.mxu1  ;;  %v6717_v60 = vpop.f32.mrf.mxu0 }
 0x2c1   : > { %5872 = vst [vmem:[%s7823_s10 + $0xf88] sm:$0xff] %v5315_v22  ;;  %5621 = vst [vmem:[%s7823_s10 + $0x7b0] sm:$0xff] %v6717_v60 }
 0x2c2   : > { %v6973_v61 = vpop.f32.mrf.mxu1  ;;  %v4304_v62 = vpop.f32.mrf.mxu0 }
 0x2c3   : > { %5877 = vst [vmem:[%s7823_s10 + $0xfb0] sm:$0xff] %v6973_v61  ;;  %5619 = vst [vmem:[%s7823_s10 + $0x7a0] sm:$0xff] %v4304_v62 }
 0x2c4   : > { %v5328_v63 = vpop.f32.mrf.mxu1  ;;  %v6718_v1 = vpop.f32.mrf.mxu0 }
 0x2c5   : > { %5875 = vst [vmem:[%s7823_s10 + $0xfa0] sm:$0xff] %v5328_v63  ;;  %5622 = vst [vmem:[%s7823_s10 + $0x7b8] sm:$0xff] %v6718_v1 }
 0x2c6   : > { %v6974_v5 = vpop.f32.mrf.mxu1  ;;  %v4307_v6 = vpop.f32.mrf.mxu0 }
 0x2c7   : > { %5878 = vst [vmem:[%s7823_s10 + $0xfb8] sm:$0xff] %v6974_v5  ;;  %5620 = vst [vmem:[%s7823_s10 + $0x7a8] sm:$0xff] %v4307_v6 }
 0x2c8   : > { %v5331_v7 = vpop.f32.mrf.mxu1  ;;  %v6721_v31 = vpop.f32.mrf.mxu0 }
 0x2c9   : > { %5876 = vst [vmem:[%s7823_s10 + $0xfa8] sm:$0xff] %v5331_v7  ;;  %5625 = vst [vmem:[%s7823_s10 + $0x7d0] sm:$0xff] %v6721_v31 }
 0x2ca   : > { %v6977_v8 = vpop.f32.mrf.mxu1  ;;  %v4320_v9 = vpop.f32.mrf.mxu0 }
 0x2cb   : > { %5881 = vst [vmem:[%s7823_s10 + $0xfd0] sm:$0xff] %v6977_v8  ;;  %5623 = vst [vmem:[%s7823_s10 + $0x7c0] sm:$0xff] %v4320_v9 }
 0x2cc   : > { %v5344_v10 = vpop.f32.mrf.mxu1  ;;  %v6722_v11 = vpop.f32.mrf.mxu0 }
 0x2cd   : > { %5879 = vst [vmem:[%s7823_s10 + $0xfc0] sm:$0xff] %v5344_v10  ;;  %5626 = vst [vmem:[%s7823_s10 + $0x7d8] sm:$0xff] %v6722_v11 }
 0x2ce   : > { %v6978_v51 = vpop.f32.mrf.mxu1  ;;  %v4323_v12 = vpop.f32.mrf.mxu0 }
 0x2cf   : > { %5882 = vst [vmem:[%s7823_s10 + $0xfd8] sm:$0xff] %v6978_v51  ;;  %5624 = vst [vmem:[%s7823_s10 + $0x7c8] sm:$0xff] %v4323_v12 }
 0x2d0   : > { %v5347_v13 = vpop.f32.mrf.mxu1  ;;  %v6725_v3 = vpop.f32.mrf.mxu0 }
 0x2d1   : > { %5880 = vst [vmem:[%s7823_s10 + $0xfc8] sm:$0xff] %v5347_v13  ;;  %5629 = vst [vmem:[%s7823_s10 + $0x7f0] sm:$0xff] %v6725_v3 }
 0x2d2   : > { %v6981_v15 = vpop.f32.mrf.mxu1  ;;  %v4336_v16 = vpop.f32.mrf.mxu0 }
 0x2d3   : > { %5885 = vst [vmem:[%s7823_s10 + $0xff0] sm:$0xff] %v6981_v15  ;;  %5627 = vst [vmem:[%s7823_s10 + $0x7e0] sm:$0xff] %v4336_v16 }
 0x2d4   : > { %v5360_v17 = vpop.f32.mrf.mxu1  ;;  %v6726_v18 = vpop.f32.mrf.mxu0 }
 0x2d5   : > { %5883 = vst [vmem:[%s7823_s10 + $0xfe0] sm:$0xff] %v5360_v17  ;;  %5630 = vst [vmem:[%s7823_s10 + $0x7f8] sm:$0xff] %v6726_v18 }
 0x2d6   : > { %v6982_v19 = vpop.f32.mrf.mxu1  ;;  %v4339_v20 = vpop.f32.mrf.mxu0 }
 0x2d7   : > { %5886 = vst [vmem:[%s7823_s10 + $0xff8] sm:$0xff] %v6982_v19  ;;  %5628 = vst [vmem:[%s7823_s10 + $0x7e8] sm:$0xff] %v4339_v20 }
 0x2d8   : > { %v5363_v21 = vpop.f32.mrf.mxu1 }
 0x2d9   : > { %5884 = vst [vmem:[%s7823_s10 + $0xfe8] sm:$0xff] %v5363_v21 }
 0x2da PF: > { %s14_s15 = sadd.s32 1, %s7013_s15  }
 0x2db   : > { %p11_p4 = scmp.ge.s32.totalorder %s14_s15, 4  }
 0x2dd   :  { %13 = sbr.rel (!%p11_p4) target bundleno = 1 (0x1), region = 66 }

// kernel: generator_forward.23
= control target key start
LH: loop header
LB: loop body
LE: loop exit
PB: predicated region body
PF: predicated region fallthrough
CT: control target
= control target key end

     0   :  { %s451_s6 = smov 0   ;;  %s571_s0 = inlined_call_operand.vmem [shape: f32[768,128], index: 0, kind: input, shape index: {}]   ;;  %s572_s1 = inlined_call_operand.vmem [shape: f32[768,128], index: 1, kind: output, shape index: {}]  }
   0x1 LB: > { %s320_s7 = sadd.s32 4294967295, %s439_s6   ;;  %p324_p0 = scmp.ge.s32.totalorder %s439_s6, 1  ;;  %s439_s6 = sphi %s451_s6, %s11_s6  }
   0x2   : > { %p88_p1 = scmp.lt.s32.totalorder %s439_s6, 3 }
   0x4   : > { %p89_p2 = pnand %p324_p0, %p88_p1 }
   0x5   : > { %s108_s8 = smul.u32 (!%p89_p2), 48, %s320_s7 }
   0x6   : > { %92 = sbr.rel (%p89_p2) target bundleno = 77 (0x4d), region = 24 }
   0x7   : > { %p109_p3 = scmp.lt.s32.totalorder (!%p89_p2), %s108_s8, 95 }
   0xb   : > { %s574_s8 = smov (!%p109_p3, %s108_s8), 95 }
   0xc   : > { %s325_s9 = sshll.u32 %s574_s8, 3 }
   0xd   : > { %s465_s12 = scalar_lea.vmem %s571_s0, %s325_s9  ;;  %s484_s15 = scalar_lea.vmem %s572_s1, %s325_s9 }
   0xe   : > { %v120_v0 = vld [vmem:[%s465_s12] sm:$0xff]  ;;  %v121_v1 = vld [vmem:[%s465_s12 + $0x8] sm:$0xff]  ;;  %v122_v2 = vld [vmem:[%s465_s12 + $0x10] sm:$0xff] }
   0xf   : > { %337 = vtanh.f32 %v120_v0  ;;  %v123_v3 = vld [vmem:[%s465_s12 + $0x18] sm:$0xff]  ;;  %v124_v4 = vld [vmem:[%s465_s12 + $0x20] sm:$0xff]  ;;  %v125_v5 = vld [vmem:[%s465_s12 + $0x28] sm:$0xff] }
  0x10   : > { %339 = vtanh.f32 %v121_v1  ;;  %v126_v6 = vld [vmem:[%s465_s12 + $0x30] sm:$0xff]  ;;  %v127_v7 = vld [vmem:[%s465_s12 + $0x38] sm:$0xff]  ;;  %v128_v8 = vld [vmem:[%s465_s12 + $0x40] sm:$0xff] }
  0x11   : > { %341 = vtanh.f32 %v122_v2  ;;  %v129_v9 = vld [vmem:[%s465_s12 + $0x48] sm:$0xff]  ;;  %v130_v10 = vld [vmem:[%s465_s12 + $0x50] sm:$0xff]  ;;  %v131_v11 = vld [vmem:[%s465_s12 + $0x58] sm:$0xff] }
  0x12   : > { %343 = vtanh.f32 %v123_v3  ;;  %v132_v12 = vld [vmem:[%s465_s12 + $0x60] sm:$0xff]  ;;  %v133_v13 = vld [vmem:[%s465_s12 + $0x68] sm:$0xff]  ;;  %v134_v14 = vld [vmem:[%s465_s12 + $0x70] sm:$0xff] }
  0x13   : > { %345 = vtanh.f32 %v124_v4  ;;  %v135_v15 = vld [vmem:[%s465_s12 + $0x78] sm:$0xff]  ;;  %v136_v17 = vld [vmem:[%s465_s12 + $0x80] sm:$0xff]  ;;  %v137_v19 = vld [vmem:[%s465_s12 + $0x88] sm:$0xff] }
  0x14   : > { %347 = vtanh.f32 %v125_v5  ;;  %v138_v21 = vld [vmem:[%s465_s12 + $0x90] sm:$0xff]  ;;  %v139_v23 = vld [vmem:[%s465_s12 + $0x98] sm:$0xff]  ;;  %v140_v25 = vld [vmem:[%s465_s12 + $0xa0] sm:$0xff] }
  0x15   : > { %349 = vtanh.f32 %v126_v6  ;;  %v141_v27 = vld [vmem:[%s465_s12 + $0xa8] sm:$0xff]  ;;  %v142_v29 = vld [vmem:[%s465_s12 + $0xb0] sm:$0xff]  ;;  %v143_v31 = vld [vmem:[%s465_s12 + $0xb8] sm:$0xff] }
  0x16   : > { %351 = vtanh.f32 %v127_v7  ;;  %v144_v33 = vld [vmem:[%s465_s12 + $0xc0] sm:$0xff]  ;;  %v145_v35 = vld [vmem:[%s465_s12 + $0xc8] sm:$0xff]  ;;  %v146_v37 = vld [vmem:[%s465_s12 + $0xd0] sm:$0xff] }
  0x17   : > { %353 = vtanh.f32 %v128_v8  ;;  %v147_v39 = vld [vmem:[%s465_s12 + $0xd8] sm:$0xff]  ;;  %v148_v41 = vld [vmem:[%s465_s12 + $0xe0] sm:$0xff]  ;;  %v149_v43 = vld [vmem:[%s465_s12 + $0xe8] sm:$0xff] }
  0x18   : > { %355 = vtanh.f32 %v129_v9  ;;  %v150_v45 = vld [vmem:[%s465_s12 + $0xf0] sm:$0xff]  ;;  %v151_v47 = vld [vmem:[%s465_s12 + $0xf8] sm:$0xff]  ;;  %v152_v49 = vld [vmem:[%s465_s12 + $0x100] sm:$0xff] }
  0x19   : > { %357 = vtanh.f32 %v130_v10  ;;  %v153_v51 = vld [vmem:[%s465_s12 + $0x108] sm:$0xff]  ;;  %v154_v53 = vld [vmem:[%s465_s12 + $0x110] sm:$0xff]  ;;  %v155_v55 = vld [vmem:[%s465_s12 + $0x118] sm:$0xff] }
  0x1a   : > { %359 = vtanh.f32 %v131_v11  ;;  %v156_v57 = vld [vmem:[%s465_s12 + $0x120] sm:$0xff]  ;;  %v157_v59 = vld [vmem:[%s465_s12 + $0x128] sm:$0xff]  ;;  %v158_v61 = vld [vmem:[%s465_s12 + $0x130] sm:$0xff] }
  0x1b   : > { %361 = vtanh.f32 %v132_v12  ;;  %v159_v63 = vld [vmem:[%s465_s12 + $0x138] sm:$0xff]  ;;  %v160_v1 = vld [vmem:[%s465_s12 + $0x140] sm:$0xff]  ;;  %v161_v3 = vld [vmem:[%s465_s12 + $0x148] sm:$0xff] }
  0x1c   : > { %v338_v16 = vpop.eup %337  ;;  %363 = vtanh.f32 %v133_v13  ;;  %v162_v5 = vld [vmem:[%s465_s12 + $0x150] sm:$0xff]  ;;  %v163_v7 = vld [vmem:[%s465_s12 + $0x158] sm:$0xff]  ;;  %v164_v9 = vld [vmem:[%s465_s12 + $0x160] sm:$0xff] }
  0x1d   : > { %v340_v18 = vpop.eup %339  ;;  %216 = vst [vmem:[%s484_s15] sm:$0xff] %v338_v16  ;;  %365 = vtanh.f32 %v134_v14  ;;  %v165_v11 = vld [vmem:[%s465_s12 + $0x168] sm:$0xff]  ;;  %v166_v13 = vld [vmem:[%s465_s12 + $0x170] sm:$0xff] }
  0x1e   : > { %v342_v20 = vpop.eup %341  ;;  %217 = vst [vmem:[%s484_s15 + $0x8] sm:$0xff] %v340_v18  ;;  %367 = vtanh.f32 %v135_v15  ;;  %v167_v15 = vld [vmem:[%s465_s12 + $0x178] sm:$0xff] }
  0x1f   : > { %v344_v22 = vpop.eup %343  ;;  %218 = vst [vmem:[%s484_s15 + $0x10] sm:$0xff] %v342_v20  ;;  %369 = vtanh.f32 %v136_v17 }
  0x20   : > { %v346_v24 = vpop.eup %345  ;;  %219 = vst [vmem:[%s484_s15 + $0x18] sm:$0xff] %v344_v22  ;;  %371 = vtanh.f32 %v137_v19 }
  0x21   : > { %v348_v26 = vpop.eup %347  ;;  %220 = vst [vmem:[%s484_s15 + $0x20] sm:$0xff] %v346_v24  ;;  %373 = vtanh.f32 %v138_v21 }
  0x22   : > { %v350_v28 = vpop.eup %349  ;;  %221 = vst [vmem:[%s484_s15 + $0x28] sm:$0xff] %v348_v26  ;;  %375 = vtanh.f32 %v139_v23 }
  0x23   : > { %v352_v30 = vpop.eup %351  ;;  %222 = vst [vmem:[%s484_s15 + $0x30] sm:$0xff] %v350_v28  ;;  %377 = vtanh.f32 %v140_v25 }
  0x24   : > { %v354_v32 = vpop.eup %353  ;;  %223 = vst [vmem:[%s484_s15 + $0x38] sm:$0xff] %v352_v30  ;;  %379 = vtanh.f32 %v141_v27 }
  0x25   : > { %v356_v34 = vpop.eup %355  ;;  %224 = vst [vmem:[%s484_s15 + $0x40] sm:$0xff] %v354_v32  ;;  %381 = vtanh.f32 %v142_v29 }
  0x26   : > { %v358_v36 = vpop.eup %357  ;;  %225 = vst [vmem:[%s484_s15 + $0x48] sm:$0xff] %v356_v34  ;;  %383 = vtanh.f32 %v143_v31 }
  0x27   : > { %v360_v38 = vpop.eup %359  ;;  %226 = vst [vmem:[%s484_s15 + $0x50] sm:$0xff] %v358_v36  ;;  %385 = vtanh.f32 %v144_v33 }
  0x28   : > { %v362_v40 = vpop.eup %361  ;;  %227 = vst [vmem:[%s484_s15 + $0x58] sm:$0xff] %v360_v38  ;;  %387 = vtanh.f32 %v145_v35 }
  0x29   : > { %v364_v42 = vpop.eup %363  ;;  %228 = vst [vmem:[%s484_s15 + $0x60] sm:$0xff] %v362_v40  ;;  %389 = vtanh.f32 %v146_v37 }
  0x2a   : > { %v366_v44 = vpop.eup %365  ;;  %229 = vst [vmem:[%s484_s15 + $0x68] sm:$0xff] %v364_v42  ;;  %391 = vtanh.f32 %v147_v39 }
  0x2b   : > { %v368_v46 = vpop.eup %367  ;;  %230 = vst [vmem:[%s484_s15 + $0x70] sm:$0xff] %v366_v44  ;;  %393 = vtanh.f32 %v148_v41 }
  0x2c   : > { %v370_v48 = vpop.eup %369  ;;  %231 = vst [vmem:[%s484_s15 + $0x78] sm:$0xff] %v368_v46  ;;  %395 = vtanh.f32 %v149_v43 }
  0x2d   : > { %v372_v50 = vpop.eup %371  ;;  %232 = vst [vmem:[%s484_s15 + $0x80] sm:$0xff] %v370_v48  ;;  %397 = vtanh.f32 %v150_v45 }
  0x2e   : > { %v374_v52 = vpop.eup %373  ;;  %233 = vst [vmem:[%s484_s15 + $0x88] sm:$0xff] %v372_v50  ;;  %399 = vtanh.f32 %v151_v47 }
  0x2f   : > { %v376_v54 = vpop.eup %375  ;;  %234 = vst [vmem:[%s484_s15 + $0x90] sm:$0xff] %v374_v52  ;;  %401 = vtanh.f32 %v152_v49 }
  0x30   : > { %v378_v56 = vpop.eup %377  ;;  %235 = vst [vmem:[%s484_s15 + $0x98] sm:$0xff] %v376_v54  ;;  %403 = vtanh.f32 %v153_v51 }
  0x31   : > { %v380_v58 = vpop.eup %379  ;;  %236 = vst [vmem:[%s484_s15 + $0xa0] sm:$0xff] %v378_v56  ;;  %405 = vtanh.f32 %v154_v53 }
  0x32   : > { %v382_v60 = vpop.eup %381  ;;  %237 = vst [vmem:[%s484_s15 + $0xa8] sm:$0xff] %v380_v58  ;;  %407 = vtanh.f32 %v155_v55 }
  0x33   : > { %v384_v62 = vpop.eup %383  ;;  %238 = vst [vmem:[%s484_s15 + $0xb0] sm:$0xff] %v382_v60  ;;  %409 = vtanh.f32 %v156_v57 }
  0x34   : > { %v386_v0 = vpop.eup %385  ;;  %239 = vst [vmem:[%s484_s15 + $0xb8] sm:$0xff] %v384_v62  ;;  %411 = vtanh.f32 %v157_v59 }
  0x35   : > { %v388_v2 = vpop.eup %387  ;;  %240 = vst [vmem:[%s484_s15 + $0xc0] sm:$0xff] %v386_v0  ;;  %413 = vtanh.f32 %v158_v61 }
  0x36   : > { %v390_v4 = vpop.eup %389  ;;  %241 = vst [vmem:[%s484_s15 + $0xc8] sm:$0xff] %v388_v2  ;;  %415 = vtanh.f32 %v159_v63 }
  0x37   : > { %v392_v6 = vpop.eup %391  ;;  %242 = vst [vmem:[%s484_s15 + $0xd0] sm:$0xff] %v390_v4  ;;  %417 = vtanh.f32 %v160_v1 }
  0x38   : > { %v394_v8 = vpop.eup %393  ;;  %243 = vst [vmem:[%s484_s15 + $0xd8] sm:$0xff] %v392_v6  ;;  %419 = vtanh.f32 %v161_v3 }
  0x39   : > { %v396_v10 = vpop.eup %395  ;;  %244 = vst [vmem:[%s484_s15 + $0xe0] sm:$0xff] %v394_v8  ;;  %421 = vtanh.f32 %v162_v5 }
  0x3a   : > { %v398_v12 = vpop.eup %397  ;;  %245 = vst [vmem:[%s484_s15 + $0xe8] sm:$0xff] %v396_v10  ;;  %423 = vtanh.f32 %v163_v7 }
  0x3b   : > { %v400_v14 = vpop.eup %399  ;;  %246 = vst [vmem:[%s484_s15 + $0xf0] sm:$0xff] %v398_v12  ;;  %425 = vtanh.f32 %v164_v9 }
  0x3c   : > { %v402_v16 = vpop.eup %401  ;;  %247 = vst [vmem:[%s484_s15 + $0xf8] sm:$0xff] %v400_v14  ;;  %427 = vtanh.f32 %v165_v11 }
  0x3d   : > { %v404_v17 = vpop.eup %403  ;;  %248 = vst [vmem:[%s484_s15 + $0x100] sm:$0xff] %v402_v16  ;;  %429 = vtanh.f32 %v166_v13 }
  0x3e   : > { %v406_v18 = vpop.eup %405  ;;  %249 = vst [vmem:[%s484_s15 + $0x108] sm:$0xff] %v404_v17  ;;  %431 = vtanh.f32 %v167_v15 }
  0x3f   : > { %v408_v19 = vpop.eup %407  ;;  %250 = vst [vmem:[%s484_s15 + $0x110] sm:$0xff] %v406_v18 }
  0x40   : > { %v410_v20 = vpop.eup %409  ;;  %251 = vst [vmem:[%s484_s15 + $0x118] sm:$0xff] %v408_v19 }
  0x41   : > { %v412_v21 = vpop.eup %411  ;;  %252 = vst [vmem:[%s484_s15 + $0x120] sm:$0xff] %v410_v20 }
  0x42   : > { %v414_v22 = vpop.eup %413  ;;  %253 = vst [vmem:[%s484_s15 + $0x128] sm:$0xff] %v412_v21 }
  0x43   : > { %v416_v23 = vpop.eup %415  ;;  %254 = vst [vmem:[%s484_s15 + $0x130] sm:$0xff] %v414_v22 }
  0x44   : > { %v418_v24 = vpop.eup %417  ;;  %255 = vst [vmem:[%s484_s15 + $0x138] sm:$0xff] %v416_v23 }
  0x45   : > { %v420_v25 = vpop.eup %419  ;;  %256 = vst [vmem:[%s484_s15 + $0x140] sm:$0xff] %v418_v24 }
  0x46   : > { %v422_v26 = vpop.eup %421  ;;  %257 = vst [vmem:[%s484_s15 + $0x148] sm:$0xff] %v420_v25 }
  0x47   : > { %v424_v27 = vpop.eup %423  ;;  %258 = vst [vmem:[%s484_s15 + $0x150] sm:$0xff] %v422_v26 }
  0x48   : > { %v426_v28 = vpop.eup %425  ;;  %259 = vst [vmem:[%s484_s15 + $0x158] sm:$0xff] %v424_v27 }
  0x49   : > { %v428_v29 = vpop.eup %427  ;;  %260 = vst [vmem:[%s484_s15 + $0x160] sm:$0xff] %v426_v28 }
  0x4a   : > { %v430_v30 = vpop.eup %429  ;;  %261 = vst [vmem:[%s484_s15 + $0x168] sm:$0xff] %v428_v29 }
  0x4b   : > { %v432_v31 = vpop.eup %431  ;;  %262 = vst [vmem:[%s484_s15 + $0x170] sm:$0xff] %v430_v30 }
  0x4c   : > { %263 = vst [vmem:[%s484_s15 + $0x178] sm:$0xff] %v432_v31 }
  0x4d PF: > { %s11_s6 = sadd.s32 1, %s439_s6  }
  0x4e   : > { %p8_p4 = scmp.ge.s32.totalorder %s11_s6, 4  }
  0x50   :  { %10 = sbr.rel (!%p8_p4) target bundleno = 1 (0x1), region = 54 }

</bundles_post_ra>
